<compile_context>
chip_gen: v7x
topology: tpu7x:2x2x1
jax: 0.10.0
libtpu: 0.0.40
codegen_flags: <defaults>
</compile_context>

<pallas_src>
import functools

import numpy as np

import jax
import jax.numpy as jnp
from jax.experimental import pallas as pl
from jax.experimental.pallas import tpu as pltpu


_STAGE_KEYS = ("inc", "down1", "down2", "down3", "down4")


# ------------------------------ fused encoder kernel ------------------------------

def _encoder_kernel(*refs, stages):
    # refs layout:
    #   [x_flat] + [w, scale, shift] * (2 * n_stages) + [mask] * n_stages
    #   + [pool_scatter] * (n_stages - 1)            (inputs)
    #   + [out] * n_stages                           (outputs)
    #   + [col_scratch, pad_scratch]                 (scratch)
    n_stages = len(stages)
    pos = 1
    x_ref = refs[0]
    conv_refs = []
    for _ in range(2 * n_stages):
        conv_refs.append(refs[pos:pos + 3])
        pos += 3
    mask_refs = refs[pos:pos + n_stages]
    pos += n_stages
    pool_refs = refs[pos:pos + n_stages - 1]
    pos += n_stages - 1
    out_refs = refs[pos:pos + n_stages]
    pos += n_stages
    col_ref = refs[pos]        # (max 9*Cin, max M) im2col scratch
    pad_ref = refs[pos + 1]    # (max C,     max L) padded-activation scratch

    def conv_bn_relu(src_ref, cin, wp, m, w_ref, sc_ref, sh_ref):
        # Build the im2col buffer: 9 static lane-dense slab copies, then one
        # fat-K MXU matmul (Cout, 9*Cin) @ (9*Cin, M) -> f32, BN affine, ReLU.
        for t in range(9):
            dy, dx = divmod(t, 3)
            off = dy * wp + dx
            col_ref[pl.ds(t * cin, cin), pl.ds(0, m)] = \
                src_ref[pl.ds(0, cin), pl.ds(off, m)]
        y = jnp.dot(w_ref[...],
                    col_ref[pl.ds(0, 9 * cin), pl.ds(0, m)],
                    preferred_element_type=jnp.float32)
        return jnp.maximum(y * sc_ref[...] + sh_ref[...], 0.0)   # (Cout, M)

    src = x_ref   # stage-1 input is already padded + flattened wrapper-side
    for s, st in enumerate(stages):
        cin, cmid, cout = st["Cin"], st["Cmid"], st["Cout"]
        wp, m, L = st["Wp"], st["M"], st["L"]
        halo = wp + 1
        w1, sc1, sh1 = conv_refs[2 * s]
        w2, sc2, sh2 = conv_refs[2 * s + 1]

        # conv1 + BN + ReLU
        y1 = conv_bn_relu(src, cin, wp, m, w1, sc1, sh1)          # (cmid, m)

        # re-pad y1 into the shared padded scratch: one masked constant-offset
        # store for the whole interior + two tiny halo zero stores.
        pad_ref[pl.ds(0, cmid), pl.ds(0, halo)] = \
            jnp.zeros((cmid, halo), jnp.float32)
        pad_ref[pl.ds(0, cmid), pl.ds(halo, m)] = y1 * mask_refs[s][...]
        pad_ref[pl.ds(0, cmid), pl.ds(halo + m, halo)] = \
            jnp.zeros((cmid, halo), jnp.float32)

        # conv2 + BN + ReLU
        y2 = conv_bn_relu(pad_ref, cmid, wp, m, w2, sc2, sh2)     # (cout, m)

        # single lane-flat store of the stage output (wrapper un-flattens).
        out_refs[s][...] = y2

        # 2x2 max-pool + scatter + zero-pad for the next stage:
        # 4-way shifted max over lanes, then one matmul with a constant 0/1
        # scatter matrix that lands pooled values at interior positions of the
        # next padded buffer and zeros everywhere else (exact arithmetic).
        if s + 1 < n_stages:
            nxt = stages[s + 1]
            plen = m - wp - 1
            p4 = jnp.maximum(
                jnp.maximum(y2[:, 0:plen], y2[:, 1:plen + 1]),
                jnp.maximum(y2[:, wp:wp + plen], y2[:, wp + 1:wp + 1 + plen]))
            nxt_pad = jnp.dot(p4, pool_refs[s][...],
                              preferred_element_type=jnp.float32)  # (cout, L_next)
            pad_ref[pl.ds(0, cout), pl.ds(0, nxt["L"])] = nxt_pad
            src = pad_ref


# --------------------------- static geometry + constants ---------------------------

def _build_stages(params, n, c_in_pad, h0, w0):
    stages = []
    h, w = h0, w0
    for si, key in enumerate(_STAGE_KEYS):
        (w1, _, _), (w2, _, _) = params[key]
        if si > 0:
            h, w = h // 2, w // 2
        hp, wp = h + 2, w + 2
        hpwp = hp * wp
        L = n * hpwp
        m = L - 2 * wp - 2
        stages.append(dict(
            H=h, W=w, Hp=hp, Wp=wp, HpWp=hpwp, L=L, M=m,
            Cin=(c_in_pad if si == 0 else int(w1.shape[2])),
            Cmid=int(w1.shape[3]), Cout=int(w2.shape[3])))
    return stages


def _valid_mask_np(st):
    # 1.0 at flat positions that are real output pixels, 0.0 at halo/wrap rows.
    m = np.arange(st["M"])
    q = m % st["HpWp"]
    h = q // st["Wp"]
    w = q % st["Wp"]
    return ((h < st["H"]) & (w < st["W"])).astype(np.float32).reshape(1, -1)


def _pool_scatter_np(n, st, nxt):
    # 0/1 matrix taking the 4-way-max buffer (len = M - Wp - 1) to the next
    # stage's fully padded flat buffer (len = L_next), zeros at all halo slots.
    plen = st["M"] - st["Wp"] - 1
    S = np.zeros((plen, nxt["L"]), np.float32)
    for b in range(n):
        for hh in range(nxt["H"]):
            for ww in range(nxt["W"]):
                src = b * st["HpWp"] + (2 * hh) * st["Wp"] + (2 * ww)
                dst = b * nxt["HpWp"] + (hh + 1) * nxt["Wp"] + (ww + 1)
                S[src, dst] = 1.0
    return S


def _fold_weight(w_hwio, cin_target):
    # (3, 3, Cin, Cout) HWIO -> (Cout, 9*Cin_target), zero-padding Cin if needed
    # so every im2col block is a multiple of 8 sublanes.
    cin = w_hwio.shape[2]
    if cin_target > cin:
        w_hwio = jnp.pad(w_hwio, ((0, 0), (0, 0), (0, cin_target - cin), (0, 0)))
    cout = w_hwio.shape[3]
    return jnp.transpose(w_hwio, (3, 0, 1, 2)).reshape(cout, 9 * cin_target)


# --------------------------------- forward pass ---------------------------------

def encoding_forward(params, x_nchw):
    n, c_in, h0, w0 = x_nchw.shape
    c_in_pad = ((c_in + 7) // 8) * 8
    stages = _build_stages(params, n, c_in_pad, h0, w0)
    n_stages = len(stages)

    kernel_inputs = []
    in_specs = []

    def add_input(arr):
        arr = jnp.asarray(arr, jnp.float32)
        kernel_inputs.append(arr)
        in_specs.append(pl.BlockSpec(arr.shape, lambda i: (0, 0)))

    # input: NCHW -> (C, N, H, W) -> channel-pad -> spatial zero-pad -> (C, N*Hp*Wp)
    x_t = jnp.transpose(x_nchw.astype(jnp.float32), (1, 0, 2, 3))
    x_t = jnp.pad(x_t, ((0, c_in_pad - c_in), (0, 0), (1, 1), (1, 1)))
    add_input(x_t.reshape(c_in_pad, stages[0]["L"]))

    # conv weights (im2col layout) + folded BN scale/shift
    for si, key in enumerate(_STAGE_KEYS):
        st = stages[si]
        (w1, sc1, sh1), (w2, sc2, sh2) = params[key]
        add_input(_fold_weight(w1, st["Cin"]))
        add_input(sc1.reshape(-1, 1))
        add_input(sh1.reshape(-1, 1))
        add_input(_fold_weight(w2, st["Cmid"]))
        add_input(sc2.reshape(-1, 1))
        add_input(sh2.reshape(-1, 1))

    # per-stage validity masks (constants)
    for st in stages:
        add_input(_valid_mask_np(st))

    # pool scatter matrices (constants)
    for si in range(n_stages - 1):
        add_input(_pool_scatter_np(n, stages[si], stages[si + 1]))

    out_shapes = tuple(jax.ShapeDtypeStruct((st["Cout"], st["M"]), jnp.float32)
                       for st in stages)
    out_specs = [pl.BlockSpec((st["Cout"], st["M"]), lambda i: (0, 0))
                 for st in stages]

    max_k = max(9 * max(st["Cin"], st["Cmid"]) for st in stages)
    max_m = max(st["M"] for st in stages)
    max_c = max(max(st["Cmid"], st["Cout"]) for st in stages)
    max_l = max(st["L"] for st in stages)
    scratch_shapes = [
        pltpu.VMEM((max_k, max_m), jnp.float32),   # im2col scratch
        pltpu.VMEM((max_c, max_l), jnp.float32),   # padded-activation scratch
    ]

    kernel = functools.partial(_encoder_kernel, stages=tuple(stages))

    outs = pl.pallas_call(
        kernel,
        out_shape=out_shapes,
        grid_spec=pltpu.PrefetchScalarGridSpec(
            num_scalar_prefetch=0,
            grid=(1,),
            in_specs=in_specs,
            out_specs=out_specs,
            scratch_shapes=scratch_shapes),
        compiler_params=pltpu.CompilerParams(
            dimension_semantics=("arbitrary",)),
    )(*kernel_inputs)

    # un-flatten the lane-flat stage outputs back to NCHW (fused pad/reshape/
    # slice/transpose per output -- the transpose was needed for NCHW anyway).
    results = []
    for st, o in zip(stages, outs):
        y = jnp.pad(o, ((0, 0), (0, st["L"] - st["M"])))
        y = y.reshape(st["Cout"], n, st["Hp"], st["Wp"])[:, :, :st["H"], :st["W"]]
        results.append(jnp.transpose(y, (1, 0, 2, 3)))
    x1, x2, x3, x4, x5 = results
    return [x5, x4, x3, x2, x1]


# ----------------------------- parameter construction -----------------------------

def init_conv_bn(key, cin, cout):
    kw, kb, kg, kbt, km, kv = jax.random.split(key, 6)
    w_oihw = jax.random.normal(kw, (cout, cin, 3, 3), jnp.float32) / jnp.sqrt(9.0 * cin)
    bias = 0.05 * jax.random.normal(kb, (cout,), jnp.float32)
    gamma = 1.0 + 0.1 * jax.random.normal(kg, (cout,), jnp.float32)
    beta = 0.05 * jax.random.normal(kbt, (cout,), jnp.float32)
    rmean = 0.05 * jax.random.normal(km, (cout,), jnp.float32)
    rvar = 0.5 + jax.random.uniform(kv, (cout,), jnp.float32)
    # Fold eval-mode BatchNorm + conv bias into per-channel scale/shift:
    #   y = (conv(x) + bias - rmean) * gamma / sqrt(rvar + eps) + beta
    scale = gamma / jnp.sqrt(rvar + 1e-5)
    shift = (bias - rmean) * scale + beta
    w_hwio = jnp.transpose(w_oihw, (2, 3, 1, 0))   # PyTorch OIHW -> HWIO
    return (w_hwio, scale.astype(jnp.float32), shift.astype(jnp.float32))


def init_double_conv(key, cin, cout, cmid=None):
    cmid = cmid or cout
    k1, k2 = jax.random.split(key)
    return (init_conv_bn(k1, cin, cmid), init_conv_bn(k2, cmid, cout))


def init_encoding(key, in_channels, filters=8, factor=2):
    ks = jax.random.split(key, 5)
    return {
        "inc": init_double_conv(ks[0], in_channels, filters),
        "down1": init_double_conv(ks[1], filters, filters * 2),
        "down2": init_double_conv(ks[2], filters * 2, filters * 4),
        "down3": init_double_conv(ks[3], filters * 4, filters * 8),
        "down4": init_double_conv(ks[4], filters * 8, filters * 16 // factor),
    }


# ----------------------------- pure-JAX reference (checking) -----------------------------

def _ref_conv_bn_relu(x, w_hwio, scale, shift):
    y = jax.lax.conv_general_dilated(
        x, w_hwio, window_strides=(1, 1), padding=((1, 1), (1, 1)),
        dimension_numbers=("NHWC", "HWIO", "NHWC"),
        precision=jax.lax.Precision.HIGHEST)
    return jnp.maximum(y * scale.reshape(1, 1, 1, -1) + shift.reshape(1, 1, 1, -1), 0.0)


def _ref_maxpool2(x):
    n, h, w, c = x.shape
    return x.reshape(n, h // 2, 2, w // 2, 2, c).max(axis=(2, 4))


def _ref_stage(x, stage_params, pool):
    if pool:
        x = _ref_maxpool2(x)
    x = _ref_conv_bn_relu(x, *stage_params[0])
    x = _ref_conv_bn_relu(x, *stage_params[1])
    return x


def encoding_reference(params, x_nchw):
    x = jnp.transpose(x_nchw, (0, 2, 3, 1))
    x1 = _ref_stage(x, params["inc"], False)
    x2 = _ref_stage(x1, params["down1"], True)
    x3 = _ref_stage(x2, params["down2"], True)
    x4 = _ref_stage(x3, params["down3"], True)
    x5 = _ref_stage(x4, params["down4"], True)
    to_nchw = lambda t: jnp.transpose(t, (0, 3, 1, 2))
    return [to_nchw(x5), to_nchw(x4), to_nchw(x3), to_nchw(x2), to_nchw(x1)]


if __name__ == "__main__":
    key = jax.random.PRNGKey(0)
    kx, kp = jax.random.split(key)

    # Small shapes consistent with the module: batch=2, in_channels=4, 16x16 input,
    # filters=8 (constructor argument), factor=2.
    x = jax.random.normal(kx, (2, 4, 16, 16), jnp.float32)   # NCHW, like PyTorch
    params = init_encoding(kp, in_channels=4, filters=8, factor=2)

    outs = jax.block_until_ready(jax.jit(encoding_forward)(params, x))

    expected = [(2, 64, 1, 1), (2, 64, 2, 2), (2, 32, 4, 4), (2, 16, 8, 8), (2, 8, 16, 16)]
    got = [tuple(o.shape) for o in outs]
    assert got == expected, f"shape mismatch: {got} vs {expected}"

    refs = jax.block_until_ready(jax.jit(encoding_reference)(params, x))
    for o, r in zip(outs, refs):
        assert bool(jnp.all(jnp.isfinite(o)))
        assert bool(jnp.allclose(o, r, atol=1e-2, rtol=1e-2)), \
            float(jnp.max(jnp.abs(o - r)))

    print("KERNEL_OK")
</pallas_src>

<mosaic_0001>
module attributes {stable_mosaic.version = 11 : i64} {
  func.func @_encoder_kernel(%arg0: i32, %arg1: memref<8x648xf32, #tpu.memory_space<vmem>>, %arg2: memref<8x72xf32, #tpu.memory_space<vmem>>, %arg3: memref<8x1xf32, #tpu.memory_space<vmem>>, %arg4: memref<8x1xf32, #tpu.memory_space<vmem>>, %arg5: memref<8x72xf32, #tpu.memory_space<vmem>>, %arg6: memref<8x1xf32, #tpu.memory_space<vmem>>, %arg7: memref<8x1xf32, #tpu.memory_space<vmem>>, %arg8: memref<16x72xf32, #tpu.memory_space<vmem>>, %arg9: memref<16x1xf32, #tpu.memory_space<vmem>>, %arg10: memref<16x1xf32, #tpu.memory_space<vmem>>, %arg11: memref<16x144xf32, #tpu.memory_space<vmem>>, %arg12: memref<16x1xf32, #tpu.memory_space<vmem>>, %arg13: memref<16x1xf32, #tpu.memory_space<vmem>>, %arg14: memref<32x144xf32, #tpu.memory_space<vmem>>, %arg15: memref<32x1xf32, #tpu.memory_space<vmem>>, %arg16: memref<32x1xf32, #tpu.memory_space<vmem>>, %arg17: memref<32x288xf32, #tpu.memory_space<vmem>>, %arg18: memref<32x1xf32, #tpu.memory_space<vmem>>, %arg19: memref<32x1xf32, #tpu.memory_space<vmem>>, %arg20: memref<64x288xf32, #tpu.memory_space<vmem>>, %arg21: memref<64x1xf32, #tpu.memory_space<vmem>>, %arg22: memref<64x1xf32, #tpu.memory_space<vmem>>, %arg23: memref<64x576xf32, #tpu.memory_space<vmem>>, %arg24: memref<64x1xf32, #tpu.memory_space<vmem>>, %arg25: memref<64x1xf32, #tpu.memory_space<vmem>>, %arg26: memref<64x576xf32, #tpu.memory_space<vmem>>, %arg27: memref<64x1xf32, #tpu.memory_space<vmem>>, %arg28: memref<64x1xf32, #tpu.memory_space<vmem>>, %arg29: memref<64x576xf32, #tpu.memory_space<vmem>>, %arg30: memref<64x1xf32, #tpu.memory_space<vmem>>, %arg31: memref<64x1xf32, #tpu.memory_space<vmem>>, %arg32: memref<1x610xf32, #tpu.memory_space<vmem>>, %arg33: memref<1x178xf32, #tpu.memory_space<vmem>>, %arg34: memref<1x58xf32, #tpu.memory_space<vmem>>, %arg35: memref<1x22xf32, #tpu.memory_space<vmem>>, %arg36: memref<1x10xf32, #tpu.memory_space<vmem>>, %arg37: memref<591x200xf32, #tpu.memory_space<vmem>>, %arg38: memref<167x72xf32, #tpu.memory_space<vmem>>, %arg39: memref<51x32xf32, #tpu.memory_space<vmem>>, %arg40: memref<17x18xf32, #tpu.memory_space<vmem>>, %arg41: memref<8x610xf32, #tpu.memory_space<vmem>>, %arg42: memref<16x178xf32, #tpu.memory_space<vmem>>, %arg43: memref<32x58xf32, #tpu.memory_space<vmem>>, %arg44: memref<64x22xf32, #tpu.memory_space<vmem>>, %arg45: memref<64x10xf32, #tpu.memory_space<vmem>>, %arg46: memref<576x610xf32, #tpu.memory_space<vmem>>, %arg47: memref<64x648xf32, #tpu.memory_space<vmem>>) attributes {dimension_semantics = [#tpu.dimension_semantics<arbitrary>], iteration_bounds = array<i64: 1>, scalar_prefetch = 0 : i64, scratch_operands = 2 : i64, tpu.core_type = #tpu.core_type<tc>, window_params = [{pipeline_mode = #tpu.pipeline_mode<synchronous>, transform_indices = @transform_0, window_bounds = array<i64: 8, 648>}, {pipeline_mode = #tpu.pipeline_mode<synchronous>, transform_indices = @transform_1, window_bounds = array<i64: 8, 72>}, {pipeline_mode = #tpu.pipeline_mode<synchronous>, transform_indices = @transform_2, window_bounds = array<i64: 8, 1>}, {pipeline_mode = #tpu.pipeline_mode<synchronous>, transform_indices = @transform_3, window_bounds = array<i64: 8, 1>}, {pipeline_mode = #tpu.pipeline_mode<synchronous>, transform_indices = @transform_4, window_bounds = array<i64: 8, 72>}, {pipeline_mode = #tpu.pipeline_mode<synchronous>, transform_indices = @transform_5, window_bounds = array<i64: 8, 1>}, {pipeline_mode = #tpu.pipeline_mode<synchronous>, transform_indices = @transform_6, window_bounds = array<i64: 8, 1>}, {pipeline_mode = #tpu.pipeline_mode<synchronous>, transform_indices = @transform_7, window_bounds = array<i64: 16, 72>}, {pipeline_mode = #tpu.pipeline_mode<synchronous>, transform_indices = @transform_8, window_bounds = array<i64: 16, 1>}, {pipeline_mode = #tpu.pipeline_mode<synchronous>, transform_indices = @transform_9, window_bounds = array<i64: 16, 1>}, {pipeline_mode = #tpu.pipeline_mode<synchronous>, transform_indices = @transform_10, window_bounds = array<i64: 16, 144>}, {pipeline_mode = #tpu.pipeline_mode<synchronous>, transform_indices = @transform_11, window_bounds = array<i64: 16, 1>}, {pipeline_mode = #tpu.pipeline_mode<synchronous>, transform_indices = @transform_12, window_bounds = array<i64: 16, 1>}, {pipeline_mode = #tpu.pipeline_mode<synchronous>, transform_indices = @transform_13, window_bounds = array<i64: 32, 144>}, {pipeline_mode = #tpu.pipeline_mode<synchronous>, transform_indices = @transform_14, window_bounds = array<i64: 32, 1>}, {pipeline_mode = #tpu.pipeline_mode<synchronous>, transform_indices = @transform_15, window_bounds = array<i64: 32, 1>}, {pipeline_mode = #tpu.pipeline_mode<synchronous>, transform_indices = @transform_16, window_bounds = array<i64: 32, 288>}, {pipeline_mode = #tpu.pipeline_mode<synchronous>, transform_indices = @transform_17, window_bounds = array<i64: 32, 1>}, {pipeline_mode = #tpu.pipeline_mode<synchronous>, transform_indices = @transform_18, window_bounds = array<i64: 32, 1>}, {pipeline_mode = #tpu.pipeline_mode<synchronous>, transform_indices = @transform_19, window_bounds = array<i64: 64, 288>}, {pipeline_mode = #tpu.pipeline_mode<synchronous>, transform_indices = @transform_20, window_bounds = array<i64: 64, 1>}, {pipeline_mode = #tpu.pipeline_mode<synchronous>, transform_indices = @transform_21, window_bounds = array<i64: 64, 1>}, {pipeline_mode = #tpu.pipeline_mode<synchronous>, transform_indices = @transform_22, window_bounds = array<i64: 64, 576>}, {pipeline_mode = #tpu.pipeline_mode<synchronous>, transform_indices = @transform_23, window_bounds = array<i64: 64, 1>}, {pipeline_mode = #tpu.pipeline_mode<synchronous>, transform_indices = @transform_24, window_bounds = array<i64: 64, 1>}, {pipeline_mode = #tpu.pipeline_mode<synchronous>, transform_indices = @transform_25, window_bounds = array<i64: 64, 576>}, {pipeline_mode = #tpu.pipeline_mode<synchronous>, transform_indices = @transform_26, window_bounds = array<i64: 64, 1>}, {pipeline_mode = #tpu.pipeline_mode<synchronous>, transform_indices = @transform_27, window_bounds = array<i64: 64, 1>}, {pipeline_mode = #tpu.pipeline_mode<synchronous>, transform_indices = @transform_28, window_bounds = array<i64: 64, 576>}, {pipeline_mode = #tpu.pipeline_mode<synchronous>, transform_indices = @transform_29, window_bounds = array<i64: 64, 1>}, {pipeline_mode = #tpu.pipeline_mode<synchronous>, transform_indices = @transform_30, window_bounds = array<i64: 64, 1>}, {pipeline_mode = #tpu.pipeline_mode<synchronous>, transform_indices = @transform_31, window_bounds = array<i64: 1, 610>}, {pipeline_mode = #tpu.pipeline_mode<synchronous>, transform_indices = @transform_32, window_bounds = array<i64: 1, 178>}, {pipeline_mode = #tpu.pipeline_mode<synchronous>, transform_indices = @transform_33, window_bounds = array<i64: 1, 58>}, {pipeline_mode = #tpu.pipeline_mode<synchronous>, transform_indices = @transform_34, window_bounds = array<i64: 1, 22>}, {pipeline_mode = #tpu.pipeline_mode<synchronous>, transform_indices = @transform_35, window_bounds = array<i64: 1, 10>}, {pipeline_mode = #tpu.pipeline_mode<synchronous>, transform_indices = @transform_36, window_bounds = array<i64: 591, 200>}, {pipeline_mode = #tpu.pipeline_mode<synchronous>, transform_indices = @transform_37, window_bounds = array<i64: 167, 72>}, {pipeline_mode = #tpu.pipeline_mode<synchronous>, transform_indices = @transform_38, window_bounds = array<i64: 51, 32>}, {pipeline_mode = #tpu.pipeline_mode<synchronous>, transform_indices = @transform_39, window_bounds = array<i64: 17, 18>}, {pipeline_mode = #tpu.pipeline_mode<synchronous>, transform_indices = @transform_40, window_bounds = array<i64: 8, 610>}, {pipeline_mode = #tpu.pipeline_mode<synchronous>, transform_indices = @transform_41, window_bounds = array<i64: 16, 178>}, {pipeline_mode = #tpu.pipeline_mode<synchronous>, transform_indices = @transform_42, window_bounds = array<i64: 32, 58>}, {pipeline_mode = #tpu.pipeline_mode<synchronous>, transform_indices = @transform_43, window_bounds = array<i64: 64, 22>}, {pipeline_mode = #tpu.pipeline_mode<synchronous>, transform_indices = @transform_44, window_bounds = array<i64: 64, 10>}]} {
    %c0 = arith.constant 0 : index
    %c0_0 = arith.constant 0 : index
    %0 = vector.load %arg1[%c0, %c0_0] : memref<8x648xf32, #tpu.memory_space<vmem>>, vector<8x610xf32>
    %c0_1 = arith.constant 0 : index
    %c0_2 = arith.constant 0 : index
    %1 = vector.load %arg46[%c0_1, %c0_2] : memref<576x610xf32, #tpu.memory_space<vmem>>, vector<8x610xf32>
    tpu.vector_store %arg46[%c0_1, %c0_2], %0 {strides = array<i32>} : memref<576x610xf32, #tpu.memory_space<vmem>>, vector<8x610xf32>,
    %c0_3 = arith.constant 0 : index
    %c1 = arith.constant 1 : index
    %2 = vector.load %arg1[%c0_3, %c1] : memref<8x648xf32, #tpu.memory_space<vmem>>, vector<8x610xf32>
    %c8 = arith.constant 8 : index
    %c0_4 = arith.constant 0 : index
    %3 = vector.load %arg46[%c8, %c0_4] : memref<576x610xf32, #tpu.memory_space<vmem>>, vector<8x610xf32>
    tpu.vector_store %arg46[%c8, %c0_4], %2 {strides = array<i32>} : memref<576x610xf32, #tpu.memory_space<vmem>>, vector<8x610xf32>,
    %c0_5 = arith.constant 0 : index
    %c2 = arith.constant 2 : index
    %4 = vector.load %arg1[%c0_5, %c2] : memref<8x648xf32, #tpu.memory_space<vmem>>, vector<8x610xf32>
    %c16 = arith.constant 16 : index
    %c0_6 = arith.constant 0 : index
    %5 = vector.load %arg46[%c16, %c0_6] : memref<576x610xf32, #tpu.memory_space<vmem>>, vector<8x610xf32>
    tpu.vector_store %arg46[%c16, %c0_6], %4 {strides = array<i32>} : memref<576x610xf32, #tpu.memory_space<vmem>>, vector<8x610xf32>,
    %c0_7 = arith.constant 0 : index
    %c18 = arith.constant 18 : index
    %6 = vector.load %arg1[%c0_7, %c18] : memref<8x648xf32, #tpu.memory_space<vmem>>, vector<8x610xf32>
    %c24 = arith.constant 24 : index
    %c0_8 = arith.constant 0 : index
    %7 = vector.load %arg46[%c24, %c0_8] : memref<576x610xf32, #tpu.memory_space<vmem>>, vector<8x610xf32>
    tpu.vector_store %arg46[%c24, %c0_8], %6 {strides = array<i32>} : memref<576x610xf32, #tpu.memory_space<vmem>>, vector<8x610xf32>,
    %c0_9 = arith.constant 0 : index
    %c19 = arith.constant 19 : index
    %8 = vector.load %arg1[%c0_9, %c19] : memref<8x648xf32, #tpu.memory_space<vmem>>, vector<8x610xf32>
    %c32 = arith.constant 32 : index
    %c0_10 = arith.constant 0 : index
    %9 = vector.load %arg46[%c32, %c0_10] : memref<576x610xf32, #tpu.memory_space<vmem>>, vector<8x610xf32>
    tpu.vector_store %arg46[%c32, %c0_10], %8 {strides = array<i32>} : memref<576x610xf32, #tpu.memory_space<vmem>>, vector<8x610xf32>,
    %c0_11 = arith.constant 0 : index
    %c20 = arith.constant 20 : index
    %10 = vector.load %arg1[%c0_11, %c20] : memref<8x648xf32, #tpu.memory_space<vmem>>, vector<8x610xf32>
    %c40 = arith.constant 40 : index
    %c0_12 = arith.constant 0 : index
    %11 = vector.load %arg46[%c40, %c0_12] : memref<576x610xf32, #tpu.memory_space<vmem>>, vector<8x610xf32>
    tpu.vector_store %arg46[%c40, %c0_12], %10 {strides = array<i32>} : memref<576x610xf32, #tpu.memory_space<vmem>>, vector<8x610xf32>,
    %c0_13 = arith.constant 0 : index
    %c36 = arith.constant 36 : index
    %12 = vector.load %arg1[%c0_13, %c36] : memref<8x648xf32, #tpu.memory_space<vmem>>, vector<8x610xf32>
    %c48 = arith.constant 48 : index
    %c0_14 = arith.constant 0 : index
    %13 = vector.load %arg46[%c48, %c0_14] : memref<576x610xf32, #tpu.memory_space<vmem>>, vector<8x610xf32>
    tpu.vector_store %arg46[%c48, %c0_14], %12 {strides = array<i32>} : memref<576x610xf32, #tpu.memory_space<vmem>>, vector<8x610xf32>,
    %c0_15 = arith.constant 0 : index
    %c37 = arith.constant 37 : index
    %14 = vector.load %arg1[%c0_15, %c37] : memref<8x648xf32, #tpu.memory_space<vmem>>, vector<8x610xf32>
    %c56 = arith.constant 56 : index
    %c0_16 = arith.constant 0 : index
    %15 = vector.load %arg46[%c56, %c0_16] : memref<576x610xf32, #tpu.memory_space<vmem>>, vector<8x610xf32>
    tpu.vector_store %arg46[%c56, %c0_16], %14 {strides = array<i32>} : memref<576x610xf32, #tpu.memory_space<vmem>>, vector<8x610xf32>,
    %c0_17 = arith.constant 0 : index
    %c38 = arith.constant 38 : index
    %16 = vector.load %arg1[%c0_17, %c38] : memref<8x648xf32, #tpu.memory_space<vmem>>, vector<8x610xf32>
    %c64 = arith.constant 64 : index
    %c0_18 = arith.constant 0 : index
    %17 = vector.load %arg46[%c64, %c0_18] : memref<576x610xf32, #tpu.memory_space<vmem>>, vector<8x610xf32>
    tpu.vector_store %arg46[%c64, %c0_18], %16 {strides = array<i32>} : memref<576x610xf32, #tpu.memory_space<vmem>>, vector<8x610xf32>,
    %c0_19 = arith.constant 0 : index
    %c0_20 = arith.constant 0 : index
    %18 = vector.load %arg2[%c0_19, %c0_20] : memref<8x72xf32, #tpu.memory_space<vmem>>, vector<8x72xf32>
    %c0_21 = arith.constant 0 : index
    %c0_22 = arith.constant 0 : index
    %19 = vector.load %arg46[%c0_21, %c0_22] : memref<576x610xf32, #tpu.memory_space<vmem>>, vector<72x610xf32>
    %cst = arith.constant dense<0.000000e+00> : vector<8x610xf32>
    %20 = tpu.matmul %18, %19, %cst {dimension_numbers = #tpu.dot_dimension_numbers<[1], [0], [0], [1], [0, 0, 1, 1], [], []>} : vector<8x72xf32>, vector<72x610xf32>, vector<8x610xf32> -> vector<8x610xf32>
    %c0_23 = arith.constant 0 : index
    %c0_24 = arith.constant 0 : index
    %21 = vector.load %arg3[%c0_23, %c0_24] : memref<8x1xf32, #tpu.memory_space<vmem>>, vector<8x1xf32>
    %22 = vector.broadcast %21 : vector<8x1xf32> to vector<8x610xf32>
    %23 = arith.mulf %20, %22 : vector<8x610xf32>
    %c0_25 = arith.constant 0 : index
    %c0_26 = arith.constant 0 : index
    %24 = vector.load %arg4[%c0_25, %c0_26] : memref<8x1xf32, #tpu.memory_space<vmem>>, vector<8x1xf32>
    %25 = vector.broadcast %24 : vector<8x1xf32> to vector<8x610xf32>
    %26 = arith.addf %23, %25 : vector<8x610xf32>
    %cst_27 = arith.constant 0.000000e+00 : f32
    %27 = vector.broadcast %cst_27 : f32 to vector<8x610xf32>
    %28 = arith.maximumf %26, %27 : vector<8x610xf32>
    %cst_28 = arith.constant 0.000000e+00 : f32
    %29 = vector.broadcast %cst_28 : f32 to vector<8x19xf32>
    %c0_29 = arith.constant 0 : index
    %c0_30 = arith.constant 0 : index
    %30 = vector.load %arg47[%c0_29, %c0_30] : memref<64x648xf32, #tpu.memory_space<vmem>>, vector<8x19xf32>
    tpu.vector_store %arg47[%c0_29, %c0_30], %29 {strides = array<i32>} : memref<64x648xf32, #tpu.memory_space<vmem>>, vector<8x19xf32>,
    %c0_31 = arith.constant 0 : index
    %c0_32 = arith.constant 0 : index
    %31 = vector.load %arg32[%c0_31, %c0_32] : memref<1x610xf32, #tpu.memory_space<vmem>>, vector<1x610xf32>
    %32 = vector.broadcast %31 : vector<1x610xf32> to vector<8x610xf32>
    %33 = arith.mulf %28, %32 : vector<8x610xf32>
    %c0_33 = arith.constant 0 : index
    %c19_34 = arith.constant 19 : index
    %34 = vector.load %arg47[%c0_33, %c19_34] : memref<64x648xf32, #tpu.memory_space<vmem>>, vector<8x610xf32>
    tpu.vector_store %arg47[%c0_33, %c19_34], %33 {strides = array<i32>} : memref<64x648xf32, #tpu.memory_space<vmem>>, vector<8x610xf32>,
    %cst_35 = arith.constant 0.000000e+00 : f32
    %35 = vector.broadcast %cst_35 : f32 to vector<8x19xf32>
    %c0_36 = arith.constant 0 : index
    %c629 = arith.constant 629 : index
    %36 = vector.load %arg47[%c0_36, %c629] : memref<64x648xf32, #tpu.memory_space<vmem>>, vector<8x19xf32>
    tpu.vector_store %arg47[%c0_36, %c629], %35 {strides = array<i32>} : memref<64x648xf32, #tpu.memory_space<vmem>>, vector<8x19xf32>,
    %c0_37 = arith.constant 0 : index
    %c0_38 = arith.constant 0 : index
    %37 = vector.load %arg47[%c0_37, %c0_38] : memref<64x648xf32, #tpu.memory_space<vmem>>, vector<8x610xf32>
    %c0_39 = arith.constant 0 : index
    %c0_40 = arith.constant 0 : index
    %38 = vector.load %arg46[%c0_39, %c0_40] : memref<576x610xf32, #tpu.memory_space<vmem>>, vector<8x610xf32>
    tpu.vector_store %arg46[%c0_39, %c0_40], %37 {strides = array<i32>} : memref<576x610xf32, #tpu.memory_space<vmem>>, vector<8x610xf32>,
    %c0_41 = arith.constant 0 : index
    %c1_42 = arith.constant 1 : index
    %39 = vector.load %arg47[%c0_41, %c1_42] : memref<64x648xf32, #tpu.memory_space<vmem>>, vector<8x610xf32>
    %c8_43 = arith.constant 8 : index
    %c0_44 = arith.constant 0 : index
    %40 = vector.load %arg46[%c8_43, %c0_44] : memref<576x610xf32, #tpu.memory_space<vmem>>, vector<8x610xf32>
    tpu.vector_store %arg46[%c8_43, %c0_44], %39 {strides = array<i32>} : memref<576x610xf32, #tpu.memory_space<vmem>>, vector<8x610xf32>,
    %c0_45 = arith.constant 0 : index
    %c2_46 = arith.constant 2 : index
    %41 = vector.load %arg47[%c0_45, %c2_46] : memref<64x648xf32, #tpu.memory_space<vmem>>, vector<8x610xf32>
    %c16_47 = arith.constant 16 : index
    %c0_48 = arith.constant 0 : index
    %42 = vector.load %arg46[%c16_47, %c0_48] : memref<576x610xf32, #tpu.memory_space<vmem>>, vector<8x610xf32>
    tpu.vector_store %arg46[%c16_47, %c0_48], %41 {strides = array<i32>} : memref<576x610xf32, #tpu.memory_space<vmem>>, vector<8x610xf32>,
    %c0_49 = arith.constant 0 : index
    %c18_50 = arith.constant 18 : index
    %43 = vector.load %arg47[%c0_49, %c18_50] : memref<64x648xf32, #tpu.memory_space<vmem>>, vector<8x610xf32>
    %c24_51 = arith.constant 24 : index
    %c0_52 = arith.constant 0 : index
    %44 = vector.load %arg46[%c24_51, %c0_52] : memref<576x610xf32, #tpu.memory_space<vmem>>, vector<8x610xf32>
    tpu.vector_store %arg46[%c24_51, %c0_52], %43 {strides = array<i32>} : memref<576x610xf32, #tpu.memory_space<vmem>>, vector<8x610xf32>,
    %c0_53 = arith.constant 0 : index
    %c19_54 = arith.constant 19 : index
    %45 = vector.load %arg47[%c0_53, %c19_54] : memref<64x648xf32, #tpu.memory_space<vmem>>, vector<8x610xf32>
    %c32_55 = arith.constant 32 : index
    %c0_56 = arith.constant 0 : index
    %46 = vector.load %arg46[%c32_55, %c0_56] : memref<576x610xf32, #tpu.memory_space<vmem>>, vector<8x610xf32>
    tpu.vector_store %arg46[%c32_55, %c0_56], %45 {strides = array<i32>} : memref<576x610xf32, #tpu.memory_space<vmem>>, vector<8x610xf32>,
    %c0_57 = arith.constant 0 : index
    %c20_58 = arith.constant 20 : index
    %47 = vector.load %arg47[%c0_57, %c20_58] : memref<64x648xf32, #tpu.memory_space<vmem>>, vector<8x610xf32>
    %c40_59 = arith.constant 40 : index
    %c0_60 = arith.constant 0 : index
    %48 = vector.load %arg46[%c40_59, %c0_60] : memref<576x610xf32, #tpu.memory_space<vmem>>, vector<8x610xf32>
    tpu.vector_store %arg46[%c40_59, %c0_60], %47 {strides = array<i32>} : memref<576x610xf32, #tpu.memory_space<vmem>>, vector<8x610xf32>,
    %c0_61 = arith.constant 0 : index
    %c36_62 = arith.constant 36 : index
    %49 = vector.load %arg47[%c0_61, %c36_62] : memref<64x648xf32, #tpu.memory_space<vmem>>, vector<8x610xf32>
    %c48_63 = arith.constant 48 : index
    %c0_64 = arith.constant 0 : index
    %50 = vector.load %arg46[%c48_63, %c0_64] : memref<576x610xf32, #tpu.memory_space<vmem>>, vector<8x610xf32>
    tpu.vector_store %arg46[%c48_63, %c0_64], %49 {strides = array<i32>} : memref<576x610xf32, #tpu.memory_space<vmem>>, vector<8x610xf32>,
    %c0_65 = arith.constant 0 : index
    %c37_66 = arith.constant 37 : index
    %51 = vector.load %arg47[%c0_65, %c37_66] : memref<64x648xf32, #tpu.memory_space<vmem>>, vector<8x610xf32>
    %c56_67 = arith.constant 56 : index
    %c0_68 = arith.constant 0 : index
    %52 = vector.load %arg46[%c56_67, %c0_68] : memref<576x610xf32, #tpu.memory_space<vmem>>, vector<8x610xf32>
    tpu.vector_store %arg46[%c56_67, %c0_68], %51 {strides = array<i32>} : memref<576x610xf32, #tpu.memory_space<vmem>>, vector<8x610xf32>,
    %c0_69 = arith.constant 0 : index
    %c38_70 = arith.constant 38 : index
    %53 = vector.load %arg47[%c0_69, %c38_70] : memref<64x648xf32, #tpu.memory_space<vmem>>, vector<8x610xf32>
    %c64_71 = arith.constant 64 : index
    %c0_72 = arith.constant 0 : index
    %54 = vector.load %arg46[%c64_71, %c0_72] : memref<576x610xf32, #tpu.memory_space<vmem>>, vector<8x610xf32>
    tpu.vector_store %arg46[%c64_71, %c0_72], %53 {strides = array<i32>} : memref<576x610xf32, #tpu.memory_space<vmem>>, vector<8x610xf32>,
    %c0_73 = arith.constant 0 : index
    %c0_74 = arith.constant 0 : index
    %55 = vector.load %arg5[%c0_73, %c0_74] : memref<8x72xf32, #tpu.memory_space<vmem>>, vector<8x72xf32>
    %c0_75 = arith.constant 0 : index
    %c0_76 = arith.constant 0 : index
    %56 = vector.load %arg46[%c0_75, %c0_76] : memref<576x610xf32, #tpu.memory_space<vmem>>, vector<72x610xf32>
    %cst_77 = arith.constant dense<0.000000e+00> : vector<8x610xf32>
    %57 = tpu.matmul %55, %56, %cst_77 {dimension_numbers = #tpu.dot_dimension_numbers<[1], [0], [0], [1], [0, 0, 1, 1], [], []>} : vector<8x72xf32>, vector<72x610xf32>, vector<8x610xf32> -> vector<8x610xf32>
    %c0_78 = arith.constant 0 : index
    %c0_79 = arith.constant 0 : index
    %58 = vector.load %arg6[%c0_78, %c0_79] : memref<8x1xf32, #tpu.memory_space<vmem>>, vector<8x1xf32>
    %59 = vector.broadcast %58 : vector<8x1xf32> to vector<8x610xf32>
    %60 = arith.mulf %57, %59 : vector<8x610xf32>
    %c0_80 = arith.constant 0 : index
    %c0_81 = arith.constant 0 : index
    %61 = vector.load %arg7[%c0_80, %c0_81] : memref<8x1xf32, #tpu.memory_space<vmem>>, vector<8x1xf32>
    %62 = vector.broadcast %61 : vector<8x1xf32> to vector<8x610xf32>
    %63 = arith.addf %60, %62 : vector<8x610xf32>
    %cst_82 = arith.constant 0.000000e+00 : f32
    %64 = vector.broadcast %cst_82 : f32 to vector<8x610xf32>
    %65 = arith.maximumf %63, %64 : vector<8x610xf32>
    %c0_83 = arith.constant 0 : index
    %c0_84 = arith.constant 0 : index
    %66 = vector.load %arg41[%c0_83, %c0_84] : memref<8x610xf32, #tpu.memory_space<vmem>>, vector<8x610xf32>
    tpu.vector_store %arg41[%c0_83, %c0_84], %65 {strides = array<i32>} : memref<8x610xf32, #tpu.memory_space<vmem>>, vector<8x610xf32>,
    %67 = vector.extract_strided_slice %65 {offsets = [0, 0], sizes = [8, 591], strides = [1, 1]} : vector<8x610xf32> to vector<8x591xf32>
    %68 = vector.extract_strided_slice %65 {offsets = [0, 1], sizes = [8, 591], strides = [1, 1]} : vector<8x610xf32> to vector<8x591xf32>
    %69 = arith.maximumf %67, %68 : vector<8x591xf32>
    %70 = vector.extract_strided_slice %65 {offsets = [0, 18], sizes = [8, 591], strides = [1, 1]} : vector<8x610xf32> to vector<8x591xf32>
    %71 = vector.extract_strided_slice %65 {offsets = [0, 19], sizes = [8, 591], strides = [1, 1]} : vector<8x610xf32> to vector<8x591xf32>
    %72 = arith.maximumf %70, %71 : vector<8x591xf32>
    %73 = arith.maximumf %69, %72 : vector<8x591xf32>
    %c0_85 = arith.constant 0 : index
    %c0_86 = arith.constant 0 : index
    %74 = vector.load %arg37[%c0_85, %c0_86] : memref<591x200xf32, #tpu.memory_space<vmem>>, vector<591x200xf32>
    %cst_87 = arith.constant dense<0.000000e+00> : vector<8x200xf32>
    %75 = tpu.matmul %73, %74, %cst_87 {dimension_numbers = #tpu.dot_dimension_numbers<[1], [0], [0], [1], [0, 0, 1, 1], [], []>} : vector<8x591xf32>, vector<591x200xf32>, vector<8x200xf32> -> vector<8x200xf32>
    %c0_88 = arith.constant 0 : index
    %c0_89 = arith.constant 0 : index
    %76 = vector.load %arg47[%c0_88, %c0_89] : memref<64x648xf32, #tpu.memory_space<vmem>>, vector<8x200xf32>
    tpu.vector_store %arg47[%c0_88, %c0_89], %75 {strides = array<i32>} : memref<64x648xf32, #tpu.memory_space<vmem>>, vector<8x200xf32>,
    %c0_90 = arith.constant 0 : index
    %c0_91 = arith.constant 0 : index
    %77 = vector.load %arg47[%c0_90, %c0_91] : memref<64x648xf32, #tpu.memory_space<vmem>>, vector<8x178xf32>
    %c0_92 = arith.constant 0 : index
    %c0_93 = arith.constant 0 : index
    %78 = vector.load %arg46[%c0_92, %c0_93] : memref<576x610xf32, #tpu.memory_space<vmem>>, vector<8x178xf32>
    tpu.vector_store %arg46[%c0_92, %c0_93], %77 {strides = array<i32>} : memref<576x610xf32, #tpu.memory_space<vmem>>, vector<8x178xf32>,
    %c0_94 = arith.constant 0 : index
    %c1_95 = arith.constant 1 : index
    %79 = vector.load %arg47[%c0_94, %c1_95] : memref<64x648xf32, #tpu.memory_space<vmem>>, vector<8x178xf32>
    %c8_96 = arith.constant 8 : index
    %c0_97 = arith.constant 0 : index
    %80 = vector.load %arg46[%c8_96, %c0_97] : memref<576x610xf32, #tpu.memory_space<vmem>>, vector<8x178xf32>
    tpu.vector_store %arg46[%c8_96, %c0_97], %79 {strides = array<i32>} : memref<576x610xf32, #tpu.memory_space<vmem>>, vector<8x178xf32>,
    %c0_98 = arith.constant 0 : index
    %c2_99 = arith.constant 2 : index
    %81 = vector.load %arg47[%c0_98, %c2_99] : memref<64x648xf32, #tpu.memory_space<vmem>>, vector<8x178xf32>
    %c16_100 = arith.constant 16 : index
    %c0_101 = arith.constant 0 : index
    %82 = vector.load %arg46[%c16_100, %c0_101] : memref<576x610xf32, #tpu.memory_space<vmem>>, vector<8x178xf32>
    tpu.vector_store %arg46[%c16_100, %c0_101], %81 {strides = array<i32>} : memref<576x610xf32, #tpu.memory_space<vmem>>, vector<8x178xf32>,
    %c0_102 = arith.constant 0 : index
    %c10 = arith.constant 10 : index
    %83 = vector.load %arg47[%c0_102, %c10] : memref<64x648xf32, #tpu.memory_space<vmem>>, vector<8x178xf32>
    %c24_103 = arith.constant 24 : index
    %c0_104 = arith.constant 0 : index
    %84 = vector.load %arg46[%c24_103, %c0_104] : memref<576x610xf32, #tpu.memory_space<vmem>>, vector<8x178xf32>
    tpu.vector_store %arg46[%c24_103, %c0_104], %83 {strides = array<i32>} : memref<576x610xf32, #tpu.memory_space<vmem>>, vector<8x178xf32>,
    %c0_105 = arith.constant 0 : index
    %c11 = arith.constant 11 : index
    %85 = vector.load %arg47[%c0_105, %c11] : memref<64x648xf32, #tpu.memory_space<vmem>>, vector<8x178xf32>
    %c32_106 = arith.constant 32 : index
    %c0_107 = arith.constant 0 : index
    %86 = vector.load %arg46[%c32_106, %c0_107] : memref<576x610xf32, #tpu.memory_space<vmem>>, vector<8x178xf32>
    tpu.vector_store %arg46[%c32_106, %c0_107], %85 {strides = array<i32>} : memref<576x610xf32, #tpu.memory_space<vmem>>, vector<8x178xf32>,
    %c0_108 = arith.constant 0 : index
    %c12 = arith.constant 12 : index
    %87 = vector.load %arg47[%c0_108, %c12] : memref<64x648xf32, #tpu.memory_space<vmem>>, vector<8x178xf32>
    %c40_109 = arith.constant 40 : index
    %c0_110 = arith.constant 0 : index
    %88 = vector.load %arg46[%c40_109, %c0_110] : memref<576x610xf32, #tpu.memory_space<vmem>>, vector<8x178xf32>
    tpu.vector_store %arg46[%c40_109, %c0_110], %87 {strides = array<i32>} : memref<576x610xf32, #tpu.memory_space<vmem>>, vector<8x178xf32>,
    %c0_111 = arith.constant 0 : index
    %c20_112 = arith.constant 20 : index
    %89 = vector.load %arg47[%c0_111, %c20_112] : memref<64x648xf32, #tpu.memory_space<vmem>>, vector<8x178xf32>
    %c48_113 = arith.constant 48 : index
    %c0_114 = arith.constant 0 : index
    %90 = vector.load %arg46[%c48_113, %c0_114] : memref<576x610xf32, #tpu.memory_space<vmem>>, vector<8x178xf32>
    tpu.vector_store %arg46[%c48_113, %c0_114], %89 {strides = array<i32>} : memref<576x610xf32, #tpu.memory_space<vmem>>, vector<8x178xf32>,
    %c0_115 = arith.constant 0 : index
    %c21 = arith.constant 21 : index
    %91 = vector.load %arg47[%c0_115, %c21] : memref<64x648xf32, #tpu.memory_space<vmem>>, vector<8x178xf32>
    %c56_116 = arith.constant 56 : index
    %c0_117 = arith.constant 0 : index
    %92 = vector.load %arg46[%c56_116, %c0_117] : memref<576x610xf32, #tpu.memory_space<vmem>>, vector<8x178xf32>
    tpu.vector_store %arg46[%c56_116, %c0_117], %91 {strides = array<i32>} : memref<576x610xf32, #tpu.memory_space<vmem>>, vector<8x178xf32>,
    %c0_118 = arith.constant 0 : index
    %c22 = arith.constant 22 : index
    %93 = vector.load %arg47[%c0_118, %c22] : memref<64x648xf32, #tpu.memory_space<vmem>>, vector<8x178xf32>
    %c64_119 = arith.constant 64 : index
    %c0_120 = arith.constant 0 : index
    %94 = vector.load %arg46[%c64_119, %c0_120] : memref<576x610xf32, #tpu.memory_space<vmem>>, vector<8x178xf32>
    tpu.vector_store %arg46[%c64_119, %c0_120], %93 {strides = array<i32>} : memref<576x610xf32, #tpu.memory_space<vmem>>, vector<8x178xf32>,
    %c0_121 = arith.constant 0 : index
    %c0_122 = arith.constant 0 : index
    %95 = vector.load %arg8[%c0_121, %c0_122] : memref<16x72xf32, #tpu.memory_space<vmem>>, vector<16x72xf32>
    %c0_123 = arith.constant 0 : index
    %c0_124 = arith.constant 0 : index
    %96 = vector.load %arg46[%c0_123, %c0_124] : memref<576x610xf32, #tpu.memory_space<vmem>>, vector<72x178xf32>
    %cst_125 = arith.constant dense<0.000000e+00> : vector<16x178xf32>
    %97 = tpu.matmul %95, %96, %cst_125 {dimension_numbers = #tpu.dot_dimension_numbers<[1], [0], [0], [1], [0, 0, 1, 1], [], []>} : vector<16x72xf32>, vector<72x178xf32>, vector<16x178xf32> -> vector<16x178xf32>
    %c0_126 = arith.constant 0 : index
    %c0_127 = arith.constant 0 : index
    %98 = vector.load %arg9[%c0_126, %c0_127] : memref<16x1xf32, #tpu.memory_space<vmem>>, vector<16x1xf32>
    %99 = vector.broadcast %98 : vector<16x1xf32> to vector<16x178xf32>
    %100 = arith.mulf %97, %99 : vector<16x178xf32>
    %c0_128 = arith.constant 0 : index
    %c0_129 = arith.constant 0 : index
    %101 = vector.load %arg10[%c0_128, %c0_129] : memref<16x1xf32, #tpu.memory_space<vmem>>, vector<16x1xf32>
    %102 = vector.broadcast %101 : vector<16x1xf32> to vector<16x178xf32>
    %103 = arith.addf %100, %102 : vector<16x178xf32>
    %cst_130 = arith.constant 0.000000e+00 : f32
    %104 = vector.broadcast %cst_130 : f32 to vector<16x178xf32>
    %105 = arith.maximumf %103, %104 : vector<16x178xf32>
    %cst_131 = arith.constant 0.000000e+00 : f32
    %106 = vector.broadcast %cst_131 : f32 to vector<16x11xf32>
    %c0_132 = arith.constant 0 : index
    %c0_133 = arith.constant 0 : index
    %107 = vector.load %arg47[%c0_132, %c0_133] : memref<64x648xf32, #tpu.memory_space<vmem>>, vector<16x11xf32>
    tpu.vector_store %arg47[%c0_132, %c0_133], %106 {strides = array<i32>} : memref<64x648xf32, #tpu.memory_space<vmem>>, vector<16x11xf32>,
    %c0_134 = arith.constant 0 : index
    %c0_135 = arith.constant 0 : index
    %108 = vector.load %arg33[%c0_134, %c0_135] : memref<1x178xf32, #tpu.memory_space<vmem>>, vector<1x178xf32>
    %109 = vector.broadcast %108 : vector<1x178xf32> to vector<16x178xf32>
    %110 = arith.mulf %105, %109 : vector<16x178xf32>
    %c0_136 = arith.constant 0 : index
    %c11_137 = arith.constant 11 : index
    %111 = vector.load %arg47[%c0_136, %c11_137] : memref<64x648xf32, #tpu.memory_space<vmem>>, vector<16x178xf32>
    tpu.vector_store %arg47[%c0_136, %c11_137], %110 {strides = array<i32>} : memref<64x648xf32, #tpu.memory_space<vmem>>, vector<16x178xf32>,
    %cst_138 = arith.constant 0.000000e+00 : f32
    %112 = vector.broadcast %cst_138 : f32 to vector<16x11xf32>
    %c0_139 = arith.constant 0 : index
    %c189 = arith.constant 189 : index
    %113 = vector.load %arg47[%c0_139, %c189] : memref<64x648xf32, #tpu.memory_space<vmem>>, vector<16x11xf32>
    tpu.vector_store %arg47[%c0_139, %c189], %112 {strides = array<i32>} : memref<64x648xf32, #tpu.memory_space<vmem>>, vector<16x11xf32>,
    %c0_140 = arith.constant 0 : index
    %c0_141 = arith.constant 0 : index
    %114 = vector.load %arg47[%c0_140, %c0_141] : memref<64x648xf32, #tpu.memory_space<vmem>>, vector<16x178xf32>
    %c0_142 = arith.constant 0 : index
    %c0_143 = arith.constant 0 : index
    %115 = vector.load %arg46[%c0_142, %c0_143] : memref<576x610xf32, #tpu.memory_space<vmem>>, vector<16x178xf32>
    tpu.vector_store %arg46[%c0_142, %c0_143], %114 {strides = array<i32>} : memref<576x610xf32, #tpu.memory_space<vmem>>, vector<16x178xf32>,
    %c0_144 = arith.constant 0 : index
    %c1_145 = arith.constant 1 : index
    %116 = vector.load %arg47[%c0_144, %c1_145] : memref<64x648xf32, #tpu.memory_space<vmem>>, vector<16x178xf32>
    %c16_146 = arith.constant 16 : index
    %c0_147 = arith.constant 0 : index
    %117 = vector.load %arg46[%c16_146, %c0_147] : memref<576x610xf32, #tpu.memory_space<vmem>>, vector<16x178xf32>
    tpu.vector_store %arg46[%c16_146, %c0_147], %116 {strides = array<i32>} : memref<576x610xf32, #tpu.memory_space<vmem>>, vector<16x178xf32>,
    %c0_148 = arith.constant 0 : index
    %c2_149 = arith.constant 2 : index
    %118 = vector.load %arg47[%c0_148, %c2_149] : memref<64x648xf32, #tpu.memory_space<vmem>>, vector<16x178xf32>
    %c32_150 = arith.constant 32 : index
    %c0_151 = arith.constant 0 : index
    %119 = vector.load %arg46[%c32_150, %c0_151] : memref<576x610xf32, #tpu.memory_space<vmem>>, vector<16x178xf32>
    tpu.vector_store %arg46[%c32_150, %c0_151], %118 {strides = array<i32>} : memref<576x610xf32, #tpu.memory_space<vmem>>, vector<16x178xf32>,
    %c0_152 = arith.constant 0 : index
    %c10_153 = arith.constant 10 : index
    %120 = vector.load %arg47[%c0_152, %c10_153] : memref<64x648xf32, #tpu.memory_space<vmem>>, vector<16x178xf32>
    %c48_154 = arith.constant 48 : index
    %c0_155 = arith.constant 0 : index
    %121 = vector.load %arg46[%c48_154, %c0_155] : memref<576x610xf32, #tpu.memory_space<vmem>>, vector<16x178xf32>
    tpu.vector_store %arg46[%c48_154, %c0_155], %120 {strides = array<i32>} : memref<576x610xf32, #tpu.memory_space<vmem>>, vector<16x178xf32>,
    %c0_156 = arith.constant 0 : index
    %c11_157 = arith.constant 11 : index
    %122 = vector.load %arg47[%c0_156, %c11_157] : memref<64x648xf32, #tpu.memory_space<vmem>>, vector<16x178xf32>
    %c64_158 = arith.constant 64 : index
    %c0_159 = arith.constant 0 : index
    %123 = vector.load %arg46[%c64_158, %c0_159] : memref<576x610xf32, #tpu.memory_space<vmem>>, vector<16x178xf32>
    tpu.vector_store %arg46[%c64_158, %c0_159], %122 {strides = array<i32>} : memref<576x610xf32, #tpu.memory_space<vmem>>, vector<16x178xf32>,
    %c0_160 = arith.constant 0 : index
    %c12_161 = arith.constant 12 : index
    %124 = vector.load %arg47[%c0_160, %c12_161] : memref<64x648xf32, #tpu.memory_space<vmem>>, vector<16x178xf32>
    %c80 = arith.constant 80 : index
    %c0_162 = arith.constant 0 : index
    %125 = vector.load %arg46[%c80, %c0_162] : memref<576x610xf32, #tpu.memory_space<vmem>>, vector<16x178xf32>
    tpu.vector_store %arg46[%c80, %c0_162], %124 {strides = array<i32>} : memref<576x610xf32, #tpu.memory_space<vmem>>, vector<16x178xf32>,
    %c0_163 = arith.constant 0 : index
    %c20_164 = arith.constant 20 : index
    %126 = vector.load %arg47[%c0_163, %c20_164] : memref<64x648xf32, #tpu.memory_space<vmem>>, vector<16x178xf32>
    %c96 = arith.constant 96 : index
    %c0_165 = arith.constant 0 : index
    %127 = vector.load %arg46[%c96, %c0_165] : memref<576x610xf32, #tpu.memory_space<vmem>>, vector<16x178xf32>
    tpu.vector_store %arg46[%c96, %c0_165], %126 {strides = array<i32>} : memref<576x610xf32, #tpu.memory_space<vmem>>, vector<16x178xf32>,
    %c0_166 = arith.constant 0 : index
    %c21_167 = arith.constant 21 : index
    %128 = vector.load %arg47[%c0_166, %c21_167] : memref<64x648xf32, #tpu.memory_space<vmem>>, vector<16x178xf32>
    %c112 = arith.constant 112 : index
    %c0_168 = arith.constant 0 : index
    %129 = vector.load %arg46[%c112, %c0_168] : memref<576x610xf32, #tpu.memory_space<vmem>>, vector<16x178xf32>
    tpu.vector_store %arg46[%c112, %c0_168], %128 {strides = array<i32>} : memref<576x610xf32, #tpu.memory_space<vmem>>, vector<16x178xf32>,
    %c0_169 = arith.constant 0 : index
    %c22_170 = arith.constant 22 : index
    %130 = vector.load %arg47[%c0_169, %c22_170] : memref<64x648xf32, #tpu.memory_space<vmem>>, vector<16x178xf32>
    %c128 = arith.constant 128 : index
    %c0_171 = arith.constant 0 : index
    %131 = vector.load %arg46[%c128, %c0_171] : memref<576x610xf32, #tpu.memory_space<vmem>>, vector<16x178xf32>
    tpu.vector_store %arg46[%c128, %c0_171], %130 {strides = array<i32>} : memref<576x610xf32, #tpu.memory_space<vmem>>, vector<16x178xf32>,
    %c0_172 = arith.constant 0 : index
    %c0_173 = arith.constant 0 : index
    %132 = vector.load %arg11[%c0_172, %c0_173] : memref<16x144xf32, #tpu.memory_space<vmem>>, vector<16x144xf32>
    %c0_174 = arith.constant 0 : index
    %c0_175 = arith.constant 0 : index
    %133 = vector.load %arg46[%c0_174, %c0_175] : memref<576x610xf32, #tpu.memory_space<vmem>>, vector<144x178xf32>
    %cst_176 = arith.constant dense<0.000000e+00> : vector<16x178xf32>
    %134 = tpu.matmul %132, %133, %cst_176 {dimension_numbers = #tpu.dot_dimension_numbers<[1], [0], [0], [1], [0, 0, 1, 1], [], []>} : vector<16x144xf32>, vector<144x178xf32>, vector<16x178xf32> -> vector<16x178xf32>
    %c0_177 = arith.constant 0 : index
    %c0_178 = arith.constant 0 : index
    %135 = vector.load %arg12[%c0_177, %c0_178] : memref<16x1xf32, #tpu.memory_space<vmem>>, vector<16x1xf32>
    %136 = vector.broadcast %135 : vector<16x1xf32> to vector<16x178xf32>
    %137 = arith.mulf %134, %136 : vector<16x178xf32>
    %c0_179 = arith.constant 0 : index
    %c0_180 = arith.constant 0 : index
    %138 = vector.load %arg13[%c0_179, %c0_180] : memref<16x1xf32, #tpu.memory_space<vmem>>, vector<16x1xf32>
    %139 = vector.broadcast %138 : vector<16x1xf32> to vector<16x178xf32>
    %140 = arith.addf %137, %139 : vector<16x178xf32>
    %cst_181 = arith.constant 0.000000e+00 : f32
    %141 = vector.broadcast %cst_181 : f32 to vector<16x178xf32>
    %142 = arith.maximumf %140, %141 : vector<16x178xf32>
    %c0_182 = arith.constant 0 : index
    %c0_183 = arith.constant 0 : index
    %143 = vector.load %arg42[%c0_182, %c0_183] : memref<16x178xf32, #tpu.memory_space<vmem>>, vector<16x178xf32>
    tpu.vector_store %arg42[%c0_182, %c0_183], %142 {strides = array<i32>} : memref<16x178xf32, #tpu.memory_space<vmem>>, vector<16x178xf32>,
    %144 = vector.extract_strided_slice %142 {offsets = [0, 0], sizes = [16, 167], strides = [1, 1]} : vector<16x178xf32> to vector<16x167xf32>
    %145 = vector.extract_strided_slice %142 {offsets = [0, 1], sizes = [16, 167], strides = [1, 1]} : vector<16x178xf32> to vector<16x167xf32>
    %146 = arith.maximumf %144, %145 : vector<16x167xf32>
    %147 = vector.extract_strided_slice %142 {offsets = [0, 10], sizes = [16, 167], strides = [1, 1]} : vector<16x178xf32> to vector<16x167xf32>
    %148 = vector.extract_strided_slice %142 {offsets = [0, 11], sizes = [16, 167], strides = [1, 1]} : vector<16x178xf32> to vector<16x167xf32>
    %149 = arith.maximumf %147, %148 : vector<16x167xf32>
    %150 = arith.maximumf %146, %149 : vector<16x167xf32>
    %c0_184 = arith.constant 0 : index
    %c0_185 = arith.constant 0 : index
    %151 = vector.load %arg38[%c0_184, %c0_185] : memref<167x72xf32, #tpu.memory_space<vmem>>, vector<167x72xf32>
    %cst_186 = arith.constant dense<0.000000e+00> : vector<16x72xf32>
    %152 = tpu.matmul %150, %151, %cst_186 {dimension_numbers = #tpu.dot_dimension_numbers<[1], [0], [0], [1], [0, 0, 1, 1], [], []>} : vector<16x167xf32>, vector<167x72xf32>, vector<16x72xf32> -> vector<16x72xf32>
    %c0_187 = arith.constant 0 : index
    %c0_188 = arith.constant 0 : index
    %153 = vector.load %arg47[%c0_187, %c0_188] : memref<64x648xf32, #tpu.memory_space<vmem>>, vector<16x72xf32>
    tpu.vector_store %arg47[%c0_187, %c0_188], %152 {strides = array<i32>} : memref<64x648xf32, #tpu.memory_space<vmem>>, vector<16x72xf32>,
    %c0_189 = arith.constant 0 : index
    %c0_190 = arith.constant 0 : index
    %154 = vector.load %arg47[%c0_189, %c0_190] : memref<64x648xf32, #tpu.memory_space<vmem>>, vector<16x58xf32>
    %c0_191 = arith.constant 0 : index
    %c0_192 = arith.constant 0 : index
    %155 = vector.load %arg46[%c0_191, %c0_192] : memref<576x610xf32, #tpu.memory_space<vmem>>, vector<16x58xf32>
    tpu.vector_store %arg46[%c0_191, %c0_192], %154 {strides = array<i32>} : memref<576x610xf32, #tpu.memory_space<vmem>>, vector<16x58xf32>,
    %c0_193 = arith.constant 0 : index
    %c1_194 = arith.constant 1 : index
    %156 = vector.load %arg47[%c0_193, %c1_194] : memref<64x648xf32, #tpu.memory_space<vmem>>, vector<16x58xf32>
    %c16_195 = arith.constant 16 : index
    %c0_196 = arith.constant 0 : index
    %157 = vector.load %arg46[%c16_195, %c0_196] : memref<576x610xf32, #tpu.memory_space<vmem>>, vector<16x58xf32>
    tpu.vector_store %arg46[%c16_195, %c0_196], %156 {strides = array<i32>} : memref<576x610xf32, #tpu.memory_space<vmem>>, vector<16x58xf32>,
    %c0_197 = arith.constant 0 : index
    %c2_198 = arith.constant 2 : index
    %158 = vector.load %arg47[%c0_197, %c2_198] : memref<64x648xf32, #tpu.memory_space<vmem>>, vector<16x58xf32>
    %c32_199 = arith.constant 32 : index
    %c0_200 = arith.constant 0 : index
    %159 = vector.load %arg46[%c32_199, %c0_200] : memref<576x610xf32, #tpu.memory_space<vmem>>, vector<16x58xf32>
    tpu.vector_store %arg46[%c32_199, %c0_200], %158 {strides = array<i32>} : memref<576x610xf32, #tpu.memory_space<vmem>>, vector<16x58xf32>,
    %c0_201 = arith.constant 0 : index
    %c6 = arith.constant 6 : index
    %160 = vector.load %arg47[%c0_201, %c6] : memref<64x648xf32, #tpu.memory_space<vmem>>, vector<16x58xf32>
    %c48_202 = arith.constant 48 : index
    %c0_203 = arith.constant 0 : index
    %161 = vector.load %arg46[%c48_202, %c0_203] : memref<576x610xf32, #tpu.memory_space<vmem>>, vector<16x58xf32>
    tpu.vector_store %arg46[%c48_202, %c0_203], %160 {strides = array<i32>} : memref<576x610xf32, #tpu.memory_space<vmem>>, vector<16x58xf32>,
    %c0_204 = arith.constant 0 : index
    %c7 = arith.constant 7 : index
    %162 = vector.load %arg47[%c0_204, %c7] : memref<64x648xf32, #tpu.memory_space<vmem>>, vector<16x58xf32>
    %c64_205 = arith.constant 64 : index
    %c0_206 = arith.constant 0 : index
    %163 = vector.load %arg46[%c64_205, %c0_206] : memref<576x610xf32, #tpu.memory_space<vmem>>, vector<16x58xf32>
    tpu.vector_store %arg46[%c64_205, %c0_206], %162 {strides = array<i32>} : memref<576x610xf32, #tpu.memory_space<vmem>>, vector<16x58xf32>,
    %c0_207 = arith.constant 0 : index
    %c8_208 = arith.constant 8 : index
    %164 = vector.load %arg47[%c0_207, %c8_208] : memref<64x648xf32, #tpu.memory_space<vmem>>, vector<16x58xf32>
    %c80_209 = arith.constant 80 : index
    %c0_210 = arith.constant 0 : index
    %165 = vector.load %arg46[%c80_209, %c0_210] : memref<576x610xf32, #tpu.memory_space<vmem>>, vector<16x58xf32>
    tpu.vector_store %arg46[%c80_209, %c0_210], %164 {strides = array<i32>} : memref<576x610xf32, #tpu.memory_space<vmem>>, vector<16x58xf32>,
    %c0_211 = arith.constant 0 : index
    %c12_212 = arith.constant 12 : index
    %166 = vector.load %arg47[%c0_211, %c12_212] : memref<64x648xf32, #tpu.memory_space<vmem>>, vector<16x58xf32>
    %c96_213 = arith.constant 96 : index
    %c0_214 = arith.constant 0 : index
    %167 = vector.load %arg46[%c96_213, %c0_214] : memref<576x610xf32, #tpu.memory_space<vmem>>, vector<16x58xf32>
    tpu.vector_store %arg46[%c96_213, %c0_214], %166 {strides = array<i32>} : memref<576x610xf32, #tpu.memory_space<vmem>>, vector<16x58xf32>,
    %c0_215 = arith.constant 0 : index
    %c13 = arith.constant 13 : index
    %168 = vector.load %arg47[%c0_215, %c13] : memref<64x648xf32, #tpu.memory_space<vmem>>, vector<16x58xf32>
    %c112_216 = arith.constant 112 : index
    %c0_217 = arith.constant 0 : index
    %169 = vector.load %arg46[%c112_216, %c0_217] : memref<576x610xf32, #tpu.memory_space<vmem>>, vector<16x58xf32>
    tpu.vector_store %arg46[%c112_216, %c0_217], %168 {strides = array<i32>} : memref<576x610xf32, #tpu.memory_space<vmem>>, vector<16x58xf32>,
    %c0_218 = arith.constant 0 : index
    %c14 = arith.constant 14 : index
    %170 = vector.load %arg47[%c0_218, %c14] : memref<64x648xf32, #tpu.memory_space<vmem>>, vector<16x58xf32>
    %c128_219 = arith.constant 128 : index
    %c0_220 = arith.constant 0 : index
    %171 = vector.load %arg46[%c128_219, %c0_220] : memref<576x610xf32, #tpu.memory_space<vmem>>, vector<16x58xf32>
    tpu.vector_store %arg46[%c128_219, %c0_220], %170 {strides = array<i32>} : memref<576x610xf32, #tpu.memory_space<vmem>>, vector<16x58xf32>,
    %c0_221 = arith.constant 0 : index
    %c0_222 = arith.constant 0 : index
    %172 = vector.load %arg14[%c0_221, %c0_222] : memref<32x144xf32, #tpu.memory_space<vmem>>, vector<32x144xf32>
    %c0_223 = arith.constant 0 : index
    %c0_224 = arith.constant 0 : index
    %173 = vector.load %arg46[%c0_223, %c0_224] : memref<576x610xf32, #tpu.memory_space<vmem>>, vector<144x58xf32>
    %cst_225 = arith.constant dense<0.000000e+00> : vector<32x58xf32>
    %174 = tpu.matmul %172, %173, %cst_225 {dimension_numbers = #tpu.dot_dimension_numbers<[1], [0], [0], [1], [0, 0, 1, 1], [], []>} : vector<32x144xf32>, vector<144x58xf32>, vector<32x58xf32> -> vector<32x58xf32>
    %c0_226 = arith.constant 0 : index
    %c0_227 = arith.constant 0 : index
    %175 = vector.load %arg15[%c0_226, %c0_227] : memref<32x1xf32, #tpu.memory_space<vmem>>, vector<32x1xf32>
    %176 = vector.broadcast %175 : vector<32x1xf32> to vector<32x58xf32>
    %177 = arith.mulf %174, %176 : vector<32x58xf32>
    %c0_228 = arith.constant 0 : index
    %c0_229 = arith.constant 0 : index
    %178 = vector.load %arg16[%c0_228, %c0_229] : memref<32x1xf32, #tpu.memory_space<vmem>>, vector<32x1xf32>
    %179 = vector.broadcast %178 : vector<32x1xf32> to vector<32x58xf32>
    %180 = arith.addf %177, %179 : vector<32x58xf32>
    %cst_230 = arith.constant 0.000000e+00 : f32
    %181 = vector.broadcast %cst_230 : f32 to vector<32x58xf32>
    %182 = arith.maximumf %180, %181 : vector<32x58xf32>
    %cst_231 = arith.constant 0.000000e+00 : f32
    %183 = vector.broadcast %cst_231 : f32 to vector<32x7xf32>
    %c0_232 = arith.constant 0 : index
    %c0_233 = arith.constant 0 : index
    %184 = vector.load %arg47[%c0_232, %c0_233] : memref<64x648xf32, #tpu.memory_space<vmem>>, vector<32x7xf32>
    tpu.vector_store %arg47[%c0_232, %c0_233], %183 {strides = array<i32>} : memref<64x648xf32, #tpu.memory_space<vmem>>, vector<32x7xf32>,
    %c0_234 = arith.constant 0 : index
    %c0_235 = arith.constant 0 : index
    %185 = vector.load %arg34[%c0_234, %c0_235] : memref<1x58xf32, #tpu.memory_space<vmem>>, vector<1x58xf32>
    %186 = vector.broadcast %185 : vector<1x58xf32> to vector<32x58xf32>
    %187 = arith.mulf %182, %186 : vector<32x58xf32>
    %c0_236 = arith.constant 0 : index
    %c7_237 = arith.constant 7 : index
    %188 = vector.load %arg47[%c0_236, %c7_237] : memref<64x648xf32, #tpu.memory_space<vmem>>, vector<32x58xf32>
    tpu.vector_store %arg47[%c0_236, %c7_237], %187 {strides = array<i32>} : memref<64x648xf32, #tpu.memory_space<vmem>>, vector<32x58xf32>,
    %cst_238 = arith.constant 0.000000e+00 : f32
    %189 = vector.broadcast %cst_238 : f32 to vector<32x7xf32>
    %c0_239 = arith.constant 0 : index
    %c65 = arith.constant 65 : index
    %190 = vector.load %arg47[%c0_239, %c65] : memref<64x648xf32, #tpu.memory_space<vmem>>, vector<32x7xf32>
    tpu.vector_store %arg47[%c0_239, %c65], %189 {strides = array<i32>} : memref<64x648xf32, #tpu.memory_space<vmem>>, vector<32x7xf32>,
    %c0_240 = arith.constant 0 : index
    %c0_241 = arith.constant 0 : index
    %191 = vector.load %arg47[%c0_240, %c0_241] : memref<64x648xf32, #tpu.memory_space<vmem>>, vector<32x58xf32>
    %c0_242 = arith.constant 0 : index
    %c0_243 = arith.constant 0 : index
    %192 = vector.load %arg46[%c0_242, %c0_243] : memref<576x610xf32, #tpu.memory_space<vmem>>, vector<32x58xf32>
    tpu.vector_store %arg46[%c0_242, %c0_243], %191 {strides = array<i32>} : memref<576x610xf32, #tpu.memory_space<vmem>>, vector<32x58xf32>,
    %c0_244 = arith.constant 0 : index
    %c1_245 = arith.constant 1 : index
    %193 = vector.load %arg47[%c0_244, %c1_245] : memref<64x648xf32, #tpu.memory_space<vmem>>, vector<32x58xf32>
    %c32_246 = arith.constant 32 : index
    %c0_247 = arith.constant 0 : index
    %194 = vector.load %arg46[%c32_246, %c0_247] : memref<576x610xf32, #tpu.memory_space<vmem>>, vector<32x58xf32>
    tpu.vector_store %arg46[%c32_246, %c0_247], %193 {strides = array<i32>} : memref<576x610xf32, #tpu.memory_space<vmem>>, vector<32x58xf32>,
    %c0_248 = arith.constant 0 : index
    %c2_249 = arith.constant 2 : index
    %195 = vector.load %arg47[%c0_248, %c2_249] : memref<64x648xf32, #tpu.memory_space<vmem>>, vector<32x58xf32>
    %c64_250 = arith.constant 64 : index
    %c0_251 = arith.constant 0 : index
    %196 = vector.load %arg46[%c64_250, %c0_251] : memref<576x610xf32, #tpu.memory_space<vmem>>, vector<32x58xf32>
    tpu.vector_store %arg46[%c64_250, %c0_251], %195 {strides = array<i32>} : memref<576x610xf32, #tpu.memory_space<vmem>>, vector<32x58xf32>,
    %c0_252 = arith.constant 0 : index
    %c6_253 = arith.constant 6 : index
    %197 = vector.load %arg47[%c0_252, %c6_253] : memref<64x648xf32, #tpu.memory_space<vmem>>, vector<32x58xf32>
    %c96_254 = arith.constant 96 : index
    %c0_255 = arith.constant 0 : index
    %198 = vector.load %arg46[%c96_254, %c0_255] : memref<576x610xf32, #tpu.memory_space<vmem>>, vector<32x58xf32>
    tpu.vector_store %arg46[%c96_254, %c0_255], %197 {strides = array<i32>} : memref<576x610xf32, #tpu.memory_space<vmem>>, vector<32x58xf32>,
    %c0_256 = arith.constant 0 : index
    %c7_257 = arith.constant 7 : index
    %199 = vector.load %arg47[%c0_256, %c7_257] : memref<64x648xf32, #tpu.memory_space<vmem>>, vector<32x58xf32>
    %c128_258 = arith.constant 128 : index
    %c0_259 = arith.constant 0 : index
    %200 = vector.load %arg46[%c128_258, %c0_259] : memref<576x610xf32, #tpu.memory_space<vmem>>, vector<32x58xf32>
    tpu.vector_store %arg46[%c128_258, %c0_259], %199 {strides = array<i32>} : memref<576x610xf32, #tpu.memory_space<vmem>>, vector<32x58xf32>,
    %c0_260 = arith.constant 0 : index
    %c8_261 = arith.constant 8 : index
    %201 = vector.load %arg47[%c0_260, %c8_261] : memref<64x648xf32, #tpu.memory_space<vmem>>, vector<32x58xf32>
    %c160 = arith.constant 160 : index
    %c0_262 = arith.constant 0 : index
    %202 = vector.load %arg46[%c160, %c0_262] : memref<576x610xf32, #tpu.memory_space<vmem>>, vector<32x58xf32>
    tpu.vector_store %arg46[%c160, %c0_262], %201 {strides = array<i32>} : memref<576x610xf32, #tpu.memory_space<vmem>>, vector<32x58xf32>,
    %c0_263 = arith.constant 0 : index
    %c12_264 = arith.constant 12 : index
    %203 = vector.load %arg47[%c0_263, %c12_264] : memref<64x648xf32, #tpu.memory_space<vmem>>, vector<32x58xf32>
    %c192 = arith.constant 192 : index
    %c0_265 = arith.constant 0 : index
    %204 = vector.load %arg46[%c192, %c0_265] : memref<576x610xf32, #tpu.memory_space<vmem>>, vector<32x58xf32>
    tpu.vector_store %arg46[%c192, %c0_265], %203 {strides = array<i32>} : memref<576x610xf32, #tpu.memory_space<vmem>>, vector<32x58xf32>,
    %c0_266 = arith.constant 0 : index
    %c13_267 = arith.constant 13 : index
    %205 = vector.load %arg47[%c0_266, %c13_267] : memref<64x648xf32, #tpu.memory_space<vmem>>, vector<32x58xf32>
    %c224 = arith.constant 224 : index
    %c0_268 = arith.constant 0 : index
    %206 = vector.load %arg46[%c224, %c0_268] : memref<576x610xf32, #tpu.memory_space<vmem>>, vector<32x58xf32>
    tpu.vector_store %arg46[%c224, %c0_268], %205 {strides = array<i32>} : memref<576x610xf32, #tpu.memory_space<vmem>>, vector<32x58xf32>,
    %c0_269 = arith.constant 0 : index
    %c14_270 = arith.constant 14 : index
    %207 = vector.load %arg47[%c0_269, %c14_270] : memref<64x648xf32, #tpu.memory_space<vmem>>, vector<32x58xf32>
    %c256 = arith.constant 256 : index
    %c0_271 = arith.constant 0 : index
    %208 = vector.load %arg46[%c256, %c0_271] : memref<576x610xf32, #tpu.memory_space<vmem>>, vector<32x58xf32>
    tpu.vector_store %arg46[%c256, %c0_271], %207 {strides = array<i32>} : memref<576x610xf32, #tpu.memory_space<vmem>>, vector<32x58xf32>,
    %c0_272 = arith.constant 0 : index
    %c0_273 = arith.constant 0 : index
    %209 = vector.load %arg17[%c0_272, %c0_273] : memref<32x288xf32, #tpu.memory_space<vmem>>, vector<32x288xf32>
    %c0_274 = arith.constant 0 : index
    %c0_275 = arith.constant 0 : index
    %210 = vector.load %arg46[%c0_274, %c0_275] : memref<576x610xf32, #tpu.memory_space<vmem>>, vector<288x58xf32>
    %cst_276 = arith.constant dense<0.000000e+00> : vector<32x58xf32>
    %211 = tpu.matmul %209, %210, %cst_276 {dimension_numbers = #tpu.dot_dimension_numbers<[1], [0], [0], [1], [0, 0, 1, 1], [], []>} : vector<32x288xf32>, vector<288x58xf32>, vector<32x58xf32> -> vector<32x58xf32>
    %c0_277 = arith.constant 0 : index
    %c0_278 = arith.constant 0 : index
    %212 = vector.load %arg18[%c0_277, %c0_278] : memref<32x1xf32, #tpu.memory_space<vmem>>, vector<32x1xf32>
    %213 = vector.broadcast %212 : vector<32x1xf32> to vector<32x58xf32>
    %214 = arith.mulf %211, %213 : vector<32x58xf32>
    %c0_279 = arith.constant 0 : index
    %c0_280 = arith.constant 0 : index
    %215 = vector.load %arg19[%c0_279, %c0_280] : memref<32x1xf32, #tpu.memory_space<vmem>>, vector<32x1xf32>
    %216 = vector.broadcast %215 : vector<32x1xf32> to vector<32x58xf32>
    %217 = arith.addf %214, %216 : vector<32x58xf32>
    %cst_281 = arith.constant 0.000000e+00 : f32
    %218 = vector.broadcast %cst_281 : f32 to vector<32x58xf32>
    %219 = arith.maximumf %217, %218 : vector<32x58xf32>
    %c0_282 = arith.constant 0 : index
    %c0_283 = arith.constant 0 : index
    %220 = vector.load %arg43[%c0_282, %c0_283] : memref<32x58xf32, #tpu.memory_space<vmem>>, vector<32x58xf32>
    tpu.vector_store %arg43[%c0_282, %c0_283], %219 {strides = array<i32>} : memref<32x58xf32, #tpu.memory_space<vmem>>, vector<32x58xf32>,
    %221 = vector.extract_strided_slice %219 {offsets = [0, 0], sizes = [32, 51], strides = [1, 1]} : vector<32x58xf32> to vector<32x51xf32>
    %222 = vector.extract_strided_slice %219 {offsets = [0, 1], sizes = [32, 51], strides = [1, 1]} : vector<32x58xf32> to vector<32x51xf32>
    %223 = arith.maximumf %221, %222 : vector<32x51xf32>
    %224 = vector.extract_strided_slice %219 {offsets = [0, 6], sizes = [32, 51], strides = [1, 1]} : vector<32x58xf32> to vector<32x51xf32>
    %225 = vector.extract_strided_slice %219 {offsets = [0, 7], sizes = [32, 51], strides = [1, 1]} : vector<32x58xf32> to vector<32x51xf32>
    %226 = arith.maximumf %224, %225 : vector<32x51xf32>
    %227 = arith.maximumf %223, %226 : vector<32x51xf32>
    %c0_284 = arith.constant 0 : index
    %c0_285 = arith.constant 0 : index
    %228 = vector.load %arg39[%c0_284, %c0_285] : memref<51x32xf32, #tpu.memory_space<vmem>>, vector<51x32xf32>
    %cst_286 = arith.constant dense<0.000000e+00> : vector<32x32xf32>
    %229 = tpu.matmul %227, %228, %cst_286 {dimension_numbers = #tpu.dot_dimension_numbers<[1], [0], [0], [1], [0, 0, 1, 1], [], []>} : vector<32x51xf32>, vector<51x32xf32>, vector<32x32xf32> -> vector<32x32xf32>
    %c0_287 = arith.constant 0 : index
    %c0_288 = arith.constant 0 : index
    %230 = vector.load %arg47[%c0_287, %c0_288] : memref<64x648xf32, #tpu.memory_space<vmem>>, vector<32x32xf32>
    tpu.vector_store %arg47[%c0_287, %c0_288], %229 {strides = array<i32>} : memref<64x648xf32, #tpu.memory_space<vmem>>, vector<32x32xf32>,
    %c0_289 = arith.constant 0 : index
    %c0_290 = arith.constant 0 : index
    %231 = vector.load %arg47[%c0_289, %c0_290] : memref<64x648xf32, #tpu.memory_space<vmem>>, vector<32x22xf32>
    %c0_291 = arith.constant 0 : index
    %c0_292 = arith.constant 0 : index
    %232 = vector.load %arg46[%c0_291, %c0_292] : memref<576x610xf32, #tpu.memory_space<vmem>>, vector<32x22xf32>
    tpu.vector_store %arg46[%c0_291, %c0_292], %231 {strides = array<i32>} : memref<576x610xf32, #tpu.memory_space<vmem>>, vector<32x22xf32>,
    %c0_293 = arith.constant 0 : index
    %c1_294 = arith.constant 1 : index
    %233 = vector.load %arg47[%c0_293, %c1_294] : memref<64x648xf32, #tpu.memory_space<vmem>>, vector<32x22xf32>
    %c32_295 = arith.constant 32 : index
    %c0_296 = arith.constant 0 : index
    %234 = vector.load %arg46[%c32_295, %c0_296] : memref<576x610xf32, #tpu.memory_space<vmem>>, vector<32x22xf32>
    tpu.vector_store %arg46[%c32_295, %c0_296], %233 {strides = array<i32>} : memref<576x610xf32, #tpu.memory_space<vmem>>, vector<32x22xf32>,
    %c0_297 = arith.constant 0 : index
    %c2_298 = arith.constant 2 : index
    %235 = vector.load %arg47[%c0_297, %c2_298] : memref<64x648xf32, #tpu.memory_space<vmem>>, vector<32x22xf32>
    %c64_299 = arith.constant 64 : index
    %c0_300 = arith.constant 0 : index
    %236 = vector.load %arg46[%c64_299, %c0_300] : memref<576x610xf32, #tpu.memory_space<vmem>>, vector<32x22xf32>
    tpu.vector_store %arg46[%c64_299, %c0_300], %235 {strides = array<i32>} : memref<576x610xf32, #tpu.memory_space<vmem>>, vector<32x22xf32>,
    %c0_301 = arith.constant 0 : index
    %c4 = arith.constant 4 : index
    %237 = vector.load %arg47[%c0_301, %c4] : memref<64x648xf32, #tpu.memory_space<vmem>>, vector<32x22xf32>
    %c96_302 = arith.constant 96 : index
    %c0_303 = arith.constant 0 : index
    %238 = vector.load %arg46[%c96_302, %c0_303] : memref<576x610xf32, #tpu.memory_space<vmem>>, vector<32x22xf32>
    tpu.vector_store %arg46[%c96_302, %c0_303], %237 {strides = array<i32>} : memref<576x610xf32, #tpu.memory_space<vmem>>, vector<32x22xf32>,
    %c0_304 = arith.constant 0 : index
    %c5 = arith.constant 5 : index
    %239 = vector.load %arg47[%c0_304, %c5] : memref<64x648xf32, #tpu.memory_space<vmem>>, vector<32x22xf32>
    %c128_305 = arith.constant 128 : index
    %c0_306 = arith.constant 0 : index
    %240 = vector.load %arg46[%c128_305, %c0_306] : memref<576x610xf32, #tpu.memory_space<vmem>>, vector<32x22xf32>
    tpu.vector_store %arg46[%c128_305, %c0_306], %239 {strides = array<i32>} : memref<576x610xf32, #tpu.memory_space<vmem>>, vector<32x22xf32>,
    %c0_307 = arith.constant 0 : index
    %c6_308 = arith.constant 6 : index
    %241 = vector.load %arg47[%c0_307, %c6_308] : memref<64x648xf32, #tpu.memory_space<vmem>>, vector<32x22xf32>
    %c160_309 = arith.constant 160 : index
    %c0_310 = arith.constant 0 : index
    %242 = vector.load %arg46[%c160_309, %c0_310] : memref<576x610xf32, #tpu.memory_space<vmem>>, vector<32x22xf32>
    tpu.vector_store %arg46[%c160_309, %c0_310], %241 {strides = array<i32>} : memref<576x610xf32, #tpu.memory_space<vmem>>, vector<32x22xf32>,
    %c0_311 = arith.constant 0 : index
    %c8_312 = arith.constant 8 : index
    %243 = vector.load %arg47[%c0_311, %c8_312] : memref<64x648xf32, #tpu.memory_space<vmem>>, vector<32x22xf32>
    %c192_313 = arith.constant 192 : index
    %c0_314 = arith.constant 0 : index
    %244 = vector.load %arg46[%c192_313, %c0_314] : memref<576x610xf32, #tpu.memory_space<vmem>>, vector<32x22xf32>
    tpu.vector_store %arg46[%c192_313, %c0_314], %243 {strides = array<i32>} : memref<576x610xf32, #tpu.memory_space<vmem>>, vector<32x22xf32>,
    %c0_315 = arith.constant 0 : index
    %c9 = arith.constant 9 : index
    %245 = vector.load %arg47[%c0_315, %c9] : memref<64x648xf32, #tpu.memory_space<vmem>>, vector<32x22xf32>
    %c224_316 = arith.constant 224 : index
    %c0_317 = arith.constant 0 : index
    %246 = vector.load %arg46[%c224_316, %c0_317] : memref<576x610xf32, #tpu.memory_space<vmem>>, vector<32x22xf32>
    tpu.vector_store %arg46[%c224_316, %c0_317], %245 {strides = array<i32>} : memref<576x610xf32, #tpu.memory_space<vmem>>, vector<32x22xf32>,
    %c0_318 = arith.constant 0 : index
    %c10_319 = arith.constant 10 : index
    %247 = vector.load %arg47[%c0_318, %c10_319] : memref<64x648xf32, #tpu.memory_space<vmem>>, vector<32x22xf32>
    %c256_320 = arith.constant 256 : index
    %c0_321 = arith.constant 0 : index
    %248 = vector.load %arg46[%c256_320, %c0_321] : memref<576x610xf32, #tpu.memory_space<vmem>>, vector<32x22xf32>
    tpu.vector_store %arg46[%c256_320, %c0_321], %247 {strides = array<i32>} : memref<576x610xf32, #tpu.memory_space<vmem>>, vector<32x22xf32>,
    %c0_322 = arith.constant 0 : index
    %c0_323 = arith.constant 0 : index
    %249 = vector.load %arg20[%c0_322, %c0_323] : memref<64x288xf32, #tpu.memory_space<vmem>>, vector<64x288xf32>
    %c0_324 = arith.constant 0 : index
    %c0_325 = arith.constant 0 : index
    %250 = vector.load %arg46[%c0_324, %c0_325] : memref<576x610xf32, #tpu.memory_space<vmem>>, vector<288x22xf32>
    %cst_326 = arith.constant dense<0.000000e+00> : vector<64x22xf32>
    %251 = tpu.matmul %249, %250, %cst_326 {dimension_numbers = #tpu.dot_dimension_numbers<[1], [0], [0], [1], [0, 0, 1, 1], [], []>} : vector<64x288xf32>, vector<288x22xf32>, vector<64x22xf32> -> vector<64x22xf32>
    %c0_327 = arith.constant 0 : index
    %c0_328 = arith.constant 0 : index
    %252 = vector.load %arg21[%c0_327, %c0_328] : memref<64x1xf32, #tpu.memory_space<vmem>>, vector<64x1xf32>
    %253 = vector.broadcast %252 : vector<64x1xf32> to vector<64x22xf32>
    %254 = arith.mulf %251, %253 : vector<64x22xf32>
    %c0_329 = arith.constant 0 : index
    %c0_330 = arith.constant 0 : index
    %255 = vector.load %arg22[%c0_329, %c0_330] : memref<64x1xf32, #tpu.memory_space<vmem>>, vector<64x1xf32>
    %256 = vector.broadcast %255 : vector<64x1xf32> to vector<64x22xf32>
    %257 = arith.addf %254, %256 : vector<64x22xf32>
    %cst_331 = arith.constant 0.000000e+00 : f32
    %258 = vector.broadcast %cst_331 : f32 to vector<64x22xf32>
    %259 = arith.maximumf %257, %258 : vector<64x22xf32>
    %cst_332 = arith.constant 0.000000e+00 : f32
    %260 = vector.broadcast %cst_332 : f32 to vector<64x5xf32>
    %c0_333 = arith.constant 0 : index
    %c0_334 = arith.constant 0 : index
    %261 = vector.load %arg47[%c0_333, %c0_334] : memref<64x648xf32, #tpu.memory_space<vmem>>, vector<64x5xf32>
    tpu.vector_store %arg47[%c0_333, %c0_334], %260 {strides = array<i32>} : memref<64x648xf32, #tpu.memory_space<vmem>>, vector<64x5xf32>,
    %c0_335 = arith.constant 0 : index
    %c0_336 = arith.constant 0 : index
    %262 = vector.load %arg35[%c0_335, %c0_336] : memref<1x22xf32, #tpu.memory_space<vmem>>, vector<1x22xf32>
    %263 = vector.broadcast %262 : vector<1x22xf32> to vector<64x22xf32>
    %264 = arith.mulf %259, %263 : vector<64x22xf32>
    %c0_337 = arith.constant 0 : index
    %c5_338 = arith.constant 5 : index
    %265 = vector.load %arg47[%c0_337, %c5_338] : memref<64x648xf32, #tpu.memory_space<vmem>>, vector<64x22xf32>
    tpu.vector_store %arg47[%c0_337, %c5_338], %264 {strides = array<i32>} : memref<64x648xf32, #tpu.memory_space<vmem>>, vector<64x22xf32>,
    %cst_339 = arith.constant 0.000000e+00 : f32
    %266 = vector.broadcast %cst_339 : f32 to vector<64x5xf32>
    %c0_340 = arith.constant 0 : index
    %c27 = arith.constant 27 : index
    %267 = vector.load %arg47[%c0_340, %c27] : memref<64x648xf32, #tpu.memory_space<vmem>>, vector<64x5xf32>
    tpu.vector_store %arg47[%c0_340, %c27], %266 {strides = array<i32>} : memref<64x648xf32, #tpu.memory_space<vmem>>, vector<64x5xf32>,
    %c0_341 = arith.constant 0 : index
    %c0_342 = arith.constant 0 : index
    %268 = vector.load %arg47[%c0_341, %c0_342] : memref<64x648xf32, #tpu.memory_space<vmem>>, vector<64x22xf32>
    %c0_343 = arith.constant 0 : index
    %c0_344 = arith.constant 0 : index
    %269 = vector.load %arg46[%c0_343, %c0_344] : memref<576x610xf32, #tpu.memory_space<vmem>>, vector<64x22xf32>
    tpu.vector_store %arg46[%c0_343, %c0_344], %268 {strides = array<i32>} : memref<576x610xf32, #tpu.memory_space<vmem>>, vector<64x22xf32>,
    %c0_345 = arith.constant 0 : index
    %c1_346 = arith.constant 1 : index
    %270 = vector.load %arg47[%c0_345, %c1_346] : memref<64x648xf32, #tpu.memory_space<vmem>>, vector<64x22xf32>
    %c64_347 = arith.constant 64 : index
    %c0_348 = arith.constant 0 : index
    %271 = vector.load %arg46[%c64_347, %c0_348] : memref<576x610xf32, #tpu.memory_space<vmem>>, vector<64x22xf32>
    tpu.vector_store %arg46[%c64_347, %c0_348], %270 {strides = array<i32>} : memref<576x610xf32, #tpu.memory_space<vmem>>, vector<64x22xf32>,
    %c0_349 = arith.constant 0 : index
    %c2_350 = arith.constant 2 : index
    %272 = vector.load %arg47[%c0_349, %c2_350] : memref<64x648xf32, #tpu.memory_space<vmem>>, vector<64x22xf32>
    %c128_351 = arith.constant 128 : index
    %c0_352 = arith.constant 0 : index
    %273 = vector.load %arg46[%c128_351, %c0_352] : memref<576x610xf32, #tpu.memory_space<vmem>>, vector<64x22xf32>
    tpu.vector_store %arg46[%c128_351, %c0_352], %272 {strides = array<i32>} : memref<576x610xf32, #tpu.memory_space<vmem>>, vector<64x22xf32>,
    %c0_353 = arith.constant 0 : index
    %c4_354 = arith.constant 4 : index
    %274 = vector.load %arg47[%c0_353, %c4_354] : memref<64x648xf32, #tpu.memory_space<vmem>>, vector<64x22xf32>
    %c192_355 = arith.constant 192 : index
    %c0_356 = arith.constant 0 : index
    %275 = vector.load %arg46[%c192_355, %c0_356] : memref<576x610xf32, #tpu.memory_space<vmem>>, vector<64x22xf32>
    tpu.vector_store %arg46[%c192_355, %c0_356], %274 {strides = array<i32>} : memref<576x610xf32, #tpu.memory_space<vmem>>, vector<64x22xf32>,
    %c0_357 = arith.constant 0 : index
    %c5_358 = arith.constant 5 : index
    %276 = vector.load %arg47[%c0_357, %c5_358] : memref<64x648xf32, #tpu.memory_space<vmem>>, vector<64x22xf32>
    %c256_359 = arith.constant 256 : index
    %c0_360 = arith.constant 0 : index
    %277 = vector.load %arg46[%c256_359, %c0_360] : memref<576x610xf32, #tpu.memory_space<vmem>>, vector<64x22xf32>
    tpu.vector_store %arg46[%c256_359, %c0_360], %276 {strides = array<i32>} : memref<576x610xf32, #tpu.memory_space<vmem>>, vector<64x22xf32>,
    %c0_361 = arith.constant 0 : index
    %c6_362 = arith.constant 6 : index
    %278 = vector.load %arg47[%c0_361, %c6_362] : memref<64x648xf32, #tpu.memory_space<vmem>>, vector<64x22xf32>
    %c320 = arith.constant 320 : index
    %c0_363 = arith.constant 0 : index
    %279 = vector.load %arg46[%c320, %c0_363] : memref<576x610xf32, #tpu.memory_space<vmem>>, vector<64x22xf32>
    tpu.vector_store %arg46[%c320, %c0_363], %278 {strides = array<i32>} : memref<576x610xf32, #tpu.memory_space<vmem>>, vector<64x22xf32>,
    %c0_364 = arith.constant 0 : index
    %c8_365 = arith.constant 8 : index
    %280 = vector.load %arg47[%c0_364, %c8_365] : memref<64x648xf32, #tpu.memory_space<vmem>>, vector<64x22xf32>
    %c384 = arith.constant 384 : index
    %c0_366 = arith.constant 0 : index
    %281 = vector.load %arg46[%c384, %c0_366] : memref<576x610xf32, #tpu.memory_space<vmem>>, vector<64x22xf32>
    tpu.vector_store %arg46[%c384, %c0_366], %280 {strides = array<i32>} : memref<576x610xf32, #tpu.memory_space<vmem>>, vector<64x22xf32>,
    %c0_367 = arith.constant 0 : index
    %c9_368 = arith.constant 9 : index
    %282 = vector.load %arg47[%c0_367, %c9_368] : memref<64x648xf32, #tpu.memory_space<vmem>>, vector<64x22xf32>
    %c448 = arith.constant 448 : index
    %c0_369 = arith.constant 0 : index
    %283 = vector.load %arg46[%c448, %c0_369] : memref<576x610xf32, #tpu.memory_space<vmem>>, vector<64x22xf32>
    tpu.vector_store %arg46[%c448, %c0_369], %282 {strides = array<i32>} : memref<576x610xf32, #tpu.memory_space<vmem>>, vector<64x22xf32>,
    %c0_370 = arith.constant 0 : index
    %c10_371 = arith.constant 10 : index
    %284 = vector.load %arg47[%c0_370, %c10_371] : memref<64x648xf32, #tpu.memory_space<vmem>>, vector<64x22xf32>
    %c512 = arith.constant 512 : index
    %c0_372 = arith.constant 0 : index
    %285 = vector.load %arg46[%c512, %c0_372] : memref<576x610xf32, #tpu.memory_space<vmem>>, vector<64x22xf32>
    tpu.vector_store %arg46[%c512, %c0_372], %284 {strides = array<i32>} : memref<576x610xf32, #tpu.memory_space<vmem>>, vector<64x22xf32>,
    %c0_373 = arith.constant 0 : index
    %c0_374 = arith.constant 0 : index
    %286 = vector.load %arg23[%c0_373, %c0_374] : memref<64x576xf32, #tpu.memory_space<vmem>>, vector<64x576xf32>
    %c0_375 = arith.constant 0 : index
    %c0_376 = arith.constant 0 : index
    %287 = vector.load %arg46[%c0_375, %c0_376] : memref<576x610xf32, #tpu.memory_space<vmem>>, vector<576x22xf32>
    %cst_377 = arith.constant dense<0.000000e+00> : vector<64x22xf32>
    %288 = tpu.matmul %286, %287, %cst_377 {dimension_numbers = #tpu.dot_dimension_numbers<[1], [0], [0], [1], [0, 0, 1, 1], [], []>} : vector<64x576xf32>, vector<576x22xf32>, vector<64x22xf32> -> vector<64x22xf32>
    %c0_378 = arith.constant 0 : index
    %c0_379 = arith.constant 0 : index
    %289 = vector.load %arg24[%c0_378, %c0_379] : memref<64x1xf32, #tpu.memory_space<vmem>>, vector<64x1xf32>
    %290 = vector.broadcast %289 : vector<64x1xf32> to vector<64x22xf32>
    %291 = arith.mulf %288, %290 : vector<64x22xf32>
    %c0_380 = arith.constant 0 : index
    %c0_381 = arith.constant 0 : index
    %292 = vector.load %arg25[%c0_380, %c0_381] : memref<64x1xf32, #tpu.memory_space<vmem>>, vector<64x1xf32>
    %293 = vector.broadcast %292 : vector<64x1xf32> to vector<64x22xf32>
    %294 = arith.addf %291, %293 : vector<64x22xf32>
    %cst_382 = arith.constant 0.000000e+00 : f32
    %295 = vector.broadcast %cst_382 : f32 to vector<64x22xf32>
    %296 = arith.maximumf %294, %295 : vector<64x22xf32>
    %c0_383 = arith.constant 0 : index
    %c0_384 = arith.constant 0 : index
    %297 = vector.load %arg44[%c0_383, %c0_384] : memref<64x22xf32, #tpu.memory_space<vmem>>, vector<64x22xf32>
    tpu.vector_store %arg44[%c0_383, %c0_384], %296 {strides = array<i32>} : memref<64x22xf32, #tpu.memory_space<vmem>>, vector<64x22xf32>,
    %298 = vector.extract_strided_slice %296 {offsets = [0, 0], sizes = [64, 17], strides = [1, 1]} : vector<64x22xf32> to vector<64x17xf32>
    %299 = vector.extract_strided_slice %296 {offsets = [0, 1], sizes = [64, 17], strides = [1, 1]} : vector<64x22xf32> to vector<64x17xf32>
    %300 = arith.maximumf %298, %299 : vector<64x17xf32>
    %301 = vector.extract_strided_slice %296 {offsets = [0, 4], sizes = [64, 17], strides = [1, 1]} : vector<64x22xf32> to vector<64x17xf32>
    %302 = vector.extract_strided_slice %296 {offsets = [0, 5], sizes = [64, 17], strides = [1, 1]} : vector<64x22xf32> to vector<64x17xf32>
    %303 = arith.maximumf %301, %302 : vector<64x17xf32>
    %304 = arith.maximumf %300, %303 : vector<64x17xf32>
    %c0_385 = arith.constant 0 : index
    %c0_386 = arith.constant 0 : index
    %305 = vector.load %arg40[%c0_385, %c0_386] : memref<17x18xf32, #tpu.memory_space<vmem>>, vector<17x18xf32>
    %cst_387 = arith.constant dense<0.000000e+00> : vector<64x18xf32>
    %306 = tpu.matmul %304, %305, %cst_387 {dimension_numbers = #tpu.dot_dimension_numbers<[1], [0], [0], [1], [0, 0, 1, 1], [], []>} : vector<64x17xf32>, vector<17x18xf32>, vector<64x18xf32> -> vector<64x18xf32>
    %c0_388 = arith.constant 0 : index
    %c0_389 = arith.constant 0 : index
    %307 = vector.load %arg47[%c0_388, %c0_389] : memref<64x648xf32, #tpu.memory_space<vmem>>, vector<64x18xf32>
    tpu.vector_store %arg47[%c0_388, %c0_389], %306 {strides = array<i32>} : memref<64x648xf32, #tpu.memory_space<vmem>>, vector<64x18xf32>,
    %c0_390 = arith.constant 0 : index
    %c0_391 = arith.constant 0 : index
    %308 = vector.load %arg47[%c0_390, %c0_391] : memref<64x648xf32, #tpu.memory_space<vmem>>, vector<64x10xf32>
    %c0_392 = arith.constant 0 : index
    %c0_393 = arith.constant 0 : index
    %309 = vector.load %arg46[%c0_392, %c0_393] : memref<576x610xf32, #tpu.memory_space<vmem>>, vector<64x10xf32>
    tpu.vector_store %arg46[%c0_392, %c0_393], %308 {strides = array<i32>} : memref<576x610xf32, #tpu.memory_space<vmem>>, vector<64x10xf32>,
    %c0_394 = arith.constant 0 : index
    %c1_395 = arith.constant 1 : index
    %310 = vector.load %arg47[%c0_394, %c1_395] : memref<64x648xf32, #tpu.memory_space<vmem>>, vector<64x10xf32>
    %c64_396 = arith.constant 64 : index
    %c0_397 = arith.constant 0 : index
    %311 = vector.load %arg46[%c64_396, %c0_397] : memref<576x610xf32, #tpu.memory_space<vmem>>, vector<64x10xf32>
    tpu.vector_store %arg46[%c64_396, %c0_397], %310 {strides = array<i32>} : memref<576x610xf32, #tpu.memory_space<vmem>>, vector<64x10xf32>,
    %c0_398 = arith.constant 0 : index
    %c2_399 = arith.constant 2 : index
    %312 = vector.load %arg47[%c0_398, %c2_399] : memref<64x648xf32, #tpu.memory_space<vmem>>, vector<64x10xf32>
    %c128_400 = arith.constant 128 : index
    %c0_401 = arith.constant 0 : index
    %313 = vector.load %arg46[%c128_400, %c0_401] : memref<576x610xf32, #tpu.memory_space<vmem>>, vector<64x10xf32>
    tpu.vector_store %arg46[%c128_400, %c0_401], %312 {strides = array<i32>} : memref<576x610xf32, #tpu.memory_space<vmem>>, vector<64x10xf32>,
    %c0_402 = arith.constant 0 : index
    %c3 = arith.constant 3 : index
    %314 = vector.load %arg47[%c0_402, %c3] : memref<64x648xf32, #tpu.memory_space<vmem>>, vector<64x10xf32>
    %c192_403 = arith.constant 192 : index
    %c0_404 = arith.constant 0 : index
    %315 = vector.load %arg46[%c192_403, %c0_404] : memref<576x610xf32, #tpu.memory_space<vmem>>, vector<64x10xf32>
    tpu.vector_store %arg46[%c192_403, %c0_404], %314 {strides = array<i32>} : memref<576x610xf32, #tpu.memory_space<vmem>>, vector<64x10xf32>,
    %c0_405 = arith.constant 0 : index
    %c4_406 = arith.constant 4 : index
    %316 = vector.load %arg47[%c0_405, %c4_406] : memref<64x648xf32, #tpu.memory_space<vmem>>, vector<64x10xf32>
    %c256_407 = arith.constant 256 : index
    %c0_408 = arith.constant 0 : index
    %317 = vector.load %arg46[%c256_407, %c0_408] : memref<576x610xf32, #tpu.memory_space<vmem>>, vector<64x10xf32>
    tpu.vector_store %arg46[%c256_407, %c0_408], %316 {strides = array<i32>} : memref<576x610xf32, #tpu.memory_space<vmem>>, vector<64x10xf32>,
    %c0_409 = arith.constant 0 : index
    %c5_410 = arith.constant 5 : index
    %318 = vector.load %arg47[%c0_409, %c5_410] : memref<64x648xf32, #tpu.memory_space<vmem>>, vector<64x10xf32>
    %c320_411 = arith.constant 320 : index
    %c0_412 = arith.constant 0 : index
    %319 = vector.load %arg46[%c320_411, %c0_412] : memref<576x610xf32, #tpu.memory_space<vmem>>, vector<64x10xf32>
    tpu.vector_store %arg46[%c320_411, %c0_412], %318 {strides = array<i32>} : memref<576x610xf32, #tpu.memory_space<vmem>>, vector<64x10xf32>,
    %c0_413 = arith.constant 0 : index
    %c6_414 = arith.constant 6 : index
    %320 = vector.load %arg47[%c0_413, %c6_414] : memref<64x648xf32, #tpu.memory_space<vmem>>, vector<64x10xf32>
    %c384_415 = arith.constant 384 : index
    %c0_416 = arith.constant 0 : index
    %321 = vector.load %arg46[%c384_415, %c0_416] : memref<576x610xf32, #tpu.memory_space<vmem>>, vector<64x10xf32>
    tpu.vector_store %arg46[%c384_415, %c0_416], %320 {strides = array<i32>} : memref<576x610xf32, #tpu.memory_space<vmem>>, vector<64x10xf32>,
    %c0_417 = arith.constant 0 : index
    %c7_418 = arith.constant 7 : index
    %322 = vector.load %arg47[%c0_417, %c7_418] : memref<64x648xf32, #tpu.memory_space<vmem>>, vector<64x10xf32>
    %c448_419 = arith.constant 448 : index
    %c0_420 = arith.constant 0 : index
    %323 = vector.load %arg46[%c448_419, %c0_420] : memref<576x610xf32, #tpu.memory_space<vmem>>, vector<64x10xf32>
    tpu.vector_store %arg46[%c448_419, %c0_420], %322 {strides = array<i32>} : memref<576x610xf32, #tpu.memory_space<vmem>>, vector<64x10xf32>,
    %c0_421 = arith.constant 0 : index
    %c8_422 = arith.constant 8 : index
    %324 = vector.load %arg47[%c0_421, %c8_422] : memref<64x648xf32, #tpu.memory_space<vmem>>, vector<64x10xf32>
    %c512_423 = arith.constant 512 : index
    %c0_424 = arith.constant 0 : index
    %325 = vector.load %arg46[%c512_423, %c0_424] : memref<576x610xf32, #tpu.memory_space<vmem>>, vector<64x10xf32>
    tpu.vector_store %arg46[%c512_423, %c0_424], %324 {strides = array<i32>} : memref<576x610xf32, #tpu.memory_space<vmem>>, vector<64x10xf32>,
    %c0_425 = arith.constant 0 : index
    %c0_426 = arith.constant 0 : index
    %326 = vector.load %arg26[%c0_425, %c0_426] : memref<64x576xf32, #tpu.memory_space<vmem>>, vector<64x576xf32>
    %c0_427 = arith.constant 0 : index
    %c0_428 = arith.constant 0 : index
    %327 = vector.load %arg46[%c0_427, %c0_428] : memref<576x610xf32, #tpu.memory_space<vmem>>, vector<576x10xf32>
    %cst_429 = arith.constant dense<0.000000e+00> : vector<64x10xf32>
    %328 = tpu.matmul %326, %327, %cst_429 {dimension_numbers = #tpu.dot_dimension_numbers<[1], [0], [0], [1], [0, 0, 1, 1], [], []>} : vector<64x576xf32>, vector<576x10xf32>, vector<64x10xf32> -> vector<64x10xf32>
    %c0_430 = arith.constant 0 : index
    %c0_431 = arith.constant 0 : index
    %329 = vector.load %arg27[%c0_430, %c0_431] : memref<64x1xf32, #tpu.memory_space<vmem>>, vector<64x1xf32>
    %330 = vector.broadcast %329 : vector<64x1xf32> to vector<64x10xf32>
    %331 = arith.mulf %328, %330 : vector<64x10xf32>
    %c0_432 = arith.constant 0 : index
    %c0_433 = arith.constant 0 : index
    %332 = vector.load %arg28[%c0_432, %c0_433] : memref<64x1xf32, #tpu.memory_space<vmem>>, vector<64x1xf32>
    %333 = vector.broadcast %332 : vector<64x1xf32> to vector<64x10xf32>
    %334 = arith.addf %331, %333 : vector<64x10xf32>
    %cst_434 = arith.constant 0.000000e+00 : f32
    %335 = vector.broadcast %cst_434 : f32 to vector<64x10xf32>
    %336 = arith.maximumf %334, %335 : vector<64x10xf32>
    %cst_435 = arith.constant 0.000000e+00 : f32
    %337 = vector.broadcast %cst_435 : f32 to vector<64x4xf32>
    %c0_436 = arith.constant 0 : index
    %c0_437 = arith.constant 0 : index
    %338 = vector.load %arg47[%c0_436, %c0_437] : memref<64x648xf32, #tpu.memory_space<vmem>>, vector<64x4xf32>
    tpu.vector_store %arg47[%c0_436, %c0_437], %337 {strides = array<i32>} : memref<64x648xf32, #tpu.memory_space<vmem>>, vector<64x4xf32>,
    %c0_438 = arith.constant 0 : index
    %c0_439 = arith.constant 0 : index
    %339 = vector.load %arg36[%c0_438, %c0_439] : memref<1x10xf32, #tpu.memory_space<vmem>>, vector<1x10xf32>
    %340 = vector.broadcast %339 : vector<1x10xf32> to vector<64x10xf32>
    %341 = arith.mulf %336, %340 : vector<64x10xf32>
    %c0_440 = arith.constant 0 : index
    %c4_441 = arith.constant 4 : index
    %342 = vector.load %arg47[%c0_440, %c4_441] : memref<64x648xf32, #tpu.memory_space<vmem>>, vector<64x10xf32>
    tpu.vector_store %arg47[%c0_440, %c4_441], %341 {strides = array<i32>} : memref<64x648xf32, #tpu.memory_space<vmem>>, vector<64x10xf32>,
    %cst_442 = arith.constant 0.000000e+00 : f32
    %343 = vector.broadcast %cst_442 : f32 to vector<64x4xf32>
    %c0_443 = arith.constant 0 : index
    %c14_444 = arith.constant 14 : index
    %344 = vector.load %arg47[%c0_443, %c14_444] : memref<64x648xf32, #tpu.memory_space<vmem>>, vector<64x4xf32>
    tpu.vector_store %arg47[%c0_443, %c14_444], %343 {strides = array<i32>} : memref<64x648xf32, #tpu.memory_space<vmem>>, vector<64x4xf32>,
    %c0_445 = arith.constant 0 : index
    %c0_446 = arith.constant 0 : index
    %345 = vector.load %arg47[%c0_445, %c0_446] : memref<64x648xf32, #tpu.memory_space<vmem>>, vector<64x10xf32>
    %c0_447 = arith.constant 0 : index
    %c0_448 = arith.constant 0 : index
    %346 = vector.load %arg46[%c0_447, %c0_448] : memref<576x610xf32, #tpu.memory_space<vmem>>, vector<64x10xf32>
    tpu.vector_store %arg46[%c0_447, %c0_448], %345 {strides = array<i32>} : memref<576x610xf32, #tpu.memory_space<vmem>>, vector<64x10xf32>,
    %c0_449 = arith.constant 0 : index
    %c1_450 = arith.constant 1 : index
    %347 = vector.load %arg47[%c0_449, %c1_450] : memref<64x648xf32, #tpu.memory_space<vmem>>, vector<64x10xf32>
    %c64_451 = arith.constant 64 : index
    %c0_452 = arith.constant 0 : index
    %348 = vector.load %arg46[%c64_451, %c0_452] : memref<576x610xf32, #tpu.memory_space<vmem>>, vector<64x10xf32>
    tpu.vector_store %arg46[%c64_451, %c0_452], %347 {strides = array<i32>} : memref<576x610xf32, #tpu.memory_space<vmem>>, vector<64x10xf32>,
    %c0_453 = arith.constant 0 : index
    %c2_454 = arith.constant 2 : index
    %349 = vector.load %arg47[%c0_453, %c2_454] : memref<64x648xf32, #tpu.memory_space<vmem>>, vector<64x10xf32>
    %c128_455 = arith.constant 128 : index
    %c0_456 = arith.constant 0 : index
    %350 = vector.load %arg46[%c128_455, %c0_456] : memref<576x610xf32, #tpu.memory_space<vmem>>, vector<64x10xf32>
    tpu.vector_store %arg46[%c128_455, %c0_456], %349 {strides = array<i32>} : memref<576x610xf32, #tpu.memory_space<vmem>>, vector<64x10xf32>,
    %c0_457 = arith.constant 0 : index
    %c3_458 = arith.constant 3 : index
    %351 = vector.load %arg47[%c0_457, %c3_458] : memref<64x648xf32, #tpu.memory_space<vmem>>, vector<64x10xf32>
    %c192_459 = arith.constant 192 : index
    %c0_460 = arith.constant 0 : index
    %352 = vector.load %arg46[%c192_459, %c0_460] : memref<576x610xf32, #tpu.memory_space<vmem>>, vector<64x10xf32>
    tpu.vector_store %arg46[%c192_459, %c0_460], %351 {strides = array<i32>} : memref<576x610xf32, #tpu.memory_space<vmem>>, vector<64x10xf32>,
    %c0_461 = arith.constant 0 : index
    %c4_462 = arith.constant 4 : index
    %353 = vector.load %arg47[%c0_461, %c4_462] : memref<64x648xf32, #tpu.memory_space<vmem>>, vector<64x10xf32>
    %c256_463 = arith.constant 256 : index
    %c0_464 = arith.constant 0 : index
    %354 = vector.load %arg46[%c256_463, %c0_464] : memref<576x610xf32, #tpu.memory_space<vmem>>, vector<64x10xf32>
    tpu.vector_store %arg46[%c256_463, %c0_464], %353 {strides = array<i32>} : memref<576x610xf32, #tpu.memory_space<vmem>>, vector<64x10xf32>,
    %c0_465 = arith.constant 0 : index
    %c5_466 = arith.constant 5 : index
    %355 = vector.load %arg47[%c0_465, %c5_466] : memref<64x648xf32, #tpu.memory_space<vmem>>, vector<64x10xf32>
    %c320_467 = arith.constant 320 : index
    %c0_468 = arith.constant 0 : index
    %356 = vector.load %arg46[%c320_467, %c0_468] : memref<576x610xf32, #tpu.memory_space<vmem>>, vector<64x10xf32>
    tpu.vector_store %arg46[%c320_467, %c0_468], %355 {strides = array<i32>} : memref<576x610xf32, #tpu.memory_space<vmem>>, vector<64x10xf32>,
    %c0_469 = arith.constant 0 : index
    %c6_470 = arith.constant 6 : index
    %357 = vector.load %arg47[%c0_469, %c6_470] : memref<64x648xf32, #tpu.memory_space<vmem>>, vector<64x10xf32>
    %c384_471 = arith.constant 384 : index
    %c0_472 = arith.constant 0 : index
    %358 = vector.load %arg46[%c384_471, %c0_472] : memref<576x610xf32, #tpu.memory_space<vmem>>, vector<64x10xf32>
    tpu.vector_store %arg46[%c384_471, %c0_472], %357 {strides = array<i32>} : memref<576x610xf32, #tpu.memory_space<vmem>>, vector<64x10xf32>,
    %c0_473 = arith.constant 0 : index
    %c7_474 = arith.constant 7 : index
    %359 = vector.load %arg47[%c0_473, %c7_474] : memref<64x648xf32, #tpu.memory_space<vmem>>, vector<64x10xf32>
    %c448_475 = arith.constant 448 : index
    %c0_476 = arith.constant 0 : index
    %360 = vector.load %arg46[%c448_475, %c0_476] : memref<576x610xf32, #tpu.memory_space<vmem>>, vector<64x10xf32>
    tpu.vector_store %arg46[%c448_475, %c0_476], %359 {strides = array<i32>} : memref<576x610xf32, #tpu.memory_space<vmem>>, vector<64x10xf32>,
    %c0_477 = arith.constant 0 : index
    %c8_478 = arith.constant 8 : index
    %361 = vector.load %arg47[%c0_477, %c8_478] : memref<64x648xf32, #tpu.memory_space<vmem>>, vector<64x10xf32>
    %c512_479 = arith.constant 512 : index
    %c0_480 = arith.constant 0 : index
    %362 = vector.load %arg46[%c512_479, %c0_480] : memref<576x610xf32, #tpu.memory_space<vmem>>, vector<64x10xf32>
    tpu.vector_store %arg46[%c512_479, %c0_480], %361 {strides = array<i32>} : memref<576x610xf32, #tpu.memory_space<vmem>>, vector<64x10xf32>,
    %c0_481 = arith.constant 0 : index
    %c0_482 = arith.constant 0 : index
    %363 = vector.load %arg29[%c0_481, %c0_482] : memref<64x576xf32, #tpu.memory_space<vmem>>, vector<64x576xf32>
    %c0_483 = arith.constant 0 : index
    %c0_484 = arith.constant 0 : index
    %364 = vector.load %arg46[%c0_483, %c0_484] : memref<576x610xf32, #tpu.memory_space<vmem>>, vector<576x10xf32>
    %cst_485 = arith.constant dense<0.000000e+00> : vector<64x10xf32>
    %365 = tpu.matmul %363, %364, %cst_485 {dimension_numbers = #tpu.dot_dimension_numbers<[1], [0], [0], [1], [0, 0, 1, 1], [], []>} : vector<64x576xf32>, vector<576x10xf32>, vector<64x10xf32> -> vector<64x10xf32>
    %c0_486 = arith.constant 0 : index
    %c0_487 = arith.constant 0 : index
    %366 = vector.load %arg30[%c0_486, %c0_487] : memref<64x1xf32, #tpu.memory_space<vmem>>, vector<64x1xf32>
    %367 = vector.broadcast %366 : vector<64x1xf32> to vector<64x10xf32>
    %368 = arith.mulf %365, %367 : vector<64x10xf32>
    %c0_488 = arith.constant 0 : index
    %c0_489 = arith.constant 0 : index
    %369 = vector.load %arg31[%c0_488, %c0_489] : memref<64x1xf32, #tpu.memory_space<vmem>>, vector<64x1xf32>
    %370 = vector.broadcast %369 : vector<64x1xf32> to vector<64x10xf32>
    %371 = arith.addf %368, %370 : vector<64x10xf32>
    %cst_490 = arith.constant 0.000000e+00 : f32
    %372 = vector.broadcast %cst_490 : f32 to vector<64x10xf32>
    %373 = arith.maximumf %371, %372 : vector<64x10xf32>
    %c0_491 = arith.constant 0 : index
    %c0_492 = arith.constant 0 : index
    %374 = vector.load %arg45[%c0_491, %c0_492] : memref<64x10xf32, #tpu.memory_space<vmem>>, vector<64x10xf32>
    tpu.vector_store %arg45[%c0_491, %c0_492], %373 {strides = array<i32>} : memref<64x10xf32, #tpu.memory_space<vmem>>, vector<64x10xf32>,
    return
  }
  func.func @transform_0(%arg0: i32) -> (i32, i32) {
    %c0_i32 = arith.constant 0 : i32
    %c0_i32_0 = arith.constant 0 : i32
    %c0_i32_1 = arith.constant 0 : i32
    return %c0_i32, %c0_i32_0 : i32, i32
  }
  func.func @transform_1(%arg0: i32) -> (i32, i32) {
    %c0_i32 = arith.constant 0 : i32
    %c0_i32_0 = arith.constant 0 : i32
    %c0_i32_1 = arith.constant 0 : i32
    return %c0_i32, %c0_i32_0 : i32, i32
  }
  func.func @transform_2(%arg0: i32) -> (i32, i32) {
    %c0_i32 = arith.constant 0 : i32
    %c0_i32_0 = arith.constant 0 : i32
    %c0_i32_1 = arith.constant 0 : i32
    return %c0_i32, %c0_i32_0 : i32, i32
  }
  func.func @transform_3(%arg0: i32) -> (i32, i32) {
    %c0_i32 = arith.constant 0 : i32
    %c0_i32_0 = arith.constant 0 : i32
    %c0_i32_1 = arith.constant 0 : i32
    return %c0_i32, %c0_i32_0 : i32, i32
  }
  func.func @transform_4(%arg0: i32) -> (i32, i32) {
    %c0_i32 = arith.constant 0 : i32
    %c0_i32_0 = arith.constant 0 : i32
    %c0_i32_1 = arith.constant 0 : i32
    return %c0_i32, %c0_i32_0 : i32, i32
  }
  func.func @transform_5(%arg0: i32) -> (i32, i32) {
    %c0_i32 = arith.constant 0 : i32
    %c0_i32_0 = arith.constant 0 : i32
    %c0_i32_1 = arith.constant 0 : i32
    return %c0_i32, %c0_i32_0 : i32, i32
  }
  func.func @transform_6(%arg0: i32) -> (i32, i32) {
    %c0_i32 = arith.constant 0 : i32
    %c0_i32_0 = arith.constant 0 : i32
    %c0_i32_1 = arith.constant 0 : i32
    return %c0_i32, %c0_i32_0 : i32, i32
  }
  func.func @transform_7(%arg0: i32) -> (i32, i32) {
    %c0_i32 = arith.constant 0 : i32
    %c0_i32_0 = arith.constant 0 : i32
    %c0_i32_1 = arith.constant 0 : i32
    return %c0_i32, %c0_i32_0 : i32, i32
  }
  func.func @transform_8(%arg0: i32) -> (i32, i32) {
    %c0_i32 = arith.constant 0 : i32
    %c0_i32_0 = arith.constant 0 : i32
    %c0_i32_1 = arith.constant 0 : i32
    return %c0_i32, %c0_i32_0 : i32, i32
  }
  func.func @transform_9(%arg0: i32) -> (i32, i32) {
    %c0_i32 = arith.constant 0 : i32
    %c0_i32_0 = arith.constant 0 : i32
    %c0_i32_1 = arith.constant 0 : i32
    return %c0_i32, %c0_i32_0 : i32, i32
  }
  func.func @transform_10(%arg0: i32) -> (i32, i32) {
    %c0_i32 = arith.constant 0 : i32
    %c0_i32_0 = arith.constant 0 : i32
    %c0_i32_1 = arith.constant 0 : i32
    return %c0_i32, %c0_i32_0 : i32, i32
  }
  func.func @transform_11(%arg0: i32) -> (i32, i32) {
    %c0_i32 = arith.constant 0 : i32
    %c0_i32_0 = arith.constant 0 : i32
    %c0_i32_1 = arith.constant 0 : i32
    return %c0_i32, %c0_i32_0 : i32, i32
  }
  func.func @transform_12(%arg0: i32) -> (i32, i32) {
    %c0_i32 = arith.constant 0 : i32
    %c0_i32_0 = arith.constant 0 : i32
    %c0_i32_1 = arith.constant 0 : i32
    return %c0_i32, %c0_i32_0 : i32, i32
  }
  func.func @transform_13(%arg0: i32) -> (i32, i32) {
    %c0_i32 = arith.constant 0 : i32
    %c0_i32_0 = arith.constant 0 : i32
    %c0_i32_1 = arith.constant 0 : i32
    return %c0_i32, %c0_i32_0 : i32, i32
  }
  func.func @transform_14(%arg0: i32) -> (i32, i32) {
    %c0_i32 = arith.constant 0 : i32
    %c0_i32_0 = arith.constant 0 : i32
    %c0_i32_1 = arith.constant 0 : i32
    return %c0_i32, %c0_i32_0 : i32, i32
  }
  func.func @transform_15(%arg0: i32) -> (i32, i32) {
    %c0_i32 = arith.constant 0 : i32
    %c0_i32_0 = arith.constant 0 : i32
    %c0_i32_1 = arith.constant 0 : i32
    return %c0_i32, %c0_i32_0 : i32, i32
  }
  func.func @transform_16(%arg0: i32) -> (i32, i32) {
    %c0_i32 = arith.constant 0 : i32
    %c0_i32_0 = arith.constant 0 : i32
    %c0_i32_1 = arith.constant 0 : i32
    return %c0_i32, %c0_i32_0 : i32, i32
  }
  func.func @transform_17(%arg0: i32) -> (i32, i32) {
    %c0_i32 = arith.constant 0 : i32
    %c0_i32_0 = arith.constant 0 : i32
    %c0_i32_1 = arith.constant 0 : i32
    return %c0_i32, %c0_i32_0 : i32, i32
  }
  func.func @transform_18(%arg0: i32) -> (i32, i32) {
    %c0_i32 = arith.constant 0 : i32
    %c0_i32_0 = arith.constant 0 : i32
    %c0_i32_1 = arith.constant 0 : i32
    return %c0_i32, %c0_i32_0 : i32, i32
  }
  func.func @transform_19(%arg0: i32) -> (i32, i32) {
    %c0_i32 = arith.constant 0 : i32
    %c0_i32_0 = arith.constant 0 : i32
    %c0_i32_1 = arith.constant 0 : i32
    return %c0_i32, %c0_i32_0 : i32, i32
  }
  func.func @transform_20(%arg0: i32) -> (i32, i32) {
    %c0_i32 = arith.constant 0 : i32
    %c0_i32_0 = arith.constant 0 : i32
    %c0_i32_1 = arith.constant 0 : i32
    return %c0_i32, %c0_i32_0 : i32, i32
  }
  func.func @transform_21(%arg0: i32) -> (i32, i32) {
    %c0_i32 = arith.constant 0 : i32
    %c0_i32_0 = arith.constant 0 : i32
    %c0_i32_1 = arith.constant 0 : i32
    return %c0_i32, %c0_i32_0 : i32, i32
  }
  func.func @transform_22(%arg0: i32) -> (i32, i32) {
    %c0_i32 = arith.constant 0 : i32
    %c0_i32_0 = arith.constant 0 : i32
    %c0_i32_1 = arith.constant 0 : i32
    return %c0_i32, %c0_i32_0 : i32, i32
  }
  func.func @transform_23(%arg0: i32) -> (i32, i32) {
    %c0_i32 = arith.constant 0 : i32
    %c0_i32_0 = arith.constant 0 : i32
    %c0_i32_1 = arith.constant 0 : i32
    return %c0_i32, %c0_i32_0 : i32, i32
  }
  func.func @transform_24(%arg0: i32) -> (i32, i32) {
    %c0_i32 = arith.constant 0 : i32
    %c0_i32_0 = arith.constant 0 : i32
    %c0_i32_1 = arith.constant 0 : i32
    return %c0_i32, %c0_i32_0 : i32, i32
  }
  func.func @transform_25(%arg0: i32) -> (i32, i32) {
    %c0_i32 = arith.constant 0 : i32
    %c0_i32_0 = arith.constant 0 : i32
    %c0_i32_1 = arith.constant 0 : i32
    return %c0_i32, %c0_i32_0 : i32, i32
  }
  func.func @transform_26(%arg0: i32) -> (i32, i32) {
    %c0_i32 = arith.constant 0 : i32
    %c0_i32_0 = arith.constant 0 : i32
    %c0_i32_1 = arith.constant 0 : i32
    return %c0_i32, %c0_i32_0 : i32, i32
  }
  func.func @transform_27(%arg0: i32) -> (i32, i32) {
    %c0_i32 = arith.constant 0 : i32
    %c0_i32_0 = arith.constant 0 : i32
    %c0_i32_1 = arith.constant 0 : i32
    return %c0_i32, %c0_i32_0 : i32, i32
  }
  func.func @transform_28(%arg0: i32) -> (i32, i32) {
    %c0_i32 = arith.constant 0 : i32
    %c0_i32_0 = arith.constant 0 : i32
    %c0_i32_1 = arith.constant 0 : i32
    return %c0_i32, %c0_i32_0 : i32, i32
  }
  func.func @transform_29(%arg0: i32) -> (i32, i32) {
    %c0_i32 = arith.constant 0 : i32
    %c0_i32_0 = arith.constant 0 : i32
    %c0_i32_1 = arith.constant 0 : i32
    return %c0_i32, %c0_i32_0 : i32, i32
  }
  func.func @transform_30(%arg0: i32) -> (i32, i32) {
    %c0_i32 = arith.constant 0 : i32
    %c0_i32_0 = arith.constant 0 : i32
    %c0_i32_1 = arith.constant 0 : i32
    return %c0_i32, %c0_i32_0 : i32, i32
  }
  func.func @transform_31(%arg0: i32) -> (i32, i32) {
    %c0_i32 = arith.constant 0 : i32
    %c0_i32_0 = arith.constant 0 : i32
    %c0_i32_1 = arith.constant 0 : i32
    return %c0_i32, %c0_i32_0 : i32, i32
  }
  func.func @transform_32(%arg0: i32) -> (i32, i32) {
    %c0_i32 = arith.constant 0 : i32
    %c0_i32_0 = arith.constant 0 : i32
    %c0_i32_1 = arith.constant 0 : i32
    return %c0_i32, %c0_i32_0 : i32, i32
  }
  func.func @transform_33(%arg0: i32) -> (i32, i32) {
    %c0_i32 = arith.constant 0 : i32
    %c0_i32_0 = arith.constant 0 : i32
    %c0_i32_1 = arith.constant 0 : i32
    return %c0_i32, %c0_i32_0 : i32, i32
  }
  func.func @transform_34(%arg0: i32) -> (i32, i32) {
    %c0_i32 = arith.constant 0 : i32
    %c0_i32_0 = arith.constant 0 : i32
    %c0_i32_1 = arith.constant 0 : i32
    return %c0_i32, %c0_i32_0 : i32, i32
  }
  func.func @transform_35(%arg0: i32) -> (i32, i32) {
    %c0_i32 = arith.constant 0 : i32
    %c0_i32_0 = arith.constant 0 : i32
    %c0_i32_1 = arith.constant 0 : i32
    return %c0_i32, %c0_i32_0 : i32, i32
  }
  func.func @transform_36(%arg0: i32) -> (i32, i32) {
    %c0_i32 = arith.constant 0 : i32
    %c0_i32_0 = arith.constant 0 : i32
    %c0_i32_1 = arith.constant 0 : i32
    return %c0_i32, %c0_i32_0 : i32, i32
  }
  func.func @transform_37(%arg0: i32) -> (i32, i32) {
    %c0_i32 = arith.constant 0 : i32
    %c0_i32_0 = arith.constant 0 : i32
    %c0_i32_1 = arith.constant 0 : i32
    return %c0_i32, %c0_i32_0 : i32, i32
  }
  func.func @transform_38(%arg0: i32) -> (i32, i32) {
    %c0_i32 = arith.constant 0 : i32
    %c0_i32_0 = arith.constant 0 : i32
    %c0_i32_1 = arith.constant 0 : i32
    return %c0_i32, %c0_i32_0 : i32, i32
  }
  func.func @transform_39(%arg0: i32) -> (i32, i32) {
    %c0_i32 = arith.constant 0 : i32
    %c0_i32_0 = arith.constant 0 : i32
    %c0_i32_1 = arith.constant 0 : i32
    return %c0_i32, %c0_i32_0 : i32, i32
  }
  func.func @transform_40(%arg0: i32) -> (i32, i32) {
    %c0_i32 = arith.constant 0 : i32
    %c0_i32_0 = arith.constant 0 : i32
    %c0_i32_1 = arith.constant 0 : i32
    return %c0_i32, %c0_i32_0 : i32, i32
  }
  func.func @transform_41(%arg0: i32) -> (i32, i32) {
    %c0_i32 = arith.constant 0 : i32
    %c0_i32_0 = arith.constant 0 : i32
    %c0_i32_1 = arith.constant 0 : i32
    return %c0_i32, %c0_i32_0 : i32, i32
  }
  func.func @transform_42(%arg0: i32) -> (i32, i32) {
    %c0_i32 = arith.constant 0 : i32
    %c0_i32_0 = arith.constant 0 : i32
    %c0_i32_1 = arith.constant 0 : i32
    return %c0_i32, %c0_i32_0 : i32, i32
  }
  func.func @transform_43(%arg0: i32) -> (i32, i32) {
    %c0_i32 = arith.constant 0 : i32
    %c0_i32_0 = arith.constant 0 : i32
    %c0_i32_1 = arith.constant 0 : i32
    return %c0_i32, %c0_i32_0 : i32, i32
  }
  func.func @transform_44(%arg0: i32) -> (i32, i32) {
    %c0_i32 = arith.constant 0 : i32
    %c0_i32_0 = arith.constant 0 : i32
    %c0_i32_1 = arith.constant 0 : i32
    return %c0_i32, %c0_i32_0 : i32, i32
  }
}

</mosaic_0001>

<bundles_post_ra>
// kernel: encoding_forward.1
= control target key start
LH: loop header
LB: loop body
LE: loop exit
PB: predicated region body
PF: predicated region fallthrough
CT: control target
= control target key end

     0   :  { %s9249_s6 = smov 127   ;;  %s9250_s7 = smov 126   ;;  %vm184_vm0 = vcmask 801792   ;;  %v9256_v5 = vmov 0.0   ;;  %v9258_v7 = vmov 0   ;;  %vm206_vm1 = vcmask 1039360   ;;  %s11699_s0 = inlined_call_operand.smem [shape: u32[45], index: -1, kind: input, shape index: {}] }
   0x1   :  { %s9328_s5 = sld [smem:[%s11699_s0]]   ;;  %s9251_s8 = smov 110   ;;  %595 = vmatprep.mubr.f32.mxu0 %v9256_v5  ;;  %666 = vmatprep.mubr.f32.mxu1 %v9256_v5  ;;  %vm241_vm2 = vcmask 1031168   ;;  %vm276_vm3 = vcmask 900096   ;;  %vm311_vm4 = vcmask 891904   ;;  %vm346_vm5 = vcmask 883712  }
   0x2   :  { %s9252_s9 = smov 109   ;;  %s9253_s10 = smov 108   ;;  %9232 = vset.pattern.permute.xlu1 %v9258_v7  ;;  %9233 = vset.pattern.permute.xlu0 %v9258_v7  ;;  %vm385_vm6 = vcmask 752640   ;;  %vm425_vm7 = vcmask 744448   ;;  %vm465_vm8 = vcmask 736256   ;;  %vm527_vm9 = vcmask 588800  }
   0x3   :  { %s9254_s11 = smov 92   ;;  %s9255_s12 = smov 91   ;;  %vm9263_vm10 = vmmov 0   ;;  %vm770_vm11 = vcmask 154624   ;;  %vm837_vm12 = vcmask 64512   ;;  %vm828_vm13 = vcmask 1047704  }
   0x4   :  { %s9257_s13 = smov 90   ;;  %s9259_s14 = smov 2   ;;  %771 = vst.msk [vmem:[#allocation3] sm:$0xff] %vm770_vm11, %v9256_v5  ;;  %vm833_vm14 = vcmask 957440   ;;  %vm835_vm15 = vcmask 1048488  }
   0x5   :  { %s7606_s17 = sld [smem:[%s11699_s0 + %s9259_s14]]   ;;  %s9260_s18 = smov 3   ;;  %838 = vst.msk [vmem:[#allocation3 + $0x28] sm:$0xff] %vm837_vm12, %v9256_v5  ;;  %vm1968_vm12 = vcmask 867328  }
   0x6   :  { %s7607_s21 = sld [smem:[%s11699_s0 + %s9260_s18]]   ;;  %s9261_s22 = smov 1  }
   0x7   :  { %v9331_v0 = vld [vmem:[%s9328_s5 + $0x8] sm:$0xff]  ;;  %v9334_v1 = vld [vmem:[%s9328_s5] sm:$0xff]  ;;  %v9341_v2 = vld [vmem:[%s9328_s5 + $0x10] sm:$0xff]  ;;  %s7605_s25 = sld [smem:[%s11699_s0 + %s9261_s22]]   ;;  %s9264_s26 = smov 31  }
   0x8   :  { %198 = vrot.lane.b32.xlu0 %v9331_v0, %s9249_s6  ;;  %196 = vrot.lane.b32.xlu1 %v9334_v1, %s9249_s6  ;;  %v190_v3 = vld [vmem:[%s9328_s5 + $0x20] sm:$0xff]  ;;  %v9382_v4 = vld [vmem:[%s9328_s5 + $0x18] sm:$0xff]  ;;  %s7635_s29 = sld [smem:[%s11699_s0 + %s9264_s26]]   ;;  %s9265_s30 = smov 19  }
   0x9   :  { %185 = vst.msk [vmem:[#allocation2 + $0x20] sm:$0xff] %vm184_vm0, %v190_v3  ;;  %v366_v6 = vld [vmem:[%s9328_s5 + $0x28] sm:$0xff]  ;;  %s9266_s1 = smov 5   ;;  %s9267_s5 = smov 6  }
   0xa   :  { %s7609_s4 = sld [smem:[%s11699_s0 + %s9266_s1]]   ;;  %s9274_s26 = smov 116  }
   0xb   :  { %v743_v8 = vld [vmem:[%s7606_s17] sm:$0xff]  ;;  %s7610_s15 = sld [smem:[%s11699_s0 + %s9267_s5]]   ;;  %s9269_s17 = smov 40  }
   0xc   :  { %200 = vrot.lane.b32.xlu0 %v9341_v2, %s9249_s6  ;;  %233 = vrot.lane.b32.xlu1 %v9331_v0, %s9250_s7  ;;  %v754_v9 = vld [vmem:[%s7607_s21] sm:$0xff]  ;;  %s9725_s20 = sld [smem:[%s11699_s0 + %s9269_s17]]   ;;  %s9270_s21 = smov 36  }
   0xd   :  { %s9751_s24 = sld [smem:[%s11699_s0 + %s9270_s21]]   ;;  %s9275_s27 = smov 8  }
   0xe   :  { %s7612_s2 = sld [smem:[%s11699_s0 + %s9275_s27]]   ;;  %s9276_s3 = smov 107  }
   0xf   :  { %s9280_s18 = smov 32   ;;  %s9281_s22 = smov 11  }
  0x10   :  { %235 = vrot.lane.b32.xlu0 %v9341_v2, %s9250_s7  ;;  %268 = vrot.lane.b32.xlu1 %v9331_v0, %s9251_s8  ;;  %s7636_s21 = sld [smem:[%s11699_s0 + %s9280_s18]]   ;;  %s9282_s28 = smov 12  }
  0x11   :  { %s7615_s27 = sld [smem:[%s11699_s0 + %s9281_s22]]   ;;  %s9289_s23 = smov 14  }
  0x14   :  { %270 = vrot.lane.b32.xlu0 %v9341_v2, %s9251_s8  ;;  %231 = vrot.lane.b32.xlu1 %v9334_v1, %s9250_s7 }
  0x18   :  { %266 = vrot.lane.b32.xlu0 %v9334_v1, %s9251_s8  ;;  %303 = vrot.lane.b32.xlu1 %v9331_v0, %s9252_s9 }
  0x1c   :  { %305 = vrot.lane.b32.xlu0 %v9341_v2, %s9252_s9  ;;  %338 = vrot.lane.b32.xlu1 %v9331_v0, %s9253_s10 }
  0x20   :  { %340 = vrot.lane.b32.xlu0 %v9341_v2, %s9253_s10  ;;  %301 = vrot.lane.b32.xlu1 %v9334_v1, %s9252_s9 }
  0x24   :  { %336 = vrot.lane.b32.xlu0 %v9334_v1, %s9253_s10  ;;  %375 = vrot.lane.b32.xlu1 %v9331_v0, %s9254_s11 }
  0x28   :  { %377 = vrot.lane.b32.xlu0 %v9341_v2, %s9254_s11  ;;  %415 = vrot.lane.b32.xlu1 %v9331_v0, %s9255_s12 }
  0x2c   :  { %417 = vrot.lane.b32.xlu0 %v9341_v2, %s9255_s12  ;;  %373 = vrot.lane.b32.xlu1 %v9334_v1, %s9254_s11 }
  0x30   :  { %413 = vrot.lane.b32.xlu0 %v9334_v1, %s9255_s12  ;;  %202 = vrot.lane.b32.xlu1 %v9382_v4, %s9249_s6 }
  0x34   :  { %204 = vrot.lane.b32.xlu0 %v190_v3, %s9249_s6  ;;  %455 = vrot.lane.b32.xlu1 %v9331_v0, %s9257_s13 }
  0x38   :  { %457 = vrot.lane.b32.xlu0 %v9341_v2, %s9257_s13  ;;  %453 = vrot.lane.b32.xlu1 %v9334_v1, %s9257_s13 }
  0x3c   :  { %237 = vrot.lane.b32.xlu0 %v9382_v4, %s9250_s7  ;;  %239 = vrot.lane.b32.xlu1 %v190_v3, %s9250_s7 }
  0x40   :  { %272 = vrot.lane.b32.xlu0 %v9382_v4, %s9251_s8  ;;  %274 = vrot.lane.b32.xlu1 %v190_v3, %s9251_s8 }
  0x44   :  { %307 = vrot.lane.b32.xlu0 %v9382_v4, %s9252_s9  ;;  %309 = vrot.lane.b32.xlu1 %v190_v3, %s9252_s9 }
  0x48   :  { %342 = vrot.lane.b32.xlu0 %v9382_v4, %s9253_s10  ;;  %344 = vrot.lane.b32.xlu1 %v190_v3, %s9253_s10 }
  0x4c   :  { %379 = vrot.lane.b32.xlu0 %v9382_v4, %s9254_s11  ;;  %381 = vrot.lane.b32.xlu1 %v190_v3, %s9254_s11 }
  0x50   :  { %419 = vrot.lane.b32.xlu0 %v9382_v4, %s9255_s12  ;;  %421 = vrot.lane.b32.xlu1 %v190_v3, %s9255_s12 }
  0x54   :  { %383 = vrot.lane.b32.xlu0 %v366_v6, %s9254_s11  ;;  %423 = vrot.lane.b32.xlu1 %v366_v6, %s9255_s12 }
  0x58   :  { %459 = vrot.lane.b32.xlu0 %v9382_v4, %s9257_s13  ;;  %461 = vrot.lane.b32.xlu1 %v190_v3, %s9257_s13 }
  0x5c   :  { %463 = vrot.lane.b32.xlu0 %v366_v6, %s9257_s13  ;;  %746 = vperm.xlu1 %9232, %v743_v8   ;;  %v9262_v6 = vmov 0.0|0.0  }
  0x60   :  { %757 = vperm.xlu0 %9233, %v754_v9  }
  0x7a   :  { %v199_v10 = vpop.permute.xlu0 %198  ;;  %v197_v11 = vpop.permute.xlu1 %196 }
  0x7b   :  { %v207_v12 = vsel %vm206_vm1, %v197_v11, %v199_v10 }
  0x7c   :  { %v8468_v17 = vpack.c.bf16 %v207_v12, %v9334_v1  ;;  %v486_v1 = vld [vmem:[#allocation2 + $0x20] sm:$0xff] }
  0x7e   :  { %v201_v13 = vpop.permute.xlu0 %200  ;;  %v234_v14 = vpop.permute.xlu1 %233 }
  0x7f   :  { %v208_v15 = vsel %vm206_vm1, %v199_v10, %v201_v13 }
  0x80   :  { %v8466_v16 = vpack.c.bf16 %v208_v15, %v9331_v0  ;;  %v9475_v0 = vld [vmem:[%s7605_s25] sm:$0xff]  ;;  %s9273_s25 = smov 117  }
  0x82   :  { %v9432_v18 = vpop.permute.xlu0 %235  ;;  %v269_v19 = vpop.permute.xlu1 %268  ;;  %8467 = vmatprep.subr.bf16.mxu0 %v8466_v16 }
  0x83   :  { %8469 = vmatpush1.bf16.msra.mxu0 %v8468_v17  ;;  %v243_v22 = vsel %vm241_vm2, %v234_v14, %v9432_v18 }
  0x86   :  { %v9434_v20 = vpop.permute.xlu0 %270  ;;  %v232_v21 = vpop.permute.xlu1 %231 }
  0x87   :  { %v278_v23 = vsel %vm276_vm3, %v269_v19, %v9434_v20  ;;  %v242_v27 = vsel %vm241_vm2, %v232_v21, %v234_v14 }
  0x88   :  { %v8470_v24 = vpack.c.bf16 %v278_v23, %v243_v22 }
  0x8a   :  { %v267_v25 = vpop.permute.xlu0 %266  ;;  %v304_v26 = vpop.permute.xlu1 %303  ;;  %8471 = vmatprep.subr.bf16.mxu0 %v8470_v24 }
  0x8b   :  { %v277_v28 = vsel %vm276_vm3, %v267_v25, %v269_v19 }
  0x8c   :  { %v8472_v29 = vpack.c.bf16 %v277_v28, %v242_v27 }
  0x8e   :  { %v9442_v30 = vpop.permute.xlu0 %305  ;;  %v339_v31 = vpop.permute.xlu1 %338  ;;  %8473 = vmatpush1.bf16.msra.mxu0 %v8472_v29 }
  0x8f   :  { %v313_v34 = vsel %vm311_vm4, %v304_v26, %v9442_v30 }
  0x92   :  { %v9444_v32 = vpop.permute.xlu0 %340  ;;  %v302_v33 = vpop.permute.xlu1 %301 }
  0x93   :  { %v348_v35 = vsel %vm346_vm5, %v339_v31, %v9444_v32  ;;  %v312_v39 = vsel %vm311_vm4, %v302_v33, %v304_v26 }
  0x94   :  { %v8474_v36 = vpack.c.bf16 %v348_v35, %v313_v34 }
  0x96   :  { %v337_v37 = vpop.permute.xlu0 %336  ;;  %v376_v38 = vpop.permute.xlu1 %375  ;;  %8475 = vmatprep.subr.bf16.mxu0 %v8474_v36 }
  0x97   :  { %v347_v40 = vsel %vm346_vm5, %v337_v37, %v339_v31 }
  0x98   :  { %v8476_v41 = vpack.c.bf16 %v347_v40, %v312_v39 }
  0x9a   :  { %v9452_v42 = vpop.permute.xlu0 %377  ;;  %v416_v43 = vpop.permute.xlu1 %415  ;;  %8477 = vmatpush1.bf16.msra.mxu0 %v8476_v41 }
  0x9b   :  { %v387_v46 = vsel %vm385_vm6, %v376_v38, %v9452_v42 }
  0x9e   :  { %v9454_v44 = vpop.permute.xlu0 %417  ;;  %v374_v45 = vpop.permute.xlu1 %373 }
  0x9f   :  { %v427_v47 = vsel %vm425_vm7, %v416_v43, %v9454_v44  ;;  %v386_v51 = vsel %vm385_vm6, %v374_v45, %v376_v38 }
  0xa0   :  { %v8478_v48 = vpack.c.bf16 %v427_v47, %v387_v46 }
  0xa2   :  { %v414_v49 = vpop.permute.xlu0 %413  ;;  %v203_v50 = vpop.permute.xlu1 %202  ;;  %8479 = vmatprep.subr.bf16.mxu0 %v8478_v48 }
  0xa3   :  { %v426_v52 = vsel %vm425_vm7, %v414_v49, %v416_v43  ;;  %v209_v54 = vsel %vm206_vm1, %v201_v13, %v203_v50 }
  0xa4   :  { %v8480_v53 = vpack.c.bf16 %v426_v52, %v386_v51  ;;  %v8484_v59 = vpack.c.bf16 %v209_v54, %v9341_v2 }
  0xa6   :  { %v205_v55 = vpop.permute.xlu0 %204  ;;  %v456_v56 = vpop.permute.xlu1 %455  ;;  %8481 = vmatpush1.bf16.msra.mxu0 %v8480_v53 }
  0xa7   :  { %v210_v57 = vsel %vm206_vm1, %v203_v50, %v205_v55  ;;  %220 = vst.msk [vmem:[#allocation2 + $0x48] sm:$0xff] %vm184_vm0, %v205_v55 }
  0xa8   :  { %v8482_v58 = vpack.c.bf16 %v210_v57, %v9382_v4 }
  0xaa   :  { %v9470_v60 = vpop.permute.xlu0 %457  ;;  %v454_v61 = vpop.permute.xlu1 %453  ;;  %8483 = vmatprep.subr.bf16.mxu1 %v8482_v58 }
  0xab   :  { %v467_v62 = vsel %vm465_vm8, %v456_v56, %v9470_v60  ;;  %v466_v63 = vsel %vm465_vm8, %v454_v61, %v456_v56  ;;  %8485 = vmatpush1.bf16.msra.mxu1 %v8484_v59  ;;  %v774_v56 = vlaneseq }
  0xac   :  { %547 = vmatprep.subr.mxu0 %v467_v62  ;;  %v772_v62 = vld [vmem:[%s7635_s29] sm:$0x1f]  ;;  %s9290_s29 = smov 115  }
  0xad   :  { %548 = vmatpush1.msra.mxu0 %v466_v63  ;;  %v9528_v57 = vshrl.u32 %v774_v56, 7 }
  0xae   :  { %v238_v3 = vpop.permute.xlu0 %237  ;;  %v240_v4 = vpop.permute.xlu1 %239  ;;  %8498 = vmatprep.subr.bf16.mxu0 %v9262_v6  ;;  %7649 = vmatmul.mubr.msk.f32.vlgmr.msra.gmra.mrb[0].mxu0 %vm527_vm9, %v9475_v0  ;;  %v491_v2 = vld [vmem:[#allocation2 + $0x48] sm:$0xff] }
  0xaf   :  { %255 = vst.msk [vmem:[#allocation2 + $0x70] sm:$0xff] %vm184_vm0, %v240_v4  ;;  %v8499_v7 = vpack.c.bf16 %v491_v2, %v486_v1  ;;  %8286 = vmatprep.mubr.msk.f32.mxu0 %vm9263_vm10, %v9256_v5  ;;  %v244_v10 = vsel %vm241_vm2, %v9432_v18, %v238_v3  ;;  %v245_v11 = vsel %vm241_vm2, %v238_v3, %v240_v4  ;;  %v776_v59 = vsub.s32 0, %v9528_v57 }
  0xb1   :  { %8500 = vmatpush3.bf16.msra.mxu0 %v8499_v7  ;;  %v777_v3 = vrot.slane %v772_v62, %v776_v59  ;;  %v784_v7 = vsub.s32 2, %v9528_v57 }
  0xb2   :  { %v273_v8 = vpop.permute.xlu0 %272  ;;  %v275_v9 = vpop.permute.xlu1 %274  ;;  %8501 = vmatprep.subr.bf16.mxu0 %v9262_v6 }
  0xb3   :  { %v279_v12 = vsel %vm276_vm3, %v9434_v20, %v273_v8  ;;  %v280_v13 = vsel %vm276_vm3, %v273_v8, %v275_v9  ;;  %290 = vst.msk [vmem:[#allocation2 + $0x98] sm:$0xff] %vm184_vm0, %v275_v9  ;;  %v788_v9 = vsub.s32 3, %v9528_v57 }
  0xb4   :  { %v8486_v14 = vpack.c.bf16 %v280_v13, %v245_v11  ;;  %v8488_v15 = vpack.c.bf16 %v279_v12, %v244_v10 }
  0xb6   :  { %v308_v16 = vpop.permute.xlu0 %307  ;;  %v310_v17 = vpop.permute.xlu1 %309  ;;  %8487 = vmatprep.subr.bf16.mxu1 %v8486_v14  ;;  %v496_v22 = vld [vmem:[#allocation2 + $0x70] sm:$0xff]  ;;  %v785_v14 = vrot.slane %v772_v62, %v784_v7 }
  0xb7   :  { %325 = vst.msk [vmem:[#allocation2 + $0xc0] sm:$0xff] %vm184_vm0, %v310_v17  ;;  %8489 = vmatpush1.bf16.msra.mxu1 %v8488_v15  ;;  %v314_v18 = vsel %vm311_vm4, %v9442_v30, %v308_v16  ;;  %v315_v20 = vsel %vm311_vm4, %v308_v16, %v310_v17  ;;  %v789_v16 = vrot.slane %v772_v62, %v788_v9 }
  0xba   :  { %v343_v19 = vpop.permute.xlu0 %342  ;;  %v345_v21 = vpop.permute.xlu1 %344  ;;  %v501_v23 = vld [vmem:[#allocation2 + $0x98] sm:$0xff] }
  0xbb   :  { %v349_v24 = vsel %vm346_vm5, %v9444_v32, %v343_v19  ;;  %v350_v25 = vsel %vm346_vm5, %v343_v19, %v345_v21  ;;  %360 = vst.msk [vmem:[#allocation2 + $0xe8] sm:$0xff] %vm184_vm0, %v345_v21  ;;  %v8502_v26 = vpack.c.bf16 %v501_v23, %v496_v22  ;;  %v792_v23 = vsub.s32 4, %v9528_v57 }
  0xbc   :  { %v8490_v27 = vpack.c.bf16 %v350_v25, %v315_v20  ;;  %v8492_v28 = vpack.c.bf16 %v349_v24, %v314_v18 }
  0xbd   :  { %8503 = vmatpush3.bf16.msra.mxu0 %v8502_v26 }
  0xbe   :  { %v380_v29 = vpop.permute.xlu0 %379  ;;  %v382_v31 = vpop.permute.xlu1 %381  ;;  %8504 = vmatprep.subr.bf16.mxu0 %v9262_v6  ;;  %8491 = vmatprep.subr.bf16.mxu1 %v8490_v27  ;;  %v506_v32 = vld [vmem:[#allocation2 + $0xc0] sm:$0xff] }
  0xbf   :  { %8493 = vmatpush1.bf16.msra.mxu1 %v8492_v28  ;;  %v388_v30 = vsel %vm385_vm6, %v9452_v42, %v380_v29  ;;  %v389_v36 = vsel %vm385_vm6, %v380_v29, %v382_v31  ;;  %v793_v28 = vrot.slane %v772_v62, %v792_v23  ;;  %v780_v29 = vsub.s32 1, %v9528_v57 }
  0xc2   :  { %v420_v33 = vpop.permute.xlu0 %419  ;;  %v422_v34 = vpop.permute.xlu1 %421  ;;  %v511_v35 = vld [vmem:[#allocation2 + $0xe8] sm:$0xff] }
  0xc3   :  { %v428_v37 = vsel %vm425_vm7, %v9454_v44, %v420_v33  ;;  %v429_v38 = vsel %vm425_vm7, %v420_v33, %v422_v34  ;;  %v8505_v39 = vpack.c.bf16 %v511_v35, %v506_v32 }
  0xc4   :  { %v8494_v40 = vpack.c.bf16 %v429_v38, %v389_v36  ;;  %v8496_v41 = vpack.c.bf16 %v428_v37, %v388_v30 }
  0xc5   :  { %8506 = vmatpush3.bf16.msra.mxu0 %v8505_v39 }
  0xc6   :  { %v384_v43 = vpop.permute.xlu0 %383  ;;  %v424_v45 = vpop.permute.xlu1 %423  ;;  %8495 = vmatprep.subr.bf16.mxu1 %v8494_v40  ;;  %8507 = vmatprep.subr.bf16.mxu0 %v9262_v6 }
  0xc7   :  { %v390_v42 = vsel %vm385_vm6, %v382_v31, %v384_v43  ;;  %v430_v46 = vsel %vm425_vm7, %v422_v34, %v424_v45  ;;  %8497 = vmatpush1.bf16.msra.mxu1 %v8496_v41  ;;  %v781_v34 = vrot.slane %v772_v62, %v780_v29 }
  0xc8   :  { %400 = vst.msk [vmem:[#allocation2 + $0x110] sm:$0xff] %vm184_vm0, %v390_v42  ;;  %440 = vst.msk [vmem:[#allocation2 + $0x138] sm:$0xff] %vm184_vm0, %v430_v46 }
  0xca   :  { %v460_v44 = vpop.permute.xlu0 %459  ;;  %v462_v47 = vpop.permute.xlu1 %461 }
  0xcb   :  { %v468_v48 = vsel %vm465_vm8, %v9470_v60, %v460_v44  ;;  %v469_v49 = vsel %vm465_vm8, %v460_v44, %v462_v47  ;;  %v1024_v44 = vld [vmem:[#allocation3 + $0x28] sm:$0xff] }
  0xcc   :  { %618 = vmatprep.subr.mxu1 %v469_v49 }
  0xcd   :  { %619 = vmatpush1.msra.mxu1 %v468_v48  ;;  %v1408_v48 = vld [vmem:[%s7610_s15] sm:$0xff]  ;;  %s9278_s15 = smov 106  }
  0xce   :  { %v464_v50 = vpop.permute.xlu0 %463  ;;  %7650 = vmatmul.mubr.msk.f32.vlgmr.msra.gmra.mrb[0].mxu1 %vm527_vm9, %v9475_v0 }
  0xcf   :  { %v470_v51 = vsel %vm465_vm8, %v462_v47, %v464_v50  ;;  %v516_v52 = vld [vmem:[#allocation2 + $0x110] sm:$0xff]  ;;  %v521_v53 = vld [vmem:[#allocation2 + $0x138] sm:$0xff]  ;;  %1249 = vmatprep.mubr.f32.mxu1 %v9256_v5  ;;  %v1397_v47 = vld [vmem:[%s7609_s4] sm:$0xff]  ;;  %s9277_s4 = smov 9  }
  0xd0   :  { %480 = vst.msk [vmem:[#allocation2 + $0x160] sm:$0xff] %vm184_vm0, %v470_v51  ;;  %v8508_v54 = vpack.c.bf16 %v521_v53, %v516_v52  ;;  %s7613_s14 = sld [smem:[%s11699_s0 + %s9277_s4]]   ;;  %s9283_s4 = smov 10  }
  0xd2   :  { %8509 = vmatpush3.bf16.msra.mxu0 %v8508_v54 }
  0xd3   :  { %8284 = vmatprep.subr.mxu0 %v9256_v5 }
  0xd7   :  { %v526_v55 = vld [vmem:[#allocation2 + $0x160] sm:$0xff] }
  0xd8   :  { %8285 = vmatpush3.msra.mxu0 %v526_v55 }
  0xd9   :  { %8287 = vmatmul.mubr.msk.f32.vlgmr.msra.gmra.mrb[2].mxu0 %vm527_vm9, %v9475_v0 }
  0xda   :  { %1320 = vmatprep.mubr.f32.mxu0 %v9256_v5 }
  0xdb   :  { %v747_v58 = vpop.permute.xlu1 %746 }
  0xdf   :  { %v758_v61 = vpop.permute.xlu0 %757 }
 0x181   :  { %v597_v60 = vpop.f32.mrb[0].mxu0 }
 0x182   :  { %v749_v63 = vmul.f32 %v747_v58, %v597_v60  ;;  %v599_v0 = vpop.f32.mrb[1].mxu0 }
 0x183   :  { %v750_v22 = vmul.f32 %v747_v58, %v599_v0 }
 0x184   :  { %v760_v1 = vadd.f32 %v758_v61, %v749_v63 }
 0x185   :  { %v761_v26 = vadd.f32 %v758_v61, %v750_v22 }
 0x186   :  { %v765_v4 = vmax.f32 %v760_v1, 0.0 }
 0x187   :  { %v766_v30 = vmax.f32 %v761_v26, 0.0 }
 0x188   :  { %v799_v2 = vmul.f32 %v777_v3, %v765_v4 }
 0x189   :  { %v800_v32 = vmul.f32 %v781_v34, %v766_v30 }
 0x18a   :  { %809 = vrot.lane.b32.xlu0 %v799_v2, %s9265_s30 }
 0x1a1   :  { %v668_v8 = vpop.f32.mrb[0].mxu1 }
 0x1a2   :  { %v751_v10 = vmul.f32 %v747_v58, %v668_v8  ;;  %v670_v11 = vpop.f32.mrb[1].mxu1 }
 0x1a3   :  { %v752_v12 = vmul.f32 %v747_v58, %v670_v11 }
 0x1a4   :  { %v762_v13 = vadd.f32 %v758_v61, %v751_v10 }
 0x1a5   :  { %v763_v15 = vadd.f32 %v758_v61, %v752_v12 }
 0x1a6   :  { %v767_v17 = vmax.f32 %v762_v13, 0.0 }
 0x1a7   :  { %v768_v18 = vmax.f32 %v763_v15, 0.0 }
 0x1a8   :  { %v801_v19 = vmul.f32 %v785_v14, %v767_v17 }
 0x1a9   :  { %v802_v21 = vmul.f32 %v789_v16, %v768_v18 }
 0x1aa   :  { %813 = vrot.lane.b32.xlu0 %v801_v19, %s9265_s30 }
 0x1ab   :  { %815 = vrot.lane.b32.xlu1 %v802_v21, %s9265_s30 }
 0x1ac   :  { %v739_v20 = vpop.f32.mrb[2].mxu0 }
 0x1ad   :  { %v753_v24 = vmul.f32 %v747_v58, %v739_v20  ;;  %v8288_v25 = vpop.f32.mrb[3].mxu0 }
 0x1af   :  { %v764_v27 = vadd.f32 %v758_v61, %v753_v24 }
 0x1b1   :  { %v769_v31 = vmax.f32 %v764_v27, 0.0 }
 0x1b3   :  { %v803_v33 = vmul.f32 %v793_v28, %v769_v31 }
 0x1b5   :  { %817 = vrot.lane.b32.xlu1 %v803_v33, %s9265_s30 }
 0x1b9   :  { %811 = vrot.lane.b32.xlu1 %v800_v32, %s9265_s30 }
 0x1fc   :  { %v810_v35 = vpop.permute.xlu0 %809 }
 0x1fd   :  { %829 = vst.msk [vmem:[#allocation3] sm:$0xff] %vm828_vm13, %v810_v35  ;;  %vm2113_vm13 = vcmask 89088  }
 0x1fe   :  { %2115 = vst.msk [vmem:[#allocation3 + $0x30] sm:$0xff] %vm2113_vm13, %v9256_v5 }
 0x204   :  { %v9545_v36 = vld [vmem:[#allocation3] sm:$0xff] }
 0x205   :  { %859 = vrot.lane.b32.xlu1 %v9545_v36, %s9249_s6  ;;  %893 = vrot.lane.b32.xlu0 %v9545_v36, %s9250_s7 }
 0x209   :  { %927 = vrot.lane.b32.xlu1 %v9545_v36, %s9251_s8  ;;  %961 = vrot.lane.b32.xlu0 %v9545_v36, %s9252_s9 }
 0x20d   :  { %995 = vrot.lane.b32.xlu1 %v9545_v36, %s9253_s10 }
 0x21c   :  { %v814_v37 = vpop.permute.xlu0 %813 }
 0x21d   :  { %v816_v38 = vpop.permute.xlu1 %815 }
 0x21e   :  { %v9558_v39 = vsel %vm770_vm11, %v814_v37, %v816_v38 }
 0x227   :  { %v818_v40 = vpop.permute.xlu1 %817 }
 0x228   :  { %v822_v41 = vsel %vm770_vm11, %v816_v38, %v818_v40 }
 0x229   :  { %834 = vst.msk [vmem:[#allocation3 + $0x20] sm:$0xff] %vm833_vm14, %v822_v41 }
 0x22a   :  { %836 = vst.msk [vmem:[#allocation3 + $0x20] sm:$0xff] %vm835_vm15, %v9256_v5  ;;  %vm2150_vm15 = vcmask 1047640  }
 0x22b   :  { %v812_v43 = vpop.permute.xlu1 %811 }
 0x22c   :  { %v9564_v45 = vsel %vm770_vm11, %v810_v35, %v812_v43  ;;  %v9567_v42 = vsel %vm770_vm11, %v812_v43, %v814_v37  ;;  %vm1954_vm11 = vcmask 875520  }
 0x22d   :  { %830 = vst [vmem:[#allocation3 + $0x8] sm:$0xff] %v9564_v45  ;;  %845 = vst [vmem:[#allocation2 + $0x8] sm:$0xff] %v9564_v45  ;;  %863 = vrot.lane.b32.xlu0 %v9567_v42, %s9249_s6  ;;  %861 = vrot.lane.b32.xlu1 %v9564_v45, %s9249_s6 }
 0x231   :  { %v843_v46 = vld [vmem:[#allocation3 + $0x20] sm:$0xff]  ;;  %895 = vrot.lane.b32.xlu0 %v9564_v45, %s9250_s7  ;;  %865 = vrot.lane.b32.xlu1 %v9558_v39, %s9249_s6 }
 0x232   :  { %848 = vst.msk [vmem:[#allocation2 + $0x20] sm:$0xff] %vm184_vm0, %v843_v46 }
 0x235   :  { %899 = vrot.lane.b32.xlu0 %v9558_v39, %s9250_s7  ;;  %897 = vrot.lane.b32.xlu1 %v9567_v42, %s9250_s7 }
 0x239   :  { %929 = vrot.lane.b32.xlu0 %v9564_v45, %s9251_s8  ;;  %931 = vrot.lane.b32.xlu1 %v9567_v42, %s9251_s8 }
 0x23d   :  { %933 = vrot.lane.b32.xlu0 %v9558_v39, %s9251_s8  ;;  %965 = vrot.lane.b32.xlu1 %v9567_v42, %s9252_s9 }
 0x241   :  { %963 = vrot.lane.b32.xlu0 %v9564_v45, %s9252_s9  ;;  %999 = vrot.lane.b32.xlu1 %v9567_v42, %s9253_s10 }
 0x245   :  { %967 = vrot.lane.b32.xlu0 %v9558_v39, %s9252_s9  ;;  %1035 = vrot.lane.b32.xlu1 %v9567_v42, %s9254_s11 }
 0x249   :  { %997 = vrot.lane.b32.xlu0 %v9564_v45, %s9253_s10  ;;  %1074 = vrot.lane.b32.xlu1 %v9567_v42, %s9255_s12 }
 0x24d   :  { %1001 = vrot.lane.b32.xlu0 %v9558_v39, %s9253_s10  ;;  %1070 = vrot.lane.b32.xlu1 %v9545_v36, %s9255_s12 }
 0x251   :  { %1033 = vrot.lane.b32.xlu0 %v9564_v45, %s9254_s11  ;;  %901 = vrot.lane.b32.xlu1 %v843_v46, %s9250_s7 }
 0x255   :  { %1037 = vrot.lane.b32.xlu0 %v9558_v39, %s9254_s11  ;;  %935 = vrot.lane.b32.xlu1 %v843_v46, %s9251_s8 }
 0x259   :  { %1072 = vrot.lane.b32.xlu0 %v9564_v45, %s9255_s12  ;;  %969 = vrot.lane.b32.xlu1 %v843_v46, %s9252_s9  ;;  %s9292_s9 = smov 15  }
 0x25d   :  { %867 = vrot.lane.b32.xlu0 %v843_v46, %s9249_s6  ;;  %1003 = vrot.lane.b32.xlu1 %v843_v46, %s9253_s10 }
 0x261   :  { %1076 = vrot.lane.b32.xlu0 %v9558_v39, %s9255_s12  ;;  %1039 = vrot.lane.b32.xlu1 %v843_v46, %s9254_s11 }
 0x265   :  { %1031 = vrot.lane.b32.xlu0 %v9545_v36, %s9254_s11  ;;  %1078 = vrot.lane.b32.xlu1 %v843_v46, %s9255_s12 }
 0x269   :  { %1111 = vrot.lane.b32.xlu0 %v9564_v45, %s9257_s13  ;;  %1113 = vrot.lane.b32.xlu1 %v9567_v42, %s9257_s13 }
 0x26d   :  { %1115 = vrot.lane.b32.xlu0 %v9558_v39, %s9257_s13  ;;  %1117 = vrot.lane.b32.xlu1 %v843_v46, %s9257_s13 }
 0x271   :  { %1109 = vrot.lane.b32.xlu0 %v9545_v36, %s9257_s13  ;;  %1041 = vrot.lane.b32.xlu1 %v1024_v44, %s9254_s11  ;;  %s9268_s11 = smov 4  }
 0x272   :  { %s7608_s16 = sld [smem:[%s11699_s0 + %s9268_s11]]  }
 0x275   :  { %1080 = vrot.lane.b32.xlu0 %v1024_v44, %s9255_s12  ;;  %1119 = vrot.lane.b32.xlu1 %v1024_v44, %s9257_s13  ;;  %s9279_s12 = smov 7  }
 0x276   :  { %s7611_s17 = sld [smem:[%s11699_s0 + %s9279_s12]]  }
 0x277   :  { %v860_v49 = vpop.permute.xlu1 %859  ;;  %v894_v50 = vpop.permute.xlu0 %893 }
 0x279   :  { %1400 = vperm.xlu0 %9233, %v1397_v47   ;;  %1411 = vperm.xlu1 %9232, %v1408_v48  }
 0x27b   :  { %v928_v51 = vpop.permute.xlu1 %927  ;;  %v962_v52 = vpop.permute.xlu0 %961 }
 0x27f   :  { %v996_v53 = vpop.permute.xlu1 %995 }
 0x29f   :  { %v864_v54 = vpop.permute.xlu0 %863  ;;  %v862_v55 = vpop.permute.xlu1 %861 }
 0x2a0   :  { %v869_v56 = vsel %vm206_vm1, %v860_v49, %v862_v55  ;;  %v870_v58 = vsel %vm206_vm1, %v862_v55, %v864_v54 }
 0x2a1   :  { %879 = vst [vmem:[#allocation2 + $0x30] sm:$0xff] %v870_v58  ;;  %v8510_v60 = vpack.c.bf16 %v870_v58, %v9564_v45  ;;  %v8512_v61 = vpack.c.bf16 %v869_v56, %v9545_v36 }
 0x2a3   :  { %v896_v62 = vpop.permute.xlu0 %895  ;;  %v9648_v63 = vpop.permute.xlu1 %865  ;;  %8511 = vmatprep.subr.bf16.mxu1 %v8510_v60 }
 0x2a4   :  { %v9652_v0 = vsel %vm206_vm1, %v864_v54, %v9648_v63  ;;  %8513 = vmatpush1.bf16.msra.mxu1 %v8512_v61  ;;  %v903_v9 = vsel %vm241_vm2, %v894_v50, %v896_v62 }
 0x2a5   :  { %v8528_v54 = vpack.c.bf16 %v9652_v0, %v9567_v42 }
 0x2a7   :  { %v900_v1 = vpop.permute.xlu0 %899  ;;  %v898_v3 = vpop.permute.xlu1 %897 }
 0x2a8   :  { %v904_v4 = vsel %vm241_vm2, %v896_v62, %v898_v3  ;;  %v9656_v2 = vsel %vm241_vm2, %v898_v3, %v900_v1 }
 0x2a9   :  { %913 = vst [vmem:[#allocation2 + $0x58] sm:$0xff] %v904_v4 }
 0x2ab   :  { %v930_v7 = vpop.permute.xlu0 %929  ;;  %v932_v8 = vpop.permute.xlu1 %931 }
 0x2ac   :  { %v937_v10 = vsel %vm276_vm3, %v928_v51, %v930_v7  ;;  %v938_v11 = vsel %vm276_vm3, %v930_v7, %v932_v8 }
 0x2ad   :  { %947 = vst [vmem:[#allocation2 + $0x80] sm:$0xff] %v938_v11  ;;  %v8514_v12 = vpack.c.bf16 %v938_v11, %v904_v4  ;;  %v8516_v13 = vpack.c.bf16 %v937_v10, %v903_v9 }
 0x2af   :  { %v934_v14 = vpop.permute.xlu0 %933  ;;  %v966_v15 = vpop.permute.xlu1 %965  ;;  %8515 = vmatprep.subr.bf16.mxu1 %v8514_v12 }
 0x2b0   :  { %v9662_v16 = vsel %vm276_vm3, %v932_v8, %v934_v14  ;;  %8517 = vmatpush1.bf16.msra.mxu1 %v8516_v13 }
 0x2b1   :  { %v8532_v62 = vpack.c.bf16 %v9662_v16, %v9656_v2  ;;  %v1136_v16 = vld [vmem:[%s7608_s16] sm:$0xff]  ;;  %s9285_s16 = smov 37  }
 0x2b2   :  { %s10135_s19 = sld [smem:[%s11699_s0 + %s9285_s16]]  }
 0x2b3   :  { %v964_v17 = vpop.permute.xlu0 %963  ;;  %v1000_v18 = vpop.permute.xlu1 %999 }
 0x2b4   :  { %v972_v19 = vsel %vm311_vm4, %v964_v17, %v966_v15  ;;  %v971_v25 = vsel %vm311_vm4, %v962_v52, %v964_v17  ;;  %v1141_v17 = vld [vmem:[#allocation2 + $0x20] sm:$0xff] }
 0x2b5   :  { %981 = vst [vmem:[#allocation2 + $0xa8] sm:$0xff] %v972_v19 }
 0x2b7   :  { %v968_v21 = vpop.permute.xlu0 %967  ;;  %v1036_v22 = vpop.permute.xlu1 %1035 }
 0x2b8   :  { %v9666_v23 = vsel %vm311_vm4, %v966_v15, %v968_v21 }
 0x2bb   :  { %v998_v20 = vpop.permute.xlu0 %997  ;;  %v1075_v24 = vpop.permute.xlu1 %1074 }
 0x2bc   :  { %v1005_v26 = vsel %vm346_vm5, %v996_v53, %v998_v20  ;;  %v1006_v27 = vsel %vm346_vm5, %v998_v20, %v1000_v18 }
 0x2bd   :  { %1015 = vst [vmem:[#allocation2 + $0xd0] sm:$0xff] %v1006_v27  ;;  %v8518_v28 = vpack.c.bf16 %v1006_v27, %v972_v19  ;;  %v8520_v31 = vpack.c.bf16 %v1005_v26, %v971_v25 }
 0x2bf   :  { %v1002_v30 = vpop.permute.xlu0 %1001  ;;  %v1071_v33 = vpop.permute.xlu1 %1070  ;;  %8519 = vmatprep.subr.bf16.mxu1 %v8518_v28 }
 0x2c0   :  { %v1007_v34 = vsel %vm346_vm5, %v1000_v18, %v1002_v30  ;;  %8521 = vmatpush1.bf16.msra.mxu1 %v8520_v31 }
 0x2c1   :  { %v8536_v7 = vpack.c.bf16 %v1007_v34, %v9666_v23 }
 0x2c3   :  { %v1034_v32 = vpop.permute.xlu0 %1033  ;;  %v902_v35 = vpop.permute.xlu1 %901 }
 0x2c4   :  { %v1044_v36 = vsel %vm385_vm6, %v1034_v32, %v1036_v22  ;;  %v906_v37 = vsel %vm241_vm2, %v900_v1, %v902_v35  ;;  %916 = vst.msk [vmem:[#allocation2 + $0x70] sm:$0xff] %vm184_vm0, %v902_v35 }
 0x2c5   :  { %1054 = vst [vmem:[#allocation2 + $0xf8] sm:$0xff] %v1044_v36 }
 0x2c7   :  { %v1038_v38 = vpop.permute.xlu0 %1037  ;;  %v936_v40 = vpop.permute.xlu1 %935 }
 0x2c8   :  { %v1045_v41 = vsel %vm385_vm6, %v1036_v22, %v1038_v38  ;;  %v940_v43 = vsel %vm276_vm3, %v934_v14, %v936_v40  ;;  %950 = vst.msk [vmem:[#allocation2 + $0x98] sm:$0xff] %vm184_vm0, %v936_v40 }
 0x2c9   :  { %v8530_v58 = vpack.c.bf16 %v940_v43, %v906_v37 }
 0x2cb   :  { %v1073_v45 = vpop.permute.xlu0 %1072  ;;  %v970_v46 = vpop.permute.xlu1 %969 }
 0x2cc   :  { %v1083_v44 = vsel %vm425_vm7, %v1073_v45, %v1075_v24  ;;  %v974_v47 = vsel %vm311_vm4, %v968_v21, %v970_v46  ;;  %984 = vst.msk [vmem:[#allocation2 + $0xc0] sm:$0xff] %vm184_vm0, %v970_v46 }
 0x2cd   :  { %1093 = vst [vmem:[#allocation2 + $0x120] sm:$0xff] %v1083_v44  ;;  %v8522_v48 = vpack.c.bf16 %v1083_v44, %v1044_v36 }
 0x2cf   :  { %v868_v49 = vpop.permute.xlu0 %867  ;;  %v1004_v50 = vpop.permute.xlu1 %1003  ;;  %8523 = vmatprep.subr.bf16.mxu1 %v8522_v48  ;;  %v1156_v25 = vld [vmem:[#allocation2 + $0x98] sm:$0xff] }
 0x2d0   :  { %v872_v51 = vsel %vm206_vm1, %v9648_v63, %v868_v49  ;;  %882 = vst.msk [vmem:[#allocation2 + $0x48] sm:$0xff] %vm184_vm0, %v868_v49  ;;  %v1008_v52 = vsel %vm346_vm5, %v1002_v30, %v1004_v50  ;;  %1018 = vst.msk [vmem:[#allocation2 + $0xe8] sm:$0xff] %vm184_vm0, %v1004_v50 }
 0x2d1   :  { %v8526_v53 = vpack.c.bf16 %v872_v51, %v9558_v39  ;;  %v8534_v3 = vpack.c.bf16 %v1008_v52, %v974_v47  ;;  %v1082_v39 = vsel %vm425_vm7, %v1071_v33, %v1073_v45 }
 0x2d3   :  { %v1077_v55 = vpop.permute.xlu0 %1076  ;;  %v1040_v56 = vpop.permute.xlu1 %1039  ;;  %8527 = vmatprep.subr.bf16.mxu0 %v8526_v53  ;;  %v1161_v33 = vld [vmem:[#allocation2 + $0xc0] sm:$0xff] }
 0x2d4   :  { %v1084_v60 = vsel %vm425_vm7, %v1075_v24, %v1077_v55  ;;  %v1046_v61 = vsel %vm385_vm6, %v1038_v38, %v1040_v56  ;;  %8529 = vmatpush1.bf16.msra.mxu0 %v8528_v54  ;;  %v1151_v24 = vld [vmem:[#allocation2 + $0x70] sm:$0xff] }
 0x2d5   :  { %8531 = vmatprep.subr.bf16.mxu0 %v8530_v58  ;;  %v8540_v11 = vpack.c.bf16 %v1084_v60, %v1045_v41  ;;  %v8546_v30 = vpack.c.bf16 %v1156_v25, %v1151_v24  ;;  %v1499_v25 = vld [vmem:[%s9751_s24 + $0x60] sm:$0xff] }
 0x2d7   :  { %v1032_v63 = vpop.permute.xlu0 %1031  ;;  %v1079_v1 = vpop.permute.xlu1 %1078  ;;  %v1146_v18 = vld [vmem:[#allocation2 + $0x48] sm:$0xff] }
 0x2d8   :  { %v1043_v42 = vsel %vm385_vm6, %v1032_v63, %v1034_v32  ;;  %v1085_v0 = vsel %vm425_vm7, %v1077_v55, %v1079_v1  ;;  %8533 = vmatpush1.bf16.msra.mxu0 %v8532_v62  ;;  %v8543_v20 = vpack.c.bf16 %v1146_v18, %v1141_v17  ;;  %v1166_v34 = vld [vmem:[#allocation2 + $0xe8] sm:$0xff]  ;;  %v1495_v17 = vld [vmem:[%s9751_s24 + $0x40] sm:$0xff]  ;;  %v1497_v18 = vld [vmem:[%s9751_s24 + $0x50] sm:$0xff] }
 0x2d9   :  { %8535 = vmatprep.subr.bf16.mxu0 %v8534_v3  ;;  %v8524_v4 = vpack.c.bf16 %v1082_v39, %v1043_v42  ;;  %v8538_v9 = vpack.c.bf16 %v1085_v0, %v1046_v61  ;;  %v8549_v32 = vpack.c.bf16 %v1166_v34, %v1161_v33  ;;  %v1488_v63 = vld [vmem:[%s9751_s24 + $0x8] sm:$0xff]  ;;  %v1487_v3 = vld [vmem:[%s9751_s24] sm:$0xff]  ;;  %v1489_v42 = vld [vmem:[%s9751_s24 + $0x10] sm:$0xff] }
 0x2da   :  { %v1492_v0 = vld [vmem:[%s9751_s24 + $0x28] sm:$0xff]  ;;  %v1503_v33 = vld [vmem:[%s9751_s24 + $0x80] sm:$0xff]  ;;  %v1505_v34 = vld [vmem:[%s9751_s24 + $0x90] sm:$0xff] }
 0x2db   :  { %v1112_v2 = vpop.permute.xlu0 %1111  ;;  %v1114_v8 = vpop.permute.xlu1 %1113  ;;  %8525 = vmatpush1.bf16.msra.mxu1 %v8524_v4  ;;  %v1494_v4 = vld [vmem:[%s9751_s24 + $0x38] sm:$0xff] }
 0x2dc   :  { %v1122_v10 = vsel %vm465_vm8, %v1112_v2, %v1114_v8  ;;  %8537 = vmatpush1.bf16.msra.mxu0 %v8536_v7  ;;  %v8556_v7 = vpack.c.bf16 %v1489_v42, %v1487_v3  ;;  %v1521_v3 = vld [vmem:[%s9751_s24 + $0x110] sm:$0xff]  ;;  %v1526_v42 = vld [vmem:[%s9751_s24 + $0x138] sm:$0xff] }
 0x2dd   :  { %1132 = vst [vmem:[#allocation2 + $0x148] sm:$0xff] %v1122_v10  ;;  %1201 = vmatprep.subr.mxu1 %v1122_v10  ;;  %8539 = vmatprep.subr.bf16.mxu0 %v8538_v9  ;;  %v1493_v9 = vld [vmem:[%s9751_s24 + $0x30] sm:$0xff]  ;;  %v1496_v10 = vld [vmem:[%s9751_s24 + $0x48] sm:$0xff] }
 0x2df   :  { %v1116_v12 = vpop.permute.xlu0 %1115  ;;  %v1118_v13 = vpop.permute.xlu1 %1117 }
 0x2e0   :  { %v1123_v14 = vsel %vm465_vm8, %v1114_v8, %v1116_v12  ;;  %v1124_v15 = vsel %vm465_vm8, %v1116_v12, %v1118_v13  ;;  %8541 = vmatpush1.bf16.msra.mxu0 %v8540_v11  ;;  %v1491_v8 = vld [vmem:[%s9751_s24 + $0x20] sm:$0xff]  ;;  %v1498_v12 = vld [vmem:[%s9751_s24 + $0x58] sm:$0xff] }
 0x2e1   :  { %1272 = vmatprep.subr.mxu0 %v1124_v15  ;;  %v8560_v15 = vpack.c.bf16 %v1493_v9, %v1491_v8  ;;  %v1528_v8 = vld [vmem:[%s9751_s24 + $0x148] sm:$0xff]  ;;  %v1530_v9 = vld [vmem:[%s9751_s24 + $0x158] sm:$0xff] }
 0x2e3   :  { %v1110_v19 = vpop.permute.xlu0 %1109  ;;  %v1042_v21 = vpop.permute.xlu1 %1041 }
 0x2e4   :  { %v1121_v22 = vsel %vm465_vm8, %v1110_v19, %v1112_v2  ;;  %v1047_v23 = vsel %vm385_vm6, %v1040_v56, %v1042_v21  ;;  %1273 = vmatpush1.msra.mxu0 %v1123_v14  ;;  %v8558_v2 = vpack.c.bf16 %v1494_v4, %v1492_v0  ;;  %v1500_v21 = vld [vmem:[%s9751_s24 + $0x68] sm:$0xff]  ;;  %vm1635_vm6 = vcmask 646144  }
 0x2e5   :  { %1057 = vst.msk [vmem:[#allocation2 + $0x110] sm:$0xff] %vm184_vm0, %v1047_v23  ;;  %1202 = vmatpush1.msra.mxu1 %v1121_v22  ;;  %7653 = vmatmul.mubr.msk.f32.vlgmr.msra.gmra.mrb[4].mxu0 %vm527_vm9, %v1136_v16  ;;  %v1502_v22 = vld [vmem:[%s9751_s24 + $0x78] sm:$0xff] }
 0x2e6   :  { %7652 = vmatmul.mubr.msk.f32.vlgmr.msra.gmra.mrb[2].mxu1 %vm527_vm9, %v1136_v16  ;;  %8542 = vmatprep.subr.bf16.mxu1 %v9262_v6  ;;  %v8566_v24 = vpack.c.bf16 %v1502_v22, %v1500_v21  ;;  %v1536_v21 = vld [vmem:[%s9751_s24 + $0x188] sm:$0xff]  ;;  %v1538_v22 = vld [vmem:[%s9751_s24 + $0x198] sm:$0xff] }
 0x2e7   :  { %v1081_v26 = vpop.permute.xlu0 %1080  ;;  %v1120_v27 = vpop.permute.xlu1 %1119  ;;  %8544 = vmatpush3.bf16.msra.mxu1 %v8543_v20  ;;  %8307 = vmatprep.mubr.msk.f32.mxu1 %vm9263_vm10, %v9256_v5  ;;  %v8564_v20 = vpack.c.bf16 %v1497_v18, %v1495_v17  ;;  %v1531_v18 = vld [vmem:[%s9751_s24 + $0x160] sm:$0xff]  ;;  %vm1927_vm10 = vcmask 949248  }
 0x2e8   :  { %v1086_v28 = vsel %vm425_vm7, %v1079_v1, %v1081_v26  ;;  %v1125_v31 = vsel %vm465_vm8, %v1118_v13, %v1120_v27  ;;  %8545 = vmatprep.subr.bf16.mxu1 %v9262_v6  ;;  %v1490_v1 = vld [vmem:[%s9751_s24 + $0x18] sm:$0xff]  ;;  %v1501_v26 = vld [vmem:[%s9751_s24 + $0x70] sm:$0xff]  ;;  %v1504_v27 = vld [vmem:[%s9751_s24 + $0x88] sm:$0xff]  ;;  %vm1864_vm7 = vcmask 408576   ;;  %vm1900_vm8 = vcmask 965632  }
 0x2e9   :  { %1096 = vst.msk [vmem:[#allocation2 + $0x138] sm:$0xff] %vm184_vm0, %v1086_v28  ;;  %1135 = vst.msk [vmem:[#allocation2 + $0x160] sm:$0xff] %vm184_vm0, %v1125_v31  ;;  %v8554_v39 = vpack.c.bf16 %v1490_v1, %v1488_v63  ;;  %v1506_v28 = vld [vmem:[%s9751_s24 + $0x98] sm:$0xff]  ;;  %v8568_v31 = vpack.c.bf16 %v1501_v26, %v1499_v25  ;;  %v1519_v1 = vld [vmem:[%s9751_s24 + $0x100] sm:$0xff] }
 0x2ea   :  { %v8588_v0 = vpack.c.bf16 %v1521_v3, %v1519_v1  ;;  %v1535_v25 = vld [vmem:[%s9751_s24 + $0x180] sm:$0xff]  ;;  %v1537_v26 = vld [vmem:[%s9751_s24 + $0x190] sm:$0xff] }
 0x2eb   :  { %8547 = vmatpush3.bf16.msra.mxu1 %v8546_v30  ;;  %8555 = vmatprep.subr.bf16.mxu0 %v8554_v39  ;;  %v8570_v30 = vpack.c.bf16 %v1506_v28, %v1504_v27  ;;  %v1524_v39 = vld [vmem:[%s9751_s24 + $0x128] sm:$0xff]  ;;  %v1542_v28 = vld [vmem:[%s9751_s24 + $0x1b8] sm:$0xff] }
 0x2ec   :  { %8548 = vmatprep.subr.bf16.mxu1 %v9262_v6  ;;  %v1171_v35 = vld [vmem:[#allocation2 + $0x110] sm:$0xff]  ;;  %8557 = vmatpush1.bf16.msra.mxu0 %v8556_v7  ;;  %v8590_v4 = vpack.c.bf16 %v1526_v42, %v1524_v39  ;;  %v1523_v7 = vld [vmem:[%s9751_s24 + $0x120] sm:$0xff]  ;;  %v1540_v27 = vld [vmem:[%s9751_s24 + $0x1a8] sm:$0xff] }
 0x2ed   :  { %8559 = vmatprep.subr.bf16.mxu0 %v8558_v2  ;;  %v1525_v2 = vld [vmem:[%s9751_s24 + $0x130] sm:$0xff] }
 0x2ef   :  { %8550 = vmatpush3.bf16.msra.mxu1 %v8549_v32  ;;  %v1508_v32 = vld [vmem:[%s9751_s24 + $0xa8] sm:$0xff] }
 0x2f0   :  { %8551 = vmatprep.subr.bf16.mxu1 %v9262_v6  ;;  %v1176_v36 = vld [vmem:[#allocation2 + $0x138] sm:$0xff]  ;;  %v1181_v38 = vld [vmem:[#allocation2 + $0x160] sm:$0xff]  ;;  %8561 = vmatpush1.bf16.msra.mxu0 %v8560_v15 }
 0x2f1   :  { %v8552_v37 = vpack.c.bf16 %v1176_v36, %v1171_v35  ;;  %v1510_v35 = vld [vmem:[%s9751_s24 + $0xb8] sm:$0xff]  ;;  %v8572_v36 = vpack.c.bf16 %v1505_v34, %v1503_v33  ;;  %v1539_v33 = vld [vmem:[%s9751_s24 + $0x1a0] sm:$0xff]  ;;  %v1541_v34 = vld [vmem:[%s9751_s24 + $0x1b0] sm:$0xff] }
 0x2f2   :  { %v1534_v15 = vld [vmem:[%s9751_s24 + $0x178] sm:$0xff] }
 0x2f3   :  { %8553 = vmatpush3.bf16.msra.mxu1 %v8552_v37  ;;  %v8574_v37 = vpack.c.bf16 %v1510_v35, %v1508_v32  ;;  %v8608_v32 = vpack.c.bf16 %v1541_v34, %v1539_v33  ;;  %v1544_v35 = vld [vmem:[%s9751_s24 + $0x1c8] sm:$0xff] }
 0x2f4   :  { %8305 = vmatprep.subr.mxu1 %v9256_v5 }
 0x2f7   :  { %8306 = vmatpush3.msra.mxu1 %v1181_v38  ;;  %v1507_v38 = vld [vmem:[%s9751_s24 + $0xa0] sm:$0xff] }
 0x2f8   :  { %8308 = vmatmul.mubr.msk.f32.vlgmr.msra.gmra.mrb[4].mxu1 %vm527_vm9, %v1136_v16  ;;  %v1401_v40 = vpop.permute.xlu0 %1400  ;;  %v1412_v44 = vpop.permute.xlu1 %1411  ;;  %v8562_v16 = vpack.c.bf16 %v1498_v12, %v1496_v10  ;;  %v8592_v10 = vpack.c.bf16 %v1525_v2, %v1523_v7  ;;  %v1527_v12 = vld [vmem:[%s9751_s24 + $0x140] sm:$0xff] }
 0x2f9   :  { %2064 = vmatprep.mubr.f32.mxu1 %v9256_v5 }
 0x2fa   :  { %8563 = vmatprep.subr.bf16.mxu0 %v8562_v16 }
 0x2fb   :  { %8565 = vmatpush1.bf16.msra.mxu0 %v8564_v20 }
 0x2fc   :  { %8567 = vmatprep.subr.bf16.mxu0 %v8566_v24  ;;  %v8602_v24 = vpack.c.bf16 %v1538_v22, %v1536_v21  ;;  %v1555_v22 = vld [vmem:[%s9751_s24 + $0x220] sm:$0xff] }
 0x2ff   :  { %8569 = vmatpush1.bf16.msra.mxu0 %v8568_v31  ;;  %v8604_v31 = vpack.c.bf16 %v1537_v26, %v1535_v25  ;;  %v1560_v25 = vld [vmem:[%s9751_s24 + $0x248] sm:$0xff]  ;;  %v1562_v26 = vld [vmem:[%s9751_s24 + $0x258] sm:$0xff] }
 0x300   :  { %8571 = vmatprep.subr.bf16.mxu0 %v8570_v30  ;;  %v8606_v30 = vpack.c.bf16 %v1542_v28, %v1540_v27  ;;  %v8626_v27 = vpack.c.bf16 %v1562_v26, %v1560_v25  ;;  %v1561_v28 = vld [vmem:[%s9751_s24 + $0x250] sm:$0xff]  ;;  %v1596_v25 = vld [vmem:[%s9751_s24 + $0x368] sm:$0xff]  ;;  %v1598_v26 = vld [vmem:[%s9751_s24 + $0x378] sm:$0xff] }
 0x303   :  { %8573 = vmatpush1.bf16.msra.mxu0 %v8572_v36  ;;  %v1546_v36 = vld [vmem:[%s9751_s24 + $0x1d8] sm:$0xff] }
 0x304   :  { %8575 = vmatprep.subr.bf16.mxu0 %v8574_v37  ;;  %v8610_v37 = vpack.c.bf16 %v1546_v36, %v1544_v35  ;;  %v1565_v35 = vld [vmem:[%s9751_s24 + $0x270] sm:$0xff]  ;;  %v1568_v36 = vld [vmem:[%s9751_s24 + $0x288] sm:$0xff] }
 0x3b8   :  { %v1322_v41 = vpop.f32.mrb[4].mxu0 }
 0x3b9   :  { %v1405_v43 = vmul.f32 %v1401_v40, %v1322_v41  ;;  %v1251_v45 = vpop.f32.mrb[2].mxu1  ;;  %v1324_v46 = vpop.f32.mrb[5].mxu0  ;;  %v1512_v41 = vld [vmem:[%s9751_s24 + $0xc8] sm:$0xff] }
 0x3ba   :  { %v1403_v47 = vmul.f32 %v1401_v40, %v1251_v45  ;;  %v1406_v48 = vmul.f32 %v1401_v40, %v1324_v46  ;;  %v1253_v49 = vpop.f32.mrb[3].mxu1 }
 0x3bb   :  { %v1416_v50 = vadd.f32 %v1412_v44, %v1405_v43  ;;  %v1404_v51 = vmul.f32 %v1401_v40, %v1253_v49  ;;  %v1514_v43 = vld [vmem:[%s9751_s24 + $0xd8] sm:$0xff] }
 0x3bc   :  { %v1414_v52 = vadd.f32 %v1412_v44, %v1403_v47  ;;  %v1417_v53 = vadd.f32 %v1412_v44, %v1406_v48  ;;  %v8578_v46 = vpack.c.bf16 %v1514_v43, %v1512_v41  ;;  %v1513_v47 = vld [vmem:[%s9751_s24 + $0xd0] sm:$0xff]  ;;  %v1516_v48 = vld [vmem:[%s9751_s24 + $0xe8] sm:$0xff]  ;;  %v1518_v49 = vld [vmem:[%s9751_s24 + $0xf8] sm:$0xff] }
 0x3bd   :  { %v9727_v54 = vmax.f32 %v1416_v50, 0.0  ;;  %v1415_v55 = vadd.f32 %v1412_v44, %v1404_v51  ;;  %v8582_v51 = vpack.c.bf16 %v1518_v49, %v1516_v48  ;;  %v1548_v43 = vld [vmem:[%s9751_s24 + $0x1e8] sm:$0xff] }
 0x3be   :  { %v9729_v56 = vmax.f32 %v1414_v52, 0.0  ;;  %v9731_v58 = vmax.f32 %v1417_v53, 0.0  ;;  %v1515_v52 = vld [vmem:[%s9751_s24 + $0xe0] sm:$0xff]  ;;  %v1517_v53 = vld [vmem:[%s9751_s24 + $0xf0] sm:$0xff] }
 0x3bf   :  { %1426 = vst [vmem:[%s9725_s20 + $0x10] sm:$0xff] %v9727_v54  ;;  %v9735_v60 = vmax.f32 %v1415_v55, 0.0  ;;  %v1520_v55 = vld [vmem:[%s9751_s24 + $0x108] sm:$0xff] }
 0x3c0   :  { %1424 = vst [vmem:[%s9725_s20] sm:$0xff] %v9729_v56  ;;  %1427 = vst [vmem:[%s9725_s20 + $0x18] sm:$0xff] %v9731_v58  ;;  %v9239_v61 = vpack.i.bf16 %v9729_v56, %v9731_v58 }
 0x3c1   :  { %1425 = vst [vmem:[%s9725_s20 + $0x8] sm:$0xff] %v9735_v60  ;;  %v9234_v62 = vpack.i.bf16 %v9727_v54, %v9735_v60 }
 0x3c2   :  { %9240 = vrot.lane.b32.xlu1 %v9239_v61, %s9249_s6  ;;  %v1522_v61 = vld [vmem:[%s9751_s24 + $0x118] sm:$0xff] }
 0x3c3   :  { %9235 = vrot.lane.b32.xlu0 %v9234_v62, %s9249_s6  ;;  %v8584_v62 = vpack.c.bf16 %v1517_v53, %v1515_v52  ;;  %v8586_v63 = vpack.c.bf16 %v1522_v61, %v1520_v55  ;;  %v1552_v61 = vld [vmem:[%s9751_s24 + $0x208] sm:$0xff] }
 0x3cb   :  { %v1393_v11 = vpop.f32.mrb[4].mxu1 }
 0x3cc   :  { %v1407_v13 = vmul.f32 %v1401_v40, %v1393_v11  ;;  %v8309_v14 = vpop.f32.mrb[5].mxu1  ;;  %v1509_v40 = vld [vmem:[%s9751_s24 + $0xb0] sm:$0xff]  ;;  %v8594_v11 = vpack.c.bf16 %v1530_v9, %v1528_v8 }
 0x3cd   :  { %v8576_v45 = vpack.c.bf16 %v1509_v40, %v1507_v38  ;;  %v1532_v14 = vld [vmem:[%s9751_s24 + $0x168] sm:$0xff]  ;;  %v1543_v38 = vld [vmem:[%s9751_s24 + $0x1c0] sm:$0xff]  ;;  %v1545_v40 = vld [vmem:[%s9751_s24 + $0x1d0] sm:$0xff] }
 0x3ce   :  { %v1418_v19 = vadd.f32 %v1412_v44, %v1407_v13  ;;  %v1511_v44 = vld [vmem:[%s9751_s24 + $0xc0] sm:$0xff]  ;;  %v1529_v13 = vld [vmem:[%s9751_s24 + $0x150] sm:$0xff]  ;;  %v8598_v17 = vpack.c.bf16 %v1534_v15, %v1532_v14  ;;  %v8612_v41 = vpack.c.bf16 %v1545_v40, %v1543_v38 }
 0x3cf   :  { %8577 = vmatpush1.bf16.msra.mxu0 %v8576_v45  ;;  %v8580_v50 = vpack.c.bf16 %v1513_v47, %v1511_v44  ;;  %v8596_v16 = vpack.c.bf16 %v1529_v13, %v1527_v12  ;;  %v1550_v45 = vld [vmem:[%s9751_s24 + $0x1f8] sm:$0xff]  ;;  %v1547_v44 = vld [vmem:[%s9751_s24 + $0x1e0] sm:$0xff]  ;;  %v1549_v47 = vld [vmem:[%s9751_s24 + $0x1f0] sm:$0xff] }
 0x3d0   :  { %v9768_v23 = vmax.f32 %v1418_v19, 0.0  ;;  %8579 = vmatprep.subr.bf16.mxu0 %v8578_v46  ;;  %v1533_v19 = vld [vmem:[%s9751_s24 + $0x170] sm:$0xff]  ;;  %v8614_v46 = vpack.c.bf16 %v1550_v45, %v1548_v43  ;;  %v8616_v48 = vpack.c.bf16 %v1549_v47, %v1547_v44  ;;  %v1572_v45 = vld [vmem:[%s9751_s24 + $0x2a8] sm:$0xff] }
 0x3d1   :  { %v8600_v20 = vpack.c.bf16 %v1533_v19, %v1531_v18  ;;  %v1569_v43 = vld [vmem:[%s9751_s24 + $0x290] sm:$0xff] }
 0x3d2   :  { %1428 = vst.msk [vmem:[%s9725_s20 + $0x20] sm:$0xff] %vm184_vm0, %v9768_v23  ;;  %vm1639_vm0 = vcmask 1046528   ;;  %s9286_s20 = smov 122  }
 0x3d3   :  { %8581 = vmatpush1.bf16.msra.mxu0 %v8580_v50 }
 0x3d4   :  { %8583 = vmatprep.subr.bf16.mxu0 %v8582_v51 }
 0x3d7   :  { %8585 = vmatpush1.bf16.msra.mxu0 %v8584_v62  ;;  %v1554_v62 = vld [vmem:[%s9751_s24 + $0x218] sm:$0xff] }
 0x3d8   :  { %8587 = vmatprep.subr.bf16.mxu0 %v8586_v63  ;;  %v8618_v39 = vpack.c.bf16 %v1554_v62, %v1552_v61  ;;  %v1577_v61 = vld [vmem:[%s9751_s24 + $0x2d0] sm:$0xff]  ;;  %v1580_v62 = vld [vmem:[%s9751_s24 + $0x2e8] sm:$0xff] }
 0x3db   :  { %8589 = vmatpush1.bf16.msra.mxu0 %v8588_v0 }
 0x3dc   :  { %8591 = vmatprep.subr.bf16.mxu0 %v8590_v4 }
 0x3df   :  { %8593 = vmatpush1.bf16.msra.mxu0 %v8592_v10  ;;  %v1556_v10 = vld [vmem:[%s9751_s24 + $0x228] sm:$0xff] }
 0x3e0   :  { %8595 = vmatprep.subr.bf16.mxu0 %v8594_v11  ;;  %v1558_v11 = vld [vmem:[%s9751_s24 + $0x238] sm:$0xff] }
 0x3e1   :  { %v8622_v21 = vpack.c.bf16 %v1558_v11, %v1556_v10  ;;  %v1588_v10 = vld [vmem:[%s9751_s24 + $0x328] sm:$0xff]  ;;  %v1590_v11 = vld [vmem:[%s9751_s24 + $0x338] sm:$0xff] }
 0x3e3   :  { %8597 = vmatpush1.bf16.msra.mxu0 %v8596_v16 }
 0x3e4   :  { %8599 = vmatprep.subr.bf16.mxu0 %v8598_v17 }
 0x3e7   :  { %8601 = vmatpush1.bf16.msra.mxu0 %v8600_v20  ;;  %v1557_v20 = vld [vmem:[%s9751_s24 + $0x230] sm:$0xff] }
 0x3e8   :  { %8603 = vmatprep.subr.bf16.mxu0 %v8602_v24 }
 0x3eb   :  { %8605 = vmatpush1.bf16.msra.mxu0 %v8604_v31  ;;  %v1564_v31 = vld [vmem:[%s9751_s24 + $0x268] sm:$0xff] }
 0x3ec   :  { %8607 = vmatprep.subr.bf16.mxu0 %v8606_v30  ;;  %v1566_v30 = vld [vmem:[%s9751_s24 + $0x278] sm:$0xff] }
 0x3ed   :  { %v8630_v34 = vpack.c.bf16 %v1566_v30, %v1564_v31  ;;  %v1600_v31 = vld [vmem:[%s9751_s24 + $0x388] sm:$0xff]  ;;  %v1602_v30 = vld [vmem:[%s9751_s24 + $0x398] sm:$0xff] }
 0x3ef   :  { %8609 = vmatpush1.bf16.msra.mxu0 %v8608_v32  ;;  %v1563_v32 = vld [vmem:[%s9751_s24 + $0x260] sm:$0xff] }
 0x3f0   :  { %8611 = vmatprep.subr.bf16.mxu0 %v8610_v37  ;;  %v1570_v37 = vld [vmem:[%s9751_s24 + $0x298] sm:$0xff]  ;;  %v8632_v38 = vpack.c.bf16 %v1565_v35, %v1563_v32  ;;  %v1599_v32 = vld [vmem:[%s9751_s24 + $0x380] sm:$0xff]  ;;  %v1601_v35 = vld [vmem:[%s9751_s24 + $0x390] sm:$0xff] }
 0x3f1   :  { %v8634_v40 = vpack.c.bf16 %v1570_v37, %v1568_v36  ;;  %v1604_v36 = vld [vmem:[%s9751_s24 + $0x3a8] sm:$0xff]  ;;  %v1606_v37 = vld [vmem:[%s9751_s24 + $0x3b8] sm:$0xff] }
 0x3f3   :  { %8613 = vmatpush1.bf16.msra.mxu0 %v8612_v41  ;;  %v1567_v41 = vld [vmem:[%s9751_s24 + $0x280] sm:$0xff] }
 0x3f4   :  { %8615 = vmatprep.subr.bf16.mxu0 %v8614_v46  ;;  %v1574_v46 = vld [vmem:[%s9751_s24 + $0x2b8] sm:$0xff]  ;;  %v8636_v44 = vpack.c.bf16 %v1569_v43, %v1567_v41  ;;  %v1603_v41 = vld [vmem:[%s9751_s24 + $0x3a0] sm:$0xff]  ;;  %v1605_v43 = vld [vmem:[%s9751_s24 + $0x3b0] sm:$0xff] }
 0x3f5   :  { %v8638_v47 = vpack.c.bf16 %v1574_v46, %v1572_v45  ;;  %v1608_v45 = vld [vmem:[%s9751_s24 + $0x3c8] sm:$0xff]  ;;  %v1610_v46 = vld [vmem:[%s9751_s24 + $0x3d8] sm:$0xff] }
 0x3f7   :  { %8617 = vmatpush1.bf16.msra.mxu0 %v8616_v48  ;;  %v1571_v48 = vld [vmem:[%s9751_s24 + $0x2a0] sm:$0xff] }
 0x3f8   :  { %8619 = vmatprep.subr.bf16.mxu0 %v8618_v39  ;;  %v1579_v39 = vld [vmem:[%s9751_s24 + $0x2e0] sm:$0xff] }
 0x434   :  { %v9241_v49 = vpop.permute.xlu1 %9240 }
 0x435   :  { %v9243_v50 = vunpack.i.h.bf16 %v9241_v49  ;;  %v9242_v51 = vunpack.i.l.bf16 %v9241_v49  ;;  %v9236_v52 = vpop.permute.xlu0 %9235  ;;  %v1573_v49 = vld [vmem:[%s9751_s24 + $0x2b0] sm:$0xff] }
 0x436   :  { %v9238_v53 = vunpack.i.h.bf16 %v9236_v52  ;;  %v9237_v55 = vunpack.i.l.bf16 %v9236_v52  ;;  %v8640_v52 = vpack.c.bf16 %v1573_v49, %v1571_v48  ;;  %v1607_v48 = vld [vmem:[%s9751_s24 + $0x3c0] sm:$0xff]  ;;  %v1609_v49 = vld [vmem:[%s9751_s24 + $0x3d0] sm:$0xff] }
 0x438   :  { %v1444_v63 = vsel %vm206_vm1, %v9243_v50, %v9237_v55  ;;  %v1445_v1 = vsel %vm206_vm1, %v9237_v55, %v9238_v53  ;;  %v1446_v3 = vsel %vm206_vm1, %v9238_v53, %v9242_v51  ;;  %v1576_v50 = vld [vmem:[%s9751_s24 + $0x2c8] sm:$0xff]  ;;  %v1575_v55 = vld [vmem:[%s9751_s24 + $0x2c0] sm:$0xff] }
 0x439   :  { %v1453_v42 = vmax.f32 %v9729_v56, %v1444_v63  ;;  %v1454_v0 = vmax.f32 %v9735_v60, %v1445_v1  ;;  %v9831_v4 = vmax.f32 %v9727_v54, %v1446_v3  ;;  %v1551_v54 = vld [vmem:[%s9751_s24 + $0x200] sm:$0xff]  ;;  %v1553_v60 = vld [vmem:[%s9751_s24 + $0x210] sm:$0xff]  ;;  %v1582_v63 = vld [vmem:[%s9751_s24 + $0x2f8] sm:$0xff]  ;;  %v8644_v1 = vpack.c.bf16 %v1577_v61, %v1575_v55 }
 0x43a   :  { %v8620_v17 = vpack.c.bf16 %v1553_v60, %v1551_v54  ;;  %v8646_v3 = vpack.c.bf16 %v1582_v63, %v1580_v62  ;;  %v1583_v60 = vld [vmem:[%s9751_s24 + $0x300] sm:$0xff]  ;;  %v1613_v61 = vld [vmem:[%s9751_s24 + $0x3f0] sm:$0xff]  ;;  %v1616_v62 = vld [vmem:[%s9751_s24 + $0x408] sm:$0xff] }
 0x43b   :  { %1463 = vrot.lane.b32.xlu1 %v1453_v42, %s9251_s8  ;;  %v9244_v7 = vpack.i.bf16 %v9831_v4, %v1454_v0  ;;  %v1611_v55 = vld [vmem:[%s9751_s24 + $0x3e0] sm:$0xff]  ;;  %v1618_v63 = vld [vmem:[%s9751_s24 + $0x418] sm:$0xff] }
 0x43d   :  { %9245 = vrot.lane.b32.xlu0 %v9244_v7, %s9251_s8  ;;  %v1586_v7 = vld [vmem:[%s9751_s24 + $0x318] sm:$0xff] }
 0x441   :  { %1442 = vrot.lane.b32.xlu0 %v9768_v23, %s9249_s6 }
 0x4ad   :  { %v1464_v9 = vpop.permute.xlu1 %1463 }
 0x4af   :  { %v9838_v2 = vpop.permute.xlu0 %9245 }
 0x4b0   :  { %v9248_v8 = vunpack.i.h.bf16 %v9838_v2  ;;  %v9247_v56 = vunpack.i.l.bf16 %v9838_v2  ;;  %v1626_v2 = vld [vmem:[%s9751_s24 + $0x458] sm:$0xff] }
 0x4b2   :  { %v1473_v12 = vsel %vm276_vm3, %v1464_v9, %v9247_v56  ;;  %v1474_v13 = vsel %vm276_vm3, %v9247_v56, %v9248_v8  ;;  %v1585_v9 = vld [vmem:[%s9751_s24 + $0x310] sm:$0xff] }
 0x4b3   :  { %v1443_v14 = vpop.permute.xlu0 %1442  ;;  %v1483_v15 = vmax.f32 %v1454_v0, %v1474_v13  ;;  %v1482_v16 = vmax.f32 %v1453_v42, %v1473_v12  ;;  %v1581_v42 = vld [vmem:[%s9751_s24 + $0x2f0] sm:$0xff]  ;;  %v1584_v0 = vld [vmem:[%s9751_s24 + $0x308] sm:$0xff]  ;;  %v8652_v12 = vpack.c.bf16 %v1585_v9, %v1583_v60  ;;  %v8654_v13 = vpack.c.bf16 %v1590_v11, %v1588_v10 }
 0x4b4   :  { %v1447_v18 = vsel %vm206_vm1, %v9242_v51, %v1443_v14  ;;  %v9852_v19 = vmax.f32 %v9768_v23, %v1443_v14  ;;  %v8624_v23 = vpack.c.bf16 %v1557_v20, %v1555_v22  ;;  %v1578_v51 = vld [vmem:[%s9751_s24 + $0x2d8] sm:$0xff]  ;;  %v8648_v56 = vpack.c.bf16 %v1581_v42, %v1579_v39  ;;  %v1587_v14 = vld [vmem:[%s9751_s24 + $0x320] sm:$0xff]  ;;  %v1593_v20 = vld [vmem:[%s9751_s24 + $0x350] sm:$0xff] }
 0x4b5   :  { %v9857_v24 = vmax.f32 %v9731_v58, %v1447_v18  ;;  %1710 = vmatprep.mubr.f32.mxu0 %v1483_v15  ;;  %v1559_v58 = vld [vmem:[%s9751_s24 + $0x240] sm:$0xff]  ;;  %v8642_v53 = vpack.c.bf16 %v1578_v51, %v1576_v50  ;;  %v8650_v54 = vpack.c.bf16 %v1586_v7, %v1584_v0  ;;  %v1589_v15 = vld [vmem:[%s9751_s24 + $0x330] sm:$0xff]  ;;  %v1612_v50 = vld [vmem:[%s9751_s24 + $0x3e8] sm:$0xff] }
 0x4b6   :  { %1471 = vrot.lane.b32.xlu0 %v9852_v19, %s9251_s8  ;;  %1711 = vmatmul.mubr.f32.vlgmr.msra.gmra.mrb[6].mxu0 %v1482_v16  ;;  %v8628_v33 = vpack.c.bf16 %v1561_v28, %v1559_v58  ;;  %v1592_v16 = vld [vmem:[%s9751_s24 + $0x348] sm:$0xff]  ;;  %v8656_v18 = vpack.c.bf16 %v1589_v15, %v1587_v14  ;;  %v1591_v22 = vld [vmem:[%s9751_s24 + $0x340] sm:$0xff]  ;;  %v1597_v28 = vld [vmem:[%s9751_s24 + $0x370] sm:$0xff] }
 0x4b7   :  { %1469 = vrot.lane.b32.xlu1 %v9857_v24, %s9251_s8  ;;  %8621 = vmatpush1.bf16.msra.mxu0 %v8620_v17  ;;  %v1594_v17 = vld [vmem:[%s9751_s24 + $0x358] sm:$0xff]  ;;  %v1595_v58 = vld [vmem:[%s9751_s24 + $0x360] sm:$0xff]  ;;  %v1617_v0 = vld [vmem:[%s9751_s24 + $0x410] sm:$0xff]  ;;  %s9272_s8 = smov 118  }
 0x4b8   :  { %8623 = vmatprep.subr.bf16.mxu0 %v8622_v21  ;;  %v8658_v21 = vpack.c.bf16 %v1594_v17, %v1592_v16  ;;  %v1614_v51 = vld [vmem:[%s9751_s24 + $0x3f8] sm:$0xff]  ;;  %v1615_v42 = vld [vmem:[%s9751_s24 + $0x400] sm:$0xff]  ;;  %v1621_v15 = vld [vmem:[%s9751_s24 + $0x430] sm:$0xff] }
 0x4b9   :  { %v1619_v14 = vld [vmem:[%s9751_s24 + $0x420] sm:$0xff]  ;;  %v1624_v16 = vld [vmem:[%s9751_s24 + $0x448] sm:$0xff]  ;;  %v1625_v17 = vld [vmem:[%s9751_s24 + $0x450] sm:$0xff] }
 0x4bb   :  { %8625 = vmatpush1.bf16.msra.mxu0 %v8624_v23  ;;  %v8660_v23 = vpack.c.bf16 %v1593_v20, %v1591_v22 }
 0x4bc   :  { %8627 = vmatprep.subr.bf16.mxu0 %v8626_v27  ;;  %v8662_v27 = vpack.c.bf16 %v1598_v26, %v1596_v25  ;;  %v1627_v25 = vld [vmem:[%s9751_s24 + $0x460] sm:$0xff]  ;;  %v1629_v26 = vld [vmem:[%s9751_s24 + $0x470] sm:$0xff] }
 0x4bf   :  { %8629 = vmatpush1.bf16.msra.mxu0 %v8628_v33  ;;  %v8664_v33 = vpack.c.bf16 %v1597_v28, %v1595_v58  ;;  %v8696_v58 = vpack.c.bf16 %v1629_v26, %v1627_v25  ;;  %v1975_v25 = vld [vmem:[%s7611_s17 + $0x8] sm:$0xff] }
 0x4c0   :  { %8631 = vmatprep.subr.bf16.mxu0 %v8630_v34  ;;  %v8666_v34 = vpack.c.bf16 %v1602_v30, %v1600_v31  ;;  %v1631_v31 = vld [vmem:[%s9751_s24 + $0x480] sm:$0xff]  ;;  %v1633_v30 = vld [vmem:[%s9751_s24 + $0x490] sm:$0x7f] }
 0x4c3   :  { %8633 = vmatpush1.bf16.msra.mxu0 %v8632_v38  ;;  %v8668_v38 = vpack.c.bf16 %v1601_v35, %v1599_v32 }
 0x4c4   :  { %8635 = vmatprep.subr.bf16.mxu0 %v8634_v40  ;;  %v8670_v40 = vpack.c.bf16 %v1606_v37, %v1604_v36  ;;  %v2093_v37 = vld [vmem:[%s7613_s14] sm:$0xff] }
 0x4c7   :  { %8637 = vmatpush1.bf16.msra.mxu0 %v8636_v44  ;;  %v8672_v44 = vpack.c.bf16 %v1605_v43, %v1603_v41 }
 0x4c8   :  { %8639 = vmatprep.subr.bf16.mxu0 %v8638_v47  ;;  %v8674_v47 = vpack.c.bf16 %v1610_v46, %v1608_v45 }
 0x4cb   :  { %8641 = vmatpush1.bf16.msra.mxu0 %v8640_v52  ;;  %v8676_v52 = vpack.c.bf16 %v1609_v49, %v1607_v48 }
 0x4cc   :  { %8643 = vmatprep.subr.bf16.mxu0 %v8642_v53  ;;  %v8678_v53 = vpack.c.bf16 %v1614_v51, %v1612_v50 }
 0x4cf   :  { %8645 = vmatpush1.bf16.msra.mxu0 %v8644_v1  ;;  %v8680_v1 = vpack.c.bf16 %v1613_v61, %v1611_v55 }
 0x4d0   :  { %8647 = vmatprep.subr.bf16.mxu0 %v8646_v3  ;;  %v8682_v3 = vpack.c.bf16 %v1618_v63, %v1616_v62 }
 0x4d3   :  { %8649 = vmatpush1.bf16.msra.mxu0 %v8648_v56  ;;  %v1620_v56 = vld [vmem:[%s9751_s24 + $0x428] sm:$0xff] }
 0x4d4   :  { %8651 = vmatprep.subr.bf16.mxu0 %v8650_v54  ;;  %v1622_v54 = vld [vmem:[%s9751_s24 + $0x438] sm:$0xff] }
 0x4d7   :  { %8653 = vmatpush1.bf16.msra.mxu0 %v8652_v12  ;;  %v8684_v12 = vpack.c.bf16 %v1617_v0, %v1615_v42 }
 0x4d8   :  { %8655 = vmatprep.subr.bf16.mxu0 %v8654_v13  ;;  %v8686_v13 = vpack.c.bf16 %v1622_v54, %v1620_v56 }
 0x4db   :  { %8657 = vmatpush1.bf16.msra.mxu0 %v8656_v18  ;;  %v1628_v18 = vld [vmem:[%s9751_s24 + $0x468] sm:$0xff] }
 0x4dc   :  { %8659 = vmatprep.subr.bf16.mxu0 %v8658_v21  ;;  %v1630_v21 = vld [vmem:[%s9751_s24 + $0x478] sm:$0xff] }
 0x4dd   :  { %v8694_v20 = vpack.c.bf16 %v1630_v21, %v1628_v18 }
 0x4df   :  { %8661 = vmatpush1.bf16.msra.mxu0 %v8660_v23  ;;  %v1632_v23 = vld [vmem:[%s9751_s24 + $0x488] sm:$0xff] }
 0x4e0   :  { %8663 = vmatprep.subr.bf16.mxu0 %v8662_v27  ;;  %v1634_v27 = vld [vmem:[%s9751_s24 + $0x498] sm:$0x7f] }
 0x4e1   :  { %v8698_v28 = vpack.c.bf16 %v1634_v27, %v1632_v23 }
 0x4e3   :  { %8665 = vmatpush1.bf16.msra.mxu0 %v8664_v33  ;;  %v8701_v33 = vpack.c.bf16 %v1633_v30, %v1631_v31 }
 0x4e4   :  { %8667 = vmatprep.subr.bf16.mxu0 %v8666_v34 }
 0x4e7   :  { %8669 = vmatpush1.bf16.msra.mxu0 %v8668_v38  ;;  %v2078_v38 = vld [vmem:[%s7612_s2 + $0x8] sm:$0xff] }
 0x4e8   :  { %8671 = vmatprep.subr.bf16.mxu0 %v8670_v40  ;;  %v2094_v40 = vld [vmem:[%s7613_s14 + $0x8] sm:$0xff]  ;;  %s10055_s14 = sld [smem:[%s11699_s0 + %s9283_s4]]  }
 0x4eb   :  { %8673 = vmatpush1.bf16.msra.mxu0 %v8672_v44 }
 0x4ec   :  { %8675 = vmatprep.subr.bf16.mxu0 %v8674_v47 }
 0x4ef   :  { %8677 = vmatpush1.bf16.msra.mxu0 %v8676_v52 }
 0x4f0   :  { %8679 = vmatprep.subr.bf16.mxu0 %v8678_v53 }
 0x4f3   :  { %8681 = vmatpush1.bf16.msra.mxu0 %v8680_v1 }
 0x4f4   :  { %8683 = vmatprep.subr.bf16.mxu0 %v8682_v3 }
 0x528   :  { %v1472_v39 = vpop.permute.xlu0 %1471 }
 0x529   :  { %v1470_v7 = vpop.permute.xlu1 %1469  ;;  %v1486_v34 = vmax.f32 %v9852_v19, %v1472_v39  ;;  %v2077_v19 = vld [vmem:[%s7612_s2] sm:$0xff]  ;;  %s9291_s2 = smov 13  }
 0x52a   :  { %v1475_v60 = vsel %vm276_vm3, %v9248_v8, %v1470_v7  ;;  %v1476_v9 = vsel %vm276_vm3, %v1470_v7, %v1472_v39  ;;  %v8688_v8 = vpack.c.bf16 %v1621_v15, %v1619_v14  ;;  %vm9271_vm3 = vmmov 1   ;;  %s10232_s5 = sld [smem:[%s11699_s0 + %s9291_s2]]  }
 0x52b   :  { %v1484_v10 = vmax.f32 %v9831_v4, %v1475_v60  ;;  %v1485_v11 = vmax.f32 %v9857_v24, %v1476_v9  ;;  %v8690_v4 = vpack.c.bf16 %v1626_v2, %v1624_v16  ;;  %v1623_v24 = vld [vmem:[%s9751_s24 + $0x440] sm:$0xff]  ;;  %vm8699_vm4 = vmpackc.low %vm1639_vm0, %vm9271_vm3  ;;  %vm2152_vm3 = vcmask 498688  }
 0x52c   :  { %v8692_v22 = vpack.c.bf16 %v1625_v17, %v1623_v24 }
 0x52d   :  { %1781 = vmatprep.mubr.f32.mxu0 %v1485_v11 }
 0x52e   :  { %1782 = vmatmul.mubr.f32.vlgmr.msra.gmra.mrb[6].mxu0 %v1484_v10 }
 0x52f   :  { %8685 = vmatpush1.bf16.msra.mxu0 %v8684_v12  ;;  %1852 = vmatprep.mubr.f32.mxu0 %v9256_v5 }
 0x530   :  { %8687 = vmatprep.subr.bf16.mxu0 %v8686_v13 }
 0x533   :  { %8689 = vmatpush1.bf16.msra.mxu0 %v8688_v8 }
 0x534   :  { %8691 = vmatprep.subr.bf16.mxu0 %v8690_v4 }
 0x537   :  { %8693 = vmatpush1.bf16.msra.mxu0 %v8692_v22  ;;  %v1974_v22 = vld [vmem:[%s7611_s17] sm:$0xff] }
 0x538   :  { %8695 = vmatprep.subr.bf16.mxu0 %v8694_v20 }
 0x53b   :  { %8697 = vmatpush1.bf16.msra.mxu0 %v8696_v58  ;;  %v2116_v58 = vld [vmem:[%s7636_s21] sm:$0x3]  ;;  %s9287_s21 = smov 121  }
 0x53c   :  { %8700 = vmatprep.subr.msk.bf16.mxu0 %vm8699_vm4, %v8698_v28 }
 0x53f   :  { %8703 = vmatpush1.bf16.msk.msra.mxu0 %vm8699_vm4, %v8701_v33  ;;  %vm2156_vm4 = vcmask 589288  }
 0x542   :  { %7657 = vmatmul.mubr.msk.f32.vlgmr.msra.gmra.mrb[6].mxu0 %vm1635_vm6, %v1486_v34  ;;  %vm2415_vm6 = vcmask 130048  }
 0x615   :  { %v1854_v32 = vpop.f32.mrb[6].mxu0 }
 0x616   :  { %1859 = vst [vmem:[#allocation3] sm:$0xff] %v1854_v32  ;;  %v1856_v35 = vpop.f32.mrb[7].mxu0  ;;  %1870 = vrot.lane.b32.xlu1 %v1854_v32, %s9249_s6 }
 0x617   :  { %1860 = vst.msk [vmem:[#allocation3 + $0x8] sm:$0xff] %vm527_vm9, %v1856_v35 }
 0x618   :  { %2114 = vst.msk [vmem:[#allocation3] sm:$0xff] %vm2113_vm13, %v9256_v5 }
 0x61a   :  { %1883 = vrot.lane.b32.xlu1 %v1854_v32, %s9250_s7 }
 0x61e   :  { %v1867_v36 = vld [vmem:[#allocation3 + $0x8] sm:$0xff]  ;;  %1896 = vrot.lane.b32.xlu1 %v1854_v32, %s9272_s8 }
 0x61f   :  { %1872 = vrot.lane.b32.xlu0 %v1867_v36, %s9249_s6  ;;  %1865 = vst.msk [vmem:[#allocation2 + $0x8] sm:$0xff] %vm1864_vm7, %v1867_v36 }
 0x622   :  { %1910 = vrot.lane.b32.xlu1 %v1854_v32, %s9273_s25 }
 0x623   :  { %1885 = vrot.lane.b32.xlu0 %v1867_v36, %s9250_s7 }
 0x626   :  { %1923 = vrot.lane.b32.xlu1 %v1854_v32, %s9274_s26  ;;  %v1977_v49 = vld [vmem:[#allocation2 + $0x8] sm:$0xff] }
 0x627   :  { %1898 = vrot.lane.b32.xlu0 %v1867_v36, %s9272_s8 }
 0x62a   :  { %1937 = vrot.lane.b32.xlu1 %v1854_v32, %s9253_s10 }
 0x62b   :  { %1912 = vrot.lane.b32.xlu0 %v1867_v36, %s9273_s25 }
 0x62e   :  { %1950 = vrot.lane.b32.xlu1 %v1854_v32, %s9276_s3 }
 0x62f   :  { %1925 = vrot.lane.b32.xlu0 %v1867_v36, %s9274_s26 }
 0x632   :  { %1964 = vrot.lane.b32.xlu1 %v1854_v32, %s9278_s15 }
 0x633   :  { %1939 = vrot.lane.b32.xlu0 %v1867_v36, %s9253_s10 }
 0x636   :  { %2081 = vperm.xlu1 %9232, %v2077_v19  }
 0x637   :  { %1952 = vrot.lane.b32.xlu0 %v1867_v36, %s9276_s3 }
 0x63a   :  { %2097 = vperm.xlu1 %9232, %v2093_v37  }
 0x63b   :  { %1966 = vrot.lane.b32.xlu0 %v1867_v36, %s9278_s15  ;;  %v2125_v36 = vrot.slane %v2116_v58, %v780_v29 }
 0x63f   :  { %2086 = vperm.xlu0 %9233, %v2078_v38  }
 0x643   :  { %2102 = vperm.xlu0 %9233, %v2094_v40  }
 0x688   :  { %v1871_v41 = vpop.permute.xlu1 %1870 }
 0x68c   :  { %v1884_v45 = vpop.permute.xlu1 %1883 }
 0x690   :  { %v1897_v44 = vpop.permute.xlu1 %1896 }
 0x691   :  { %v1873_v43 = vpop.permute.xlu0 %1872 }
 0x692   :  { %1878 = vst.msk [vmem:[#allocation2 + $0x30] sm:$0xff] %vm1864_vm7, %v1873_v43  ;;  %v1874_v47 = vsel %vm206_vm1, %v1871_v41, %v1873_v43 }
 0x693   :  { %v8706_v52 = vpack.c.bf16 %v1874_v47, %v1854_v32  ;;  %v2121_v32 = vrot.slane %v2116_v58, %v776_v59 }
 0x694   :  { %v1911_v53 = vpop.permute.xlu1 %1910 }
 0x695   :  { %v1886_v46 = vpop.permute.xlu0 %1885 }
 0x696   :  { %1891 = vst.msk [vmem:[#allocation2 + $0x58] sm:$0xff] %vm1864_vm7, %v1886_v46  ;;  %v1887_v3 = vsel %vm241_vm2, %v1884_v45, %v1886_v46 }
 0x698   :  { %v1924_v42 = vpop.permute.xlu1 %1923 }
 0x699   :  { %v1899_v48 = vpop.permute.xlu0 %1898  ;;  %v1979_v50 = vld [vmem:[#allocation2 + $0x30] sm:$0xff] }
 0x69a   :  { %1905 = vst.msk [vmem:[#allocation2 + $0x80] sm:$0xff] %vm1864_vm7, %v1899_v48  ;;  %v8704_v51 = vpack.c.bf16 %v1979_v50, %v1977_v49  ;;  %v1901_v61 = vsel %vm1900_vm8, %v1897_v44, %v1899_v48 }
 0x69b   :  { %v8710_v0 = vpack.c.bf16 %v1901_v61, %v1887_v3 }
 0x69c   :  { %8705 = vmatprep.subr.bf16.mxu1 %v8704_v51  ;;  %v1938_v54 = vpop.permute.xlu1 %1937 }
 0x69d   :  { %v1913_v55 = vpop.permute.xlu0 %1912  ;;  %8707 = vmatpush1.bf16.msra.mxu1 %v8706_v52  ;;  %v1981_v63 = vld [vmem:[#allocation2 + $0x58] sm:$0xff] }
 0x69e   :  { %1918 = vst.msk [vmem:[#allocation2 + $0xa8] sm:$0xff] %vm1864_vm7, %v1913_v55  ;;  %v1914_v11 = vsel %vm833_vm14, %v1911_v53, %v1913_v55 }
 0x6a0   :  { %v1951_v15 = vpop.permute.xlu1 %1950 }
 0x6a1   :  { %v1926_v62 = vpop.permute.xlu0 %1925  ;;  %v1983_v1 = vld [vmem:[#allocation2 + $0x80] sm:$0xff] }
 0x6a2   :  { %1932 = vst.msk [vmem:[#allocation2 + $0xd0] sm:$0xff] %vm1864_vm7, %v1926_v62  ;;  %v8708_v39 = vpack.c.bf16 %v1983_v1, %v1981_v63  ;;  %v1928_v56 = vsel %vm1927_vm10, %v1924_v42, %v1926_v62 }
 0x6a3   :  { %v8714_v13 = vpack.c.bf16 %v1928_v56, %v1914_v11  ;;  %v2499_v56 = vld [vmem:[%s7615_s27] sm:$0xff] }
 0x6a4   :  { %8709 = vmatprep.subr.bf16.mxu1 %v8708_v39  ;;  %v1965_v21 = vpop.permute.xlu1 %1964 }
 0x6a5   :  { %v1940_v7 = vpop.permute.xlu0 %1939  ;;  %8711 = vmatpush1.bf16.msra.mxu1 %v8710_v0  ;;  %v1985_v9 = vld [vmem:[#allocation2 + $0xa8] sm:$0xff] }
 0x6a6   :  { %1945 = vst.msk [vmem:[#allocation2 + $0xf8] sm:$0xff] %vm1864_vm7, %v1940_v7  ;;  %v1941_v4 = vsel %vm346_vm5, %v1938_v54, %v1940_v7  ;;  %v2376_v54 = vld [vmem:[%s10055_s14 + $0x8] sm:$0xff] }
 0x6a9   :  { %v1953_v60 = vpop.permute.xlu0 %1952  ;;  %v1987_v10 = vld [vmem:[#allocation2 + $0xd0] sm:$0xff] }
 0x6aa   :  { %1959 = vst.msk [vmem:[#allocation2 + $0x120] sm:$0xff] %vm1864_vm7, %v1953_v60  ;;  %v8712_v12 = vpack.c.bf16 %v1987_v10, %v1985_v9  ;;  %v1955_v16 = vsel %vm1954_vm11, %v1951_v15, %v1953_v60  ;;  %v2500_v9 = vld [vmem:[%s7615_s27 + $0x8] sm:$0xff]  ;;  %s9296_s27 = smov 17  }
 0x6ab   :  { %v8718_v17 = vpack.c.bf16 %v1955_v16, %v1941_v4 }
 0x6ac   :  { %8713 = vmatprep.subr.bf16.mxu1 %v8712_v12 }
 0x6ad   :  { %v1967_v14 = vpop.permute.xlu0 %1966  ;;  %8715 = vmatpush1.bf16.msra.mxu1 %v8714_v13  ;;  %v1989_v2 = vld [vmem:[#allocation2 + $0xf8] sm:$0xff] }
 0x6ae   :  { %1973 = vst.msk [vmem:[#allocation2 + $0x148] sm:$0xff] %vm1864_vm7, %v1967_v14  ;;  %v1969_v20 = vsel %vm1968_vm12, %v1965_v21, %v1967_v14 }
 0x6b1   :  { %v1991_v8 = vld [vmem:[#allocation2 + $0x120] sm:$0xff] }
 0x6b2   :  { %v8716_v24 = vpack.c.bf16 %v1991_v8, %v1989_v2 }
 0x6b4   :  { %8717 = vmatprep.subr.bf16.mxu1 %v8716_v24 }
 0x6b5   :  { %8719 = vmatpush1.bf16.msra.mxu1 %v8718_v17  ;;  %v1993_v18 = vld [vmem:[#allocation2 + $0x148] sm:$0xff]  ;;  %v2082_v26 = vpop.permute.xlu1 %2081 }
 0x6b6   :  { %2016 = vmatprep.subr.mxu1 %v1993_v18 }
 0x6b9   :  { %2017 = vmatpush1.msra.mxu1 %v1969_v20  ;;  %v2098_v30 = vpop.permute.xlu1 %2097 }
 0x6ba   :  { %7658 = vmatmul.mubr.msk.f32.vlgmr.msra.gmra.mrb[6].mxu1 %vm527_vm9, %v1974_v22 }
 0x6bb   :  { %2070 = vmatprep.mubr.f32.mxu1 %v9256_v5 }
 0x6be   :  { %7659 = vmatmul.mubr.msk.f32.gmra.mrb[8].mxu1 %vm527_vm9, %v1975_v25  ;;  %v2087_v23 = vpop.permute.xlu0 %2086 }
 0x6bf   :  { %7660 = vmatprep.mubr.msk.f32.mxu1 %vm2415_vm6, %v2376_v54 }
 0x6c2   :  { %v2103_v41 = vpop.permute.xlu0 %2102 }
 0x78d   :  { %v2066_v27 = vpop.f32.mrb[6].mxu1 }
 0x78e   :  { %v2089_v28 = vmul.f32 %v2082_v26, %v2066_v27  ;;  %v2068_v31 = vpop.f32.mrb[7].mxu1 }
 0x78f   :  { %v2090_v33 = vmul.f32 %v2082_v26, %v2068_v31 }
 0x790   :  { %v2105_v34 = vadd.f32 %v2098_v30, %v2089_v28 }
 0x791   :  { %v2106_v35 = vadd.f32 %v2098_v30, %v2090_v33  ;;  %v2072_v19 = vpop.f32.mrb[8].mxu1 }
 0x792   :  { %v2109_v37 = vmax.f32 %v2105_v34, 0.0  ;;  %v2091_v38 = vmul.f32 %v2087_v23, %v2072_v19  ;;  %v2074_v40 = vpop.f32.mrb[9].mxu1 }
 0x793   :  { %v2110_v43 = vmax.f32 %v2106_v35, 0.0  ;;  %v2092_v45 = vmul.f32 %v2087_v23, %v2074_v40 }
 0x794   :  { %v2128_v46 = vmul.f32 %v2121_v32, %v2109_v37  ;;  %v2107_v44 = vadd.f32 %v2103_v41, %v2091_v38 }
 0x795   :  { %v2129_v47 = vmul.f32 %v2125_v36, %v2110_v43  ;;  %v2108_v48 = vadd.f32 %v2103_v41, %v2092_v45 }
 0x796   :  { %v2111_v49 = vmax.f32 %v2107_v44, 0.0  ;;  %2136 = vrot.lane.b32.xlu1 %v2128_v46, %s9281_s22 }
 0x797   :  { %v2112_v59 = vmax.f32 %v2108_v48, 0.0  ;;  %2138 = vrot.lane.b32.xlu0 %v2129_v47, %s9281_s22 }
 0x798   :  { %v2130_v57 = vmul.f32 %v2121_v32, %v2111_v49 }
 0x799   :  { %v2131_v29 = vmul.f32 %v2125_v36, %v2112_v59 }
 0x79a   :  { %2140 = vrot.lane.b32.xlu1 %v2130_v57, %s9281_s22 }
 0x79b   :  { %2142 = vrot.lane.b32.xlu0 %v2131_v29, %s9281_s22  ;;  %s9288_s22 = smov 120  }
 0x808   :  { %v2137_v50 = vpop.permute.xlu1 %2136 }
 0x809   :  { %2151 = vst.msk [vmem:[#allocation3] sm:$0xff] %vm2150_vm15, %v2137_v50  ;;  %v2139_v51 = vpop.permute.xlu0 %2138 }
 0x80a   :  { %v2144_v52 = vsel %vm2113_vm13, %v2137_v50, %v2139_v51 }
 0x80b   :  { %2153 = vst.msk [vmem:[#allocation3 + $0x8] sm:$0xff] %vm2152_vm3, %v2144_v52 }
 0x80c   :  { %v2141_v53 = vpop.permute.xlu1 %2140  ;;  %2157 = vst.msk [vmem:[#allocation3 + $0x8] sm:$0xff] %vm2156_vm4, %v9256_v5 }
 0x80d   :  { %2154 = vst.msk [vmem:[#allocation3 + $0x30] sm:$0xff] %vm2150_vm15, %v2141_v53  ;;  %v2143_v55 = vpop.permute.xlu0 %2142  ;;  %vm4866_vm15 = vcmask 523264  }
 0x80e   :  { %v2145_v61 = vsel %vm2113_vm13, %v2141_v53, %v2143_v55  ;;  %vm4345_vm13 = vcmask 261336  }
 0x80f   :  { %2155 = vst.msk [vmem:[#allocation3 + $0x38] sm:$0xff] %vm2152_vm3, %v2145_v61  ;;  %vm5442_vm3 = vcmask 1040384  }
 0x810   :  { %v2159_v62 = vld [vmem:[#allocation3] sm:$0xff]  ;;  %2158 = vst.msk [vmem:[#allocation3 + $0x38] sm:$0xff] %vm2156_vm4, %v9256_v5  ;;  %vm5417_vm4 = vcmask 138240  }
 0x811   :  { %2163 = vst [vmem:[#allocation2] sm:$0xff] %v2159_v62  ;;  %2175 = vrot.lane.b32.xlu1 %v2159_v62, %s9249_s6 }
 0x813   :  { %v2168_v63 = vld [vmem:[#allocation3 + $0x8] sm:$0xff] }
 0x814   :  { %v2161_v1 = vld [vmem:[#allocation3 + $0x30] sm:$0xff]  ;;  %2177 = vrot.lane.b32.xlu0 %v2168_v63, %s9249_s6  ;;  %2164 = vst.msk [vmem:[#allocation2 + $0x8] sm:$0xff] %vm1864_vm7, %v2168_v63 }
 0x815   :  { %2165 = vst [vmem:[#allocation2 + $0x28] sm:$0xff] %v2161_v1  ;;  %2201 = vrot.lane.b32.xlu1 %v2159_v62, %s9250_s7  ;;  %v8722_v7 = vpack.c.bf16 %v2161_v1, %v2159_v62 }
 0x817   :  { %v2162_v3 = vld [vmem:[#allocation3 + $0x38] sm:$0xff] }
 0x818   :  { %2166 = vst.msk [vmem:[#allocation2 + $0x30] sm:$0xff] %vm1864_vm7, %v2162_v3  ;;  %2203 = vrot.lane.b32.xlu0 %v2168_v63, %s9250_s7 }
 0x819   :  { %2227 = vrot.lane.b32.xlu1 %v2159_v62, %s9272_s8 }
 0x81b   :  { %v2380_v39 = vld [vmem:[#allocation2 + $0x8] sm:$0xff] }
 0x81c   :  { %2229 = vrot.lane.b32.xlu0 %v2168_v63, %s9272_s8 }
 0x81d   :  { %2253 = vrot.lane.b32.xlu1 %v2159_v62, %s9273_s25 }
 0x81f   :  { %v2382_v42 = vld [vmem:[#allocation2 + $0x30] sm:$0xff] }
 0x820   :  { %2255 = vrot.lane.b32.xlu0 %v2168_v63, %s9273_s25  ;;  %v8720_v0 = vpack.c.bf16 %v2382_v42, %v2380_v39 }
 0x821   :  { %2279 = vrot.lane.b32.xlu1 %v2159_v62, %s9274_s26 }
 0x822   :  { %8721 = vmatprep.subr.bf16.mxu1 %v8720_v0 }
 0x823   :  { %8723 = vmatpush1.bf16.msra.mxu1 %v8722_v7 }
 0x824   :  { %2281 = vrot.lane.b32.xlu0 %v2168_v63, %s9274_s26 }
 0x825   :  { %2305 = vrot.lane.b32.xlu1 %v2159_v62, %s9253_s10 }
 0x828   :  { %2307 = vrot.lane.b32.xlu0 %v2168_v63, %s9253_s10 }
 0x829   :  { %2331 = vrot.lane.b32.xlu1 %v2159_v62, %s9276_s3 }
 0x82c   :  { %2333 = vrot.lane.b32.xlu0 %v2168_v63, %s9276_s3 }
 0x82d   :  { %2357 = vrot.lane.b32.xlu1 %v2159_v62, %s9278_s15 }
 0x830   :  { %2359 = vrot.lane.b32.xlu0 %v2168_v63, %s9278_s15 }
 0x831   :  { %2179 = vrot.lane.b32.xlu1 %v2161_v1, %s9249_s6 }
 0x834   :  { %2181 = vrot.lane.b32.xlu0 %v2162_v3, %s9249_s6 }
 0x835   :  { %2205 = vrot.lane.b32.xlu1 %v2161_v1, %s9250_s7 }
 0x838   :  { %2207 = vrot.lane.b32.xlu0 %v2162_v3, %s9250_s7 }
 0x839   :  { %2231 = vrot.lane.b32.xlu1 %v2161_v1, %s9272_s8 }
 0x83c   :  { %2233 = vrot.lane.b32.xlu0 %v2162_v3, %s9272_s8 }
 0x83d   :  { %2257 = vrot.lane.b32.xlu1 %v2161_v1, %s9273_s25 }
 0x840   :  { %2259 = vrot.lane.b32.xlu0 %v2162_v3, %s9273_s25  ;;  %s7616_s25 = sld [smem:[%s11699_s0 + %s9282_s28]]  }
 0x841   :  { %2283 = vrot.lane.b32.xlu1 %v2161_v1, %s9274_s26  ;;  %s7618_s28 = sld [smem:[%s11699_s0 + %s9289_s23]]  }
 0x844   :  { %2285 = vrot.lane.b32.xlu0 %v2162_v3, %s9274_s26 }
 0x845   :  { %2309 = vrot.lane.b32.xlu1 %v2161_v1, %s9253_s10 }
 0x846   :  { %v2515_v60 = vld [vmem:[%s7616_s25] sm:$0xff]  ;;  %v2516_v10 = vld [vmem:[%s7616_s25 + $0x8] sm:$0xff]  ;;  %s9297_s25 = smov 18  }
 0x848   :  { %2311 = vrot.lane.b32.xlu0 %v2162_v3, %s9253_s10  ;;  %s9284_s10 = smov 41  }
 0x849   :  { %2335 = vrot.lane.b32.xlu1 %v2161_v1, %s9276_s3  ;;  %s10130_s13 = sld [smem:[%s11699_s0 + %s9284_s10]]   ;;  %s9311_s10 = smov 125  }
 0x84c   :  { %2337 = vrot.lane.b32.xlu0 %v2162_v3, %s9276_s3  ;;  %s7619_s3 = sld [smem:[%s11699_s0 + %s9292_s9]]  }
 0x84d   :  { %2361 = vrot.lane.b32.xlu1 %v2161_v1, %s9278_s15  ;;  %s7622_s9 = sld [smem:[%s11699_s0 + %s9297_s25]]   ;;  %s9304_s25 = smov 21  }
 0x850   :  { %2363 = vrot.lane.b32.xlu0 %v2162_v3, %s9278_s15  ;;  %s9293_s15 = smov 114  }
 0x851   :  { %2503 = vperm.xlu1 %9232, %v2499_v56  }
 0x854   :  { %2519 = vperm.xlu0 %9233, %v2515_v60  }
 0x855   :  { %2508 = vperm.xlu1 %9232, %v2500_v9  }
 0x858   :  { %2524 = vperm.xlu0 %9233, %v2516_v10  }
 0x883   :  { %v2176_v11 = vpop.permute.xlu1 %2175 }
 0x886   :  { %v2178_v12 = vpop.permute.xlu0 %2177 }
 0x887   :  { %v2183_v13 = vsel %vm206_vm1, %v2176_v11, %v2178_v12  ;;  %2190 = vst.msk [vmem:[#allocation2 + $0x58] sm:$0xff] %vm1864_vm7, %v2178_v12  ;;  %v2202_v14 = vpop.permute.xlu1 %2201 }
 0x888   :  { %2189 = vst [vmem:[#allocation2 + $0x50] sm:$0xff] %v2183_v13 }
 0x88a   :  { %v2204_v15 = vpop.permute.xlu0 %2203 }
 0x88b   :  { %v10065_v16 = vsel %vm241_vm2, %v2202_v14, %v2204_v15  ;;  %2216 = vst.msk [vmem:[#allocation2 + $0xa8] sm:$0xff] %vm1864_vm7, %v2204_v15  ;;  %v2228_v2 = vpop.permute.xlu1 %2227 }
 0x88c   :  { %2215 = vst [vmem:[#allocation2 + $0xa0] sm:$0xff] %v10065_v16 }
 0x88e   :  { %v2230_v8 = vpop.permute.xlu0 %2229  ;;  %v2384_v41 = vld [vmem:[#allocation2 + $0x58] sm:$0xff] }
 0x88f   :  { %v10070_v4 = vsel %vm1900_vm8, %v2228_v2, %v2230_v8  ;;  %2242 = vst.msk [vmem:[#allocation2 + $0xf8] sm:$0xff] %vm1864_vm7, %v2230_v8  ;;  %v2254_v24 = vpop.permute.xlu1 %2253 }
 0x890   :  { %2241 = vst [vmem:[#allocation2 + $0xf0] sm:$0xff] %v10070_v4 }
 0x892   :  { %v2256_v17 = vpop.permute.xlu0 %2255  ;;  %v2388_v49 = vld [vmem:[#allocation2 + $0xa8] sm:$0xff] }
 0x893   :  { %v10075_v18 = vsel %vm833_vm14, %v2254_v24, %v2256_v17  ;;  %2268 = vst.msk [vmem:[#allocation2 + $0x148] sm:$0xff] %vm1864_vm7, %v2256_v17  ;;  %v2280_v21 = vpop.permute.xlu1 %2279 }
 0x894   :  { %2267 = vst [vmem:[#allocation2 + $0x140] sm:$0xff] %v10075_v18 }
 0x896   :  { %v2282_v22 = vpop.permute.xlu0 %2281  ;;  %v2392_v53 = vld [vmem:[#allocation2 + $0xf8] sm:$0xff] }
 0x897   :  { %v10080_v20 = vsel %vm1927_vm10, %v2280_v21, %v2282_v22  ;;  %2294 = vst.msk [vmem:[#allocation2 + $0x198] sm:$0xff] %vm1864_vm7, %v2282_v22  ;;  %v2306_v25 = vpop.permute.xlu1 %2305 }
 0x898   :  { %2293 = vst [vmem:[#allocation2 + $0x190] sm:$0xff] %v10080_v20 }
 0x89a   :  { %v2308_v26 = vpop.permute.xlu0 %2307  ;;  %v2396_v39 = vld [vmem:[#allocation2 + $0x148] sm:$0xff] }
 0x89b   :  { %v10085_v23 = vsel %vm346_vm5, %v2306_v25, %v2308_v26  ;;  %2320 = vst.msk [vmem:[#allocation2 + $0x1e8] sm:$0xff] %vm1864_vm7, %v2308_v26  ;;  %v2332_v27 = vpop.permute.xlu1 %2331 }
 0x89c   :  { %2319 = vst [vmem:[#allocation2 + $0x1e0] sm:$0xff] %v10085_v23 }
 0x89e   :  { %v2334_v58 = vpop.permute.xlu0 %2333  ;;  %v2400_v9 = vld [vmem:[#allocation2 + $0x198] sm:$0xff] }
 0x89f   :  { %v10090_v28 = vsel %vm1954_vm11, %v2332_v27, %v2334_v58  ;;  %2346 = vst.msk [vmem:[#allocation2 + $0x238] sm:$0xff] %vm1864_vm7, %v2334_v58  ;;  %v2358_v31 = vpop.permute.xlu1 %2357  ;;  %v2375_v58 = vld [vmem:[%s10055_s14] sm:$0xff] }
 0x8a0   :  { %2345 = vst [vmem:[#allocation2 + $0x230] sm:$0xff] %v10090_v28 }
 0x8a2   :  { %v2360_v30 = vpop.permute.xlu0 %2359 }
 0x8a3   :  { %v10095_v33 = vsel %vm1968_vm12, %v2358_v31, %v2360_v30  ;;  %2372 = vst.msk [vmem:[#allocation2 + $0x288] sm:$0xff] %vm1864_vm7, %v2360_v30  ;;  %v2180_v34 = vpop.permute.xlu1 %2179  ;;  %v2377_v31 = vld [vmem:[%s10055_s14 + $0x10] sm:$0xff] }
 0x8a4   :  { %2371 = vst [vmem:[#allocation2 + $0x280] sm:$0xff] %v10095_v33 }
 0x8a6   :  { %v2182_v32 = vpop.permute.xlu0 %2181  ;;  %v2408_v17 = vld [vmem:[#allocation2 + $0x238] sm:$0xff] }
 0x8a7   :  { %v2184_v35 = vsel %vm206_vm1, %v2180_v34, %v2182_v32  ;;  %2192 = vst.msk [vmem:[#allocation2 + $0x80] sm:$0xff] %vm1864_vm7, %v2182_v32  ;;  %v2206_v36 = vpop.permute.xlu1 %2205 }
 0x8a8   :  { %2191 = vst [vmem:[#allocation2 + $0x78] sm:$0xff] %v2184_v35  ;;  %v8726_v47 = vpack.c.bf16 %v2184_v35, %v2183_v13 }
 0x8aa   :  { %v2208_v19 = vpop.permute.xlu0 %2207 }
 0x8ab   :  { %v2210_v37 = vsel %vm241_vm2, %v2206_v36, %v2208_v19  ;;  %2218 = vst.msk [vmem:[#allocation2 + $0xd0] sm:$0xff] %vm1864_vm7, %v2208_v19  ;;  %v2232_v38 = vpop.permute.xlu1 %2231  ;;  %vm2604_vm2 = vcmask 318464  }
 0x8ac   :  { %2217 = vst [vmem:[#allocation2 + $0xc8] sm:$0xff] %v2210_v37  ;;  %v8730_v51 = vpack.c.bf16 %v2210_v37, %v10065_v16  ;;  %v2404_v16 = vld [vmem:[#allocation2 + $0x1e8] sm:$0xff] }
 0x8ae   :  { %v2234_v40 = vpop.permute.xlu0 %2233  ;;  %v2386_v43 = vld [vmem:[#allocation2 + $0x80] sm:$0xff] }
 0x8af   :  { %v2236_v45 = vsel %vm1900_vm8, %v2232_v38, %v2234_v40  ;;  %2244 = vst.msk [vmem:[#allocation2 + $0x120] sm:$0xff] %vm1864_vm7, %v2234_v40  ;;  %v2258_v46 = vpop.permute.xlu1 %2257  ;;  %v8724_v44 = vpack.c.bf16 %v2386_v43, %v2384_v41 }
 0x8b0   :  { %2243 = vst [vmem:[#allocation2 + $0x118] sm:$0xff] %v2236_v45  ;;  %v8734_v1 = vpack.c.bf16 %v2236_v45, %v10070_v4 }
 0x8b1   :  { %8725 = vmatprep.subr.bf16.mxu1 %v8724_v44 }
 0x8b2   :  { %8727 = vmatpush1.bf16.msra.mxu1 %v8726_v47  ;;  %v2260_v48 = vpop.permute.xlu0 %2259  ;;  %v2390_v59 = vld [vmem:[#allocation2 + $0xd0] sm:$0xff] }
 0x8b3   :  { %v2262_v57 = vsel %vm833_vm14, %v2258_v46, %v2260_v48  ;;  %2270 = vst.msk [vmem:[#allocation2 + $0x170] sm:$0xff] %vm1864_vm7, %v2260_v48  ;;  %v2284_v29 = vpop.permute.xlu1 %2283  ;;  %v8728_v50 = vpack.c.bf16 %v2390_v59, %v2388_v49  ;;  %v2583_v59 = vld [vmem:[%s10135_s19] sm:$0xff]  ;;  %vm3012_vm14 = vcmask 589320  }
 0x8b4   :  { %2269 = vst [vmem:[#allocation2 + $0x168] sm:$0xff] %v2262_v57  ;;  %v8738_v54 = vpack.c.bf16 %v2262_v57, %v10075_v18  ;;  %v2584_v57 = vld [vmem:[%s10135_s19 + $0x8] sm:$0xff] }
 0x8b5   :  { %8729 = vmatprep.subr.bf16.mxu1 %v8728_v50 }
 0x8b6   :  { %8731 = vmatpush1.bf16.msra.mxu1 %v8730_v51  ;;  %v2286_v52 = vpop.permute.xlu0 %2285  ;;  %v2394_v55 = vld [vmem:[#allocation2 + $0x120] sm:$0xff]  ;;  %v8757_v51 = vpack.c.bf16 %v2584_v57, %v2583_v59  ;;  %v2793_v59 = vld [vmem:[%s10232_s5 + $0x8] sm:$0xff] }
 0x8b7   :  { %v2288_v61 = vsel %vm1927_vm10, %v2284_v29, %v2286_v52  ;;  %2296 = vst.msk [vmem:[#allocation2 + $0x1c0] sm:$0xff] %vm1864_vm7, %v2286_v52  ;;  %v2310_v62 = vpop.permute.xlu1 %2309  ;;  %v8732_v63 = vpack.c.bf16 %v2394_v55, %v2392_v53  ;;  %v2585_v29 = vld [vmem:[%s10135_s19 + $0x10] sm:$0xff]  ;;  %v2586_v52 = vld [vmem:[%s10135_s19 + $0x18] sm:$0xff]  ;;  %v2587_v55 = vld [vmem:[%s10135_s19 + $0x20] sm:$0xff]  ;;  %vm3669_vm10 = vcmask 179200  }
 0x8b8   :  { %2295 = vst [vmem:[#allocation2 + $0x1b8] sm:$0xff] %v2288_v61  ;;  %v8742_v13 = vpack.c.bf16 %v2288_v61, %v10080_v20  ;;  %v2412_v20 = vld [vmem:[#allocation2 + $0x288] sm:$0xff]  ;;  %v8760_v53 = vpack.c.bf16 %v2586_v52, %v2585_v29  ;;  %v2943_v57 = vld [vmem:[%s7619_s3] sm:$0xff]  ;;  %v2945_v52 = vld [vmem:[%s7619_s3 + $0x10] sm:$0xff] }
 0x8b9   :  { %8733 = vmatprep.subr.bf16.mxu1 %v8732_v63  ;;  %v2588_v61 = vld [vmem:[%s10135_s19 + $0x28] sm:$0xff]  ;;  %v2589_v63 = vld [vmem:[%s10135_s19 + $0x30] sm:$0xff] }
 0x8ba   :  { %8735 = vmatpush1.bf16.msra.mxu1 %v8734_v1  ;;  %v2312_v3 = vpop.permute.xlu0 %2311  ;;  %v2398_v42 = vld [vmem:[#allocation2 + $0x170] sm:$0xff]  ;;  %v2590_v1 = vld [vmem:[%s10135_s19 + $0x38] sm:$0xff]  ;;  %v2916_v29 = vld [vmem:[%s7618_s28 + $0x8] sm:$0xff] }
 0x8bb   :  { %v2314_v0 = vsel %vm346_vm5, %v2310_v62, %v2312_v3  ;;  %2322 = vst.msk [vmem:[#allocation2 + $0x210] sm:$0xff] %vm1864_vm7, %v2312_v3  ;;  %v8736_v7 = vpack.c.bf16 %v2398_v42, %v2396_v39  ;;  %v2336_v56 = vpop.permute.xlu1 %2335  ;;  %v8763_v62 = vpack.c.bf16 %v2588_v61, %v2587_v55  ;;  %v8766_v3 = vpack.c.bf16 %v2590_v1, %v2589_v63  ;;  %v2591_v39 = vld [vmem:[%s10135_s19 + $0x40] sm:$0xff]  ;;  %v2592_v42 = vld [vmem:[%s10135_s19 + $0x48] sm:$0xff]  ;;  %v2946_v55 = vld [vmem:[%s7619_s3 + $0x18] sm:$0xff] }
 0x8bc   :  { %2321 = vst [vmem:[#allocation2 + $0x208] sm:$0xff] %v2314_v0  ;;  %v8746_v24 = vpack.c.bf16 %v2314_v0, %v10085_v23  ;;  %v2378_v23 = vld [vmem:[%s10055_s14 + $0x18] sm:$0xff]  ;;  %v8769_v0 = vpack.c.bf16 %v2592_v42, %v2591_v39  ;;  %vm2975_vm5 = vcmask 56320  }
 0x8bd   :  { %8737 = vmatprep.subr.bf16.mxu1 %v8736_v7  ;;  %v2593_v7 = vld [vmem:[%s10135_s19 + $0x50] sm:$0xff]  ;;  %2978 = vst.msk [vmem:[#allocation3 + $0x60] sm:$0xff] %vm2975_vm5, %v9256_v5  ;;  %2979 = vst.msk [vmem:[#allocation3 + $0x90] sm:$0xff] %vm2975_vm5, %v9256_v5 }
 0x8be   :  { %8739 = vmatpush1.bf16.msra.mxu1 %v8738_v54  ;;  %v2338_v60 = vpop.permute.xlu0 %2337  ;;  %v2402_v10 = vld [vmem:[#allocation2 + $0x1c0] sm:$0xff] }
 0x8bf   :  { %v2340_v11 = vsel %vm1954_vm11, %v2336_v56, %v2338_v60  ;;  %2348 = vst.msk [vmem:[#allocation2 + $0x260] sm:$0xff] %vm1864_vm7, %v2338_v60  ;;  %v8740_v12 = vpack.c.bf16 %v2402_v10, %v2400_v9  ;;  %v2362_v14 = vpop.permute.xlu1 %2361  ;;  %v2594_v56 = vld [vmem:[%s10135_s19 + $0x58] sm:$0xff]  ;;  %v2595_v60 = vld [vmem:[%s10135_s19 + $0x60] sm:$0xff]  ;;  %v2596_v9 = vld [vmem:[%s10135_s19 + $0x68] sm:$0xff]  ;;  %vm4280_vm11 = vcmask 39936  }
 0x8c0   :  { %2347 = vst [vmem:[#allocation2 + $0x258] sm:$0xff] %v2340_v11  ;;  %v8750_v22 = vpack.c.bf16 %v2340_v11, %v10090_v28  ;;  %v8772_v54 = vpack.c.bf16 %v2594_v56, %v2593_v7  ;;  %v8775_v10 = vpack.c.bf16 %v2596_v9, %v2595_v60  ;;  %v2597_v11 = vld [vmem:[%s10135_s19 + $0x70] sm:$0xff]  ;;  %4285 = vst.msk [vmem:[#allocation3 + $0xc0] sm:$0xff] %vm4280_vm11, %v9256_v5 }
 0x8c1   :  { %8741 = vmatprep.subr.bf16.mxu1 %v8740_v12  ;;  %v2598_v12 = vld [vmem:[%s10135_s19 + $0x78] sm:$0xff]  ;;  %4286 = vst.msk [vmem:[#allocation3 + $0xf0] sm:$0xff] %vm4280_vm11, %v9256_v5  ;;  %4287 = vst.msk [vmem:[#allocation3 + $0x120] sm:$0xff] %vm4280_vm11, %v9256_v5 }
 0x8c2   :  { %8743 = vmatpush1.bf16.msra.mxu1 %v8742_v13  ;;  %v2364_v15 = vpop.permute.xlu0 %2363  ;;  %v2406_v2 = vld [vmem:[#allocation2 + $0x210] sm:$0xff]  ;;  %v8778_v13 = vpack.c.bf16 %v2598_v12, %v2597_v11  ;;  %4288 = vst.msk [vmem:[#allocation3 + $0x150] sm:$0xff] %vm4280_vm11, %v9256_v5 }
 0x8c3   :  { %v2366_v8 = vsel %vm1968_vm12, %v2362_v14, %v2364_v15  ;;  %2374 = vst.msk [vmem:[#allocation2 + $0x2b0] sm:$0xff] %vm1864_vm7, %v2364_v15  ;;  %v8744_v4 = vpack.c.bf16 %v2406_v2, %v2404_v16  ;;  %v2599_v14 = vld [vmem:[%s10135_s19 + $0x80] sm:$0xff]  ;;  %v2600_v15 = vld [vmem:[%s10135_s19 + $0x88] sm:$0xff]  ;;  %v2601_v2 = vld [vmem:[%s10135_s19 + $0x90] sm:$0xff]  ;;  %vm4336_vm12 = vcmask 220200  }
 0x8c4   :  { %2373 = vst [vmem:[#allocation2 + $0x2a8] sm:$0xff] %v2366_v8  ;;  %v8754_v27 = vpack.c.bf16 %v2366_v8, %v10095_v33  ;;  %v8781_v16 = vpack.c.bf16 %v2600_v15, %v2599_v14  ;;  %v2602_v8 = vld [vmem:[%s10135_s19 + $0x98] sm:$0xff] }
 0x8c5   :  { %8745 = vmatprep.subr.bf16.mxu1 %v8744_v4  ;;  %v8784_v4 = vpack.c.bf16 %v2602_v8, %v2601_v2 }
 0x8c6   :  { %8747 = vmatpush1.bf16.msra.mxu1 %v8746_v24  ;;  %v2410_v18 = vld [vmem:[#allocation2 + $0x260] sm:$0xff] }
 0x8c7   :  { %v8748_v21 = vpack.c.bf16 %v2410_v18, %v2408_v17  ;;  %v2603_v24 = vld [vmem:[%s10135_s19 + $0xa0] sm:$0x7f]  ;;  %s9302_s19 = smov 124  }
 0x8c9   :  { %8749 = vmatprep.subr.bf16.mxu1 %v8748_v21 }
 0x8ca   :  { %8751 = vmatpush1.bf16.msra.mxu1 %v8750_v22  ;;  %v2414_v25 = vld [vmem:[#allocation2 + $0x2b0] sm:$0xff] }
 0x8cb   :  { %v8752_v26 = vpack.c.bf16 %v2414_v25, %v2412_v20 }
 0x8cd   :  { %8753 = vmatprep.subr.bf16.mxu1 %v8752_v26 }
 0x8ce   :  { %8755 = vmatpush1.bf16.msra.mxu1 %v8754_v27 }
 0x8cf   :  { %8756 = vmatprep.subr.bf16.mxu1 %v9262_v6 }
 0x8d0   :  { %v2504_v30 = vpop.permute.xlu1 %2503 }
 0x8d1   :  { %2487 = vmatmul.mubr.f32.vlgmr.msra.gmra.mrb[10].mxu1 %v2375_v58 }
 0x8d2   :  { %7661 = vmatprep.mubr.msk.f32.mxu1 %vm2415_vm6, %v2378_v23  ;;  %8758 = vmatpush1.bf16.msra.mxu1 %v8757_v51  ;;  %v2944_v51 = vld [vmem:[%s7619_s3 + $0x8] sm:$0xff] }
 0x8d3   :  { %v2520_v28 = vpop.permute.xlu0 %2519  ;;  %8759 = vmatprep.subr.bf16.mxu1 %v9262_v6 }
 0x8d4   :  { %v2509_v19 = vpop.permute.xlu1 %2508 }
 0x8d5   :  { %2493 = vmatmul.mubr.f32.gmra.mrb[12].mxu1 %v2377_v31 }
 0x8d6   :  { %8761 = vmatpush1.bf16.msra.mxu1 %v8760_v53  ;;  %v2918_v53 = vld [vmem:[%s7618_s28 + $0x18] sm:$0xff] }
 0x8d7   :  { %v2525_v45 = vpop.permute.xlu0 %2524  ;;  %8762 = vmatprep.subr.bf16.mxu1 %v9262_v6 }
 0x8da   :  { %8764 = vmatpush1.bf16.msra.mxu1 %v8763_v62 }
 0x8db   :  { %8765 = vmatprep.subr.bf16.mxu1 %v9262_v6 }
 0x8de   :  { %8767 = vmatpush1.bf16.msra.mxu1 %v8766_v3 }
 0x8df   :  { %8768 = vmatprep.subr.bf16.mxu1 %v9262_v6 }
 0x8e2   :  { %8770 = vmatpush1.bf16.msra.mxu1 %v8769_v0 }
 0x8e3   :  { %8771 = vmatprep.subr.bf16.mxu1 %v9262_v6 }
 0x8e6   :  { %8773 = vmatpush1.bf16.msra.mxu1 %v8772_v54 }
 0x8e7   :  { %8774 = vmatprep.subr.bf16.mxu1 %v9262_v6 }
 0x8ea   :  { %8776 = vmatpush1.bf16.msra.mxu1 %v8775_v10 }
 0x8eb   :  { %8777 = vmatprep.subr.bf16.mxu1 %v9262_v6 }
 0x8ee   :  { %8779 = vmatpush1.bf16.msra.mxu1 %v8778_v13 }
 0x8ef   :  { %8780 = vmatprep.subr.bf16.mxu1 %v9262_v6 }
 0x8f2   :  { %8782 = vmatpush1.bf16.msra.mxu1 %v8781_v16 }
 0x8f3   :  { %8783 = vmatprep.subr.bf16.mxu1 %v9262_v6 }
 0x8f6   :  { %8785 = vmatpush1.bf16.msra.mxu1 %v8784_v4 }
 0x8f7   :  { %2654 = vmatprep.subr.mxu1 %v9256_v5 }
 0x8fa   :  { %7662 = vmatpush1.msk.msra.mxu1 %vm1639_vm0, %v2603_v24  ;;  %vm3265_vm0 = vcmask 261120  }
 0x8fb   :  { %8786 = vmatprep.subr.bf16.mxu1 %v9262_v6 }
 0x9a4   :  { %v2488_v33 = vpop.f32.mrb[10].mxu1 }
 0x9a5   :  { %v2511_v34 = vmul.f32 %v2504_v30, %v2488_v33  ;;  %v2490_v32 = vpop.f32.mrb[11].mxu1 }
 0x9a6   :  { %v2512_v35 = vmul.f32 %v2504_v30, %v2490_v32 }
 0x9a7   :  { %v2527_v36 = vadd.f32 %v2520_v28, %v2511_v34 }
 0x9a8   :  { %v2528_v37 = vadd.f32 %v2520_v28, %v2512_v35  ;;  %v2494_v38 = vpop.f32.mrb[12].mxu1 }
 0x9a9   :  { %v10137_v40 = vmax.f32 %v2527_v36, 0.0  ;;  %v2513_v41 = vmul.f32 %v2509_v19, %v2494_v38  ;;  %v2496_v43 = vpop.f32.mrb[13].mxu1 }
 0x9aa   :  { %v10139_v46 = vmax.f32 %v2528_v37, 0.0  ;;  %v2514_v44 = vmul.f32 %v2509_v19, %v2496_v43 }
 0x9ab   :  { %2535 = vst [vmem:[%s10130_s13] sm:$0xff] %v10137_v40  ;;  %v2529_v47 = vadd.f32 %v2525_v45, %v2513_v41  ;;  %2543 = vrot.lane.b32.xlu1 %v10137_v40, %s9249_s6 }
 0x9ac   :  { %2536 = vst.msk [vmem:[%s10130_s13 + $0x8] sm:$0xff] %vm1864_vm7, %v10139_v46  ;;  %v2530_v48 = vadd.f32 %v2525_v45, %v2514_v44  ;;  %2545 = vrot.lane.b32.xlu0 %v10139_v46, %s9249_s6 }
 0x9ad   :  { %v10150_v49 = vmax.f32 %v2529_v47, 0.0 }
 0x9ae   :  { %v10155_v50 = vmax.f32 %v2530_v48, 0.0 }
 0x9af   :  { %2537 = vst [vmem:[%s10130_s13 + $0x10] sm:$0xff] %v10150_v49  ;;  %2547 = vrot.lane.b32.xlu1 %v10150_v49, %s9249_s6 }
 0x9b0   :  { %2538 = vst.msk [vmem:[%s10130_s13 + $0x18] sm:$0xff] %vm1864_vm7, %v10155_v50  ;;  %2549 = vrot.lane.b32.xlu0 %v10155_v50, %s9249_s6  ;;  %s9294_s13 = smov 33   ;;  %vm3572_vm7 = vcmask 1042432  }
 0x9b1   :  { %s7637_s18 = sld [smem:[%s11699_s0 + %s9294_s13]]  }
 0xa1d   :  { %v2544_v17 = vpop.permute.xlu1 %2543 }
 0xa1e   :  { %v2546_v18 = vpop.permute.xlu0 %2545 }
 0xa1f   :  { %v2551_v21 = vsel %vm206_vm1, %v2544_v17, %v2546_v18  ;;  %v2558_v22 = vmax.f32 %v10139_v46, %v2546_v18 }
 0xa20   :  { %v2557_v20 = vmax.f32 %v10137_v40, %v2551_v21 }
 0xa21   :  { %v2548_v25 = vpop.permute.xlu1 %2547  ;;  %2567 = vrot.lane.b32.xlu0 %v2558_v22, %s9272_s8 }
 0xa22   :  { %2565 = vrot.lane.b32.xlu1 %v2557_v20, %s9272_s8  ;;  %v2550_v26 = vpop.permute.xlu0 %2549 }
 0xa23   :  { %v2552_v27 = vsel %vm206_vm1, %v2548_v25, %v2550_v26  ;;  %v2560_v58 = vmax.f32 %v10155_v50, %v2550_v26  ;;  %vm2693_vm1 = vcmask 474112   ;;  %v2917_v50 = vld [vmem:[%s7618_s28 + $0x10] sm:$0xff] }
 0xa24   :  { %v2559_v23 = vmax.f32 %v10150_v49, %v2552_v27  ;;  %v2915_v49 = vld [vmem:[%s7618_s28] sm:$0xff]  ;;  %s9303_s28 = smov 20  }
 0xa25   :  { %2571 = vrot.lane.b32.xlu0 %v2560_v58, %s9272_s8 }
 0xa26   :  { %2569 = vrot.lane.b32.xlu1 %v2559_v23, %s9272_s8 }
 0xa93   :  { %v2568_v31 = vpop.permute.xlu0 %2567 }
 0xa94   :  { %v2580_v30 = vmax.f32 %v2558_v22, %v2568_v31  ;;  %v2566_v28 = vpop.permute.xlu1 %2565 }
 0xa95   :  { %v2573_v33 = vsel %vm1900_vm8, %v2566_v28, %v2568_v31 }
 0xa96   :  { %v2579_v34 = vmax.f32 %v2557_v20, %v2573_v33  ;;  %7663 = vmatprep.mubr.msk.f32.mxu1 %vm2604_vm2, %v2580_v30 }
 0xa97   :  { %v2572_v32 = vpop.permute.xlu0 %2571 }
 0xa98   :  { %v2582_v35 = vmax.f32 %v2560_v58, %v2572_v32  ;;  %v2570_v36 = vpop.permute.xlu1 %2569  ;;  %2679 = vmatmul.mubr.f32.vlgmr.msra.gmra.mrb[14].mxu1 %v2579_v34 }
 0xa99   :  { %v2574_v19 = vsel %vm1900_vm8, %v2570_v36, %v2572_v32  ;;  %v2795_v36 = vld [vmem:[%s10232_s5 + $0x18] sm:$0xff]  ;;  %vm3559_vm8 = vcmask 416768  }
 0xa9a   :  { %v2581_v37 = vmax.f32 %v2559_v23, %v2574_v19  ;;  %7664 = vmatprep.mubr.msk.f32.mxu1 %vm2604_vm2, %v2582_v35  ;;  %v2792_v35 = vld [vmem:[%s10232_s5] sm:$0xff]  ;;  %v2794_v19 = vld [vmem:[%s10232_s5 + $0x10] sm:$0xff]  ;;  %vm5568_vm2 = vcmask 80896  }
 0xa9c   :  { %2684 = vmatmul.mubr.f32.gmra.mrb[16].mxu1 %v2581_v37  ;;  %v2797_v37 = vld [vmem:[%s10232_s5 + $0x28] sm:$0xff] }
 0xa9d   :  { %7665 = vmatprep.mubr.msk.f32.mxu1 %vm2415_vm6, %v2793_v59 }
 0xb6b   :  { %v2680_v38 = vpop.f32.mrb[14].mxu1 }
 0xb6c   :  { %2689 = vst.msk [vmem:[#allocation3] sm:$0xff] %vm527_vm9, %v2680_v38  ;;  %v2682_v40 = vpop.f32.mrb[15].mxu1  ;;  %v2796_v38 = vld [vmem:[%s10232_s5 + $0x20] sm:$0xff] }
 0xb6d   :  { %v2799_v40 = vld [vmem:[%s10232_s5 + $0x38] sm:$0xff] }
 0xb6f   :  { %v2685_v41 = vpop.f32.mrb[16].mxu1 }
 0xb70   :  { %2690 = vst.msk [vmem:[#allocation3 + $0x30] sm:$0xff] %vm527_vm9, %v2685_v41  ;;  %v2687_v43 = vpop.f32.mrb[17].mxu1  ;;  %vm3007_vm9 = vcmask 531512  }
 0xb73   :  { %v2696_v45 = vld [vmem:[#allocation3] sm:$0xff] }
 0xb74   :  { %2700 = vrot.lane.b32.xlu1 %v2696_v45, %s9249_s6  ;;  %2694 = vst.msk [vmem:[#allocation2] sm:$0xff] %vm2693_vm1, %v2696_v45 }
 0xb75   :  { %2976 = vst.msk [vmem:[#allocation3] sm:$0xff] %vm2975_vm5, %v9256_v5 }
 0xb77   :  { %v2697_v46 = vld [vmem:[#allocation3 + $0x30] sm:$0xff] }
 0xb78   :  { %2712 = vrot.lane.b32.xlu1 %v2696_v45, %s9250_s7  ;;  %2702 = vrot.lane.b32.xlu0 %v2697_v46, %s9249_s6  ;;  %2695 = vst.msk [vmem:[#allocation2 + $0x28] sm:$0xff] %vm2693_vm1, %v2697_v46 }
 0xb79   :  { %2977 = vst.msk [vmem:[#allocation3 + $0x30] sm:$0xff] %vm2975_vm5, %v9256_v5  ;;  %vm6588_vm5 = vcmask 113696  }
 0xb7b   :  { %v2800_v44 = vld [vmem:[#allocation2] sm:$0xff] }
 0xb7c   :  { %2724 = vrot.lane.b32.xlu1 %v2696_v45, %s9286_s20  ;;  %2714 = vrot.lane.b32.xlu0 %v2697_v46, %s9250_s7 }
 0xb7f   :  { %v2801_v47 = vld [vmem:[#allocation2 + $0x28] sm:$0xff] }
 0xb80   :  { %2736 = vrot.lane.b32.xlu1 %v2696_v45, %s9287_s21  ;;  %2726 = vrot.lane.b32.xlu0 %v2697_v46, %s9286_s20  ;;  %v8787_v48 = vpack.c.bf16 %v2801_v47, %v2800_v44 }
 0xb82   :  { %8788 = vmatpush1.bf16.msra.mxu1 %v8787_v48 }
 0xb83   :  { %8789 = vmatprep.subr.bf16.mxu1 %v9262_v6 }
 0xb84   :  { %2748 = vrot.lane.b32.xlu1 %v2696_v45, %s9288_s22  ;;  %2738 = vrot.lane.b32.xlu0 %v2697_v46, %s9287_s21 }
 0xb88   :  { %2760 = vrot.lane.b32.xlu1 %v2696_v45, %s9274_s26  ;;  %2750 = vrot.lane.b32.xlu0 %v2697_v46, %s9288_s22 }
 0xb8c   :  { %2772 = vrot.lane.b32.xlu1 %v2696_v45, %s9290_s29  ;;  %2762 = vrot.lane.b32.xlu0 %v2697_v46, %s9274_s26 }
 0xb90   :  { %2784 = vrot.lane.b32.xlu1 %v2696_v45, %s9293_s15  ;;  %2774 = vrot.lane.b32.xlu0 %v2697_v46, %s9290_s29 }
 0xb94   :  { %2921 = vperm.xlu1 %9232, %v2915_v49   ;;  %2786 = vrot.lane.b32.xlu0 %v2697_v46, %s9293_s15 }
 0xb98   :  { %2949 = vperm.xlu1 %9232, %v2943_v57   ;;  %2926 = vperm.xlu0 %9233, %v2916_v29   ;;  %v7669_v57 = vld [vmem:[%s7637_s18] ss:$0 sm:$0xff]  ;;  %s9300_s18 = smov 123  }
 0xb9c   :  { %2931 = vperm.xlu1 %9232, %v2917_v50   ;;  %2954 = vperm.xlu0 %9233, %v2944_v51  }
 0xba0   :  { %2959 = vperm.xlu1 %9232, %v2945_v52   ;;  %2936 = vperm.xlu0 %9233, %v2918_v53  }
 0xba4   :  { %2964 = vperm.xlu0 %9233, %v2946_v55  }
 0xbe6   :  { %v2701_v61 = vpop.permute.xlu1 %2700 }
 0xbe7   :  { %2706 = vst.msk [vmem:[#allocation2 + $0x50] sm:$0xff] %vm2693_vm1, %v2701_v61 }
 0xbea   :  { %v2713_v62 = vpop.permute.xlu1 %2712  ;;  %v2703_v63 = vpop.permute.xlu0 %2702 }
 0xbeb   :  { %2718 = vst.msk [vmem:[#allocation2 + $0xa0] sm:$0xff] %vm2693_vm1, %v2713_v62  ;;  %2707 = vst.msk [vmem:[#allocation2 + $0x78] sm:$0xff] %vm2693_vm1, %v2703_v63 }
 0xbee   :  { %v2725_v1 = vpop.permute.xlu1 %2724  ;;  %v2715_v3 = vpop.permute.xlu0 %2714  ;;  %v2802_v0 = vld [vmem:[#allocation2 + $0x50] sm:$0xff] }
 0xbef   :  { %2730 = vst.msk [vmem:[#allocation2 + $0xf0] sm:$0xff] %vm2693_vm1, %v2725_v1  ;;  %2719 = vst.msk [vmem:[#allocation2 + $0xc8] sm:$0xff] %vm2693_vm1, %v2715_v3 }
 0xbf2   :  { %v2737_v39 = vpop.permute.xlu1 %2736  ;;  %v2727_v42 = vpop.permute.xlu0 %2726  ;;  %v2803_v7 = vld [vmem:[#allocation2 + $0x78] sm:$0xff]  ;;  %v2804_v9 = vld [vmem:[#allocation2 + $0xa0] sm:$0xff] }
 0xbf3   :  { %2742 = vst.msk [vmem:[#allocation2 + $0x140] sm:$0xff] %vm2693_vm1, %v2737_v39  ;;  %2731 = vst.msk [vmem:[#allocation2 + $0x118] sm:$0xff] %vm2693_vm1, %v2727_v42  ;;  %v8790_v56 = vpack.c.bf16 %v2803_v7, %v2802_v0 }
 0xbf5   :  { %8791 = vmatpush1.bf16.msra.mxu1 %v8790_v56 }
 0xbf6   :  { %v2749_v54 = vpop.permute.xlu1 %2748  ;;  %v2739_v60 = vpop.permute.xlu0 %2738  ;;  %8792 = vmatprep.subr.bf16.mxu1 %v9262_v6  ;;  %v2805_v10 = vld [vmem:[#allocation2 + $0xc8] sm:$0xff]  ;;  %v2806_v14 = vld [vmem:[#allocation2 + $0xf0] sm:$0xff] }
 0xbf7   :  { %2754 = vst.msk [vmem:[#allocation2 + $0x190] sm:$0xff] %vm2693_vm1, %v2749_v54  ;;  %2743 = vst.msk [vmem:[#allocation2 + $0x168] sm:$0xff] %vm2693_vm1, %v2739_v60  ;;  %v8793_v11 = vpack.c.bf16 %v2805_v10, %v2804_v9 }
 0xbf9   :  { %8794 = vmatpush1.bf16.msra.mxu1 %v8793_v11 }
 0xbfa   :  { %v2761_v12 = vpop.permute.xlu1 %2760  ;;  %v2751_v13 = vpop.permute.xlu0 %2750  ;;  %8795 = vmatprep.subr.bf16.mxu1 %v9262_v6  ;;  %v2807_v15 = vld [vmem:[#allocation2 + $0x118] sm:$0xff]  ;;  %v2808_v4 = vld [vmem:[#allocation2 + $0x140] sm:$0xff] }
 0xbfb   :  { %2766 = vst.msk [vmem:[#allocation2 + $0x1e0] sm:$0xff] %vm2693_vm1, %v2761_v12  ;;  %2755 = vst.msk [vmem:[#allocation2 + $0x1b8] sm:$0xff] %vm2693_vm1, %v2751_v13  ;;  %v8796_v16 = vpack.c.bf16 %v2807_v15, %v2806_v14 }
 0xbfd   :  { %8797 = vmatpush1.bf16.msra.mxu1 %v8796_v16 }
 0xbfe   :  { %v2773_v2 = vpop.permute.xlu1 %2772  ;;  %v2763_v8 = vpop.permute.xlu0 %2762  ;;  %8798 = vmatprep.subr.bf16.mxu1 %v9262_v6  ;;  %v2809_v24 = vld [vmem:[#allocation2 + $0x168] sm:$0xff]  ;;  %v2810_v22 = vld [vmem:[#allocation2 + $0x190] sm:$0xff] }
 0xbff   :  { %2778 = vst.msk [vmem:[#allocation2 + $0x230] sm:$0xff] %vm2693_vm1, %v2773_v2  ;;  %2767 = vst.msk [vmem:[#allocation2 + $0x208] sm:$0xff] %vm2693_vm1, %v2763_v8  ;;  %v8799_v17 = vpack.c.bf16 %v2809_v24, %v2808_v4 }
 0xc01   :  { %8800 = vmatpush1.bf16.msra.mxu1 %v8799_v17 }
 0xc02   :  { %v2785_v18 = vpop.permute.xlu1 %2784  ;;  %v2775_v21 = vpop.permute.xlu0 %2774  ;;  %8801 = vmatprep.subr.bf16.mxu1 %v9262_v6  ;;  %v2811_v20 = vld [vmem:[#allocation2 + $0x1b8] sm:$0xff]  ;;  %v2812_v27 = vld [vmem:[#allocation2 + $0x1e0] sm:$0xff] }
 0xc03   :  { %2790 = vst.msk [vmem:[#allocation2 + $0x280] sm:$0xff] %vm2693_vm1, %v2785_v18  ;;  %2779 = vst.msk [vmem:[#allocation2 + $0x258] sm:$0xff] %vm2693_vm1, %v2775_v21  ;;  %v8802_v25 = vpack.c.bf16 %v2811_v20, %v2810_v22  ;;  %v3476_v20 = vld [vmem:[%s7622_s9] sm:$0xff] }
 0xc05   :  { %8803 = vmatpush1.bf16.msra.mxu1 %v8802_v25 }
 0xc06   :  { %v2787_v26 = vpop.permute.xlu0 %2786  ;;  %8804 = vmatprep.subr.bf16.mxu1 %v9262_v6  ;;  %v2813_v58 = vld [vmem:[#allocation2 + $0x208] sm:$0xff]  ;;  %v2814_v31 = vld [vmem:[#allocation2 + $0x230] sm:$0xff] }
 0xc07   :  { %2791 = vst.msk [vmem:[#allocation2 + $0x2a8] sm:$0xff] %vm2693_vm1, %v2787_v26  ;;  %v8805_v23 = vpack.c.bf16 %v2813_v58, %v2812_v27  ;;  %v3477_v27 = vld [vmem:[%s7622_s9 + $0x8] sm:$0xff]  ;;  %v3478_v58 = vld [vmem:[%s7622_s9 + $0x10] sm:$0xff] }
 0xc09   :  { %8806 = vmatpush1.bf16.msra.mxu1 %v8805_v23 }
 0xc0a   :  { %8807 = vmatprep.subr.bf16.mxu1 %v9262_v6  ;;  %v2815_v30 = vld [vmem:[#allocation2 + $0x258] sm:$0xff]  ;;  %v2816_v33 = vld [vmem:[#allocation2 + $0x280] sm:$0xff] }
 0xc0b   :  { %v8808_v28 = vpack.c.bf16 %v2815_v30, %v2814_v31  ;;  %v3479_v31 = vld [vmem:[%s7622_s9 + $0x18] sm:$0xff]  ;;  %s10479_s9 = sld [smem:[%s11699_s0 + %s9304_s25]]  }
 0xc0d   :  { %8809 = vmatpush1.bf16.msra.mxu1 %v8808_v28 }
 0xc0e   :  { %8810 = vmatprep.subr.bf16.mxu1 %v9262_v6  ;;  %v2817_v34 = vld [vmem:[#allocation2 + $0x2a8] sm:$0xff]  ;;  %v2798_v6 = vld [vmem:[%s10232_s5 + $0x30] sm:$0xff]  ;;  %s9310_s5 = smov 39  }
 0xc0f   :  { %v8811_v32 = vpack.c.bf16 %v2817_v34, %v2816_v33  ;;  %s7643_s14 = sld [smem:[%s11699_s0 + %s9310_s5]]  }
 0xc11   :  { %8812 = vmatpush1.bf16.msra.mxu1 %v8811_v32 }
 0xc13   :  { %v2922_v41 = vpop.permute.xlu1 %2921 }
 0xc14   :  { %2895 = vmatmul.mubr.f32.vlgmr.msra.gmra.mrb[18].mxu1 %v2792_v35 }
 0xc15   :  { %7666 = vmatprep.mubr.msk.f32.mxu1 %vm2415_vm6, %v2795_v36 }
 0xc17   :  { %v2927_v43 = vpop.permute.xlu0 %2926  ;;  %v2950_v45 = vpop.permute.xlu1 %2949 }
 0xc18   :  { %2900 = vmatmul.mubr.f32.gmra.mrb[20].mxu1 %v2794_v19 }
 0xc19   :  { %7667 = vmatprep.mubr.msk.f32.mxu1 %vm2415_vm6, %v2797_v37 }
 0xc1b   :  { %v2955_v48 = vpop.permute.xlu0 %2954  ;;  %v2932_v59 = vpop.permute.xlu1 %2931 }
 0xc1c   :  { %2905 = vmatmul.mubr.f32.gmra.mrb[22].mxu1 %v2796_v38 }
 0xc1d   :  { %7668 = vmatprep.mubr.msk.f32.mxu1 %vm2415_vm6, %v2799_v40  ;;  %vm5551_vm6 = vcmask 146432  }
 0xc1f   :  { %v2937_v61 = vpop.permute.xlu0 %2936  ;;  %v2960_v39 = vpop.permute.xlu1 %2959 }
 0xc20   :  { %2910 = vmatmul.mubr.f32.gmra.mrb[24].mxu1 %v2798_v6 }
 0xc23   :  { %v2965_v9 = vpop.permute.xlu0 %2964 }
 0xce7   :  { %v2896_v46 = vpop.f32.mrb[18].mxu1 }
 0xce8   :  { %v2939_v44 = vmul.f32 %v2922_v41, %v2896_v46  ;;  %v2898_v47 = vpop.f32.mrb[19].mxu1 }
 0xcea   :  { %v2967_v49 = vadd.f32 %v2950_v45, %v2939_v44 }
 0xceb   :  { %v2901_v29 = vpop.f32.mrb[20].mxu1 }
 0xcec   :  { %v2971_v50 = vmax.f32 %v2967_v49, 0.0  ;;  %v2940_v51 = vmul.f32 %v2927_v43, %v2901_v29  ;;  %v2903_v52 = vpop.f32.mrb[21].mxu1 }
 0xcee   :  { %v2987_v53 = vmul.f32 %v7669_v57, %v2971_v50  ;;  %v2968_v55 = vadd.f32 %v2955_v48, %v2940_v51 }
 0xcef   :  { %v2906_v62 = vpop.f32.mrb[22].mxu1 }
 0xcf0   :  { %v2972_v63 = vmax.f32 %v2968_v55, 0.0  ;;  %v2941_v1 = vmul.f32 %v2932_v59, %v2906_v62  ;;  %2995 = vrot.lane.b32.xlu1 %v2987_v53, %s9279_s12  ;;  %v2908_v3 = vpop.f32.mrb[23].mxu1 }
 0xcf2   :  { %v2988_v42 = vmul.f32 %v7669_v57, %v2972_v63  ;;  %v2969_v0 = vadd.f32 %v2960_v39, %v2941_v1 }
 0xcf3   :  { %v2911_v7 = vpop.f32.mrb[24].mxu1 }
 0xcf4   :  { %v2973_v56 = vmax.f32 %v2969_v0, 0.0  ;;  %v2942_v54 = vmul.f32 %v2937_v61, %v2911_v7  ;;  %2997 = vrot.lane.b32.xlu0 %v2988_v42, %s9279_s12  ;;  %v2913_v60 = vpop.f32.mrb[25].mxu1 }
 0xcf6   :  { %v2989_v10 = vmul.f32 %v7669_v57, %v2973_v56  ;;  %v2970_v11 = vadd.f32 %v2965_v9, %v2942_v54 }
 0xcf8   :  { %v2974_v12 = vmax.f32 %v2970_v11, 0.0  ;;  %2999 = vrot.lane.b32.xlu1 %v2989_v10, %s9279_s12 }
 0xcfa   :  { %v2990_v13 = vmul.f32 %v7669_v57, %v2974_v12 }
 0xcfc   :  { %3001 = vrot.lane.b32.xlu0 %v2990_v13, %s9279_s12  ;;  %s9295_s12 = smov 16  }
 0xcfd   :  { %s10330_s24 = sld [smem:[%s11699_s0 + %s9295_s12]]   ;;  %s9301_s12 = smov 119  }
 0xd03   :  { %v3218_v18 = vld [vmem:[%s10330_s24 + $0x8] sm:$0xff]  ;;  %v3219_v22 = vld [vmem:[%s10330_s24 + $0x10] sm:$0xff] }
 0xd04   :  { %3342 = vmatprep.mubr.f32.mxu1 %v3218_v18  ;;  %8318 = vmatprep.mubr.msk.f32.mxu0 %vm3265_vm0, %v3219_v22 }
 0xd62   :  { %v2996_v14 = vpop.permute.xlu1 %2995 }
 0xd63   :  { %3008 = vst.msk [vmem:[#allocation3] sm:$0xff] %vm3007_vm9, %v2996_v14 }
 0xd64   :  { %3013 = vst.msk [vmem:[#allocation3] sm:$0xff] %vm3012_vm14, %v9256_v5 }
 0xd66   :  { %v2998_v15 = vpop.permute.xlu0 %2997 }
 0xd67   :  { %3009 = vst.msk [vmem:[#allocation3 + $0x30] sm:$0xff] %vm3007_vm9, %v2998_v15 }
 0xd68   :  { %3014 = vst.msk [vmem:[#allocation3 + $0x30] sm:$0xff] %vm3012_vm14, %v9256_v5 }
 0xd6a   :  { %v3000_v16 = vpop.permute.xlu1 %2999 }
 0xd6b   :  { %v3017_v2 = vld [vmem:[#allocation3] sm:$0xff]  ;;  %3010 = vst.msk [vmem:[#allocation3 + $0x60] sm:$0xff] %vm3007_vm9, %v3000_v16 }
 0xd6c   :  { %3021 = vst.msk [vmem:[#allocation2] sm:$0xff] %vm2693_vm1, %v3017_v2  ;;  %3105 = vrot.lane.b32.xlu1 %v3017_v2, %s9287_s21 }
 0xd6d   :  { %3015 = vst.msk [vmem:[#allocation3 + $0x60] sm:$0xff] %vm3012_vm14, %v9256_v5 }
 0xd6e   :  { %v3002_v8 = vpop.permute.xlu0 %3001 }
 0xd6f   :  { %v3018_v4 = vld [vmem:[#allocation3 + $0x30] sm:$0xff]  ;;  %3011 = vst.msk [vmem:[#allocation3 + $0x90] sm:$0xff] %vm3007_vm9, %v3002_v8  ;;  %vm6597_vm9 = vcmask 146544  }
 0xd70   :  { %3022 = vst.msk [vmem:[#allocation2 + $0x28] sm:$0xff] %vm2693_vm1, %v3018_v4  ;;  %3129 = vrot.lane.b32.xlu1 %v3017_v2, %s9288_s22  ;;  %3107 = vrot.lane.b32.xlu0 %v3018_v4, %s9287_s21 }
 0xd71   :  { %3016 = vst.msk [vmem:[#allocation3 + $0x90] sm:$0xff] %vm3012_vm14, %v9256_v5 }
 0xd73   :  { %v3229_v35 = vld [vmem:[#allocation2] sm:$0xff] }
 0xd74   :  { %v3019_v24 = vld [vmem:[#allocation3 + $0x60] sm:$0xff]  ;;  %3033 = vrot.lane.b32.xlu1 %v3017_v2, %s9249_s6  ;;  %3131 = vrot.lane.b32.xlu0 %v3018_v4, %s9288_s22 }
 0xd75   :  { %3023 = vst.msk [vmem:[#allocation2 + $0x50] sm:$0xff] %vm2693_vm1, %v3019_v24 }
 0xd77   :  { %v3230_v36 = vld [vmem:[#allocation2 + $0x28] sm:$0xff] }
 0xd78   :  { %v3020_v17 = vld [vmem:[#allocation3 + $0x90] sm:$0xff]  ;;  %3153 = vrot.lane.b32.xlu1 %v3017_v2, %s9274_s26  ;;  %3035 = vrot.lane.b32.xlu0 %v3018_v4, %s9249_s6  ;;  %v8815_v6 = vpack.c.bf16 %v3230_v36, %v3229_v35 }
 0xd79   :  { %3024 = vst.msk [vmem:[#allocation2 + $0x78] sm:$0xff] %vm2693_vm1, %v3020_v17 }
 0xd7c   :  { %3057 = vrot.lane.b32.xlu1 %v3017_v2, %s9250_s7  ;;  %3155 = vrot.lane.b32.xlu0 %v3018_v4, %s9274_s26  ;;  %v3231_v50 = vld [vmem:[#allocation2 + $0x50] sm:$0xff] }
 0xd80   :  { %3177 = vrot.lane.b32.xlu1 %v3017_v2, %s9290_s29  ;;  %3059 = vrot.lane.b32.xlu0 %v3018_v4, %s9250_s7  ;;  %v3232_v51 = vld [vmem:[#allocation2 + $0x78] sm:$0xff] }
 0xd81   :  { %v8819_v62 = vpack.c.bf16 %v3232_v51, %v3231_v50  ;;  %v3220_v50 = vld [vmem:[%s10330_s24 + $0x18] sm:$0xff] }
 0xd84   :  { %3109 = vrot.lane.b32.xlu1 %v3019_v24, %s9287_s21  ;;  %3179 = vrot.lane.b32.xlu0 %v3018_v4, %s9290_s29 }
 0xd88   :  { %3081 = vrot.lane.b32.xlu1 %v3017_v2, %s9286_s20  ;;  %3111 = vrot.lane.b32.xlu0 %v3020_v17, %s9287_s21 }
 0xd8c   :  { %3133 = vrot.lane.b32.xlu1 %v3019_v24, %s9288_s22  ;;  %3083 = vrot.lane.b32.xlu0 %v3018_v4, %s9286_s20 }
 0xd90   :  { %3037 = vrot.lane.b32.xlu1 %v3019_v24, %s9249_s6  ;;  %3135 = vrot.lane.b32.xlu0 %v3020_v17, %s9288_s22 }
 0xd94   :  { %3157 = vrot.lane.b32.xlu1 %v3019_v24, %s9274_s26  ;;  %3039 = vrot.lane.b32.xlu0 %v3020_v17, %s9249_s6 }
 0xd98   :  { %3061 = vrot.lane.b32.xlu1 %v3019_v24, %s9250_s7  ;;  %3159 = vrot.lane.b32.xlu0 %v3020_v17, %s9274_s26  ;;  %s7621_s26 = sld [smem:[%s11699_s0 + %s9296_s27]]  }
 0xd99   :  { %s10460_s27 = sld [smem:[%s11699_s0 + %s9265_s30]]  }
 0xd9c   :  { %3181 = vrot.lane.b32.xlu1 %v3019_v24, %s9290_s29  ;;  %3063 = vrot.lane.b32.xlu0 %v3020_v17, %s9250_s7 }
 0xd9e   :  { %v3448_v21 = vld [vmem:[%s7621_s26] sm:$0xff]  ;;  %v3449_v25 = vld [vmem:[%s7621_s26 + $0x8] sm:$0xff]  ;;  %v3450_v26 = vld [vmem:[%s7621_s26 + $0x10] sm:$0xff] }
 0xd9f   :  { %v3451_v23 = vld [vmem:[%s7621_s26 + $0x18] sm:$0xff]  ;;  %s10472_s26 = sld [smem:[%s11699_s0 + %s9303_s28]]  }
 0xda0   :  { %3085 = vrot.lane.b32.xlu1 %v3019_v24, %s9286_s20  ;;  %3183 = vrot.lane.b32.xlu0 %v3020_v17, %s9290_s29  ;;  %s9298_s29 = smov 42  }
 0xda1   :  { %s10396_s3 = sld [smem:[%s11699_s0 + %s9298_s29]]   ;;  %s9305_s29 = smov 34  }
 0xda4   :  { %3201 = vrot.lane.b32.xlu1 %v3017_v2, %s9293_s15  ;;  %3087 = vrot.lane.b32.xlu0 %v3020_v17, %s9286_s20 }
 0xda8   :  { %3205 = vrot.lane.b32.xlu1 %v3019_v24, %s9293_s15  ;;  %3203 = vrot.lane.b32.xlu0 %v3018_v4, %s9293_s15 }
 0xdac   :  { %3454 = vperm.xlu1 %9232, %v3448_v21   ;;  %3207 = vrot.lane.b32.xlu0 %v3020_v17, %s9293_s15  ;;  %s9299_s15 = smov 38  }
 0xdad   :  { %s10401_s17 = sld [smem:[%s11699_s0 + %s9299_s15]]  }
 0xdb0   :  { %3482 = vperm.xlu1 %9232, %v3476_v20   ;;  %3459 = vperm.xlu0 %9233, %v3449_v25  }
 0xdb4   :  { %3464 = vperm.xlu1 %9232, %v3450_v26   ;;  %3487 = vperm.xlu0 %9233, %v3477_v27  }
 0xdb8   :  { %3492 = vperm.xlu1 %9232, %v3478_v58   ;;  %3469 = vperm.xlu0 %9233, %v3451_v23  }
 0xdbc   :  { %3497 = vperm.xlu0 %9233, %v3479_v31  }
 0xdde   :  { %v3106_v30 = vpop.permute.xlu1 %3105 }
 0xddf   :  { %3117 = vst.msk [vmem:[#allocation2 + $0x280] sm:$0xff] %vm2693_vm1, %v3106_v30 }
 0xde2   :  { %v3108_v28 = vpop.permute.xlu0 %3107  ;;  %v3130_v33 = vpop.permute.xlu1 %3129 }
 0xde3   :  { %3118 = vst.msk [vmem:[#allocation2 + $0x2a8] sm:$0xff] %vm2693_vm1, %v3108_v28  ;;  %3141 = vst.msk [vmem:[#allocation2 + $0x320] sm:$0xff] %vm2693_vm1, %v3130_v33 }
 0xde6   :  { %v3132_v34 = vpop.permute.xlu0 %3131  ;;  %v3034_v32 = vpop.permute.xlu1 %3033  ;;  %v3245_v19 = vld [vmem:[#allocation2 + $0x280] sm:$0xff] }
 0xde7   :  { %3142 = vst.msk [vmem:[#allocation2 + $0x348] sm:$0xff] %vm2693_vm1, %v3132_v34  ;;  %3045 = vst.msk [vmem:[#allocation2 + $0xa0] sm:$0xff] %vm2693_vm1, %v3034_v32 }
 0xdea   :  { %v3036_v37 = vpop.permute.xlu0 %3035  ;;  %v3246_v38 = vld [vmem:[#allocation2 + $0x2a8] sm:$0xff]  ;;  %v3154_v40 = vpop.permute.xlu1 %3153  ;;  %v3249_v63 = vld [vmem:[#allocation2 + $0x320] sm:$0xff] }
 0xdeb   :  { %3046 = vst.msk [vmem:[#allocation2 + $0xc8] sm:$0xff] %vm2693_vm1, %v3036_v37  ;;  %v8813_v41 = vpack.c.bf16 %v3246_v38, %v3245_v19  ;;  %3165 = vst.msk [vmem:[#allocation2 + $0x3c0] sm:$0xff] %vm2693_vm1, %v3154_v40 }
 0xded   :  { %8814 = vmatprep.subr.bf16.mxu1 %v8813_v41 }
 0xdee   :  { %v3156_v43 = vpop.permute.xlu0 %3155  ;;  %v3058_v45 = vpop.permute.xlu1 %3057  ;;  %8816 = vmatpush3.bf16.msra.mxu1 %v8815_v6  ;;  %v3250_v1 = vld [vmem:[#allocation2 + $0x348] sm:$0xff]  ;;  %v3233_v42 = vld [vmem:[#allocation2 + $0xa0] sm:$0xff] }
 0xdef   :  { %3166 = vst.msk [vmem:[#allocation2 + $0x3e8] sm:$0xff] %vm2693_vm1, %v3156_v43  ;;  %3069 = vst.msk [vmem:[#allocation2 + $0x140] sm:$0xff] %vm2693_vm1, %v3058_v45  ;;  %v8821_v39 = vpack.c.bf16 %v3250_v1, %v3249_v63  ;;  %v3225_v63 = vld [vmem:[%s10330_s24 + $0x40] sm:$0xff]  ;;  %v3226_v1 = vld [vmem:[%s10330_s24 + $0x48] sm:$0xff] }
 0xdf2   :  { %v3060_v46 = vpop.permute.xlu0 %3059  ;;  %v3178_v44 = vpop.permute.xlu1 %3177  ;;  %v3234_v0 = vld [vmem:[#allocation2 + $0xc8] sm:$0xff]  ;;  %v3253_v14 = vld [vmem:[#allocation2 + $0x3c0] sm:$0xff] }
 0xdf3   :  { %3070 = vst.msk [vmem:[#allocation2 + $0x168] sm:$0xff] %vm2693_vm1, %v3060_v46  ;;  %3189 = vst.msk [vmem:[#allocation2 + $0x460] sm:$0xff] %vm2693_vm1, %v3178_v44  ;;  %v8823_v54 = vpack.c.bf16 %v3234_v0, %v3233_v42 }
 0xdf6   :  { %v3180_v47 = vpop.permute.xlu0 %3179  ;;  %v3110_v48 = vpop.permute.xlu1 %3109  ;;  %v3254_v15 = vld [vmem:[#allocation2 + $0x3e8] sm:$0xff]  ;;  %v3237_v17 = vld [vmem:[#allocation2 + $0x140] sm:$0xff] }
 0xdf7   :  { %3190 = vst.msk [vmem:[#allocation2 + $0x488] sm:$0xff] %vm2693_vm1, %v3180_v47  ;;  %3119 = vst.msk [vmem:[#allocation2 + $0x2d0] sm:$0xff] %vm2693_vm1, %v3110_v48  ;;  %v8829_v24 = vpack.c.bf16 %v3254_v15, %v3253_v14  ;;  %v3217_v48 = vld [vmem:[%s10330_s24] sm:$0xff] }
 0xdfa   :  { %v3112_v49 = vpop.permute.xlu0 %3111  ;;  %v3082_v59 = vpop.permute.xlu1 %3081  ;;  %v3238_v18 = vld [vmem:[#allocation2 + $0x168] sm:$0xff]  ;;  %v3257_v23 = vld [vmem:[#allocation2 + $0x460] sm:$0xff] }
 0xdfb   :  { %3120 = vst.msk [vmem:[#allocation2 + $0x2f8] sm:$0xff] %vm2693_vm1, %v3112_v49  ;;  %3093 = vst.msk [vmem:[#allocation2 + $0x1e0] sm:$0xff] %vm2693_vm1, %v3082_v59  ;;  %v8831_v26 = vpack.c.bf16 %v3238_v18, %v3237_v17  ;;  %v3221_v59 = vld [vmem:[%s10330_s24 + $0x20] sm:$0xff] }
 0xdfe   :  { %v3084_v57 = vpop.permute.xlu0 %3083  ;;  %v3134_v29 = vpop.permute.xlu1 %3133  ;;  %v3247_v52 = vld [vmem:[#allocation2 + $0x2d0] sm:$0xff]  ;;  %v3258_v31 = vld [vmem:[#allocation2 + $0x488] sm:$0xff] }
 0xdff   :  { %3094 = vst.msk [vmem:[#allocation2 + $0x208] sm:$0xff] %vm2693_vm1, %v3084_v57  ;;  %3143 = vst.msk [vmem:[#allocation2 + $0x370] sm:$0xff] %vm2693_vm1, %v3134_v29  ;;  %v8837_v32 = vpack.c.bf16 %v3258_v31, %v3257_v23 }
 0xe02   :  { %v3136_v53 = vpop.permute.xlu0 %3135  ;;  %v3248_v55 = vld [vmem:[#allocation2 + $0x2f8] sm:$0xff]  ;;  %v3038_v61 = vpop.permute.xlu1 %3037  ;;  %v3241_v35 = vld [vmem:[#allocation2 + $0x1e0] sm:$0xff] }
 0xe03   :  { %3144 = vst.msk [vmem:[#allocation2 + $0x398] sm:$0xff] %vm2693_vm1, %v3136_v53  ;;  %v8817_v3 = vpack.c.bf16 %v3248_v55, %v3247_v52  ;;  %3047 = vst.msk [vmem:[#allocation2 + $0xf0] sm:$0xff] %vm2693_vm1, %v3038_v61  ;;  %v3224_v52 = vld [vmem:[%s10330_s24 + $0x38] sm:$0xff]  ;;  %v3223_v55 = vld [vmem:[%s10330_s24 + $0x30] sm:$0xff] }
 0xe04   :  { %v3222_v61 = vld [vmem:[%s10330_s24 + $0x28] sm:$0xff] }
 0xe05   :  { %8818 = vmatprep.subr.bf16.mxu1 %v8817_v3  ;;  %v3228_v3 = vld [vmem:[%s10330_s24 + $0x58] sm:$0xff] }
 0xe06   :  { %8820 = vmatpush3.bf16.msra.mxu1 %v8819_v62  ;;  %v3040_v7 = vpop.permute.xlu0 %3039  ;;  %v3158_v56 = vpop.permute.xlu1 %3157  ;;  %v3251_v60 = vld [vmem:[#allocation2 + $0x370] sm:$0xff]  ;;  %v3242_v36 = vld [vmem:[#allocation2 + $0x208] sm:$0xff] }
 0xe07   :  { %3048 = vst.msk [vmem:[#allocation2 + $0x118] sm:$0xff] %vm2693_vm1, %v3040_v7  ;;  %8822 = vmatprep.subr.bf16.mxu1 %v8821_v39  ;;  %3167 = vst.msk [vmem:[#allocation2 + $0x410] sm:$0xff] %vm2693_vm1, %v3158_v56  ;;  %v8839_v6 = vpack.c.bf16 %v3242_v36, %v3241_v35  ;;  %v3227_v62 = vld [vmem:[%s10330_s24 + $0x50] sm:$0xff] }
 0xe0a   :  { %8824 = vmatpush3.bf16.msra.mxu1 %v8823_v54  ;;  %v3160_v9 = vpop.permute.xlu0 %3159  ;;  %v3252_v10 = vld [vmem:[#allocation2 + $0x398] sm:$0xff]  ;;  %v3062_v11 = vpop.permute.xlu1 %3061  ;;  %v3235_v13 = vld [vmem:[#allocation2 + $0xf0] sm:$0xff] }
 0xe0b   :  { %3168 = vst.msk [vmem:[#allocation2 + $0x438] sm:$0xff] %vm2693_vm1, %v3160_v9  ;;  %v8825_v12 = vpack.c.bf16 %v3252_v10, %v3251_v60  ;;  %3071 = vst.msk [vmem:[#allocation2 + $0x190] sm:$0xff] %vm2693_vm1, %v3062_v11 }
 0xe0d   :  { %8826 = vmatprep.subr.bf16.mxu1 %v8825_v12 }
 0xe0e   :  { %v3064_v16 = vpop.permute.xlu0 %3063  ;;  %v3236_v2 = vld [vmem:[#allocation2 + $0x118] sm:$0xff]  ;;  %v3182_v8 = vpop.permute.xlu1 %3181  ;;  %v3255_v21 = vld [vmem:[#allocation2 + $0x410] sm:$0xff] }
 0xe0f   :  { %3072 = vst.msk [vmem:[#allocation2 + $0x1b8] sm:$0xff] %vm2693_vm1, %v3064_v16  ;;  %v8827_v4 = vpack.c.bf16 %v3236_v2, %v3235_v13  ;;  %3191 = vst.msk [vmem:[#allocation2 + $0x4b0] sm:$0xff] %vm2693_vm1, %v3182_v8 }
 0xe11   :  { %8828 = vmatpush3.bf16.msra.mxu1 %v8827_v4 }
 0xe12   :  { %8830 = vmatprep.subr.bf16.mxu1 %v8829_v24  ;;  %v3184_v22 = vpop.permute.xlu0 %3183  ;;  %v3086_v20 = vpop.permute.xlu1 %3085  ;;  %v3256_v25 = vld [vmem:[#allocation2 + $0x438] sm:$0xff]  ;;  %v3239_v58 = vld [vmem:[#allocation2 + $0x190] sm:$0xff] }
 0xe13   :  { %3192 = vst.msk [vmem:[#allocation2 + $0x4d8] sm:$0xff] %vm2693_vm1, %v3184_v22  ;;  %3095 = vst.msk [vmem:[#allocation2 + $0x230] sm:$0xff] %vm2693_vm1, %v3086_v20  ;;  %v8833_v27 = vpack.c.bf16 %v3256_v25, %v3255_v21 }
 0xe15   :  { %8832 = vmatpush3.bf16.msra.mxu1 %v8831_v26 }
 0xe16   :  { %8834 = vmatprep.subr.bf16.mxu1 %v8833_v27  ;;  %v3088_v30 = vpop.permute.xlu0 %3087  ;;  %v3240_v28 = vld [vmem:[#allocation2 + $0x1b8] sm:$0xff]  ;;  %v3202_v33 = vpop.permute.xlu1 %3201  ;;  %v3259_v19 = vld [vmem:[#allocation2 + $0x4b0] sm:$0xff] }
 0xe17   :  { %3096 = vst.msk [vmem:[#allocation2 + $0x258] sm:$0xff] %vm2693_vm1, %v3088_v30  ;;  %v8835_v34 = vpack.c.bf16 %v3240_v28, %v3239_v58  ;;  %3213 = vst.msk [vmem:[#allocation2 + $0x500] sm:$0xff] %vm2693_vm1, %v3202_v33 }
 0xe19   :  { %8836 = vmatpush3.bf16.msra.mxu1 %v8835_v34 }
 0xe1a   :  { %8838 = vmatprep.subr.bf16.mxu1 %v8837_v32  ;;  %v3204_v37 = vpop.permute.xlu0 %3203  ;;  %v3206_v38 = vpop.permute.xlu1 %3205  ;;  %v3260_v40 = vld [vmem:[#allocation2 + $0x4d8] sm:$0xff]  ;;  %v3243_v43 = vld [vmem:[#allocation2 + $0x230] sm:$0xff] }
 0xe1b   :  { %3214 = vst.msk [vmem:[#allocation2 + $0x528] sm:$0xff] %vm2693_vm1, %v3204_v37  ;;  %3215 = vst.msk [vmem:[#allocation2 + $0x550] sm:$0xff] %vm2693_vm1, %v3206_v38  ;;  %v8841_v41 = vpack.c.bf16 %v3260_v40, %v3259_v19  ;;  %v3552_v37 = vld [vmem:[%s10401_s17] sm:$0xff]  ;;  %v3553_v38 = vld [vmem:[%s10401_s17 + $0x8] sm:$0xff] }
 0xe1c   :  { %v3554_v40 = vld [vmem:[%s10401_s17 + $0x10] sm:$0xff] }
 0xe1d   :  { %8840 = vmatpush3.bf16.msra.mxu1 %v8839_v6 }
 0xe1e   :  { %8842 = vmatprep.subr.bf16.mxu1 %v8841_v41  ;;  %v3208_v45 = vpop.permute.xlu0 %3207  ;;  %v3244_v46 = vld [vmem:[#allocation2 + $0x258] sm:$0xff]  ;;  %v3261_v47 = vld [vmem:[#allocation2 + $0x500] sm:$0xff]  ;;  %v8853_v41 = vpack.c.bf16 %v3553_v38, %v3552_v37 }
 0xe1f   :  { %3216 = vst.msk [vmem:[#allocation2 + $0x578] sm:$0xff] %vm2693_vm1, %v3208_v45  ;;  %v8843_v44 = vpack.c.bf16 %v3244_v46, %v3243_v43  ;;  %v3555_v43 = vld [vmem:[%s10401_s17 + $0x18] sm:$0xff] }
 0xe20   :  { %v8857_v46 = vpack.c.bf16 %v3555_v43, %v3554_v40 }
 0xe21   :  { %8844 = vmatpush3.bf16.msra.mxu1 %v8843_v44  ;;  %v3556_v44 = vld [vmem:[%s10401_s17 + $0x20] sm:$0xff] }
 0xe22   :  { %v3262_v49 = vld [vmem:[#allocation2 + $0x528] sm:$0xff]  ;;  %v3263_v29 = vld [vmem:[#allocation2 + $0x550] sm:$0xff] }
 0xe23   :  { %v8845_v57 = vpack.c.bf16 %v3262_v49, %v3261_v47  ;;  %v3557_v47 = vld [vmem:[%s10401_s17 + $0x28] sm:$0xff]  ;;  %v3558_v49 = vld [vmem:[%s10401_s17 + $0x30] sm:$0x7]  ;;  %s9307_s17 = smov 23  }
 0xe24   :  { %3343 = vmatmul.mubr.f32.vlgmr.msra.gmra.mrb[26].mxu1 %v3217_v48  ;;  %v8861_v48 = vpack.c.bf16 %v3557_v47, %v3556_v44  ;;  %s10779_s24 = sld [smem:[%s11699_s0 + %s9307_s17]]  }
 0xe25   :  { %8846 = vmatprep.subr.bf16.mxu0 %v8845_v57  ;;  %3347 = vmatprep.mubr.f32.mxu1 %v3221_v59 }
 0xe26   :  { %8848 = vmatpush3.bf16.msra.mxu0 %v8845_v57  ;;  %v3264_v51 = vld [vmem:[#allocation2 + $0x578] sm:$0xff] }
 0xe27   :  { %v8849_v53 = vpack.c.bf16 %v3264_v51, %v3263_v29 }
 0xe28   :  { %3348 = vmatmul.mubr.f32.gmra.mrb[28].mxu1 %v3220_v50 }
 0xe29   :  { %8850 = vmatprep.subr.bf16.mxu0 %v8849_v53  ;;  %3352 = vmatprep.mubr.f32.mxu1 %v3224_v52 }
 0xe2a   :  { %8852 = vmatpush3.bf16.msra.mxu0 %v8849_v53 }
 0xe2b   :  { %v3455_v39 = vpop.permute.xlu1 %3454  ;;  %8854 = vmatprep.subr.bf16.mxu0 %v8853_v41 }
 0xe2c   :  { %3353 = vmatmul.mubr.f32.gmra.mrb[30].mxu1 %v3223_v55 }
 0xe2d   :  { %8319 = vmatmul.mubr.msk.f32.vlgmr.msra.gmra.mrb[8].mxu0 %vm3265_vm0, %v3222_v61  ;;  %3357 = vmatprep.mubr.f32.mxu1 %v3227_v62 }
 0xe2e   :  { %8321 = vmatprep.mubr.msk.f32.mxu0 %vm3265_vm0, %v3225_v63  ;;  %8856 = vmatpush3.bf16.msra.mxu0 %v8853_v41 }
 0xe2f   :  { %v3460_v42 = vpop.permute.xlu0 %3459  ;;  %v3483_v60 = vpop.permute.xlu1 %3482  ;;  %8858 = vmatprep.subr.bf16.mxu0 %v8857_v46 }
 0xe30   :  { %3358 = vmatmul.mubr.f32.gmra.mrb[32].mxu1 %v3226_v1 }
 0xe31   :  { %8322 = vmatmul.mubr.msk.f32.gmra.mrb[10].mxu0 %vm3265_vm0, %v3228_v3 }
 0xe32   :  { %8860 = vmatpush3.bf16.msra.mxu0 %v8857_v46 }
 0xe33   :  { %v3488_v10 = vpop.permute.xlu0 %3487  ;;  %v3465_v8 = vpop.permute.xlu1 %3464  ;;  %8862 = vmatprep.subr.bf16.mxu0 %v8861_v48 }
 0xe36   :  { %8864 = vmatpush3.bf16.msra.mxu0 %v8861_v48 }
 0xe37   :  { %v3470_v24 = vpop.permute.xlu0 %3469  ;;  %v3493_v34 = vpop.permute.xlu1 %3492  ;;  %8336 = vmatprep.subr.msk.mxu0 %vm3572_vm7, %v3558_v49 }
 0xe3a   :  { %8337 = vmatpush3.msk.msra.mxu0 %vm3572_vm7, %v3558_v49 }
 0xe3b   :  { %v3498_v35 = vpop.permute.xlu0 %3497 }
 0xef7   :  { %v7774_v0 = vpop.f32.mrb[26].mxu1 }
 0xef8   :  { %v7775_v7 = vpop.f32.mrb[27].mxu1 }
 0xef9   :  { %v7776_v56 = vadd.f32 %v7775_v7, %v7774_v0 }
 0xefb   :  { %v7777_v54 = vpop.f32.mrb[28].mxu1 }
 0xefc   :  { %v7778_v9 = vpop.f32.mrb[29].mxu1 }
 0xefd   :  { %v7779_v11 = vadd.f32 %v7778_v9, %v7777_v54 }
 0xeff   :  { %v7780_v12 = vpop.f32.mrb[30].mxu1 }
 0xf00   :  { %v8320_v13 = vpop.f32.mrb[8].mxu0  ;;  %v7781_v14 = vpop.f32.mrb[31].mxu1 }
 0xf01   :  { %v3435_v15 = vadd.f32 %v8320_v13, %v7779_v11  ;;  %v3429_v16 = vpop.f32.mrb[9].mxu0  ;;  %v7782_v2 = vadd.f32 %v7781_v14, %v7780_v12  ;;  %v3867_v13 = vld [vmem:[%s10460_s27 + $0x8] sm:$0xff]  ;;  %v3868_v14 = vld [vmem:[%s10460_s27 + $0x10] sm:$0xff] }
 0xf02   :  { %v3430_v4 = vadd.f32 %v7776_v56, %v3429_v16  ;;  %4014 = vmatprep.mubr.f32.mxu1 %v3867_v13  ;;  %v4160_v16 = vld [vmem:[%s10472_s26] sm:$0xff] }
 0xf03   :  { %v3473_v17 = vmul.f32 %v3460_v42, %v3435_v15  ;;  %v7783_v18 = vpop.f32.mrb[32].mxu1  ;;  %v4161_v15 = vld [vmem:[%s10472_s26 + $0x8] sm:$0xff] }
 0xf04   :  { %v3472_v21 = vmul.f32 %v3455_v39, %v3430_v4  ;;  %v7784_v22 = vpop.f32.mrb[33].mxu1  ;;  %v8323_v20 = vpop.f32.mrb[10].mxu0  ;;  %v4163_v4 = vld [vmem:[%s10472_s26 + $0x18] sm:$0xff] }
 0xf05   :  { %v3501_v25 = vadd.f32 %v3488_v10, %v3473_v17  ;;  %v7785_v26 = vadd.f32 %v7784_v22, %v7783_v18  ;;  %v3439_v27 = vpop.f32.mrb[11].mxu0  ;;  %v4219_v17 = vld [vmem:[%s10479_s9 + $0x18] sm:$0xff]  ;;  %v4218_v18 = vld [vmem:[%s10479_s9 + $0x10] sm:$0xff]  ;;  %v4164_v22 = vld [vmem:[%s10472_s26 + $0x20] sm:$0xff] }
 0xf06   :  { %v3500_v58 = vadd.f32 %v3483_v60, %v3472_v21  ;;  %v3440_v23 = vadd.f32 %v7782_v2, %v3439_v27  ;;  %v4217_v2 = vld [vmem:[%s10479_s9 + $0x8] sm:$0xff]  ;;  %v4166_v27 = vld [vmem:[%s10472_s26 + $0x30] sm:$0xff] }
 0xf07   :  { %v3505_v31 = vmax.f32 %v3501_v25, 0.0  ;;  %v3445_v30 = vadd.f32 %v8323_v20, %v7785_v26  ;;  %v4165_v21 = vld [vmem:[%s10472_s26 + $0x28] sm:$0xff]  ;;  %v4220_v25 = vld [vmem:[%s10479_s9 + $0x20] sm:$0xff]  ;;  %v4167_v26 = vld [vmem:[%s10472_s26 + $0x38] sm:$0xff] }
 0xf08   :  { %v3504_v28 = vmax.f32 %v3500_v58, 0.0  ;;  %v3474_v33 = vmul.f32 %v3465_v8, %v3440_v23  ;;  %v4216_v8 = vld [vmem:[%s10479_s9] sm:$0xff]  ;;  %v4221_v20 = vld [vmem:[%s10479_s9 + $0x28] sm:$0xff]  ;;  %v4223_v58 = vld [vmem:[%s10479_s9 + $0x38] sm:$0xff] }
 0xf09   :  { %3509 = vst.msk [vmem:[%s10396_s3 + $0x8] sm:$0xff] %vm2693_vm1, %v3505_v31  ;;  %v3475_v32 = vmul.f32 %v3470_v24, %v3445_v30  ;;  %3518 = vrot.lane.b32.xlu0 %v3505_v31, %s9249_s6  ;;  %v4162_v24 = vld [vmem:[%s10472_s26 + $0x10] sm:$0xff] }
 0xf0a   :  { %3508 = vst.msk [vmem:[%s10396_s3] sm:$0xff] %vm2693_vm1, %v3504_v28  ;;  %v3502_v36 = vadd.f32 %v3493_v34, %v3474_v33  ;;  %3516 = vrot.lane.b32.xlu1 %v3504_v28, %s9249_s6  ;;  %v4222_v23 = vld [vmem:[%s10479_s9 + $0x30] sm:$0xff] }
 0xf0b   :  { %v3503_v19 = vadd.f32 %v3498_v35, %v3475_v32 }
 0xf0c   :  { %v3506_v6 = vmax.f32 %v3502_v36, 0.0 }
 0xf0d   :  { %v3507_v45 = vmax.f32 %v3503_v19, 0.0 }
 0xf0e   :  { %3510 = vst.msk [vmem:[%s10396_s3 + $0x10] sm:$0xff] %vm2693_vm1, %v3506_v6  ;;  %3520 = vrot.lane.b32.xlu1 %v3506_v6, %s9249_s6 }
 0xf0f   :  { %3511 = vst.msk [vmem:[%s10396_s3 + $0x18] sm:$0xff] %vm2693_vm1, %v3507_v45  ;;  %3522 = vrot.lane.b32.xlu0 %v3507_v45, %s9249_s6  ;;  %s7638_s3 = sld [smem:[%s11699_s0 + %s9305_s29]]   ;;  %vm6532_vm1 = vcmask 31744  }
 0xf7b   :  { %v3519_v59 = vpop.permute.xlu0 %3518 }
 0xf7c   :  { %v3529_v57 = vmax.f32 %v3505_v31, %v3519_v59  ;;  %v3517_v29 = vpop.permute.xlu1 %3516 }
 0xf7d   :  { %v3528_v50 = vmax.f32 %v3504_v28, %v3517_v29 }
 0xf7e   :  { %3538 = vrot.lane.b32.xlu0 %v3529_v57, %s9286_s20 }
 0xf7f   :  { %3536 = vrot.lane.b32.xlu1 %v3528_v50, %s9286_s20 }
 0xf80   :  { %v3521_v51 = vpop.permute.xlu1 %3520 }
 0xf81   :  { %v3530_v52 = vmax.f32 %v3506_v6, %v3521_v51  ;;  %v3523_v53 = vpop.permute.xlu0 %3522 }
 0xf82   :  { %v3531_v55 = vmax.f32 %v3507_v45, %v3523_v53 }
 0xf83   :  { %3540 = vrot.lane.b32.xlu1 %v3530_v52, %s9286_s20 }
 0xf84   :  { %3542 = vrot.lane.b32.xlu0 %v3531_v55, %s9286_s20 }
 0xff0   :  { %v3539_v61 = vpop.permute.xlu0 %3538 }
 0xff1   :  { %v3537_v62 = vpop.permute.xlu1 %3536  ;;  %v3549_v1 = vmax.f32 %v3529_v57, %v3539_v61 }
 0xff2   :  { %v3548_v63 = vmax.f32 %v3528_v50, %v3537_v62 }
 0xff4   :  { %8338 = vmatprep.mubr.msk.f32.mxu0 %vm3559_vm8, %v3548_v63 }
 0xff5   :  { %8339 = vmatmul.mubr.msk.f32.vlgmr.msra.gmra.mrb[12].mxu0 %vm3559_vm8, %v3549_v1  ;;  %v3541_v3 = vpop.permute.xlu1 %3540 }
 0xff6   :  { %v3550_v39 = vmax.f32 %v3530_v52, %v3541_v3  ;;  %v3543_v42 = vpop.permute.xlu0 %3542 }
 0xff7   :  { %v3551_v0 = vmax.f32 %v3531_v55, %v3543_v42 }
 0xff8   :  { %8341 = vmatprep.mubr.msk.f32.mxu0 %vm3559_vm8, %v3550_v39 }
 0xff9   :  { %8342 = vmatmul.mubr.msk.f32.gmra.mrb[14].mxu0 %vm3559_vm8, %v3551_v0 }
 0xffa   :  { %8352 = vmatprep.mubr.msk.f32.mxu0 %vm3265_vm0, %v3868_v14 }
0x10c8   :  { %v8340_v7 = vpop.f32.mrb[12].mxu0 }
0x10c9   :  { %3662 = vst.msk [vmem:[#allocation3 + $0x30] sm:$0xff] %vm3265_vm0, %v8340_v7  ;;  %v3642_v56 = vpop.f32.mrb[13].mxu0 }
0x10ca   :  { %3661 = vst.msk [vmem:[#allocation3] sm:$0xff] %vm3265_vm0, %v3642_v56 }
0x10cc   :  { %v8343_v54 = vpop.f32.mrb[14].mxu0 }
0x10cd   :  { %3664 = vst.msk [vmem:[#allocation3 + $0x90] sm:$0xff] %vm3265_vm0, %v8343_v54  ;;  %v3652_v60 = vpop.f32.mrb[15].mxu0 }
0x10ce   :  { %3663 = vst.msk [vmem:[#allocation3 + $0x60] sm:$0xff] %vm3265_vm0, %v3652_v60 }
0x10d0   :  { %v3747_v9 = vld [vmem:[#allocation3 + $0x30] sm:$0xff] }
0x10d1   :  { %3756 = vrot.lane.b32.xlu0 %v3747_v9, %s9300_s18  ;;  %v3746_v10 = vld [vmem:[#allocation3] sm:$0xff]  ;;  %3671 = vst.msk [vmem:[#allocation2 + $0x28] sm:$0xff] %vm3669_vm10, %v3747_v9 }
0x10d2   :  { %3754 = vrot.lane.b32.xlu1 %v3746_v10, %s9300_s18  ;;  %3670 = vst.msk [vmem:[#allocation2] sm:$0xff] %vm3669_vm10, %v3746_v10 }
0x10d3   :  { %4282 = vst.msk [vmem:[#allocation3 + $0x30] sm:$0xff] %vm4280_vm11, %v9256_v5  ;;  %4281 = vst.msk [vmem:[#allocation3] sm:$0xff] %vm4280_vm11, %v9256_v5 }
0x10d4   :  { %v3749_v11 = vld [vmem:[#allocation3 + $0x90] sm:$0xff] }
0x10d5   :  { %3780 = vrot.lane.b32.xlu0 %v3747_v9, %s9286_s20  ;;  %v3748_v12 = vld [vmem:[#allocation3 + $0x60] sm:$0xff]  ;;  %3673 = vst.msk [vmem:[#allocation2 + $0x78] sm:$0xff] %vm3669_vm10, %v3749_v11 }
0x10d6   :  { %3778 = vrot.lane.b32.xlu1 %v3746_v10, %s9286_s20  ;;  %3672 = vst.msk [vmem:[#allocation2 + $0x50] sm:$0xff] %vm3669_vm10, %v3748_v12 }
0x10d7   :  { %4283 = vst.msk [vmem:[#allocation3 + $0x60] sm:$0xff] %vm4280_vm11, %v9256_v5  ;;  %4284 = vst.msk [vmem:[#allocation3 + $0x90] sm:$0xff] %vm4280_vm11, %v9256_v5 }
0x10d8   :  { %v3891_v36 = vld [vmem:[#allocation2 + $0x28] sm:$0xff] }
0x10d9   :  { %3684 = vrot.lane.b32.xlu0 %v3747_v9, %s9249_s6  ;;  %v3890_v35 = vld [vmem:[#allocation2] sm:$0xff] }
0x10da   :  { %3682 = vrot.lane.b32.xlu1 %v3746_v10, %s9249_s6  ;;  %v8867_v40 = vpack.c.bf16 %v3891_v36, %v3890_v35 }
0x10dc   :  { %v3893_v51 = vld [vmem:[#allocation2 + $0x78] sm:$0xff] }
0x10dd   :  { %3804 = vrot.lane.b32.xlu0 %v3747_v9, %s9288_s22  ;;  %v3892_v50 = vld [vmem:[#allocation2 + $0x50] sm:$0xff] }
0x10de   :  { %3802 = vrot.lane.b32.xlu1 %v3746_v10, %s9288_s22  ;;  %v8871_v63 = vpack.c.bf16 %v3893_v51, %v3892_v50  ;;  %v3873_v51 = vld [vmem:[%s10460_s27 + $0x38] sm:$0xff] }
0x10e1   :  { %3708 = vrot.lane.b32.xlu0 %v3747_v9, %s9250_s7 }
0x10e2   :  { %3706 = vrot.lane.b32.xlu1 %v3746_v10, %s9250_s7 }
0x10e5   :  { %3828 = vrot.lane.b32.xlu0 %v3747_v9, %s9301_s12 }
0x10e6   :  { %3826 = vrot.lane.b32.xlu1 %v3746_v10, %s9301_s12 }
0x10e9   :  { %3760 = vrot.lane.b32.xlu0 %v3749_v11, %s9300_s18 }
0x10ea   :  { %3758 = vrot.lane.b32.xlu1 %v3748_v12, %s9300_s18 }
0x10ed   :  { %3784 = vrot.lane.b32.xlu0 %v3749_v11, %s9286_s20 }
0x10ee   :  { %3730 = vrot.lane.b32.xlu1 %v3746_v10, %s9302_s19 }
0x10f1   :  { %3688 = vrot.lane.b32.xlu0 %v3749_v11, %s9249_s6 }
0x10f2   :  { %3782 = vrot.lane.b32.xlu1 %v3748_v12, %s9286_s20 }
0x10f5   :  { %3808 = vrot.lane.b32.xlu0 %v3749_v11, %s9288_s22 }
0x10f6   :  { %3686 = vrot.lane.b32.xlu1 %v3748_v12, %s9249_s6 }
0x10f9   :  { %3712 = vrot.lane.b32.xlu0 %v3749_v11, %s9250_s7 }
0x10fa   :  { %3806 = vrot.lane.b32.xlu1 %v3748_v12, %s9288_s22 }
0x10fd   :  { %3732 = vrot.lane.b32.xlu0 %v3747_v9, %s9302_s19 }
0x10fe   :  { %3710 = vrot.lane.b32.xlu1 %v3748_v12, %s9250_s7 }
0x1101   :  { %3832 = vrot.lane.b32.xlu0 %v3749_v11, %s9301_s12 }
0x1102   :  { %3830 = vrot.lane.b32.xlu1 %v3748_v12, %s9301_s12 }
0x1105   :  { %3736 = vrot.lane.b32.xlu0 %v3749_v11, %s9302_s19 }
0x1106   :  { %3734 = vrot.lane.b32.xlu1 %v3748_v12, %s9302_s19 }
0x1109   :  { %3852 = vrot.lane.b32.xlu0 %v3747_v9, %s9272_s8 }
0x110a   :  { %3850 = vrot.lane.b32.xlu1 %v3746_v10, %s9272_s8 }
0x110d   :  { %3856 = vrot.lane.b32.xlu0 %v3749_v11, %s9272_s8 }
0x110e   :  { %3854 = vrot.lane.b32.xlu1 %v3748_v12, %s9272_s8 }
0x1111   :  { %4175 = vperm.xlu0 %9233, %v4161_v15  }
0x1112   :  { %4170 = vperm.xlu1 %9232, %v4160_v16  }
0x1115   :  { %4231 = vperm.xlu0 %9233, %v4217_v2  }
0x1116   :  { %4226 = vperm.xlu1 %9232, %v4216_v8  }
0x1119   :  { %4185 = vperm.xlu0 %9233, %v4163_v4  }
0x111a   :  { %4180 = vperm.xlu1 %9232, %v4162_v24  }
0x111d   :  { %4241 = vperm.xlu0 %9233, %v4219_v17  }
0x111e   :  { %4236 = vperm.xlu1 %9232, %v4218_v18  }
0x1121   :  { %4195 = vperm.xlu0 %9233, %v4165_v21  }
0x1122   :  { %4190 = vperm.xlu1 %9232, %v4164_v22  }
0x1125   :  { %4251 = vperm.xlu0 %9233, %v4221_v20  }
0x1126   :  { %4246 = vperm.xlu1 %9232, %v4220_v25  }
0x1129   :  { %4205 = vperm.xlu0 %9233, %v4167_v26  }
0x112a   :  { %4200 = vperm.xlu1 %9232, %v4166_v27  }
0x112d   :  { %4261 = vperm.xlu0 %9233, %v4223_v58  }
0x112e   :  { %4256 = vperm.xlu1 %9232, %v4222_v23  }
0x1143   :  { %v3757_v31 = vpop.permute.xlu0 %3756 }
0x1144   :  { %3767 = vst.msk [vmem:[#allocation2 + $0x2a8] sm:$0xff] %vm3669_vm10, %v3757_v31  ;;  %v3755_v30 = vpop.permute.xlu1 %3754 }
0x1145   :  { %3766 = vst.msk [vmem:[#allocation2 + $0x280] sm:$0xff] %vm3669_vm10, %v3755_v30 }
0x1147   :  { %v3781_v28 = vpop.permute.xlu0 %3780 }
0x1148   :  { %3791 = vst.msk [vmem:[#allocation2 + $0x348] sm:$0xff] %vm3669_vm10, %v3781_v28  ;;  %v3779_v33 = vpop.permute.xlu1 %3778 }
0x1149   :  { %3790 = vst.msk [vmem:[#allocation2 + $0x320] sm:$0xff] %vm3669_vm10, %v3779_v33 }
0x114b   :  { %v3685_v34 = vpop.permute.xlu0 %3684  ;;  %v3907_v32 = vld [vmem:[#allocation2 + $0x2a8] sm:$0xff] }
0x114c   :  { %3695 = vst.msk [vmem:[#allocation2 + $0xc8] sm:$0xff] %vm3669_vm10, %v3685_v34  ;;  %v3683_v19 = vpop.permute.xlu1 %3682  ;;  %v3906_v37 = vld [vmem:[#allocation2 + $0x280] sm:$0xff] }
0x114d   :  { %3694 = vst.msk [vmem:[#allocation2 + $0xa0] sm:$0xff] %vm3669_vm10, %v3683_v19  ;;  %v8865_v38 = vpack.c.bf16 %v3907_v32, %v3906_v37 }
0x114f   :  { %v3805_v6 = vpop.permute.xlu0 %3804  ;;  %8866 = vmatprep.subr.bf16.mxu1 %v8865_v38  ;;  %v3911_v61 = vld [vmem:[#allocation2 + $0x348] sm:$0xff] }
0x1150   :  { %3815 = vst.msk [vmem:[#allocation2 + $0x3e8] sm:$0xff] %vm3669_vm10, %v3805_v6  ;;  %8868 = vmatpush3.bf16.msra.mxu1 %v8867_v40  ;;  %v3803_v41 = vpop.permute.xlu1 %3802  ;;  %v3910_v55 = vld [vmem:[#allocation2 + $0x320] sm:$0xff] }
0x1151   :  { %3814 = vst.msk [vmem:[#allocation2 + $0x3c0] sm:$0xff] %vm3669_vm10, %v3803_v41  ;;  %v8873_v3 = vpack.c.bf16 %v3911_v61, %v3910_v55  ;;  %v3871_v55 = vld [vmem:[%s10460_s27 + $0x28] sm:$0xff]  ;;  %v3876_v61 = vld [vmem:[%s10460_s27 + $0x50] sm:$0xff] }
0x1153   :  { %v3709_v43 = vpop.permute.xlu0 %3708  ;;  %v3895_v42 = vld [vmem:[#allocation2 + $0xc8] sm:$0xff] }
0x1154   :  { %3719 = vst.msk [vmem:[#allocation2 + $0x168] sm:$0xff] %vm3669_vm10, %v3709_v43  ;;  %v3707_v45 = vpop.permute.xlu1 %3706  ;;  %v3894_v39 = vld [vmem:[#allocation2 + $0xa0] sm:$0xff] }
0x1155   :  { %3718 = vst.msk [vmem:[#allocation2 + $0x140] sm:$0xff] %vm3669_vm10, %v3707_v45  ;;  %v8875_v7 = vpack.c.bf16 %v3895_v42, %v3894_v39  ;;  %v3880_v39 = vld [vmem:[%s10460_s27 + $0x70] sm:$0xff]  ;;  %v3878_v42 = vld [vmem:[%s10460_s27 + $0x60] sm:$0xff] }
0x1157   :  { %v3829_v46 = vpop.permute.xlu0 %3828  ;;  %v3915_v13 = vld [vmem:[#allocation2 + $0x3e8] sm:$0xff] }
0x1158   :  { %3839 = vst.msk [vmem:[#allocation2 + $0x488] sm:$0xff] %vm3669_vm10, %v3829_v46  ;;  %v3827_v44 = vpop.permute.xlu1 %3826  ;;  %v3914_v12 = vld [vmem:[#allocation2 + $0x3c0] sm:$0xff] }
0x1159   :  { %3838 = vst.msk [vmem:[#allocation2 + $0x460] sm:$0xff] %vm3669_vm10, %v3827_v44  ;;  %v8881_v8 = vpack.c.bf16 %v3915_v13, %v3914_v12  ;;  %v3866_v44 = vld [vmem:[%s10460_s27] sm:$0xff]  ;;  %v3887_v12 = vld [vmem:[%s10460_s27 + $0xa8] sm:$0xff] }
0x115b   :  { %v3761_v47 = vpop.permute.xlu0 %3760  ;;  %v3899_v24 = vld [vmem:[#allocation2 + $0x168] sm:$0xff] }
0x115c   :  { %3769 = vst.msk [vmem:[#allocation2 + $0x2f8] sm:$0xff] %vm3669_vm10, %v3761_v47  ;;  %v3759_v48 = vpop.permute.xlu1 %3758  ;;  %v3898_v4 = vld [vmem:[#allocation2 + $0x140] sm:$0xff] }
0x115d   :  { %3768 = vst.msk [vmem:[#allocation2 + $0x2d0] sm:$0xff] %vm3669_vm10, %v3759_v48  ;;  %v8883_v20 = vpack.c.bf16 %v3899_v24, %v3898_v4 }
0x115f   :  { %v3785_v49 = vpop.permute.xlu0 %3784  ;;  %v3919_v58 = vld [vmem:[#allocation2 + $0x488] sm:$0xff] }
0x1160   :  { %3793 = vst.msk [vmem:[#allocation2 + $0x398] sm:$0xff] %vm3669_vm10, %v3785_v49  ;;  %v3731_v59 = vpop.permute.xlu1 %3730  ;;  %v3918_v27 = vld [vmem:[#allocation2 + $0x460] sm:$0xff] }
0x1161   :  { %3742 = vst.msk [vmem:[#allocation2 + $0x1e0] sm:$0xff] %vm3669_vm10, %v3731_v59  ;;  %v8889_v33 = vpack.c.bf16 %v3919_v58, %v3918_v27  ;;  %v3870_v49 = vld [vmem:[%s10460_s27 + $0x20] sm:$0xff] }
0x1163   :  { %v3689_v57 = vpop.permute.xlu0 %3688  ;;  %v3909_v29 = vld [vmem:[#allocation2 + $0x2f8] sm:$0xff] }
0x1164   :  { %3697 = vst.msk [vmem:[#allocation2 + $0x118] sm:$0xff] %vm3669_vm10, %v3689_v57  ;;  %v3783_v52 = vpop.permute.xlu1 %3782  ;;  %v3908_v53 = vld [vmem:[#allocation2 + $0x2d0] sm:$0xff]  ;;  %v3869_v57 = vld [vmem:[%s10460_s27 + $0x18] sm:$0xff] }
0x1165   :  { %3792 = vst.msk [vmem:[#allocation2 + $0x370] sm:$0xff] %vm3669_vm10, %v3783_v52  ;;  %v8869_v62 = vpack.c.bf16 %v3909_v29, %v3908_v53  ;;  %v3872_v53 = vld [vmem:[%s10460_s27 + $0x30] sm:$0xff] }
0x1167   :  { %v3809_v1 = vpop.permute.xlu0 %3808  ;;  %8870 = vmatprep.subr.bf16.mxu1 %v8869_v62  ;;  %v3913_v9 = vld [vmem:[#allocation2 + $0x398] sm:$0xff]  ;;  %v3874_v62 = vld [vmem:[%s10460_s27 + $0x40] sm:$0xff] }
0x1168   :  { %3817 = vst.msk [vmem:[#allocation2 + $0x438] sm:$0xff] %vm3669_vm10, %v3809_v1  ;;  %8872 = vmatpush3.bf16.msra.mxu1 %v8871_v63  ;;  %v3687_v0 = vpop.permute.xlu1 %3686  ;;  %v3902_v19 = vld [vmem:[#allocation2 + $0x1e0] sm:$0xff]  ;;  %v3875_v63 = vld [vmem:[%s10460_s27 + $0x48] sm:$0xff]  ;;  %v3877_v1 = vld [vmem:[%s10460_s27 + $0x58] sm:$0xff] }
0x1169   :  { %3696 = vst.msk [vmem:[#allocation2 + $0xf0] sm:$0xff] %vm3669_vm10, %v3687_v0  ;;  %8874 = vmatprep.subr.bf16.mxu1 %v8873_v3  ;;  %v3879_v3 = vld [vmem:[%s10460_s27 + $0x68] sm:$0xff] }
0x116a   :  { %v3883_v0 = vld [vmem:[%s10460_s27 + $0x88] sm:$0xff] }
0x116b   :  { %v3713_v56 = vpop.permute.xlu0 %3712  ;;  %v3897_v16 = vld [vmem:[#allocation2 + $0x118] sm:$0xff] }
0x116c   :  { %3721 = vst.msk [vmem:[#allocation2 + $0x1b8] sm:$0xff] %vm3669_vm10, %v3713_v56  ;;  %8876 = vmatpush3.bf16.msra.mxu1 %v8875_v7  ;;  %v3807_v54 = vpop.permute.xlu1 %3806  ;;  %v3912_v60 = vld [vmem:[#allocation2 + $0x370] sm:$0xff]  ;;  %v3882_v7 = vld [vmem:[%s10460_s27 + $0x80] sm:$0xff] }
0x116d   :  { %3816 = vst.msk [vmem:[#allocation2 + $0x410] sm:$0xff] %vm3669_vm10, %v3807_v54  ;;  %v8877_v10 = vpack.c.bf16 %v3913_v9, %v3912_v60  ;;  %v3886_v56 = vld [vmem:[%s10460_s27 + $0xa0] sm:$0xff]  ;;  %v3881_v54 = vld [vmem:[%s10460_s27 + $0x78] sm:$0xff] }
0x116e   :  { %v3885_v60 = vld [vmem:[%s10460_s27 + $0x98] sm:$0xff] }
0x116f   :  { %v3733_v11 = vpop.permute.xlu0 %3732  ;;  %8878 = vmatprep.subr.bf16.mxu1 %v8877_v10  ;;  %v3917_v22 = vld [vmem:[#allocation2 + $0x438] sm:$0xff]  ;;  %v3884_v10 = vld [vmem:[%s10460_s27 + $0x90] sm:$0xff] }
0x1170   :  { %3743 = vst.msk [vmem:[#allocation2 + $0x208] sm:$0xff] %vm3669_vm10, %v3733_v11  ;;  %v3711_v14 = vpop.permute.xlu1 %3710  ;;  %v3896_v15 = vld [vmem:[#allocation2 + $0xf0] sm:$0xff]  ;;  %v3889_v9 = vld [vmem:[%s10460_s27 + $0xb8] sm:$0xff] }
0x1171   :  { %3720 = vst.msk [vmem:[#allocation2 + $0x190] sm:$0xff] %vm3669_vm10, %v3711_v14  ;;  %v8879_v2 = vpack.c.bf16 %v3897_v16, %v3896_v15  ;;  %v3888_v11 = vld [vmem:[%s10460_s27 + $0xb0] sm:$0xff]  ;;  %s9308_s27 = smov 24  }
0x1172   :  { %s10790_s30 = sld [smem:[%s11699_s0 + %s9308_s27]]  }
0x1173   :  { %v3833_v17 = vpop.permute.xlu0 %3832  ;;  %8880 = vmatpush3.bf16.msra.mxu1 %v8879_v2  ;;  %v3901_v30 = vld [vmem:[#allocation2 + $0x1b8] sm:$0xff] }
0x1174   :  { %3841 = vst.msk [vmem:[#allocation2 + $0x4d8] sm:$0xff] %vm3669_vm10, %v3833_v17  ;;  %8882 = vmatprep.subr.bf16.mxu1 %v8881_v8  ;;  %v3831_v18 = vpop.permute.xlu1 %3830  ;;  %v3916_v21 = vld [vmem:[#allocation2 + $0x410] sm:$0xff] }
0x1175   :  { %3840 = vst.msk [vmem:[#allocation2 + $0x4b0] sm:$0xff] %vm3669_vm10, %v3831_v18  ;;  %v8885_v25 = vpack.c.bf16 %v3917_v22, %v3916_v21 }
0x1177   :  { %v3737_v26 = vpop.permute.xlu0 %3736  ;;  %8884 = vmatpush3.bf16.msra.mxu1 %v8883_v20  ;;  %v3903_v34 = vld [vmem:[#allocation2 + $0x208] sm:$0xff] }
0x1178   :  { %3745 = vst.msk [vmem:[#allocation2 + $0x258] sm:$0xff] %vm3669_vm10, %v3737_v26  ;;  %8886 = vmatprep.subr.bf16.mxu1 %v8885_v25  ;;  %v3735_v23 = vpop.permute.xlu1 %3734  ;;  %v3900_v31 = vld [vmem:[#allocation2 + $0x190] sm:$0xff]  ;;  %v8891_v38 = vpack.c.bf16 %v3903_v34, %v3902_v19 }
0x1179   :  { %3744 = vst.msk [vmem:[#allocation2 + $0x230] sm:$0xff] %vm3669_vm10, %v3735_v23  ;;  %v8887_v28 = vpack.c.bf16 %v3901_v30, %v3900_v31 }
0x117b   :  { %v3853_v32 = vpop.permute.xlu0 %3852  ;;  %8888 = vmatpush3.bf16.msra.mxu1 %v8887_v28  ;;  %v3921_v35 = vld [vmem:[#allocation2 + $0x4d8] sm:$0xff] }
0x117c   :  { %3863 = vst.msk [vmem:[#allocation2 + $0x528] sm:$0xff] %vm3669_vm10, %v3853_v32  ;;  %8890 = vmatprep.subr.bf16.mxu1 %v8889_v33  ;;  %v3851_v36 = vpop.permute.xlu1 %3850  ;;  %v3920_v37 = vld [vmem:[#allocation2 + $0x4b0] sm:$0xff] }
0x117d   :  { %3862 = vst.msk [vmem:[#allocation2 + $0x500] sm:$0xff] %vm3669_vm10, %v3851_v36  ;;  %v8893_v40 = vpack.c.bf16 %v3921_v35, %v3920_v37 }
0x117f   :  { %v3857_v6 = vpop.permute.xlu0 %3856  ;;  %8892 = vmatpush3.bf16.msra.mxu1 %v8891_v38  ;;  %v3905_v41 = vld [vmem:[#allocation2 + $0x258] sm:$0xff] }
0x1180   :  { %3865 = vst.msk [vmem:[#allocation2 + $0x578] sm:$0xff] %vm3669_vm10, %v3857_v6  ;;  %8894 = vmatprep.subr.bf16.mxu1 %v8893_v40  ;;  %v3855_v43 = vpop.permute.xlu1 %3854  ;;  %v3904_v45 = vld [vmem:[#allocation2 + $0x230] sm:$0xff]  ;;  %v10573_v6 = vld [vmem:[%s7638_s3] ss:$0 sm:$0xff]  ;;  %s9312_s3 = smov 25  }
0x1181   :  { %3864 = vst.msk [vmem:[#allocation2 + $0x550] sm:$0xff] %vm3669_vm10, %v3855_v43  ;;  %v8895_v46 = vpack.c.bf16 %v3905_v41, %v3904_v45  ;;  %s11114_s13 = sld [smem:[%s11699_s0 + %s9312_s3]]  }
0x1183   :  { %8896 = vmatpush3.bf16.msra.mxu1 %v8895_v46  ;;  %v3923_v47 = vld [vmem:[#allocation2 + $0x528] sm:$0xff] }
0x1184   :  { %v3922_v48 = vld [vmem:[#allocation2 + $0x500] sm:$0xff] }
0x1185   :  { %v8897_v59 = vpack.c.bf16 %v3923_v47, %v3922_v48 }
0x1186   :  { %4015 = vmatmul.mubr.f32.vlgmr.msra.gmra.mrb[34].mxu1 %v3866_v44 }
0x1187   :  { %8898 = vmatprep.subr.bf16.mxu0 %v8897_v59  ;;  %4019 = vmatprep.mubr.f32.mxu1 %v3870_v49  ;;  %v3925_v29 = vld [vmem:[#allocation2 + $0x578] sm:$0xff] }
0x1188   :  { %8900 = vmatpush3.bf16.msra.mxu0 %v8897_v59  ;;  %v3924_v50 = vld [vmem:[#allocation2 + $0x550] sm:$0xff] }
0x1189   :  { %v8901_v52 = vpack.c.bf16 %v3925_v29, %v3924_v50 }
0x118a   :  { %4020 = vmatmul.mubr.f32.gmra.mrb[36].mxu1 %v3869_v57 }
0x118b   :  { %8902 = vmatprep.subr.bf16.mxu0 %v8901_v52  ;;  %4024 = vmatprep.mubr.f32.mxu1 %v3873_v51 }
0x118c   :  { %8904 = vmatpush3.bf16.msra.mxu0 %v8901_v52 }
0x118e   :  { %4025 = vmatmul.mubr.f32.gmra.mrb[38].mxu1 %v3872_v53 }
0x118f   :  { %8353 = vmatmul.mubr.msk.f32.vlgmr.msra.gmra.mrb[16].mxu0 %vm3265_vm0, %v3871_v55  ;;  %4029 = vmatprep.mubr.f32.mxu1 %v3876_v61 }
0x1190   :  { %8355 = vmatprep.mubr.msk.f32.mxu0 %vm3265_vm0, %v3874_v62  ;;  %v4176_v14 = vpop.permute.xlu0 %4175 }
0x1191   :  { %v4171_v13 = vpop.permute.xlu1 %4170 }
0x1192   :  { %4030 = vmatmul.mubr.f32.gmra.mrb[40].mxu1 %v3875_v63 }
0x1193   :  { %8356 = vmatmul.mubr.msk.f32.gmra.mrb[18].mxu0 %vm3265_vm0, %v3877_v1  ;;  %4034 = vmatprep.mubr.f32.mxu1 %v3879_v3 }
0x1194   :  { %8358 = vmatprep.mubr.msk.f32.mxu0 %vm3265_vm0, %v3880_v39  ;;  %v4232_v16 = vpop.permute.xlu0 %4231 }
0x1195   :  { %v4227_v15 = vpop.permute.xlu1 %4226 }
0x1196   :  { %4035 = vmatmul.mubr.f32.gmra.mrb[42].mxu1 %v3878_v42 }
0x1197   :  { %8359 = vmatmul.mubr.msk.f32.gmra.mrb[20].mxu0 %vm3265_vm0, %v3883_v0  ;;  %4039 = vmatprep.mubr.f32.mxu1 %v3882_v7 }
0x1198   :  { %8361 = vmatprep.mubr.msk.f32.mxu0 %vm3265_vm0, %v3886_v56  ;;  %v4186_v17 = vpop.permute.xlu0 %4185 }
0x1199   :  { %v4181_v2 = vpop.permute.xlu1 %4180 }
0x119a   :  { %4040 = vmatmul.mubr.f32.gmra.mrb[44].mxu1 %v3881_v54 }
0x119b   :  { %4044 = vmatprep.mubr.f32.mxu1 %v3885_v60  ;;  %8362 = vmatmul.mubr.msk.f32.gmra.mrb[22].mxu0 %vm3265_vm0, %v3889_v9 }
0x119c   :  { %v4242_v58 = vpop.permute.xlu0 %4241 }
0x119d   :  { %v4237_v22 = vpop.permute.xlu1 %4236 }
0x119e   :  { %4045 = vmatmul.mubr.f32.gmra.mrb[46].mxu1 %v3884_v10 }
0x119f   :  { %4049 = vmatprep.mubr.f32.mxu1 %v3888_v11 }
0x11a0   :  { %v4196_v45 = vpop.permute.xlu0 %4195 }
0x11a1   :  { %v4191_v33 = vpop.permute.xlu1 %4190 }
0x11a2   :  { %4050 = vmatmul.mubr.f32.gmra.mrb[48].mxu1 %v3887_v12 }
0x11a4   :  { %v4252_v60 = vpop.permute.xlu0 %4251 }
0x11a5   :  { %v4247_v53 = vpop.permute.xlu1 %4246 }
0x1259   :  { %v7837_v8 = vpop.f32.mrb[34].mxu1 }
0x125a   :  { %v7838_v4 = vpop.f32.mrb[35].mxu1 }
0x125b   :  { %v7839_v24 = vadd.f32 %v7838_v4, %v7837_v8 }
0x125d   :  { %v7840_v18 = vpop.f32.mrb[36].mxu1 }
0x125e   :  { %v7841_v21 = vpop.f32.mrb[37].mxu1 }
0x125f   :  { %v7842_v20 = vadd.f32 %v7841_v21, %v7840_v18  ;;  %v4206_v21 = vpop.permute.xlu0 %4205 }
0x1261   :  { %v7843_v25 = vpop.f32.mrb[38].mxu1 }
0x1262   :  { %v8354_v26 = vpop.f32.mrb[16].mxu0  ;;  %v7844_v27 = vpop.f32.mrb[39].mxu1 }
0x1263   :  { %v4127_v23 = vadd.f32 %v8354_v26, %v7842_v20  ;;  %v4121_v31 = vpop.f32.mrb[17].mxu0  ;;  %v7845_v30 = vadd.f32 %v7844_v27, %v7843_v25 }
0x1264   :  { %v4122_v28 = vadd.f32 %v7839_v24, %v4121_v31 }
0x1265   :  { %v4209_v34 = vmul.f32 %v4176_v14, %v4127_v23  ;;  %v7846_v32 = vpop.f32.mrb[40].mxu1  ;;  %v4201_v14 = vpop.permute.xlu1 %4200 }
0x1266   :  { %v4208_v35 = vmul.f32 %v4171_v13, %v4122_v28  ;;  %v7847_v36 = vpop.f32.mrb[41].mxu1  ;;  %v8357_v19 = vpop.f32.mrb[18].mxu0 }
0x1267   :  { %v4265_v37 = vadd.f32 %v4232_v16, %v4209_v34  ;;  %v7848_v38 = vadd.f32 %v7847_v36, %v7846_v32  ;;  %v4131_v40 = vpop.f32.mrb[19].mxu0 }
0x1268   :  { %v4264_v41 = vadd.f32 %v4227_v15, %v4208_v35  ;;  %v4132_v43 = vadd.f32 %v7845_v30, %v4131_v40 }
0x1269   :  { %v4273_v46 = vmax.f32 %v4265_v37, 0.0  ;;  %v4137_v44 = vadd.f32 %v8357_v19, %v7848_v38  ;;  %v7849_v47 = vpop.f32.mrb[42].mxu1  ;;  %v4257_v27 = vpop.permute.xlu1 %4256 }
0x126a   :  { %v4272_v48 = vmax.f32 %v4264_v41, 0.0  ;;  %v4210_v49 = vmul.f32 %v4181_v2, %v4132_v43  ;;  %v7850_v59 = vpop.f32.mrb[43].mxu1  ;;  %v8360_v57 = vpop.f32.mrb[20].mxu0 }
0x126b   :  { %v4297_v29 = vmul.f32 %v10573_v6, %v4273_v46  ;;  %v4211_v50 = vmul.f32 %v4186_v17, %v4137_v44  ;;  %v7851_v51 = vadd.f32 %v7850_v59, %v7849_v47  ;;  %v4141_v52 = vpop.f32.mrb[21].mxu0 }
0x126c   :  { %v4296_v55 = vmul.f32 %v10573_v6, %v4272_v48  ;;  %v4266_v61 = vadd.f32 %v4237_v22, %v4210_v49 }
0x126d   :  { %v4267_v62 = vadd.f32 %v4242_v58, %v4211_v50  ;;  %v4142_v63 = vadd.f32 %v7851_v51, %v4141_v52  ;;  %v7852_v1 = vpop.f32.mrb[44].mxu1  ;;  %4314 = vrot.lane.b32.xlu0 %v4297_v29, %s9266_s1 }
0x126e   :  { %v4274_v3 = vmax.f32 %v4266_v61, 0.0  ;;  %v7853_v39 = vpop.f32.mrb[45].mxu1  ;;  %4312 = vrot.lane.b32.xlu1 %v4296_v55, %s9266_s1  ;;  %v8363_v42 = vpop.f32.mrb[22].mxu0 }
0x126f   :  { %v4275_v0 = vmax.f32 %v4267_v62, 0.0  ;;  %v4212_v7 = vmul.f32 %v4191_v33, %v4142_v63  ;;  %v7854_v56 = vadd.f32 %v7853_v39, %v7852_v1  ;;  %v4151_v54 = vpop.f32.mrb[23].mxu0  ;;  %v4262_v33 = vpop.permute.xlu0 %4261 }
0x1270   :  { %v4298_v9 = vmul.f32 %v10573_v6, %v4274_v3 }
0x1271   :  { %v4299_v10 = vmul.f32 %v10573_v6, %v4275_v0  ;;  %v4268_v11 = vadd.f32 %v4247_v53, %v4212_v7  ;;  %v4147_v12 = vadd.f32 %v8360_v57, %v7854_v56  ;;  %v7855_v13 = vpop.f32.mrb[46].mxu1  ;;  %v5207_v56 = vld [vmem:[%s10779_s24 + $0x8] sm:$0xff] }
0x1272   :  { %v7856_v15 = vpop.f32.mrb[47].mxu1  ;;  %4316 = vrot.lane.b32.xlu1 %v4298_v9, %s9266_s1 }
0x1273   :  { %v4276_v16 = vmax.f32 %v4268_v11, 0.0  ;;  %v4213_v2 = vmul.f32 %v4196_v45, %v4147_v12  ;;  %v7857_v8 = vadd.f32 %v7856_v15, %v7855_v13  ;;  %4318 = vrot.lane.b32.xlu0 %v4299_v10, %s9266_s1  ;;  %v5263_v13 = vld [vmem:[%s10790_s30 + $0x8] sm:$0xff]  ;;  %v5262_v15 = vld [vmem:[%s10790_s30] sm:$0xff] }
0x1275   :  { %v4300_v4 = vmul.f32 %v10573_v6, %v4276_v16  ;;  %v4269_v24 = vadd.f32 %v4252_v60, %v4213_v2  ;;  %v4152_v17 = vadd.f32 %v7857_v8, %v4151_v54  ;;  %v7858_v18 = vpop.f32.mrb[48].mxu1  ;;  %v5206_v60 = vld [vmem:[%s10779_s24] sm:$0xff] }
0x1276   :  { %v7859_v22 = vpop.f32.mrb[49].mxu1 }
0x1277   :  { %v4277_v20 = vmax.f32 %v4269_v24, 0.0  ;;  %v4214_v25 = vmul.f32 %v4201_v14, %v4152_v17  ;;  %v7860_v26 = vadd.f32 %v7859_v22, %v7858_v18  ;;  %4320 = vrot.lane.b32.xlu1 %v4300_v4, %s9266_s1  ;;  %v5209_v24 = vld [vmem:[%s10779_s24 + $0x18] sm:$0xff]  ;;  %v5208_v18 = vld [vmem:[%s10779_s24 + $0x10] sm:$0xff] }
0x1278   :  { %v5265_v22 = vld [vmem:[%s10790_s30 + $0x18] sm:$0xff] }
0x1279   :  { %v4270_v58 = vadd.f32 %v4257_v27, %v4214_v25  ;;  %v4157_v23 = vadd.f32 %v8363_v42, %v7860_v26  ;;  %v4301_v31 = vmul.f32 %v10573_v6, %v4277_v20  ;;  %v5264_v25 = vld [vmem:[%s10790_s30 + $0x10] sm:$0xff]  ;;  %v5211_v27 = vld [vmem:[%s10779_s24 + $0x28] sm:$0xff] }
0x127b   :  { %v4278_v30 = vmax.f32 %v4270_v58, 0.0  ;;  %v4215_v28 = vmul.f32 %v4206_v21, %v4157_v23  ;;  %4322 = vrot.lane.b32.xlu0 %v4301_v31, %s9266_s1  ;;  %v5210_v23 = vld [vmem:[%s10779_s24 + $0x20] sm:$0xff] }
0x127d   :  { %v4302_v34 = vmul.f32 %v10573_v6, %v4278_v30  ;;  %v4271_v32 = vadd.f32 %v4262_v33, %v4215_v28  ;;  %v5267_v30 = vld [vmem:[%s10790_s30 + $0x28] sm:$0xff]  ;;  %v5266_v33 = vld [vmem:[%s10790_s30 + $0x20] sm:$0xff] }
0x127f   :  { %v4279_v35 = vmax.f32 %v4271_v32, 0.0  ;;  %4324 = vrot.lane.b32.xlu1 %v4302_v34, %s9266_s1 }
0x1281   :  { %v4303_v36 = vmul.f32 %v10573_v6, %v4279_v35 }
0x1283   :  { %4326 = vrot.lane.b32.xlu0 %v4303_v36, %s9266_s1  ;;  %s9306_s1 = smov 22   ;;  %v5213_v36 = vld [vmem:[%s10779_s24 + $0x38] sm:$0xff] }
0x1284   :  { %s10738_s16 = sld [smem:[%s11699_s0 + %s9306_s1]]  }
0x128a   :  { %v4755_v50 = vld [vmem:[%s10738_s16 + $0x8] sm:$0xff]  ;;  %v4757_v51 = vld [vmem:[%s10738_s16 + $0x18] sm:$0xff] }
0x128b   :  { %4955 = vmatprep.mubr.f32.mxu0 %v4755_v50  ;;  %5060 = vmatprep.mubr.f32.mxu1 %v4757_v51 }
0x12df   :  { %v4315_v19 = vpop.permute.xlu0 %4314 }
0x12e0   :  { %4338 = vst.msk [vmem:[#allocation3 + $0x30] sm:$0xff] %vm4336_vm12, %v4315_v19  ;;  %v4313_v37 = vpop.permute.xlu1 %4312 }
0x12e1   :  { %4347 = vst.msk [vmem:[#allocation3 + $0x30] sm:$0xff] %vm4345_vm13, %v9256_v5 }
0x12e2   :  { %4337 = vst.msk [vmem:[#allocation3] sm:$0xff] %vm4336_vm12, %v4313_v37  ;;  %v5212_v37 = vld [vmem:[%s10779_s24 + $0x30] sm:$0xff]  ;;  %s9314_s24 = smov 27  }
0x12e3   :  { %4346 = vst.msk [vmem:[#allocation3] sm:$0xff] %vm4345_vm13, %v9256_v5  ;;  %s11162_s2 = sld [smem:[%s11699_s0 + %s9314_s24]]  }
0x12e4   :  { %v4317_v38 = vpop.permute.xlu1 %4316 }
0x12e5   :  { %4339 = vst.msk [vmem:[#allocation3 + $0x60] sm:$0xff] %vm4336_vm12, %v4317_v38  ;;  %v4319_v40 = vpop.permute.xlu0 %4318 }
0x12e6   :  { %4348 = vst.msk [vmem:[#allocation3 + $0x60] sm:$0xff] %vm4345_vm13, %v9256_v5 }
0x12e7   :  { %4340 = vst.msk [vmem:[#allocation3 + $0x90] sm:$0xff] %vm4336_vm12, %v4319_v40 }
0x12e8   :  { %4349 = vst.msk [vmem:[#allocation3 + $0x90] sm:$0xff] %vm4345_vm13, %v9256_v5  ;;  %v10603_v6 = vld [vmem:[#allocation3 + $0x30] sm:$0xff] }
0x12e9   :  { %4363 = vst.msk [vmem:[#allocation2 + $0x28] sm:$0xff] %vm3669_vm10, %v10603_v6  ;;  %4436 = vrot.lane.b32.xlu0 %v10603_v6, %s9250_s7  ;;  %v4321_v43 = vpop.permute.xlu1 %4320 }
0x12ea   :  { %v10607_v41 = vld [vmem:[#allocation3] sm:$0xff]  ;;  %4341 = vst.msk [vmem:[#allocation3 + $0xc0] sm:$0xff] %vm4336_vm12, %v4321_v43 }
0x12eb   :  { %4362 = vst.msk [vmem:[#allocation2] sm:$0xff] %vm3669_vm10, %v10607_v41  ;;  %4434 = vrot.lane.b32.xlu1 %v10607_v41, %s9250_s7 }
0x12ec   :  { %4350 = vst.msk [vmem:[#allocation3 + $0xc0] sm:$0xff] %vm4345_vm13, %v9256_v5 }
0x12ed   :  { %v10618_v45 = vld [vmem:[#allocation3 + $0x60] sm:$0xff]  ;;  %v4323_v46 = vpop.permute.xlu0 %4322  ;;  %4628 = vrot.lane.b32.xlu0 %v10603_v6, %s9288_s22 }
0x12ee   :  { %4364 = vst.msk [vmem:[#allocation2 + $0x50] sm:$0xff] %vm3669_vm10, %v10618_v45 }
0x12ef   :  { %v10624_v44 = vld [vmem:[#allocation3 + $0x90] sm:$0xff]  ;;  %4342 = vst.msk [vmem:[#allocation3 + $0xf0] sm:$0xff] %vm4336_vm12, %v4323_v46  ;;  %4626 = vrot.lane.b32.xlu1 %v10607_v41, %s9288_s22 }
0x12f0   :  { %4365 = vst.msk [vmem:[#allocation2 + $0x78] sm:$0xff] %vm3669_vm10, %v10624_v44  ;;  %v4795_v63 = vld [vmem:[#allocation2 + $0x28] sm:$0xff] }
0x12f1   :  { %4351 = vst.msk [vmem:[#allocation3 + $0xf0] sm:$0xff] %vm4345_vm13, %v9256_v5  ;;  %4532 = vrot.lane.b32.xlu0 %v10603_v6, %s9300_s18  ;;  %v4325_v47 = vpop.permute.xlu1 %4324 }
0x12f2   :  { %4343 = vst.msk [vmem:[#allocation3 + $0x120] sm:$0xff] %vm4336_vm12, %v4325_v47  ;;  %v4794_v62 = vld [vmem:[#allocation2] sm:$0xff] }
0x12f3   :  { %v10635_v48 = vld [vmem:[#allocation3 + $0xc0] sm:$0xff]  ;;  %4530 = vrot.lane.b32.xlu1 %v10607_v41, %s9300_s18  ;;  %4352 = vst.msk [vmem:[#allocation3 + $0x120] sm:$0xff] %vm4345_vm13, %v9256_v5  ;;  %v8907_v0 = vpack.c.bf16 %v4795_v63, %v4794_v62 }
0x12f4   :  { %4366 = vst.msk [vmem:[#allocation2 + $0xa0] sm:$0xff] %vm3669_vm10, %v10635_v48 }
0x12f5   :  { %4484 = vrot.lane.b32.xlu0 %v10603_v6, %s9302_s19  ;;  %v4327_v49 = vpop.permute.xlu0 %4326  ;;  %v4796_v32 = vld [vmem:[#allocation2 + $0x50] sm:$0xff] }
0x12f6   :  { %4344 = vst.msk [vmem:[#allocation3 + $0x150] sm:$0xff] %vm4336_vm12, %v4327_v49 }
0x12f7   :  { %4482 = vrot.lane.b32.xlu1 %v10607_v41, %s9302_s19  ;;  %4353 = vst.msk [vmem:[#allocation3 + $0x150] sm:$0xff] %vm4345_vm13, %v9256_v5  ;;  %v4797_v35 = vld [vmem:[#allocation2 + $0x78] sm:$0xff] }
0x12f8   :  { %v10646_v59 = vld [vmem:[#allocation3 + $0xf0] sm:$0xff] }
0x12f9   :  { %4367 = vst.msk [vmem:[#allocation2 + $0xc8] sm:$0xff] %vm3669_vm10, %v10646_v59  ;;  %4388 = vrot.lane.b32.xlu0 %v10603_v6, %s9249_s6 }
0x12fa   :  { %v10657_v57 = vld [vmem:[#allocation3 + $0x120] sm:$0xff] }
0x12fb   :  { %4386 = vrot.lane.b32.xlu1 %v10607_v41, %s9249_s6  ;;  %4368 = vst.msk [vmem:[#allocation2 + $0xf0] sm:$0xff] %vm3669_vm10, %v10657_v57 }
0x12fd   :  { %4676 = vrot.lane.b32.xlu0 %v10603_v6, %s9301_s12 }
0x12fe   :  { %v10665_v29 = vld [vmem:[#allocation3 + $0x150] sm:$0xff] }
0x12ff   :  { %4674 = vrot.lane.b32.xlu1 %v10607_v41, %s9301_s12  ;;  %4369 = vst.msk [vmem:[#allocation2 + $0x118] sm:$0xff] %vm3669_vm10, %v10665_v29 }
0x1301   :  { %4580 = vrot.lane.b32.xlu0 %v10603_v6, %s9286_s20 }
0x1303   :  { %4578 = vrot.lane.b32.xlu1 %v10607_v41, %s9286_s20 }
0x1305   :  { %4440 = vrot.lane.b32.xlu0 %v10624_v44, %s9250_s7 }
0x1307   :  { %4438 = vrot.lane.b32.xlu1 %v10618_v45, %s9250_s7 }
0x1309   :  { %4632 = vrot.lane.b32.xlu0 %v10624_v44, %s9288_s22 }
0x130b   :  { %4630 = vrot.lane.b32.xlu1 %v10618_v45, %s9288_s22 }
0x130d   :  { %4536 = vrot.lane.b32.xlu0 %v10624_v44, %s9300_s18 }
0x130f   :  { %4534 = vrot.lane.b32.xlu1 %v10618_v45, %s9300_s18 }
0x1311   :  { %4488 = vrot.lane.b32.xlu0 %v10624_v44, %s9302_s19 }
0x1313   :  { %4486 = vrot.lane.b32.xlu1 %v10618_v45, %s9302_s19 }
0x1315   :  { %4392 = vrot.lane.b32.xlu0 %v10624_v44, %s9249_s6 }
0x1317   :  { %4390 = vrot.lane.b32.xlu1 %v10618_v45, %s9249_s6 }
0x1319   :  { %4680 = vrot.lane.b32.xlu0 %v10624_v44, %s9301_s12 }
0x131b   :  { %4678 = vrot.lane.b32.xlu1 %v10618_v45, %s9301_s12 }
0x131d   :  { %4584 = vrot.lane.b32.xlu0 %v10624_v44, %s9286_s20 }
0x131f   :  { %4582 = vrot.lane.b32.xlu1 %v10618_v45, %s9286_s20 }
0x1321   :  { %4444 = vrot.lane.b32.xlu0 %v10646_v59, %s9250_s7 }
0x1323   :  { %4442 = vrot.lane.b32.xlu1 %v10635_v48, %s9250_s7 }
0x1325   :  { %4636 = vrot.lane.b32.xlu0 %v10646_v59, %s9288_s22 }
0x1327   :  { %4634 = vrot.lane.b32.xlu1 %v10635_v48, %s9288_s22 }
0x1329   :  { %4540 = vrot.lane.b32.xlu0 %v10646_v59, %s9300_s18 }
0x132b   :  { %4538 = vrot.lane.b32.xlu1 %v10635_v48, %s9300_s18 }
0x132d   :  { %4492 = vrot.lane.b32.xlu0 %v10646_v59, %s9302_s19 }
0x132f   :  { %4490 = vrot.lane.b32.xlu1 %v10635_v48, %s9302_s19 }
0x1331   :  { %4396 = vrot.lane.b32.xlu0 %v10646_v59, %s9249_s6 }
0x1333   :  { %4394 = vrot.lane.b32.xlu1 %v10635_v48, %s9249_s6 }
0x1335   :  { %4448 = vrot.lane.b32.xlu0 %v10665_v29, %s9250_s7 }
0x1337   :  { %4446 = vrot.lane.b32.xlu1 %v10657_v57, %s9250_s7 }
0x1339   :  { %4640 = vrot.lane.b32.xlu0 %v10665_v29, %s9288_s22 }
0x133b   :  { %4638 = vrot.lane.b32.xlu1 %v10657_v57, %s9288_s22 }
0x133d   :  { %4544 = vrot.lane.b32.xlu0 %v10665_v29, %s9300_s18 }
0x133f   :  { %4542 = vrot.lane.b32.xlu1 %v10657_v57, %s9300_s18 }
0x1341   :  { %4496 = vrot.lane.b32.xlu0 %v10665_v29, %s9302_s19 }
0x1343   :  { %4494 = vrot.lane.b32.xlu1 %v10657_v57, %s9302_s19 }
0x1345   :  { %4400 = vrot.lane.b32.xlu0 %v10665_v29, %s9249_s6 }
0x1347   :  { %4398 = vrot.lane.b32.xlu1 %v10657_v57, %s9249_s6 }
0x1349   :  { %4684 = vrot.lane.b32.xlu0 %v10646_v59, %s9301_s12 }
0x134b   :  { %4682 = vrot.lane.b32.xlu1 %v10635_v48, %s9301_s12 }
0x134d   :  { %4588 = vrot.lane.b32.xlu0 %v10646_v59, %s9286_s20 }
0x134f   :  { %4586 = vrot.lane.b32.xlu1 %v10635_v48, %s9286_s20 }
0x1351   :  { %4688 = vrot.lane.b32.xlu0 %v10665_v29, %s9301_s12 }
0x1353   :  { %4686 = vrot.lane.b32.xlu1 %v10657_v57, %s9301_s12 }
0x1355   :  { %4592 = vrot.lane.b32.xlu0 %v10665_v29, %s9286_s20 }
0x1357   :  { %4590 = vrot.lane.b32.xlu1 %v10657_v57, %s9286_s20 }
0x1359   :  { %4724 = vrot.lane.b32.xlu0 %v10603_v6, %s9272_s8 }
0x135b   :  { %4722 = vrot.lane.b32.xlu1 %v10607_v41, %s9272_s8  ;;  %v4437_v52 = vpop.permute.xlu0 %4436  ;;  %v8911_v41 = vpack.c.bf16 %v4797_v35, %v4796_v32 }
0x135c   :  { %4459 = vst.msk [vmem:[#allocation2 + $0x2a8] sm:$0xff] %vm3669_vm10, %v4437_v52 }
0x135d   :  { %v4435_v53 = vpop.permute.xlu1 %4434  ;;  %4728 = vrot.lane.b32.xlu0 %v10624_v44, %s9272_s8  ;;  %v5268_v44 = vld [vmem:[%s10790_s30 + $0x30] sm:$0xff] }
0x135e   :  { %4458 = vst.msk [vmem:[#allocation2 + $0x280] sm:$0xff] %vm3669_vm10, %v4435_v53 }
0x135f   :  { %4726 = vrot.lane.b32.xlu1 %v10618_v45, %s9272_s8  ;;  %v4629_v55 = vpop.permute.xlu0 %4628  ;;  %v5269_v45 = vld [vmem:[%s10790_s30 + $0x38] sm:$0xff]  ;;  %s9315_s30 = smov 35  }
0x1360   :  { %4651 = vst.msk [vmem:[#allocation2 + $0x7a8] sm:$0xff] %vm3669_vm10, %v4629_v55  ;;  %s7639_s25 = sld [smem:[%s11699_s0 + %s9315_s30]]  }
0x1361   :  { %v4627_v61 = vpop.permute.xlu1 %4626  ;;  %4732 = vrot.lane.b32.xlu0 %v10646_v59, %s9272_s8 }
0x1362   :  { %4650 = vst.msk [vmem:[#allocation2 + $0x780] sm:$0xff] %vm3669_vm10, %v4627_v61 }
0x1363   :  { %4730 = vrot.lane.b32.xlu1 %v10635_v48, %s9272_s8  ;;  %v4533_v1 = vpop.permute.xlu0 %4532  ;;  %v4811_v3 = vld [vmem:[#allocation2 + $0x2a8] sm:$0xff] }
0x1364   :  { %4555 = vst.msk [vmem:[#allocation2 + $0x528] sm:$0xff] %vm3669_vm10, %v4533_v1 }
0x1365   :  { %v4531_v39 = vpop.permute.xlu1 %4530  ;;  %v4810_v42 = vld [vmem:[#allocation2 + $0x280] sm:$0xff]  ;;  %4736 = vrot.lane.b32.xlu0 %v10665_v29, %s9272_s8 }
0x1366   :  { %4554 = vst.msk [vmem:[#allocation2 + $0x500] sm:$0xff] %vm3669_vm10, %v4531_v39  ;;  %v8905_v7 = vpack.c.bf16 %v4811_v3, %v4810_v42  ;;  %v4798_v42 = vld [vmem:[#allocation2 + $0xa0] sm:$0xff] }
0x1367   :  { %4734 = vrot.lane.b32.xlu1 %v10657_v57, %s9272_s8  ;;  %v4485_v54 = vpop.permute.xlu0 %4484  ;;  %v4843_v9 = vld [vmem:[#allocation2 + $0x7a8] sm:$0xff]  ;;  %s9309_s8 = smov 43  }
0x1368   :  { %8906 = vmatprep.subr.bf16.mxu0 %v8905_v7  ;;  %4507 = vst.msk [vmem:[#allocation2 + $0x3e8] sm:$0xff] %vm3669_vm10, %v4485_v54  ;;  %s10923_s4 = sld [smem:[%s11699_s0 + %s9309_s8]]  }
0x1369   :  { %v4483_v10 = vpop.permute.xlu1 %4482  ;;  %v4842_v11 = vld [vmem:[#allocation2 + $0x780] sm:$0xff]  ;;  %8908 = vmatpush3.bf16.msra.mxu0 %v8907_v0  ;;  %5221 = vperm.xlu0 %9233, %v5207_v56   ;;  %v4799_v0 = vld [vmem:[#allocation2 + $0xc8] sm:$0xff] }
0x136a   :  { %4506 = vst.msk [vmem:[#allocation2 + $0x3c0] sm:$0xff] %vm3669_vm10, %v4483_v10  ;;  %v8937_v12 = vpack.c.bf16 %v4843_v9, %v4842_v11  ;;  %v8915_v9 = vpack.c.bf16 %v4799_v0, %v4798_v42 }
0x136b   :  { %5216 = vperm.xlu1 %9232, %v5206_v60   ;;  %v4389_v14 = vpop.permute.xlu0 %4388  ;;  %v4827_v16 = vld [vmem:[#allocation2 + $0x528] sm:$0xff] }
0x136c   :  { %8938 = vmatprep.subr.bf16.mxu1 %v8937_v12  ;;  %4411 = vst.msk [vmem:[#allocation2 + $0x168] sm:$0xff] %vm3669_vm10, %v4389_v14 }
0x136d   :  { %v4387_v2 = vpop.permute.xlu1 %4386  ;;  %v4826_v8 = vld [vmem:[#allocation2 + $0x500] sm:$0xff]  ;;  %5277 = vperm.xlu0 %9233, %v5263_v13  }
0x136e   :  { %4410 = vst.msk [vmem:[#allocation2 + $0x140] sm:$0xff] %vm3669_vm10, %v4387_v2  ;;  %v8939_v4 = vpack.c.bf16 %v4827_v16, %v4826_v8 }
0x136f   :  { %5272 = vperm.xlu1 %9232, %v5262_v15   ;;  %v4677_v17 = vpop.permute.xlu0 %4676 }
0x1370   :  { %8940 = vmatpush3.bf16.msra.mxu1 %v8939_v4  ;;  %4699 = vst.msk [vmem:[#allocation2 + $0x8e8] sm:$0xff] %vm3669_vm10, %v4677_v17 }
0x1371   :  { %v4675_v21 = vpop.permute.xlu1 %4674  ;;  %5231 = vperm.xlu0 %9233, %v5209_v24  }
0x1372   :  { %4698 = vst.msk [vmem:[#allocation2 + $0x8c0] sm:$0xff] %vm3669_vm10, %v4675_v21 }
0x1373   :  { %5226 = vperm.xlu1 %9232, %v5208_v18   ;;  %v4581_v20 = vpop.permute.xlu0 %4580 }
0x1374   :  { %4603 = vst.msk [vmem:[#allocation2 + $0x668] sm:$0xff] %vm3669_vm10, %v4581_v20  ;;  %v4800_v20 = vld [vmem:[#allocation2 + $0xf0] sm:$0xff] }
0x1375   :  { %v4579_v26 = vpop.permute.xlu1 %4578  ;;  %5287 = vperm.xlu0 %9233, %v5265_v22  }
0x1376   :  { %4602 = vst.msk [vmem:[#allocation2 + $0x640] sm:$0xff] %vm3669_vm10, %v4579_v26 }
0x1377   :  { %5282 = vperm.xlu1 %9232, %v5264_v25   ;;  %v4441_v58 = vpop.permute.xlu0 %4440  ;;  %v4801_v25 = vld [vmem:[#allocation2 + $0x118] sm:$0xff] }
0x1378   :  { %4461 = vst.msk [vmem:[#allocation2 + $0x2f8] sm:$0xff] %vm3669_vm10, %v4441_v58 }
0x1379   :  { %v4439_v31 = vpop.permute.xlu1 %4438  ;;  %5241 = vperm.xlu0 %9233, %v5211_v27  }
0x137a   :  { %4460 = vst.msk [vmem:[#allocation2 + $0x2d0] sm:$0xff] %vm3669_vm10, %v4439_v31  ;;  %v8919_v31 = vpack.c.bf16 %v4801_v25, %v4800_v20  ;;  %v4760_v25 = vld [vmem:[%s10738_s16 + $0x30] sm:$0xff] }
0x137b   :  { %5236 = vperm.xlu1 %9232, %v5210_v23   ;;  %v4633_v28 = vpop.permute.xlu0 %4632 }
0x137c   :  { %4653 = vst.msk [vmem:[#allocation2 + $0x7f8] sm:$0xff] %vm3669_vm10, %v4633_v28  ;;  %v4819_v28 = vld [vmem:[#allocation2 + $0x3e8] sm:$0xff] }
0x137d   :  { %v4631_v34 = vpop.permute.xlu1 %4630  ;;  %5297 = vperm.xlu0 %9233, %v5267_v30   ;;  %v4818_v30 = vld [vmem:[#allocation2 + $0x3c0] sm:$0xff] }
0x137e   :  { %4652 = vst.msk [vmem:[#allocation2 + $0x7d0] sm:$0xff] %vm3669_vm10, %v4631_v34  ;;  %v8921_v32 = vpack.c.bf16 %v4819_v28, %v4818_v30  ;;  %v4765_v28 = vld [vmem:[%s10738_s16 + $0x58] sm:$0xff] }
0x137f   :  { %5292 = vperm.xlu1 %9232, %v5266_v33   ;;  %v4537_v19 = vpop.permute.xlu0 %4536  ;;  %v4813_v38 = vld [vmem:[#allocation2 + $0x2f8] sm:$0xff] }
0x1380   :  { %4557 = vst.msk [vmem:[#allocation2 + $0x578] sm:$0xff] %vm3669_vm10, %v4537_v19  ;;  %v4803_v19 = vld [vmem:[#allocation2 + $0x168] sm:$0xff] }
0x1381   :  { %v4535_v40 = vpop.permute.xlu1 %4534  ;;  %v4812_v6 = vld [vmem:[#allocation2 + $0x2d0] sm:$0xff]  ;;  %5251 = vperm.xlu0 %9233, %v5213_v36   ;;  %v4802_v36 = vld [vmem:[#allocation2 + $0x140] sm:$0xff] }
0x1382   :  { %4556 = vst.msk [vmem:[#allocation2 + $0x550] sm:$0xff] %vm3669_vm10, %v4535_v40  ;;  %v8909_v43 = vpack.c.bf16 %v4813_v38, %v4812_v6 }
0x1383   :  { %5246 = vperm.xlu1 %9232, %v5212_v37   ;;  %v4489_v46 = vpop.permute.xlu0 %4488  ;;  %v4845_v47 = vld [vmem:[#allocation2 + $0x7f8] sm:$0xff] }
0x1384   :  { %8910 = vmatprep.subr.bf16.mxu0 %v8909_v43  ;;  %4509 = vst.msk [vmem:[#allocation2 + $0x438] sm:$0xff] %vm3669_vm10, %v4489_v46  ;;  %v8923_v43 = vpack.c.bf16 %v4803_v19, %v4802_v36  ;;  %v4851_v46 = vld [vmem:[#allocation2 + $0x8e8] sm:$0xff] }
0x1385   :  { %v4487_v48 = vpop.permute.xlu1 %4486  ;;  %v4844_v49 = vld [vmem:[#allocation2 + $0x7d0] sm:$0xff]  ;;  %8912 = vmatpush3.bf16.msra.mxu0 %v8911_v41  ;;  %5307 = vperm.xlu0 %9233, %v5269_v45   ;;  %v4850_v45 = vld [vmem:[#allocation2 + $0x8c0] sm:$0xff] }
0x1386   :  { %4508 = vst.msk [vmem:[#allocation2 + $0x410] sm:$0xff] %vm3669_vm10, %v4487_v48  ;;  %v8941_v59 = vpack.c.bf16 %v4845_v47, %v4844_v49 }
0x1387   :  { %5302 = vperm.xlu1 %9232, %v5268_v44   ;;  %v4393_v57 = vpop.permute.xlu0 %4392  ;;  %v4829_v29 = vld [vmem:[#allocation2 + $0x578] sm:$0xff] }
0x1388   :  { %8942 = vmatprep.subr.bf16.mxu1 %v8941_v59  ;;  %4413 = vst.msk [vmem:[#allocation2 + $0x1b8] sm:$0xff] %vm3669_vm10, %v4393_v57 }
0x1389   :  { %v4391_v50 = vpop.permute.xlu1 %4390  ;;  %v4828_v51 = vld [vmem:[#allocation2 + $0x550] sm:$0xff] }
0x138a   :  { %4412 = vst.msk [vmem:[#allocation2 + $0x190] sm:$0xff] %vm3669_vm10, %v4391_v50  ;;  %v8943_v52 = vpack.c.bf16 %v4829_v29, %v4828_v51 }
0x138b   :  { %v4681_v53 = vpop.permute.xlu0 %4680  ;;  %v4821_v6 = vld [vmem:[#allocation2 + $0x438] sm:$0xff] }
0x138c   :  { %8944 = vmatpush3.bf16.msra.mxu1 %v8943_v52  ;;  %4701 = vst.msk [vmem:[#allocation2 + $0x938] sm:$0xff] %vm3669_vm10, %v4681_v53 }
0x138d   :  { %v4679_v55 = vpop.permute.xlu1 %4678  ;;  %v4820_v40 = vld [vmem:[#allocation2 + $0x410] sm:$0xff] }
0x138e   :  { %4700 = vst.msk [vmem:[#allocation2 + $0x910] sm:$0xff] %vm3669_vm10, %v4679_v55  ;;  %v8925_v47 = vpack.c.bf16 %v4821_v6, %v4820_v40  ;;  %v8953_v55 = vpack.c.bf16 %v4851_v46, %v4850_v45  ;;  %v4775_v46 = vld [vmem:[%s10738_s16 + $0xa8] sm:$0xff] }
0x138f   :  { %v4585_v61 = vpop.permute.xlu0 %4584  ;;  %v4805_v59 = vld [vmem:[#allocation2 + $0x1b8] sm:$0xff] }
0x1390   :  { %4605 = vst.msk [vmem:[#allocation2 + $0x6b8] sm:$0xff] %vm3669_vm10, %v4585_v61  ;;  %v4834_v61 = vld [vmem:[#allocation2 + $0x640] sm:$0xff] }
0x1391   :  { %v4583_v62 = vpop.permute.xlu1 %4582  ;;  %v4804_v49 = vld [vmem:[#allocation2 + $0x190] sm:$0xff] }
0x1392   :  { %4604 = vst.msk [vmem:[#allocation2 + $0x690] sm:$0xff] %vm3669_vm10, %v4583_v62  ;;  %v8927_v53 = vpack.c.bf16 %v4805_v59, %v4804_v49  ;;  %v4835_v62 = vld [vmem:[#allocation2 + $0x668] sm:$0xff]  ;;  %v4774_v59 = vld [vmem:[%s10738_s16 + $0xa0] sm:$0xff] }
0x1393   :  { %v4445_v63 = vpop.permute.xlu0 %4444 }
0x1394   :  { %4463 = vst.msk [vmem:[#allocation2 + $0x348] sm:$0xff] %vm3669_vm10, %v4445_v63  ;;  %v4853_v63 = vld [vmem:[#allocation2 + $0x938] sm:$0xff] }
0x1395   :  { %v4443_v1 = vpop.permute.xlu1 %4442  ;;  %v4852_v0 = vld [vmem:[#allocation2 + $0x910] sm:$0xff] }
0x1396   :  { %4462 = vst.msk [vmem:[#allocation2 + $0x320] sm:$0xff] %vm3669_vm10, %v4443_v1 }
0x1397   :  { %v4637_v3 = vpop.permute.xlu0 %4636 }
0x1398   :  { %4655 = vst.msk [vmem:[#allocation2 + $0x848] sm:$0xff] %vm3669_vm10, %v4637_v3 }
0x1399   :  { %v4635_v39 = vpop.permute.xlu1 %4634 }
0x139a   :  { %4654 = vst.msk [vmem:[#allocation2 + $0x820] sm:$0xff] %vm3669_vm10, %v4635_v39 }
0x139b   :  { %v4541_v7 = vpop.permute.xlu0 %4540  ;;  %v4815_v56 = vld [vmem:[#allocation2 + $0x348] sm:$0xff] }
0x139c   :  { %4559 = vst.msk [vmem:[#allocation2 + $0x5c8] sm:$0xff] %vm3669_vm10, %v4541_v7 }
0x139d   :  { %v4539_v54 = vpop.permute.xlu1 %4538  ;;  %v4814_v60 = vld [vmem:[#allocation2 + $0x320] sm:$0xff] }
0x139e   :  { %4558 = vst.msk [vmem:[#allocation2 + $0x5a0] sm:$0xff] %vm3669_vm10, %v4539_v54  ;;  %v8913_v10 = vpack.c.bf16 %v4815_v56, %v4814_v60  ;;  %v8955_v60 = vpack.c.bf16 %v4835_v62, %v4834_v61  ;;  %v4779_v62 = vld [vmem:[%s10738_s16 + $0xc8] sm:$0xff] }
0x139f   :  { %v4493_v11 = vpop.permute.xlu0 %4492  ;;  %v4847_v12 = vld [vmem:[#allocation2 + $0x848] sm:$0xff] }
0x13a0   :  { %8914 = vmatprep.subr.bf16.mxu0 %v8913_v10  ;;  %4511 = vst.msk [vmem:[#allocation2 + $0x488] sm:$0xff] %vm3669_vm10, %v4493_v11  ;;  %v8957_v10 = vpack.c.bf16 %v4853_v63, %v4852_v0  ;;  %v4836_v11 = vld [vmem:[#allocation2 + $0x690] sm:$0xff] }
0x13a1   :  { %v4491_v13 = vpop.permute.xlu1 %4490  ;;  %v4846_v14 = vld [vmem:[#allocation2 + $0x820] sm:$0xff]  ;;  %8916 = vmatpush3.bf16.msra.mxu0 %v8915_v9 }
0x13a2   :  { %4510 = vst.msk [vmem:[#allocation2 + $0x460] sm:$0xff] %vm3669_vm10, %v4491_v13  ;;  %v8945_v15 = vpack.c.bf16 %v4847_v12, %v4846_v14  ;;  %v4837_v12 = vld [vmem:[#allocation2 + $0x6b8] sm:$0xff] }
0x13a3   :  { %v4397_v16 = vpop.permute.xlu0 %4396  ;;  %v4831_v2 = vld [vmem:[#allocation2 + $0x5c8] sm:$0xff] }
0x13a4   :  { %8946 = vmatprep.subr.bf16.mxu1 %v8945_v15  ;;  %4415 = vst.msk [vmem:[#allocation2 + $0x208] sm:$0xff] %vm3669_vm10, %v4397_v16 }
0x13a5   :  { %v4395_v8 = vpop.permute.xlu1 %4394  ;;  %v4830_v4 = vld [vmem:[#allocation2 + $0x5a0] sm:$0xff] }
0x13a6   :  { %4414 = vst.msk [vmem:[#allocation2 + $0x1e0] sm:$0xff] %vm3669_vm10, %v4395_v8  ;;  %v8947_v24 = vpack.c.bf16 %v4831_v2, %v4830_v4  ;;  %v8959_v8 = vpack.c.bf16 %v4837_v12, %v4836_v11  ;;  %v4789_v12 = vld [vmem:[%s10738_s16 + $0x118] sm:$0xff] }
0x13a7   :  { %v4449_v17 = vpop.permute.xlu0 %4448  ;;  %v4823_v51 = vld [vmem:[#allocation2 + $0x488] sm:$0xff] }
0x13a8   :  { %8948 = vmatpush3.bf16.msra.mxu1 %v8947_v24  ;;  %4465 = vst.msk [vmem:[#allocation2 + $0x398] sm:$0xff] %vm3669_vm10, %v4449_v17 }
0x13a9   :  { %v4447_v18 = vpop.permute.xlu1 %4446  ;;  %v4822_v50 = vld [vmem:[#allocation2 + $0x460] sm:$0xff] }
0x13aa   :  { %4464 = vst.msk [vmem:[#allocation2 + $0x370] sm:$0xff] %vm3669_vm10, %v4447_v18  ;;  %v8929_v3 = vpack.c.bf16 %v4823_v51, %v4822_v50  ;;  %v4762_v50 = vld [vmem:[%s10738_s16 + $0x40] sm:$0xff]  ;;  %v4780_v51 = vld [vmem:[%s10738_s16 + $0xd0] sm:$0xff] }
0x13ab   :  { %v4641_v21 = vpop.permute.xlu0 %4640  ;;  %v4807_v42 = vld [vmem:[#allocation2 + $0x208] sm:$0xff] }
0x13ac   :  { %4657 = vst.msk [vmem:[#allocation2 + $0x898] sm:$0xff] %vm3669_vm10, %v4641_v21  ;;  %v4754_v21 = vld [vmem:[%s10738_s16] sm:$0xff] }
0x13ad   :  { %v4639_v22 = vpop.permute.xlu1 %4638  ;;  %v4806_v39 = vld [vmem:[#allocation2 + $0x1e0] sm:$0xff] }
0x13ae   :  { %4656 = vst.msk [vmem:[#allocation2 + $0x870] sm:$0xff] %vm3669_vm10, %v4639_v22  ;;  %v8931_v9 = vpack.c.bf16 %v4807_v42, %v4806_v39  ;;  %v4785_v39 = vld [vmem:[%s10738_s16 + $0xf8] sm:$0xff]  ;;  %v4766_v42 = vld [vmem:[%s10738_s16 + $0x60] sm:$0xff] }
0x13af   :  { %v4545_v26 = vpop.permute.xlu0 %4544  ;;  %v4817_v27 = vld [vmem:[#allocation2 + $0x398] sm:$0xff] }
0x13b0   :  { %4561 = vst.msk [vmem:[#allocation2 + $0x618] sm:$0xff] %vm3669_vm10, %v4545_v26 }
0x13b1   :  { %v4543_v58 = vpop.permute.xlu1 %4542  ;;  %v4816_v23 = vld [vmem:[#allocation2 + $0x370] sm:$0xff] }
0x13b2   :  { %4560 = vst.msk [vmem:[#allocation2 + $0x5f0] sm:$0xff] %vm3669_vm10, %v4543_v58  ;;  %v8917_v33 = vpack.c.bf16 %v4817_v27, %v4816_v23  ;;  %v4759_v23 = vld [vmem:[%s10738_s16 + $0x28] sm:$0xff] }
0x13b3   :  { %v4497_v34 = vpop.permute.xlu0 %4496  ;;  %v4849_v35 = vld [vmem:[#allocation2 + $0x898] sm:$0xff] }
0x13b4   :  { %8918 = vmatprep.subr.bf16.mxu0 %v8917_v33  ;;  %4513 = vst.msk [vmem:[#allocation2 + $0x4d8] sm:$0xff] %vm3669_vm10, %v4497_v34 }
0x13b5   :  { %8920 = vmatpush3.bf16.msra.mxu0 %v8919_v31  ;;  %v4495_v37 = vpop.permute.xlu1 %4494  ;;  %v4848_v38 = vld [vmem:[#allocation2 + $0x870] sm:$0xff] }
0x13b6   :  { %4512 = vst.msk [vmem:[#allocation2 + $0x4b0] sm:$0xff] %vm3669_vm10, %v4495_v37  ;;  %8922 = vmatprep.subr.bf16.mxu0 %v8921_v32  ;;  %v8949_v41 = vpack.c.bf16 %v4849_v35, %v4848_v38  ;;  %v4764_v35 = vld [vmem:[%s10738_s16 + $0x50] sm:$0xff]  ;;  %v4770_v37 = vld [vmem:[%s10738_s16 + $0x80] sm:$0xff] }
0x13b7   :  { %v4401_v44 = vpop.permute.xlu0 %4400  ;;  %v4833_v48 = vld [vmem:[#allocation2 + $0x618] sm:$0xff] }
0x13b8   :  { %8950 = vmatprep.subr.bf16.mxu1 %v8949_v41  ;;  %4417 = vst.msk [vmem:[#allocation2 + $0x258] sm:$0xff] %vm3669_vm10, %v4401_v44  ;;  %v4769_v41 = vld [vmem:[%s10738_s16 + $0x78] sm:$0xff] }
0x13b9   :  { %8924 = vmatpush3.bf16.msra.mxu0 %v8923_v43  ;;  %v4399_v57 = vpop.permute.xlu1 %4398  ;;  %v4832_v29 = vld [vmem:[#allocation2 + $0x5f0] sm:$0xff] }
0x13ba   :  { %4416 = vst.msk [vmem:[#allocation2 + $0x230] sm:$0xff] %vm3669_vm10, %v4399_v57  ;;  %8926 = vmatprep.subr.bf16.mxu0 %v8925_v47  ;;  %v8951_v52 = vpack.c.bf16 %v4833_v48, %v4832_v29  ;;  %v4756_v47 = vld [vmem:[%s10738_s16 + $0x10] sm:$0xff] }
0x13bb   :  { %v4685_v1 = vpop.permute.xlu0 %4684  ;;  %v4825_v54 = vld [vmem:[#allocation2 + $0x4d8] sm:$0xff] }
0x13bc   :  { %8952 = vmatpush3.bf16.msra.mxu1 %v8951_v52  ;;  %4703 = vst.msk [vmem:[#allocation2 + $0x988] sm:$0xff] %vm3669_vm10, %v4685_v1 }
0x13bd   :  { %8928 = vmatpush3.bf16.msra.mxu0 %v8927_v53  ;;  %8954 = vmatprep.subr.bf16.mxu1 %v8953_v55  ;;  %v4683_v7 = vpop.permute.xlu1 %4682  ;;  %v4824_v56 = vld [vmem:[#allocation2 + $0x4b0] sm:$0xff]  ;;  %v4761_v53 = vld [vmem:[%s10738_s16 + $0x38] sm:$0xff] }
0x13be   :  { %4702 = vst.msk [vmem:[#allocation2 + $0x960] sm:$0xff] %vm3669_vm10, %v4683_v7  ;;  %8930 = vmatprep.subr.bf16.mxu0 %v8929_v3  ;;  %v8933_v14 = vpack.c.bf16 %v4825_v54, %v4824_v56  ;;  %v4767_v3 = vld [vmem:[%s10738_s16 + $0x68] sm:$0xff]  ;;  %v4784_v7 = vld [vmem:[%s10738_s16 + $0xf0] sm:$0xff] }
0x13bf   :  { %v4589_v13 = vpop.permute.xlu0 %4588  ;;  %v4809_v15 = vld [vmem:[#allocation2 + $0x258] sm:$0xff] }
0x13c0   :  { %8956 = vmatpush3.bf16.msra.mxu1 %v8955_v60  ;;  %4607 = vst.msk [vmem:[#allocation2 + $0x708] sm:$0xff] %vm3669_vm10, %v4589_v13  ;;  %v4772_v60 = vld [vmem:[%s10738_s16 + $0x90] sm:$0xff] }
0x13c1   :  { %8932 = vmatpush3.bf16.msra.mxu0 %v8931_v9  ;;  %8958 = vmatprep.subr.bf16.mxu1 %v8957_v10  ;;  %v4587_v16 = vpop.permute.xlu1 %4586  ;;  %v4808_v2 = vld [vmem:[#allocation2 + $0x230] sm:$0xff]  ;;  %v4790_v9 = vld [vmem:[%s10738_s16 + $0x120] sm:$0xff]  ;;  %v4771_v10 = vld [vmem:[%s10738_s16 + $0x88] sm:$0xff] }
0x13c2   :  { %4606 = vst.msk [vmem:[#allocation2 + $0x6e0] sm:$0xff] %vm3669_vm10, %v4587_v16  ;;  %8934 = vmatprep.subr.bf16.mxu0 %v8933_v14  ;;  %v8935_v4 = vpack.c.bf16 %v4809_v15, %v4808_v2  ;;  %v4777_v15 = vld [vmem:[%s10738_s16 + $0xb8] sm:$0xff]  ;;  %v4758_v16 = vld [vmem:[%s10738_s16 + $0x20] sm:$0xff]  ;;  %v4776_v2 = vld [vmem:[%s10738_s16 + $0xb0] sm:$0xff] }
0x13c3   :  { %v4689_v24 = vpop.permute.xlu0 %4688  ;;  %v4855_v17 = vld [vmem:[#allocation2 + $0x988] sm:$0xff] }
0x13c4   :  { %8960 = vmatpush3.bf16.msra.mxu1 %v8959_v8  ;;  %4705 = vst.msk [vmem:[#allocation2 + $0x9d8] sm:$0xff] %vm3669_vm10, %v4689_v24  ;;  %v4763_v8 = vld [vmem:[%s10738_s16 + $0x48] sm:$0xff]  ;;  %v4768_v24 = vld [vmem:[%s10738_s16 + $0x70] sm:$0xff] }
0x13c5   :  { %8936 = vmatpush3.bf16.msra.mxu0 %v8935_v4  ;;  %v4687_v18 = vpop.permute.xlu1 %4686  ;;  %v4854_v22 = vld [vmem:[#allocation2 + $0x960] sm:$0xff] }
0x13c6   :  { %4704 = vst.msk [vmem:[#allocation2 + $0x9b0] sm:$0xff] %vm3669_vm10, %v4687_v18  ;;  %v8961_v20 = vpack.c.bf16 %v4855_v17, %v4854_v22  ;;  %v4782_v4 = vld [vmem:[%s10738_s16 + $0xe0] sm:$0xff]  ;;  %v4781_v17 = vld [vmem:[%s10738_s16 + $0xd8] sm:$0xff] }
0x13c7   :  { %v4593_v26 = vpop.permute.xlu0 %4592  ;;  %v4839_v27 = vld [vmem:[#allocation2 + $0x708] sm:$0xff]  ;;  %v4773_v18 = vld [vmem:[%s10738_s16 + $0x98] sm:$0xff]  ;;  %v4778_v22 = vld [vmem:[%s10738_s16 + $0xc0] sm:$0xff] }
0x13c8   :  { %4956 = vmatmul.mubr.f32.vlgmr.msra.gmra.mrb[24].mxu0 %v4754_v21  ;;  %8962 = vmatprep.subr.bf16.mxu1 %v8961_v20  ;;  %4609 = vst.msk [vmem:[#allocation2 + $0x758] sm:$0xff] %vm3669_vm10, %v4593_v26  ;;  %v4787_v21 = vld [vmem:[%s10738_s16 + $0x108] sm:$0xff]  ;;  %v4786_v20 = vld [vmem:[%s10738_s16 + $0x100] sm:$0xff]  ;;  %v4792_v26 = vld [vmem:[%s10738_s16 + $0x130] sm:$0xff] }
0x13c9   :  { %v4591_v58 = vpop.permute.xlu1 %4590  ;;  %4960 = vmatprep.mubr.f32.mxu0 %v4760_v25  ;;  %v4838_v31 = vld [vmem:[#allocation2 + $0x6e0] sm:$0xff]  ;;  %v4783_v25 = vld [vmem:[%s10738_s16 + $0xe8] sm:$0xff] }
0x13ca   :  { %4608 = vst.msk [vmem:[#allocation2 + $0x730] sm:$0xff] %vm3669_vm10, %v4591_v58  ;;  %v8963_v30 = vpack.c.bf16 %v4839_v27, %v4838_v31  ;;  %v4788_v27 = vld [vmem:[%s10738_s16 + $0x110] sm:$0xff]  ;;  %v4791_v58 = vld [vmem:[%s10738_s16 + $0x128] sm:$0xff] }
0x13cb   :  { %v4725_v33 = vpop.permute.xlu0 %4724  ;;  %v4857_v34 = vld [vmem:[#allocation2 + $0x9d8] sm:$0xff] }
0x13cc   :  { %4961 = vmatmul.mubr.f32.gmra.mrb[26].mxu0 %v4759_v23  ;;  %8964 = vmatpush3.bf16.msra.mxu1 %v8963_v30  ;;  %4747 = vst.msk [vmem:[#allocation2 + $0xa28] sm:$0xff] %vm3669_vm10, %v4725_v33  ;;  %v4793_v23 = vld [vmem:[%s10738_s16 + $0x138] sm:$0xff]  ;;  %s9313_s16 = smov 26  }
0x13cd   :  { %v4723_v32 = vpop.permute.xlu1 %4722  ;;  %4965 = vmatprep.mubr.f32.mxu0 %v4765_v28  ;;  %v4856_v36 = vld [vmem:[#allocation2 + $0x9b0] sm:$0xff]  ;;  %s11151_s23 = sld [smem:[%s11699_s0 + %s9313_s16]]  }
0x13ce   :  { %4746 = vst.msk [vmem:[#allocation2 + $0xa00] sm:$0xff] %vm3669_vm10, %v4723_v32  ;;  %v8965_v19 = vpack.c.bf16 %v4857_v34, %v4856_v36 }
0x13cf   :  { %v4729_v38 = vpop.permute.xlu0 %4728  ;;  %v4841_v40 = vld [vmem:[#allocation2 + $0x758] sm:$0xff] }
0x13d0   :  { %4966 = vmatmul.mubr.f32.gmra.mrb[28].mxu0 %v4764_v35  ;;  %8966 = vmatprep.subr.bf16.mxu1 %v8965_v19  ;;  %4749 = vst.msk [vmem:[#allocation2 + $0xa78] sm:$0xff] %vm3669_vm10, %v4729_v38 }
0x13d1   :  { %v4727_v6 = vpop.permute.xlu1 %4726  ;;  %4970 = vmatprep.mubr.f32.mxu0 %v4770_v37  ;;  %v4840_v43 = vld [vmem:[#allocation2 + $0x730] sm:$0xff] }
0x13d2   :  { %4748 = vst.msk [vmem:[#allocation2 + $0xa50] sm:$0xff] %vm3669_vm10, %v4727_v6  ;;  %v8967_v45 = vpack.c.bf16 %v4841_v40, %v4840_v43 }
0x13d3   :  { %v4733_v44 = vpop.permute.xlu0 %4732  ;;  %v4859_v48 = vld [vmem:[#allocation2 + $0xa28] sm:$0xff] }
0x13d4   :  { %4971 = vmatmul.mubr.f32.gmra.mrb[30].mxu0 %v4769_v41  ;;  %8968 = vmatpush3.bf16.msra.mxu1 %v8967_v45  ;;  %4751 = vst.msk [vmem:[#allocation2 + $0xac8] sm:$0xff] %vm3669_vm10, %v4733_v44 }
0x13d5   :  { %v4731_v49 = vpop.permute.xlu1 %4730  ;;  %4975 = vmatprep.mubr.f32.mxu0 %v4775_v46  ;;  %v4858_v57 = vld [vmem:[#allocation2 + $0xa00] sm:$0xff] }
0x13d6   :  { %4750 = vst.msk [vmem:[#allocation2 + $0xaa0] sm:$0xff] %vm3669_vm10, %v4731_v49  ;;  %v8969_v29 = vpack.c.bf16 %v4859_v48, %v4858_v57 }
0x13d7   :  { %5061 = vmatmul.mubr.f32.vlgmr.msra.gmra.mrb[50].mxu1 %v4756_v47  ;;  %v4737_v52 = vpop.permute.xlu0 %4736  ;;  %v4861_v55 = vld [vmem:[#allocation2 + $0xa78] sm:$0xff] }
0x13d8   :  { %4976 = vmatmul.mubr.f32.gmra.mrb[32].mxu0 %v4774_v59  ;;  %8970 = vmatprep.subr.bf16.mxu0 %v8969_v29  ;;  %4753 = vst.msk [vmem:[#allocation2 + $0xb18] sm:$0xff] %vm3669_vm10, %v4737_v52 }
0x13d9   :  { %8972 = vmatpush3.bf16.msra.mxu0 %v8969_v29  ;;  %v4735_v61 = vpop.permute.xlu1 %4734  ;;  %5065 = vmatprep.mubr.f32.mxu1 %v4762_v50  ;;  %v4860_v63 = vld [vmem:[#allocation2 + $0xa50] sm:$0xff] }
0x13da   :  { %4752 = vst.msk [vmem:[#allocation2 + $0xaf0] sm:$0xff] %vm3669_vm10, %v4735_v61  ;;  %4980 = vmatprep.mubr.f32.mxu0 %v4780_v51  ;;  %v8973_v1 = vpack.c.bf16 %v4861_v55, %v4860_v63 }
0x13db   :  { %5066 = vmatmul.mubr.f32.gmra.mrb[52].mxu1 %v4761_v53  ;;  %v4863_v0 = vld [vmem:[#allocation2 + $0xac8] sm:$0xff] }
0x13dc   :  { %4981 = vmatmul.mubr.f32.gmra.mrb[34].mxu0 %v4779_v62  ;;  %8974 = vmatprep.subr.bf16.mxu0 %v8973_v1 }
0x13dd   :  { %8976 = vmatpush3.bf16.msra.mxu0 %v8973_v1  ;;  %5070 = vmatprep.mubr.f32.mxu1 %v4767_v3  ;;  %v4862_v56 = vld [vmem:[#allocation2 + $0xaa0] sm:$0xff] }
0x13de   :  { %4985 = vmatprep.mubr.f32.mxu0 %v4785_v39  ;;  %v8977_v54 = vpack.c.bf16 %v4863_v0, %v4862_v56 }
0x13df   :  { %5071 = vmatmul.mubr.f32.gmra.mrb[54].mxu1 %v4766_v42  ;;  %v4865_v11 = vld [vmem:[#allocation2 + $0xb18] sm:$0xff] }
0x13e0   :  { %4986 = vmatmul.mubr.f32.gmra.mrb[36].mxu0 %v4784_v7  ;;  %8978 = vmatprep.subr.bf16.mxu0 %v8977_v54 }
0x13e1   :  { %8980 = vmatpush3.bf16.msra.mxu0 %v8977_v54  ;;  %5075 = vmatprep.mubr.f32.mxu1 %v4772_v60  ;;  %v4864_v13 = vld [vmem:[#allocation2 + $0xaf0] sm:$0xff] }
0x13e2   :  { %4990 = vmatprep.mubr.f32.mxu0 %v4790_v9  ;;  %v8981_v14 = vpack.c.bf16 %v4865_v11, %v4864_v13 }
0x13e3   :  { %5076 = vmatmul.mubr.f32.gmra.mrb[56].mxu1 %v4771_v10 }
0x13e4   :  { %4991 = vmatmul.mubr.f32.gmra.mrb[38].mxu0 %v4789_v12  ;;  %8982 = vmatprep.subr.bf16.mxu0 %v8981_v14 }
0x13e5   :  { %8984 = vmatpush3.bf16.msra.mxu0 %v8981_v14  ;;  %5080 = vmatprep.mubr.f32.mxu1 %v4777_v15 }
0x13e6   :  { %8380 = vmatprep.mubr.msk.f32.mxu0 %vm4866_vm15, %v4758_v16 }
0x13e7   :  { %5081 = vmatmul.mubr.f32.gmra.mrb[58].mxu1 %v4776_v2 }
0x13e8   :  { %8381 = vmatmul.mubr.msk.f32.vlgmr.msra.gmra.mrb[40].mxu0 %vm4866_vm15, %v4763_v8  ;;  %5085 = vmatprep.mubr.f32.mxu1 %v4782_v4  ;;  %v5222_v19 = vpop.permute.xlu0 %5221 }
0x13e9   :  { %8383 = vmatprep.mubr.msk.f32.mxu0 %vm4866_vm15, %v4768_v24 }
0x13ea   :  { %v5217_v35 = vpop.permute.xlu1 %5216 }
0x13eb   :  { %5086 = vmatmul.mubr.f32.gmra.mrb[60].mxu1 %v4781_v17 }
0x13ec   :  { %8384 = vmatmul.mubr.msk.f32.gmra.mrb[42].mxu0 %vm4866_vm15, %v4773_v18  ;;  %5090 = vmatprep.mubr.f32.mxu1 %v4787_v21  ;;  %v5278_v45 = vpop.permute.xlu0 %5277 }
0x13ed   :  { %8386 = vmatprep.mubr.msk.f32.mxu0 %vm4866_vm15, %v4778_v22 }
0x13ee   :  { %v5273_v6 = vpop.permute.xlu1 %5272 }
0x13ef   :  { %5091 = vmatmul.mubr.f32.gmra.mrb[62].mxu1 %v4786_v20 }
0x13f0   :  { %8387 = vmatmul.mubr.msk.f32.gmra.mrb[44].mxu0 %vm4866_vm15, %v4783_v25  ;;  %5095 = vmatprep.mubr.f32.mxu1 %v4792_v26  ;;  %v5232_v53 = vpop.permute.xlu0 %5231 }
0x13f1   :  { %8389 = vmatprep.mubr.msk.f32.mxu0 %vm4866_vm15, %v4788_v27 }
0x13f2   :  { %v5227_v57 = vpop.permute.xlu1 %5226 }
0x13f3   :  { %5096 = vmatmul.mubr.f32.gmra.mrb[64].mxu1 %v4791_v58 }
0x13f4   :  { %8390 = vmatmul.mubr.msk.f32.gmra.mrb[46].mxu0 %vm4866_vm15, %v4793_v23  ;;  %v5288_v54 = vpop.permute.xlu0 %5287 }
0x13f6   :  { %v5283_v42 = vpop.permute.xlu1 %5282 }
0x13f8   :  { %v5242_v24 = vpop.permute.xlu0 %5241 }
0x13fa   :  { %v5237_v15 = vpop.permute.xlu1 %5236 }
0x149b   :  { %v7905_v31 = vpop.f32.mrb[24].mxu0 }
0x149c   :  { %v7906_v30 = vpop.f32.mrb[25].mxu0 }
0x149d   :  { %v7907_v28 = vadd.f32 %v7906_v30, %v7905_v31  ;;  %v5293_v31 = vpop.permute.xlu1 %5292 }
0x149f   :  { %v7908_v33 = vpop.f32.mrb[26].mxu0 }
0x14a0   :  { %v7909_v34 = vpop.f32.mrb[27].mxu0 }
0x14a1   :  { %v7910_v32 = vadd.f32 %v7909_v34, %v7908_v33 }
0x14a3   :  { %v7911_v36 = vpop.f32.mrb[28].mxu0 }
0x14a4   :  { %v7912_v37 = vpop.f32.mrb[29].mxu0 }
0x14a5   :  { %v7913_v38 = vadd.f32 %v7912_v37, %v7911_v36  ;;  %v5298_v37 = vpop.permute.xlu0 %5297 }
0x14a7   :  { %v7914_v40 = vpop.f32.mrb[30].mxu0 }
0x14a8   :  { %v7915_v41 = vpop.f32.mrb[31].mxu0 }
0x14a9   :  { %v7916_v43 = vadd.f32 %v7915_v41, %v7914_v40 }
0x14aa   :  { %v7961_v46 = vpop.f32.mrb[50].mxu1 }
0x14ab   :  { %v7962_v44 = vpop.f32.mrb[51].mxu1  ;;  %v7917_v47 = vpop.f32.mrb[32].mxu0 }
0x14ac   :  { %v7963_v48 = vadd.f32 %v7962_v44, %v7961_v46  ;;  %v7918_v49 = vpop.f32.mrb[33].mxu0 }
0x14ad   :  { %v7919_v59 = vadd.f32 %v7918_v49, %v7917_v47 }
0x14ae   :  { %v7964_v29 = vpop.f32.mrb[52].mxu1  ;;  %v5063_v50 = vadd.f32 %v7963_v48, %v7907_v28 }
0x14af   :  { %v7965_v51 = vpop.f32.mrb[53].mxu1  ;;  %v7920_v52 = vpop.f32.mrb[34].mxu0 }
0x14b0   :  { %v7966_v55 = vadd.f32 %v7965_v51, %v7964_v29  ;;  %v7921_v61 = vpop.f32.mrb[35].mxu0 }
0x14b1   :  { %v7922_v62 = vadd.f32 %v7921_v61, %v7920_v52 }
0x14b2   :  { %v7967_v63 = vpop.f32.mrb[54].mxu1  ;;  %v5068_v1 = vadd.f32 %v7966_v55, %v7910_v32 }
0x14b3   :  { %v7968_v3 = vpop.f32.mrb[55].mxu1  ;;  %v7923_v39 = vpop.f32.mrb[36].mxu0 }
0x14b4   :  { %v7969_v0 = vadd.f32 %v7968_v3, %v7967_v63  ;;  %v7924_v7 = vpop.f32.mrb[37].mxu0 }
0x14b5   :  { %v7925_v56 = vadd.f32 %v7924_v7, %v7923_v39  ;;  %v5252_v39 = vpop.permute.xlu0 %5251 }
0x14b6   :  { %v7970_v60 = vpop.f32.mrb[56].mxu1  ;;  %v5073_v9 = vadd.f32 %v7969_v0, %v7913_v38 }
0x14b7   :  { %v7971_v10 = vpop.f32.mrb[57].mxu1  ;;  %v7926_v11 = vpop.f32.mrb[38].mxu0 }
0x14b8   :  { %v7972_v12 = vadd.f32 %v7971_v10, %v7970_v60  ;;  %v7927_v13 = vpop.f32.mrb[39].mxu0 }
0x14b9   :  { %v10918_v14 = vadd.f32 %v7927_v13, %v7926_v11  ;;  %v5308_v13 = vpop.permute.xlu0 %5307 }
0x14ba   :  { %v7973_v16 = vpop.f32.mrb[58].mxu1  ;;  %v5078_v2 = vadd.f32 %v7972_v12, %v7916_v43 }
0x14bb   :  { %v7974_v8 = vpop.f32.mrb[59].mxu1  ;;  %v8382_v4 = vpop.f32.mrb[40].mxu0 }
0x14bc   :  { %v7975_v17 = vadd.f32 %v7974_v8, %v7973_v16  ;;  %v5173_v18 = vadd.f32 %v8382_v4, %v5068_v1  ;;  %v5167_v21 = vpop.f32.mrb[41].mxu0  ;;  %v5414_v16 = vld [vmem:[%s7643_s14] sm:$0xff] }
0x14bd   :  { %v5168_v22 = vadd.f32 %v5167_v21, %v5063_v50 }
0x14be   :  { %v5255_v20 = vmul.f32 %v5222_v19, %v5173_v18  ;;  %v7976_v25 = vpop.f32.mrb[60].mxu1  ;;  %v5083_v26 = vadd.f32 %v7975_v17, %v7919_v59 }
0x14bf   :  { %v5254_v27 = vmul.f32 %v5217_v35, %v5168_v22  ;;  %v7977_v58 = vpop.f32.mrb[61].mxu1  ;;  %v8385_v23 = vpop.f32.mrb[42].mxu0 }
0x14c0   :  { %v5311_v30 = vadd.f32 %v5278_v45, %v5255_v20  ;;  %v7978_v28 = vadd.f32 %v7977_v58, %v7976_v25  ;;  %v5183_v33 = vadd.f32 %v8385_v23, %v5078_v2  ;;  %v5177_v34 = vpop.f32.mrb[43].mxu0  ;;  %v5415_v2 = vld [vmem:[%s7643_s14 + $0x8] sm:$0xff] }
0x14c1   :  { %v5310_v32 = vadd.f32 %v5273_v6, %v5254_v27  ;;  %v5178_v36 = vadd.f32 %v5177_v34, %v5073_v9  ;;  %v8985_v8 = vpack.c.bf16 %v5415_v2, %v5414_v16 }
0x14c2   :  { %v10925_v38 = vmax.f32 %v5311_v30, 0.0  ;;  %v5257_v40 = vmul.f32 %v5232_v53, %v5183_v33  ;;  %v7979_v41 = vpop.f32.mrb[62].mxu1  ;;  %v5088_v19 = vadd.f32 %v7978_v28, %v7922_v62 }
0x14c3   :  { %v10927_v43 = vmax.f32 %v5310_v32, 0.0  ;;  %v5256_v35 = vmul.f32 %v5227_v57, %v5178_v36  ;;  %v7980_v46 = vpop.f32.mrb[63].mxu1  ;;  %v8388_v44 = vpop.f32.mrb[44].mxu0  ;;  %8986 = vmatprep.subr.bf16.mxu0 %v8985_v8 }
0x14c4   :  { %5327 = vst.msk [vmem:[%s10923_s4 + $0x8] sm:$0xff] %vm3669_vm10, %v10925_v38  ;;  %v5313_v45 = vadd.f32 %v5288_v54, %v5257_v40  ;;  %v7981_v47 = vadd.f32 %v7980_v46, %v7979_v41  ;;  %v5193_v48 = vadd.f32 %v8388_v44, %v5088_v19  ;;  %5344 = vrot.lane.b32.xlu0 %v10925_v38, %s9249_s6  ;;  %v5187_v6 = vpop.f32.mrb[45].mxu0  ;;  %v5247_v57 = vpop.permute.xlu1 %5246 }
0x14c5   :  { %5326 = vst.msk [vmem:[%s10923_s4] sm:$0xff] %vm3669_vm10, %v10927_v43  ;;  %v5312_v49 = vadd.f32 %v5283_v42, %v5256_v35  ;;  %v5188_v59 = vadd.f32 %v5187_v6, %v5083_v26  ;;  %5342 = vrot.lane.b32.xlu1 %v10927_v43, %s9249_s6  ;;  %8988 = vmatpush3.bf16.msra.mxu0 %v8985_v8 }
0x14c6   :  { %v5321_v29 = vmax.f32 %v5313_v45, 0.0  ;;  %v5259_v50 = vmul.f32 %v5242_v24, %v5193_v48  ;;  %v7982_v51 = vpop.f32.mrb[64].mxu1  ;;  %v5093_v52 = vadd.f32 %v7981_v47, %v7925_v56  ;;  %v5416_v24 = vld [vmem:[%s7643_s14 + $0x10] sm:$0x1]  ;;  %s9319_s14 = smov 44  }
0x14c7   :  { %v5320_v53 = vmax.f32 %v5312_v49, 0.0  ;;  %v5258_v55 = vmul.f32 %v5237_v15, %v5188_v59  ;;  %v7983_v61 = vpop.f32.mrb[65].mxu1  ;;  %v8391_v62 = vpop.f32.mrb[46].mxu0  ;;  %8396 = vmatprep.subr.msk.mxu0 %vm5442_vm3, %v5416_v24  ;;  %s11673_s1 = sld [smem:[%s11699_s0 + %s9319_s14]]  }
0x14c8   :  { %5329 = vst.msk [vmem:[%s10923_s4 + $0x18] sm:$0xff] %vm3669_vm10, %v5321_v29  ;;  %v5315_v63 = vadd.f32 %v5298_v37, %v5259_v50  ;;  %v7984_v1 = vadd.f32 %v7983_v61, %v7982_v51  ;;  %5348 = vrot.lane.b32.xlu0 %v5321_v29, %s9249_s6  ;;  %v5197_v3 = vpop.f32.mrb[47].mxu0  ;;  %v5303_v9 = vpop.permute.xlu1 %5302 }
0x14c9   :  { %5328 = vst.msk [vmem:[%s10923_s4 + $0x10] sm:$0xff] %vm3669_vm10, %v5320_v53  ;;  %v5314_v42 = vadd.f32 %v5293_v31, %v5258_v55  ;;  %v5198_v0 = vadd.f32 %v5197_v3, %v5093_v52  ;;  %5346 = vrot.lane.b32.xlu1 %v5320_v53, %s9249_s6  ;;  %8397 = vmatpush3.msk.msra.mxu0 %vm5442_vm3, %v5416_v24  ;;  %v6413_v24 = vld [vmem:[%s11151_s23 + $0x8] sm:$0xff] }
0x14ca   :  { %v5323_v7 = vmax.f32 %v5315_v63, 0.0  ;;  %v5098_v56 = vadd.f32 %v7984_v1, %v10918_v14 }
0x14cb   :  { %v5322_v54 = vmax.f32 %v5314_v42, 0.0  ;;  %v5260_v60 = vmul.f32 %v5247_v57, %v5198_v0 }
0x14cc   :  { %5331 = vst.msk [vmem:[%s10923_s4 + $0x28] sm:$0xff] %vm3669_vm10, %v5323_v7  ;;  %v5203_v10 = vadd.f32 %v8391_v62, %v5098_v56  ;;  %5352 = vrot.lane.b32.xlu0 %v5323_v7, %s9249_s6  ;;  %v5962_v56 = vld [vmem:[%s11114_s13 + $0x8] sm:$0xff] }
0x14cd   :  { %5330 = vst.msk [vmem:[%s10923_s4 + $0x20] sm:$0xff] %vm3669_vm10, %v5322_v54  ;;  %v5316_v11 = vadd.f32 %v5303_v9, %v5260_v60  ;;  %5350 = vrot.lane.b32.xlu1 %v5322_v54, %s9249_s6  ;;  %6161 = vmatprep.mubr.f32.mxu1 %v5962_v56 }
0x14ce   :  { %v5261_v12 = vmul.f32 %v5252_v39, %v5203_v10 }
0x14cf   :  { %v5324_v14 = vmax.f32 %v5316_v11, 0.0 }
0x14d0   :  { %v5317_v15 = vadd.f32 %v5308_v13, %v5261_v12 }
0x14d1   :  { %5332 = vst.msk [vmem:[%s10923_s4 + $0x30] sm:$0xff] %vm3669_vm10, %v5324_v14  ;;  %5354 = vrot.lane.b32.xlu1 %v5324_v14, %s9249_s6 }
0x14d2   :  { %v5325_v4 = vmax.f32 %v5317_v15, 0.0 }
0x14d4   :  { %5333 = vst.msk [vmem:[%s10923_s4 + $0x38] sm:$0xff] %vm3669_vm10, %v5325_v4  ;;  %5356 = vrot.lane.b32.xlu0 %v5325_v4, %s9249_s6 }
0x1536   :  { %v5345_v17 = vpop.permute.xlu0 %5344 }
0x1537   :  { %v5367_v18 = vmax.f32 %v10925_v38, %v5345_v17  ;;  %v5343_v21 = vpop.permute.xlu1 %5342 }
0x1538   :  { %v5366_v22 = vmax.f32 %v10927_v43, %v5343_v21 }
0x1539   :  { %5384 = vrot.lane.b32.xlu0 %v5367_v18, %s9302_s19 }
0x153a   :  { %v5349_v20 = vpop.permute.xlu0 %5348  ;;  %5382 = vrot.lane.b32.xlu1 %v5366_v22, %s9302_s19 }
0x153b   :  { %v5369_v25 = vmax.f32 %v5321_v29, %v5349_v20  ;;  %v5347_v26 = vpop.permute.xlu1 %5346 }
0x153c   :  { %v5368_v27 = vmax.f32 %v5320_v53, %v5347_v26  ;;  %v6469_v26 = vld [vmem:[%s11162_s2 + $0x8] sm:$0xff] }
0x153d   :  { %5388 = vrot.lane.b32.xlu0 %v5369_v25, %s9302_s19 }
0x153e   :  { %v5353_v58 = vpop.permute.xlu0 %5352  ;;  %5386 = vrot.lane.b32.xlu1 %v5368_v27, %s9302_s19 }
0x153f   :  { %v5371_v23 = vmax.f32 %v5323_v7, %v5353_v58  ;;  %v5351_v31 = vpop.permute.xlu1 %5350  ;;  %v6468_v58 = vld [vmem:[%s11162_s2] sm:$0xff] }
0x1540   :  { %v5370_v30 = vmax.f32 %v5322_v54, %v5351_v31  ;;  %v5964_v54 = vld [vmem:[%s11114_s13 + $0x18] sm:$0xff] }
0x1541   :  { %5392 = vrot.lane.b32.xlu0 %v5371_v23, %s9302_s19 }
0x1542   :  { %5390 = vrot.lane.b32.xlu1 %v5370_v30, %s9302_s19 }
0x1543   :  { %v5355_v28 = vpop.permute.xlu1 %5354 }
0x1544   :  { %v5372_v33 = vmax.f32 %v5324_v14, %v5355_v28 }
0x1546   :  { %v5357_v34 = vpop.permute.xlu0 %5356  ;;  %5394 = vrot.lane.b32.xlu1 %v5372_v33, %s9302_s19 }
0x1547   :  { %v5373_v32 = vmax.f32 %v5325_v4, %v5357_v34 }
0x1549   :  { %5396 = vrot.lane.b32.xlu0 %v5373_v32, %s9302_s19 }
0x15ab   :  { %v5385_v36 = vpop.permute.xlu0 %5384 }
0x15ac   :  { %v5383_v37 = vpop.permute.xlu1 %5382  ;;  %v5407_v40 = vmax.f32 %v5367_v18, %v5385_v36  ;;  %v6412_v18 = vld [vmem:[%s11151_s23] sm:$0xff] }
0x15ad   :  { %v5406_v38 = vmax.f32 %v5366_v22, %v5383_v37  ;;  %v6471_v37 = vld [vmem:[%s11162_s2 + $0x18] sm:$0xff] }
0x15af   :  { %v5389_v41 = vpop.permute.xlu0 %5388  ;;  %8398 = vmatprep.mubr.msk.f32.mxu0 %vm5417_vm4, %v5406_v38 }
0x15b0   :  { %8399 = vmatmul.mubr.msk.f32.vlgmr.msra.gmra.mrb[48].mxu0 %vm5417_vm4, %v5407_v40  ;;  %v5387_v19 = vpop.permute.xlu1 %5386  ;;  %v5409_v35 = vmax.f32 %v5369_v25, %v5389_v41  ;;  %v6470_v40 = vld [vmem:[%s11162_s2 + $0x10] sm:$0xff] }
0x15b1   :  { %v5408_v43 = vmax.f32 %v5368_v27, %v5387_v19  ;;  %v6417_v19 = vld [vmem:[%s11151_s23 + $0x28] sm:$0xff] }
0x15b3   :  { %v5393_v46 = vpop.permute.xlu0 %5392  ;;  %8401 = vmatprep.mubr.msk.f32.mxu0 %vm5417_vm4, %v5408_v43 }
0x15b4   :  { %8402 = vmatmul.mubr.msk.f32.gmra.mrb[50].mxu0 %vm5417_vm4, %v5409_v35  ;;  %v5391_v44 = vpop.permute.xlu1 %5390  ;;  %v5411_v47 = vmax.f32 %v5371_v23, %v5393_v46  ;;  %v6416_v35 = vld [vmem:[%s11151_s23 + $0x20] sm:$0xff] }
0x15b5   :  { %v5410_v45 = vmax.f32 %v5370_v30, %v5391_v44  ;;  %v6473_v44 = vld [vmem:[%s11162_s2 + $0x28] sm:$0xff] }
0x15b7   :  { %8404 = vmatprep.mubr.msk.f32.mxu0 %vm5417_vm4, %v5410_v45 }
0x15b8   :  { %8405 = vmatmul.mubr.msk.f32.gmra.mrb[52].mxu0 %vm5417_vm4, %v5411_v47  ;;  %v5395_v48 = vpop.permute.xlu1 %5394  ;;  %v6472_v47 = vld [vmem:[%s11162_s2 + $0x20] sm:$0xff] }
0x15b9   :  { %v5412_v6 = vmax.f32 %v5372_v33, %v5395_v48  ;;  %v6415_v33 = vld [vmem:[%s11151_s23 + $0x18] sm:$0xff] }
0x15bb   :  { %v5397_v49 = vpop.permute.xlu0 %5396  ;;  %8407 = vmatprep.mubr.msk.f32.mxu0 %vm5417_vm4, %v5412_v6  ;;  %v6419_v6 = vld [vmem:[%s11151_s23 + $0x38] sm:$0xff] }
0x15bc   :  { %v5413_v59 = vmax.f32 %v5373_v32, %v5397_v49  ;;  %v6414_v32 = vld [vmem:[%s11151_s23 + $0x10] sm:$0xff] }
0x15be   :  { %8408 = vmatmul.mubr.msk.f32.gmra.mrb[54].mxu0 %vm5417_vm4, %v5413_v59 }
0x15bf   :  { %6266 = vmatprep.mubr.f32.mxu0 %v5964_v54 }
0x1683   :  { %v8400_v57 = vpop.f32.mrb[48].mxu0 }
0x1684   :  { %v5512_v29 = vpop.f32.mrb[49].mxu0  ;;  %5553 = vst.msk [vmem:[#allocation3 + $0x30] sm:$0xff] %vm5551_vm6, %v8400_v57  ;;  %v6418_v57 = vld [vmem:[%s11151_s23 + $0x30] sm:$0xff] }
0x1685   :  { %5552 = vst.msk [vmem:[#allocation3] sm:$0xff] %vm5551_vm6, %v5512_v29 }
0x1687   :  { %v8403_v50 = vpop.f32.mrb[50].mxu0 }
0x1688   :  { %v5522_v51 = vpop.f32.mrb[51].mxu0  ;;  %5555 = vst.msk [vmem:[#allocation3 + $0x90] sm:$0xff] %vm5551_vm6, %v8403_v50 }
0x1689   :  { %5554 = vst.msk [vmem:[#allocation3 + $0x60] sm:$0xff] %vm5551_vm6, %v5522_v51 }
0x168b   :  { %v8406_v52 = vpop.f32.mrb[52].mxu0  ;;  %v10983_v53 = vld [vmem:[#allocation3 + $0x30] sm:$0xff] }
0x168c   :  { %5643 = vrot.lane.b32.xlu0 %v10983_v53, %s9250_s7  ;;  %5557 = vst.msk [vmem:[#allocation3 + $0xf0] sm:$0xff] %vm5551_vm6, %v8406_v52  ;;  %v5532_v55 = vpop.f32.mrb[53].mxu0  ;;  %v10988_v61 = vld [vmem:[#allocation3] sm:$0xff] }
0x168d   :  { %5570 = vst.msk [vmem:[#allocation2 + $0x28] sm:$0xff] %vm5568_vm2, %v10983_v53  ;;  %5641 = vrot.lane.b32.xlu1 %v10988_v61, %s9250_s7  ;;  %5569 = vst.msk [vmem:[#allocation2] sm:$0xff] %vm5568_vm2, %v10988_v61 }
0x168e   :  { %5556 = vst.msk [vmem:[#allocation3 + $0xc0] sm:$0xff] %vm5551_vm6, %v5532_v55 }
0x168f   :  { %v10997_v62 = vld [vmem:[#allocation3 + $0x90] sm:$0xff]  ;;  %6534 = vst.msk [vmem:[#allocation3 + $0x30] sm:$0xff] %vm6532_vm1, %v9256_v5  ;;  %6533 = vst.msk [vmem:[#allocation3] sm:$0xff] %vm6532_vm1, %v9256_v5 }
0x1690   :  { %5835 = vrot.lane.b32.xlu0 %v10983_v53, %s9286_s20  ;;  %v11001_v63 = vld [vmem:[#allocation3 + $0x60] sm:$0xff]  ;;  %5572 = vst.msk [vmem:[#allocation2 + $0x78] sm:$0xff] %vm5568_vm2, %v10997_v62 }
0x1691   :  { %5833 = vrot.lane.b32.xlu1 %v10988_v61, %s9286_s20  ;;  %v8409_v1 = vpop.f32.mrb[54].mxu0  ;;  %5571 = vst.msk [vmem:[#allocation2 + $0x50] sm:$0xff] %vm5568_vm2, %v11001_v63 }
0x1692   :  { %5559 = vst.msk [vmem:[#allocation3 + $0x150] sm:$0xff] %vm5551_vm6, %v8409_v1  ;;  %v5542_v3 = vpop.f32.mrb[55].mxu0 }
0x1693   :  { %5558 = vst.msk [vmem:[#allocation3 + $0x120] sm:$0xff] %vm5551_vm6, %v5542_v3  ;;  %v11011_v39 = vld [vmem:[#allocation3 + $0xf0] sm:$0xff] }
0x1694   :  { %5739 = vrot.lane.b32.xlu0 %v10983_v53, %s9302_s19  ;;  %5574 = vst.msk [vmem:[#allocation2 + $0xc8] sm:$0xff] %vm5568_vm2, %v11011_v39  ;;  %v6001_v14 = vld [vmem:[#allocation2] sm:$0xff]  ;;  %v6002_v15 = vld [vmem:[#allocation2 + $0x28] sm:$0xff] }
0x1695   :  { %v11015_v42 = vld [vmem:[#allocation3 + $0xc0] sm:$0xff]  ;;  %5737 = vrot.lane.b32.xlu1 %v10988_v61, %s9302_s19  ;;  %v8991_v4 = vpack.c.bf16 %v6002_v15, %v6001_v14  ;;  %6535 = vst.msk [vmem:[#allocation3 + $0x60] sm:$0xff] %vm6532_vm1, %v9256_v5  ;;  %6536 = vst.msk [vmem:[#allocation3 + $0x90] sm:$0xff] %vm6532_vm1, %v9256_v5 }
0x1696   :  { %5573 = vst.msk [vmem:[#allocation2 + $0xa0] sm:$0xff] %vm5568_vm2, %v11015_v42 }
0x1697   :  { %v6004_v49 = vld [vmem:[#allocation2 + $0x78] sm:$0xff]  ;;  %6537 = vst.msk [vmem:[#allocation3 + $0xc0] sm:$0xff] %vm6532_vm1, %v9256_v5  ;;  %6538 = vst.msk [vmem:[#allocation3 + $0xf0] sm:$0xff] %vm6532_vm1, %v9256_v5 }
0x1698   :  { %5691 = vrot.lane.b32.xlu0 %v10983_v53, %s9311_s10  ;;  %v6003_v50 = vld [vmem:[#allocation2 + $0x50] sm:$0xff] }
0x1699   :  { %5689 = vrot.lane.b32.xlu1 %v10988_v61, %s9311_s10  ;;  %v11027_v0 = vld [vmem:[#allocation3 + $0x150] sm:$0xff]  ;;  %v8995_v55 = vpack.c.bf16 %v6004_v49, %v6003_v50 }
0x169a   :  { %v11029_v7 = vld [vmem:[#allocation3 + $0x120] sm:$0xff]  ;;  %5576 = vst.msk [vmem:[#allocation2 + $0x118] sm:$0xff] %vm5568_vm2, %v11027_v0 }
0x169b   :  { %5575 = vst.msk [vmem:[#allocation2 + $0xf0] sm:$0xff] %vm5568_vm2, %v11029_v7 }
0x169c   :  { %5595 = vrot.lane.b32.xlu0 %v10983_v53, %s9249_s6  ;;  %6539 = vst.msk [vmem:[#allocation3 + $0x120] sm:$0xff] %vm6532_vm1, %v9256_v5  ;;  %6540 = vst.msk [vmem:[#allocation3 + $0x150] sm:$0xff] %vm6532_vm1, %v9256_v5 }
0x169d   :  { %5593 = vrot.lane.b32.xlu1 %v10988_v61, %s9249_s6 }
0x16a0   :  { %5883 = vrot.lane.b32.xlu0 %v10983_v53, %s9287_s21 }
0x16a1   :  { %5881 = vrot.lane.b32.xlu1 %v10988_v61, %s9287_s21 }
0x16a4   :  { %5787 = vrot.lane.b32.xlu0 %v10983_v53, %s9300_s18 }
0x16a5   :  { %5785 = vrot.lane.b32.xlu1 %v10988_v61, %s9300_s18 }
0x16a8   :  { %5647 = vrot.lane.b32.xlu0 %v10997_v62, %s9250_s7 }
0x16a9   :  { %5645 = vrot.lane.b32.xlu1 %v11001_v63, %s9250_s7 }
0x16ac   :  { %5839 = vrot.lane.b32.xlu0 %v10997_v62, %s9286_s20 }
0x16ad   :  { %5837 = vrot.lane.b32.xlu1 %v11001_v63, %s9286_s20 }
0x16b0   :  { %5743 = vrot.lane.b32.xlu0 %v10997_v62, %s9302_s19 }
0x16b1   :  { %5741 = vrot.lane.b32.xlu1 %v11001_v63, %s9302_s19 }
0x16b4   :  { %5695 = vrot.lane.b32.xlu0 %v10997_v62, %s9311_s10 }
0x16b5   :  { %5693 = vrot.lane.b32.xlu1 %v11001_v63, %s9311_s10 }
0x16b8   :  { %5599 = vrot.lane.b32.xlu0 %v10997_v62, %s9249_s6 }
0x16b9   :  { %5597 = vrot.lane.b32.xlu1 %v11001_v63, %s9249_s6 }
0x16bc   :  { %5887 = vrot.lane.b32.xlu0 %v10997_v62, %s9287_s21 }
0x16bd   :  { %5885 = vrot.lane.b32.xlu1 %v11001_v63, %s9287_s21 }
0x16c0   :  { %5791 = vrot.lane.b32.xlu0 %v10997_v62, %s9300_s18 }
0x16c1   :  { %5789 = vrot.lane.b32.xlu1 %v11001_v63, %s9300_s18 }
0x16c4   :  { %5651 = vrot.lane.b32.xlu0 %v11011_v39, %s9250_s7 }
0x16c5   :  { %5649 = vrot.lane.b32.xlu1 %v11015_v42, %s9250_s7 }
0x16c8   :  { %5843 = vrot.lane.b32.xlu0 %v11011_v39, %s9286_s20 }
0x16c9   :  { %5841 = vrot.lane.b32.xlu1 %v11015_v42, %s9286_s20 }
0x16cc   :  { %5747 = vrot.lane.b32.xlu0 %v11011_v39, %s9302_s19 }
0x16cd   :  { %5745 = vrot.lane.b32.xlu1 %v11015_v42, %s9302_s19 }
0x16d0   :  { %5699 = vrot.lane.b32.xlu0 %v11011_v39, %s9311_s10 }
0x16d1   :  { %5697 = vrot.lane.b32.xlu1 %v11015_v42, %s9311_s10 }
0x16d4   :  { %5603 = vrot.lane.b32.xlu0 %v11011_v39, %s9249_s6 }
0x16d5   :  { %5601 = vrot.lane.b32.xlu1 %v11015_v42, %s9249_s6 }
0x16d8   :  { %5655 = vrot.lane.b32.xlu0 %v11027_v0, %s9250_s7 }
0x16d9   :  { %5653 = vrot.lane.b32.xlu1 %v11029_v7, %s9250_s7 }
0x16dc   :  { %5847 = vrot.lane.b32.xlu0 %v11027_v0, %s9286_s20 }
0x16dd   :  { %5889 = vrot.lane.b32.xlu1 %v11015_v42, %s9287_s21 }
0x16e0   :  { %5751 = vrot.lane.b32.xlu0 %v11027_v0, %s9302_s19 }
0x16e1   :  { %5845 = vrot.lane.b32.xlu1 %v11029_v7, %s9286_s20 }
0x16e4   :  { %5703 = vrot.lane.b32.xlu0 %v11027_v0, %s9311_s10 }
0x16e5   :  { %5749 = vrot.lane.b32.xlu1 %v11029_v7, %s9302_s19 }
0x16e8   :  { %5607 = vrot.lane.b32.xlu0 %v11027_v0, %s9249_s6 }
0x16e9   :  { %5701 = vrot.lane.b32.xlu1 %v11029_v7, %s9311_s10 }
0x16ec   :  { %5891 = vrot.lane.b32.xlu0 %v11011_v39, %s9287_s21 }
0x16ed   :  { %5605 = vrot.lane.b32.xlu1 %v11029_v7, %s9249_s6 }
0x16f0   :  { %5795 = vrot.lane.b32.xlu0 %v11011_v39, %s9300_s18 }
0x16f1   :  { %5793 = vrot.lane.b32.xlu1 %v11015_v42, %s9300_s18 }
0x16f4   :  { %5895 = vrot.lane.b32.xlu0 %v11027_v0, %s9287_s21 }
0x16f5   :  { %5893 = vrot.lane.b32.xlu1 %v11029_v7, %s9287_s21 }
0x16f8   :  { %5799 = vrot.lane.b32.xlu0 %v11027_v0, %s9300_s18 }
0x16f9   :  { %5797 = vrot.lane.b32.xlu1 %v11029_v7, %s9300_s18 }
0x16fc   :  { %5931 = vrot.lane.b32.xlu0 %v10983_v53, %s9288_s22 }
0x16fd   :  { %5929 = vrot.lane.b32.xlu1 %v10988_v61, %s9288_s22  ;;  %v6475_v61 = vld [vmem:[%s11162_s2 + $0x38] sm:$0xff] }
0x16fe   :  { %v5644_v60 = vpop.permute.xlu0 %5643 }
0x16ff   :  { %5666 = vst.msk [vmem:[#allocation2 + $0x2a8] sm:$0xff] %vm5568_vm2, %v5644_v60  ;;  %v5642_v9 = vpop.permute.xlu1 %5641 }
0x1700   :  { %5665 = vst.msk [vmem:[#allocation2 + $0x280] sm:$0xff] %vm5568_vm2, %v5642_v9  ;;  %5935 = vrot.lane.b32.xlu0 %v10997_v62, %s9288_s22 }
0x1701   :  { %5933 = vrot.lane.b32.xlu1 %v11001_v63, %s9288_s22  ;;  %v6474_v63 = vld [vmem:[%s11162_s2 + $0x30] sm:$0xff] }
0x1702   :  { %v5836_v10 = vpop.permute.xlu0 %5835 }
0x1703   :  { %5858 = vst.msk [vmem:[#allocation2 + $0x7a8] sm:$0xff] %vm5568_vm2, %v5836_v10  ;;  %v5834_v11 = vpop.permute.xlu1 %5833 }
0x1704   :  { %5857 = vst.msk [vmem:[#allocation2 + $0x780] sm:$0xff] %vm5568_vm2, %v5834_v11  ;;  %5939 = vrot.lane.b32.xlu0 %v11011_v39, %s9288_s22 }
0x1705   :  { %5937 = vrot.lane.b32.xlu1 %v11015_v42, %s9288_s22 }
0x1706   :  { %v5740_v12 = vpop.permute.xlu0 %5739  ;;  %v6018_v13 = vld [vmem:[#allocation2 + $0x2a8] sm:$0xff] }
0x1707   :  { %5762 = vst.msk [vmem:[#allocation2 + $0x528] sm:$0xff] %vm5568_vm2, %v5740_v12  ;;  %v5738_v16 = vpop.permute.xlu1 %5737  ;;  %v6017_v2 = vld [vmem:[#allocation2 + $0x280] sm:$0xff] }
0x1708   :  { %5761 = vst.msk [vmem:[#allocation2 + $0x500] sm:$0xff] %vm5568_vm2, %v5738_v16  ;;  %5943 = vrot.lane.b32.xlu0 %v11027_v0, %s9288_s22  ;;  %v8989_v8 = vpack.c.bf16 %v6018_v13, %v6017_v2 }
0x1709   :  { %5941 = vrot.lane.b32.xlu1 %v11029_v7, %s9288_s22 }
0x170a   :  { %v5692_v17 = vpop.permute.xlu0 %5691  ;;  %8990 = vmatprep.subr.bf16.mxu1 %v8989_v8  ;;  %v6050_v21 = vld [vmem:[#allocation2 + $0x7a8] sm:$0xff] }
0x170b   :  { %5714 = vst.msk [vmem:[#allocation2 + $0x3e8] sm:$0xff] %vm5568_vm2, %v5692_v17  ;;  %8992 = vmatpush3.bf16.msra.mxu1 %v8991_v4  ;;  %v5690_v22 = vpop.permute.xlu1 %5689  ;;  %v6049_v20 = vld [vmem:[#allocation2 + $0x780] sm:$0xff] }
0x170c   :  { %5713 = vst.msk [vmem:[#allocation2 + $0x3c0] sm:$0xff] %vm5568_vm2, %v5690_v22  ;;  %6427 = vperm.xlu0 %9233, %v6413_v24   ;;  %v9021_v25 = vpack.c.bf16 %v6050_v21, %v6049_v20  ;;  %v6005_v4 = vld [vmem:[#allocation2 + $0xa0] sm:$0xff]  ;;  %v6006_v24 = vld [vmem:[#allocation2 + $0xc8] sm:$0xff] }
0x170d   :  { %6422 = vperm.xlu1 %9232, %v6412_v18   ;;  %v8999_v22 = vpack.c.bf16 %v6006_v24, %v6005_v4 }
0x170e   :  { %v5596_v27 = vpop.permute.xlu0 %5595  ;;  %9022 = vmatprep.subr.bf16.mxu0 %v9021_v25  ;;  %v6034_v23 = vld [vmem:[#allocation2 + $0x528] sm:$0xff] }
0x170f   :  { %5618 = vst.msk [vmem:[#allocation2 + $0x168] sm:$0xff] %vm5568_vm2, %v5596_v27  ;;  %v5594_v31 = vpop.permute.xlu1 %5593  ;;  %v6033_v30 = vld [vmem:[#allocation2 + $0x500] sm:$0xff] }
0x1710   :  { %5617 = vst.msk [vmem:[#allocation2 + $0x140] sm:$0xff] %vm5568_vm2, %v5594_v31  ;;  %6483 = vperm.xlu0 %9233, %v6469_v26   ;;  %v9023_v28 = vpack.c.bf16 %v6034_v23, %v6033_v30 }
0x1711   :  { %6478 = vperm.xlu1 %9232, %v6468_v58  }
0x1712   :  { %v5884_v34 = vpop.permute.xlu0 %5883  ;;  %9024 = vmatpush3.bf16.msra.mxu0 %v9023_v28 }
0x1713   :  { %5906 = vst.msk [vmem:[#allocation2 + $0x8e8] sm:$0xff] %vm5568_vm2, %v5884_v34  ;;  %v5882_v36 = vpop.permute.xlu1 %5881 }
0x1714   :  { %5905 = vst.msk [vmem:[#allocation2 + $0x8c0] sm:$0xff] %vm5568_vm2, %v5882_v36  ;;  %6437 = vperm.xlu0 %9233, %v6415_v33  }
0x1715   :  { %6432 = vperm.xlu1 %9232, %v6414_v32  }
0x1716   :  { %v5788_v38 = vpop.permute.xlu0 %5787 }
0x1717   :  { %5810 = vst.msk [vmem:[#allocation2 + $0x668] sm:$0xff] %vm5568_vm2, %v5788_v38  ;;  %v5786_v41 = vpop.permute.xlu1 %5785  ;;  %v6009_v49 = vld [vmem:[#allocation2 + $0x140] sm:$0xff] }
0x1718   :  { %5809 = vst.msk [vmem:[#allocation2 + $0x640] sm:$0xff] %vm5568_vm2, %v5786_v41  ;;  %6493 = vperm.xlu0 %9233, %v6471_v37   ;;  %v6007_v41 = vld [vmem:[#allocation2 + $0xf0] sm:$0xff] }
0x1719   :  { %6488 = vperm.xlu1 %9232, %v6470_v40  }
0x171a   :  { %v5648_v43 = vpop.permute.xlu0 %5647 }
0x171b   :  { %5668 = vst.msk [vmem:[#allocation2 + $0x2f8] sm:$0xff] %vm5568_vm2, %v5648_v43  ;;  %v5646_v46 = vpop.permute.xlu1 %5645 }
0x171c   :  { %5667 = vst.msk [vmem:[#allocation2 + $0x2d0] sm:$0xff] %vm5568_vm2, %v5646_v46  ;;  %6447 = vperm.xlu0 %9233, %v6417_v19   ;;  %v6008_v19 = vld [vmem:[#allocation2 + $0x118] sm:$0xff]  ;;  %v6025_v46 = vld [vmem:[#allocation2 + $0x3c0] sm:$0xff] }
0x171d   :  { %6442 = vperm.xlu1 %9232, %v6416_v35  }
0x171e   :  { %v5840_v45 = vpop.permute.xlu0 %5839 }
0x171f   :  { %5860 = vst.msk [vmem:[#allocation2 + $0x7f8] sm:$0xff] %vm5568_vm2, %v5840_v45  ;;  %v5838_v48 = vpop.permute.xlu1 %5837 }
0x1720   :  { %5859 = vst.msk [vmem:[#allocation2 + $0x7d0] sm:$0xff] %vm5568_vm2, %v5838_v48  ;;  %6503 = vperm.xlu0 %9233, %v6473_v44   ;;  %v6026_v44 = vld [vmem:[#allocation2 + $0x3e8] sm:$0xff] }
0x1721   :  { %6498 = vperm.xlu1 %9232, %v6472_v47   ;;  %v9003_v47 = vpack.c.bf16 %v6008_v19, %v6007_v41 }
0x1722   :  { %v5744_v59 = vpop.permute.xlu0 %5743  ;;  %v6020_v29 = vld [vmem:[#allocation2 + $0x2f8] sm:$0xff] }
0x1723   :  { %5764 = vst.msk [vmem:[#allocation2 + $0x578] sm:$0xff] %vm5568_vm2, %v5744_v59  ;;  %v5742_v51 = vpop.permute.xlu1 %5741  ;;  %v6019_v52 = vld [vmem:[#allocation2 + $0x2d0] sm:$0xff]  ;;  %v6010_v59 = vld [vmem:[#allocation2 + $0x168] sm:$0xff] }
0x1724   :  { %5763 = vst.msk [vmem:[#allocation2 + $0x550] sm:$0xff] %vm5568_vm2, %v5742_v51  ;;  %6457 = vperm.xlu0 %9233, %v6419_v6   ;;  %v8993_v53 = vpack.c.bf16 %v6020_v29, %v6019_v52  ;;  %v9005_v6 = vpack.c.bf16 %v6026_v44, %v6025_v46  ;;  %v9007_v51 = vpack.c.bf16 %v6010_v59, %v6009_v49  ;;  %v5972_v49 = vld [vmem:[%s11114_s13 + $0x58] sm:$0xff] }
0x1725   :  { %6452 = vperm.xlu1 %9232, %v6418_v57  }
0x1726   :  { %v5696_v62 = vpop.permute.xlu0 %5695  ;;  %8994 = vmatprep.subr.bf16.mxu1 %v8993_v53  ;;  %v6052_v1 = vld [vmem:[#allocation2 + $0x7f8] sm:$0xff] }
0x1727   :  { %5716 = vst.msk [vmem:[#allocation2 + $0x438] sm:$0xff] %vm5568_vm2, %v5696_v62  ;;  %8996 = vmatpush3.bf16.msra.mxu1 %v8995_v55  ;;  %v5694_v3 = vpop.permute.xlu1 %5693  ;;  %v6051_v39 = vld [vmem:[#allocation2 + $0x7d0] sm:$0xff] }
0x1728   :  { %5715 = vst.msk [vmem:[#allocation2 + $0x410] sm:$0xff] %vm5568_vm2, %v5694_v3  ;;  %6513 = vperm.xlu0 %9233, %v6475_v61   ;;  %v9025_v42 = vpack.c.bf16 %v6052_v1, %v6051_v39 }
0x1729   :  { %6508 = vperm.xlu1 %9232, %v6474_v63  }
0x172a   :  { %v5600_v0 = vpop.permute.xlu0 %5599  ;;  %9026 = vmatprep.subr.bf16.mxu0 %v9025_v42  ;;  %v6036_v7 = vld [vmem:[#allocation2 + $0x578] sm:$0xff] }
0x172b   :  { %5620 = vst.msk [vmem:[#allocation2 + $0x1b8] sm:$0xff] %vm5568_vm2, %v5600_v0  ;;  %v5598_v56 = vpop.permute.xlu1 %5597  ;;  %v6035_v54 = vld [vmem:[#allocation2 + $0x550] sm:$0xff] }
0x172c   :  { %5619 = vst.msk [vmem:[#allocation2 + $0x190] sm:$0xff] %vm5568_vm2, %v5598_v56  ;;  %v9027_v60 = vpack.c.bf16 %v6036_v7, %v6035_v54  ;;  %v6058_v7 = vld [vmem:[#allocation2 + $0x8e8] sm:$0xff] }
0x172e   :  { %v5888_v9 = vpop.permute.xlu0 %5887  ;;  %9028 = vmatpush3.bf16.msra.mxu0 %v9027_v60  ;;  %v6028_v50 = vld [vmem:[#allocation2 + $0x438] sm:$0xff] }
0x172f   :  { %5908 = vst.msk [vmem:[#allocation2 + $0x938] sm:$0xff] %vm5568_vm2, %v5888_v9  ;;  %v5886_v10 = vpop.permute.xlu1 %5885  ;;  %v6027_v29 = vld [vmem:[#allocation2 + $0x410] sm:$0xff] }
0x1730   :  { %5907 = vst.msk [vmem:[#allocation2 + $0x910] sm:$0xff] %vm5568_vm2, %v5886_v10  ;;  %v9009_v53 = vpack.c.bf16 %v6028_v50, %v6027_v29  ;;  %v6057_v10 = vld [vmem:[#allocation2 + $0x8c0] sm:$0xff]  ;;  %v5971_v29 = vld [vmem:[%s11114_s13 + $0x50] sm:$0xff] }
0x1732   :  { %v5792_v11 = vpop.permute.xlu0 %5791  ;;  %v6012_v61 = vld [vmem:[#allocation2 + $0x1b8] sm:$0xff] }
0x1733   :  { %5812 = vst.msk [vmem:[#allocation2 + $0x6b8] sm:$0xff] %vm5568_vm2, %v5792_v11  ;;  %v5790_v12 = vpop.permute.xlu1 %5789  ;;  %v6011_v55 = vld [vmem:[#allocation2 + $0x190] sm:$0xff] }
0x1734   :  { %5811 = vst.msk [vmem:[#allocation2 + $0x690] sm:$0xff] %vm5568_vm2, %v5790_v12  ;;  %v9011_v0 = vpack.c.bf16 %v6012_v61, %v6011_v55 }
0x1736   :  { %v5652_v13 = vpop.permute.xlu0 %5651 }
0x1737   :  { %5670 = vst.msk [vmem:[#allocation2 + $0x348] sm:$0xff] %vm5568_vm2, %v5652_v13  ;;  %v5650_v14 = vpop.permute.xlu1 %5649  ;;  %v6059_v24 = vld [vmem:[#allocation2 + $0x910] sm:$0xff] }
0x1738   :  { %5669 = vst.msk [vmem:[#allocation2 + $0x320] sm:$0xff] %vm5568_vm2, %v5650_v14 }
0x173a   :  { %v5844_v15 = vpop.permute.xlu0 %5843 }
0x173b   :  { %5862 = vst.msk [vmem:[#allocation2 + $0x848] sm:$0xff] %vm5568_vm2, %v5844_v15  ;;  %v5842_v16 = vpop.permute.xlu1 %5841 }
0x173c   :  { %5861 = vst.msk [vmem:[#allocation2 + $0x820] sm:$0xff] %vm5568_vm2, %v5842_v16  ;;  %v9037_v16 = vpack.c.bf16 %v6058_v7, %v6057_v10  ;;  %v5969_v7 = vld [vmem:[%s11114_s13 + $0x40] sm:$0xff] }
0x173e   :  { %v5748_v2 = vpop.permute.xlu0 %5747  ;;  %v6022_v8 = vld [vmem:[#allocation2 + $0x348] sm:$0xff] }
0x173f   :  { %5766 = vst.msk [vmem:[#allocation2 + $0x5c8] sm:$0xff] %vm5568_vm2, %v5748_v2  ;;  %v5746_v17 = vpop.permute.xlu1 %5745  ;;  %v6021_v18 = vld [vmem:[#allocation2 + $0x320] sm:$0xff] }
0x1740   :  { %5765 = vst.msk [vmem:[#allocation2 + $0x5a0] sm:$0xff] %vm5568_vm2, %v5746_v17  ;;  %v8997_v21 = vpack.c.bf16 %v6022_v8, %v6021_v18  ;;  %v6041_v2 = vld [vmem:[#allocation2 + $0x640] sm:$0xff]  ;;  %v6042_v8 = vld [vmem:[#allocation2 + $0x668] sm:$0xff]  ;;  %v6060_v17 = vld [vmem:[#allocation2 + $0x938] sm:$0xff] }
0x1742   :  { %v5700_v20 = vpop.permute.xlu0 %5699  ;;  %8998 = vmatprep.subr.bf16.mxu1 %v8997_v21  ;;  %v6054_v25 = vld [vmem:[#allocation2 + $0x848] sm:$0xff] }
0x1743   :  { %5718 = vst.msk [vmem:[#allocation2 + $0x488] sm:$0xff] %vm5568_vm2, %v5700_v20  ;;  %9000 = vmatpush3.bf16.msra.mxu1 %v8999_v22  ;;  %v5698_v26 = vpop.permute.xlu1 %5697  ;;  %v6053_v27 = vld [vmem:[#allocation2 + $0x820] sm:$0xff] }
0x1744   :  { %5717 = vst.msk [vmem:[#allocation2 + $0x460] sm:$0xff] %vm5568_vm2, %v5698_v26  ;;  %v9029_v58 = vpack.c.bf16 %v6054_v25, %v6053_v27  ;;  %v9039_v25 = vpack.c.bf16 %v6042_v8, %v6041_v2  ;;  %v9041_v26 = vpack.c.bf16 %v6060_v17, %v6059_v24  ;;  %v6043_v27 = vld [vmem:[#allocation2 + $0x690] sm:$0xff] }
0x1745   :  { %v5979_v17 = vld [vmem:[%s11114_s13 + $0x90] sm:$0xff] }
0x1746   :  { %v5604_v23 = vpop.permute.xlu0 %5603  ;;  %9030 = vmatprep.subr.bf16.mxu0 %v9029_v58  ;;  %v6038_v31 = vld [vmem:[#allocation2 + $0x5c8] sm:$0xff]  ;;  %v6044_v58 = vld [vmem:[#allocation2 + $0x6b8] sm:$0xff] }
0x1747   :  { %5622 = vst.msk [vmem:[#allocation2 + $0x208] sm:$0xff] %vm5568_vm2, %v5604_v23  ;;  %v5602_v30 = vpop.permute.xlu1 %5601  ;;  %v6037_v28 = vld [vmem:[#allocation2 + $0x5a0] sm:$0xff] }
0x1748   :  { %5621 = vst.msk [vmem:[#allocation2 + $0x1e0] sm:$0xff] %vm5568_vm2, %v5602_v30  ;;  %v9031_v33 = vpack.c.bf16 %v6038_v31, %v6037_v28 }
0x174a   :  { %v5656_v34 = vpop.permute.xlu0 %5655  ;;  %9032 = vmatpush3.bf16.msra.mxu0 %v9031_v33  ;;  %v6030_v62 = vld [vmem:[#allocation2 + $0x488] sm:$0xff] }
0x174b   :  { %5672 = vst.msk [vmem:[#allocation2 + $0x398] sm:$0xff] %vm5568_vm2, %v5656_v34  ;;  %v5654_v32 = vpop.permute.xlu1 %5653  ;;  %v6029_v39 = vld [vmem:[#allocation2 + $0x460] sm:$0xff] }
0x174c   :  { %5671 = vst.msk [vmem:[#allocation2 + $0x370] sm:$0xff] %vm5568_vm2, %v5654_v32  ;;  %v9013_v54 = vpack.c.bf16 %v6030_v62, %v6029_v39  ;;  %v9043_v32 = vpack.c.bf16 %v6044_v58, %v6043_v27  ;;  %v5976_v62 = vld [vmem:[%s11114_s13 + $0x78] sm:$0xff] }
0x174d   :  { %v5984_v27 = vld [vmem:[%s11114_s13 + $0xb8] sm:$0xff] }
0x174e   :  { %v5848_v36 = vpop.permute.xlu0 %5847  ;;  %v6014_v9 = vld [vmem:[#allocation2 + $0x208] sm:$0xff]  ;;  %v5996_v58 = vld [vmem:[%s11114_s13 + $0x118] sm:$0xff] }
0x174f   :  { %5864 = vst.msk [vmem:[#allocation2 + $0x898] sm:$0xff] %vm5568_vm2, %v5848_v36  ;;  %v5890_v37 = vpop.permute.xlu1 %5889  ;;  %v6013_v60 = vld [vmem:[#allocation2 + $0x1e0] sm:$0xff] }
0x1750   :  { %5909 = vst.msk [vmem:[#allocation2 + $0x960] sm:$0xff] %vm5568_vm2, %v5890_v37  ;;  %v9015_v15 = vpack.c.bf16 %v6014_v9, %v6013_v60  ;;  %v5968_v60 = vld [vmem:[%s11114_s13 + $0x38] sm:$0xff] }
0x1752   :  { %v5752_v38 = vpop.permute.xlu0 %5751  ;;  %v6024_v40 = vld [vmem:[#allocation2 + $0x398] sm:$0xff] }
0x1753   :  { %5768 = vst.msk [vmem:[#allocation2 + $0x618] sm:$0xff] %vm5568_vm2, %v5752_v38  ;;  %v5846_v43 = vpop.permute.xlu1 %5845  ;;  %v6023_v35 = vld [vmem:[#allocation2 + $0x370] sm:$0xff] }
0x1754   :  { %5863 = vst.msk [vmem:[#allocation2 + $0x870] sm:$0xff] %vm5568_vm2, %v5846_v43  ;;  %v9001_v45 = vpack.c.bf16 %v6024_v40, %v6023_v35  ;;  %v5961_v40 = vld [vmem:[%s11114_s13] sm:$0xff]  ;;  %v5967_v35 = vld [vmem:[%s11114_s13 + $0x30] sm:$0xff] }
0x1756   :  { %v5704_v48 = vpop.permute.xlu0 %5703  ;;  %9002 = vmatprep.subr.bf16.mxu1 %v9001_v45  ;;  %v6056_v3 = vld [vmem:[#allocation2 + $0x898] sm:$0xff]  ;;  %v5966_v45 = vld [vmem:[%s11114_s13 + $0x28] sm:$0xff] }
0x1757   :  { %5720 = vst.msk [vmem:[#allocation2 + $0x4d8] sm:$0xff] %vm5568_vm2, %v5704_v48  ;;  %9004 = vmatpush3.bf16.msra.mxu1 %v9003_v47  ;;  %v5750_v57 = vpop.permute.xlu1 %5749  ;;  %v6061_v36 = vld [vmem:[#allocation2 + $0x960] sm:$0xff] }
0x1758   :  { %5767 = vst.msk [vmem:[#allocation2 + $0x5f0] sm:$0xff] %vm5568_vm2, %v5750_v57  ;;  %9006 = vmatprep.subr.bf16.mxu1 %v9005_v6 }
0x175a   :  { %v5608_v52 = vpop.permute.xlu0 %5607  ;;  %v6040_v13 = vld [vmem:[#allocation2 + $0x618] sm:$0xff] }
0x175b   :  { %5624 = vst.msk [vmem:[#allocation2 + $0x258] sm:$0xff] %vm5568_vm2, %v5608_v52  ;;  %9008 = vmatpush3.bf16.msra.mxu1 %v9007_v51  ;;  %v5702_v63 = vpop.permute.xlu1 %5701  ;;  %v6055_v1 = vld [vmem:[#allocation2 + $0x870] sm:$0xff] }
0x175c   :  { %5719 = vst.msk [vmem:[#allocation2 + $0x4b0] sm:$0xff] %vm5568_vm2, %v5702_v63  ;;  %9010 = vmatprep.subr.bf16.mxu1 %v9009_v53  ;;  %v9033_v42 = vpack.c.bf16 %v6056_v3, %v6055_v1  ;;  %v5977_v53 = vld [vmem:[%s11114_s13 + $0x80] sm:$0xff]  ;;  %v5963_v63 = vld [vmem:[%s11114_s13 + $0x10] sm:$0xff] }
0x175e   :  { %v5892_v56 = vpop.permute.xlu0 %5891  ;;  %9034 = vmatprep.subr.bf16.mxu0 %v9033_v42  ;;  %v6032_v22 = vld [vmem:[#allocation2 + $0x4d8] sm:$0xff]  ;;  %v5982_v42 = vld [vmem:[%s11114_s13 + $0xa8] sm:$0xff] }
0x175f   :  { %5910 = vst.msk [vmem:[#allocation2 + $0x988] sm:$0xff] %vm5568_vm2, %v5892_v56  ;;  %9012 = vmatpush3.bf16.msra.mxu1 %v9011_v0  ;;  %v5606_v11 = vpop.permute.xlu1 %5605  ;;  %v6039_v12 = vld [vmem:[#allocation2 + $0x5f0] sm:$0xff] }
0x1760   :  { %5623 = vst.msk [vmem:[#allocation2 + $0x230] sm:$0xff] %vm5568_vm2, %v5606_v11  ;;  %9014 = vmatprep.subr.bf16.mxu1 %v9013_v54  ;;  %v9035_v14 = vpack.c.bf16 %v6040_v13, %v6039_v12  ;;  %v5981_v54 = vld [vmem:[%s11114_s13 + $0xa0] sm:$0xff]  ;;  %v5987_v12 = vld [vmem:[%s11114_s13 + $0xd0] sm:$0xff] }
0x1762   :  { %v5796_v4 = vpop.permute.xlu0 %5795  ;;  %9036 = vmatpush3.bf16.msra.mxu0 %v9035_v14  ;;  %v6016_v33 = vld [vmem:[#allocation2 + $0x258] sm:$0xff]  ;;  %v5974_v14 = vld [vmem:[%s11114_s13 + $0x68] sm:$0xff] }
0x1763   :  { %5814 = vst.msk [vmem:[#allocation2 + $0x708] sm:$0xff] %vm5568_vm2, %v5796_v4  ;;  %9016 = vmatpush3.bf16.msra.mxu1 %v9015_v15  ;;  %9038 = vmatprep.subr.bf16.mxu0 %v9037_v16  ;;  %v5794_v18 = vpop.permute.xlu1 %5793  ;;  %v6031_v21 = vld [vmem:[#allocation2 + $0x4b0] sm:$0xff]  ;;  %v5986_v15 = vld [vmem:[%s11114_s13 + $0xc8] sm:$0xff]  ;;  %v5973_v16 = vld [vmem:[%s11114_s13 + $0x60] sm:$0xff] }
0x1764   :  { %5813 = vst.msk [vmem:[#allocation2 + $0x6e0] sm:$0xff] %vm5568_vm2, %v5794_v18  ;;  %v9017_v20 = vpack.c.bf16 %v6032_v22, %v6031_v21  ;;  %v5992_v4 = vld [vmem:[%s11114_s13 + $0xf8] sm:$0xff]  ;;  %v5991_v18 = vld [vmem:[%s11114_s13 + $0xf0] sm:$0xff]  ;;  %v5978_v21 = vld [vmem:[%s11114_s13 + $0x88] sm:$0xff] }
0x1766   :  { %v5896_v23 = vpop.permute.xlu0 %5895  ;;  %9018 = vmatprep.subr.bf16.mxu1 %v9017_v20  ;;  %9040 = vmatpush3.bf16.msra.mxu0 %v9039_v25  ;;  %v6062_v31 = vld [vmem:[#allocation2 + $0x988] sm:$0xff]  ;;  %v5997_v25 = vld [vmem:[%s11114_s13 + $0x120] sm:$0xff] }
0x1767   :  { %5912 = vst.msk [vmem:[#allocation2 + $0x9d8] sm:$0xff] %vm5568_vm2, %v5896_v23  ;;  %9042 = vmatprep.subr.bf16.mxu0 %v9041_v26  ;;  %v5894_v30 = vpop.permute.xlu1 %5893  ;;  %v6015_v28 = vld [vmem:[#allocation2 + $0x230] sm:$0xff]  ;;  %v9045_v37 = vpack.c.bf16 %v6062_v31, %v6061_v36  ;;  %v5989_v31 = vld [vmem:[%s11114_s13 + $0xe0] sm:$0xff] }
0x1768   :  { %5911 = vst.msk [vmem:[#allocation2 + $0x9b0] sm:$0xff] %vm5568_vm2, %v5894_v30  ;;  %v9019_v34 = vpack.c.bf16 %v6016_v33, %v6015_v28  ;;  %v5983_v23 = vld [vmem:[%s11114_s13 + $0xb0] sm:$0xff]  ;;  %v5965_v30 = vld [vmem:[%s11114_s13 + $0x20] sm:$0xff]  ;;  %v5988_v28 = vld [vmem:[%s11114_s13 + $0xd8] sm:$0xff] }
0x1769   :  { %v5970_v33 = vld [vmem:[%s11114_s13 + $0x48] sm:$0xff]  ;;  %v5993_v36 = vld [vmem:[%s11114_s13 + $0x100] sm:$0xff] }
0x176a   :  { %v5800_v38 = vpop.permute.xlu0 %5799  ;;  %9020 = vmatpush3.bf16.msra.mxu1 %v9019_v34  ;;  %9044 = vmatpush3.bf16.msra.mxu0 %v9043_v32  ;;  %v6046_v41 = vld [vmem:[#allocation2 + $0x708] sm:$0xff]  ;;  %v5975_v32 = vld [vmem:[%s11114_s13 + $0x70] sm:$0xff] }
0x176b   :  { %5816 = vst.msk [vmem:[#allocation2 + $0x758] sm:$0xff] %vm5568_vm2, %v5800_v38  ;;  %9046 = vmatprep.subr.bf16.mxu0 %v9045_v37  ;;  %v5798_v19 = vpop.permute.xlu1 %5797  ;;  %v6045_v43 = vld [vmem:[#allocation2 + $0x6e0] sm:$0xff]  ;;  %v5994_v34 = vld [vmem:[%s11114_s13 + $0x108] sm:$0xff]  ;;  %v5980_v37 = vld [vmem:[%s11114_s13 + $0x98] sm:$0xff] }
0x176c   :  { %5815 = vst.msk [vmem:[#allocation2 + $0x730] sm:$0xff] %vm5568_vm2, %v5798_v19  ;;  %v9047_v46 = vpack.c.bf16 %v6046_v41, %v6045_v43  ;;  %v5999_v38 = vld [vmem:[%s11114_s13 + $0x130] sm:$0xff]  ;;  %v5998_v41 = vld [vmem:[%s11114_s13 + $0x128] sm:$0xff] }
0x176d   :  { %6162 = vmatmul.mubr.f32.vlgmr.msra.gmra.mrb[66].mxu1 %v5961_v40  ;;  %v5985_v40 = vld [vmem:[%s11114_s13 + $0xc0] sm:$0xff]  ;;  %v5990_v19 = vld [vmem:[%s11114_s13 + $0xe8] sm:$0xff]  ;;  %v5995_v43 = vld [vmem:[%s11114_s13 + $0x110] sm:$0xff] }
0x176e   :  { %v5932_v44 = vpop.permute.xlu0 %5931  ;;  %9048 = vmatpush3.bf16.msra.mxu0 %v9047_v46  ;;  %6166 = vmatprep.mubr.f32.mxu1 %v5967_v35  ;;  %v6064_v47 = vld [vmem:[#allocation2 + $0x9d8] sm:$0xff] }
0x176f   :  { %5954 = vst.msk [vmem:[#allocation2 + $0xa28] sm:$0xff] %vm5568_vm2, %v5932_v44  ;;  %v5930_v48 = vpop.permute.xlu1 %5929  ;;  %v6063_v6 = vld [vmem:[#allocation2 + $0x9b0] sm:$0xff]  ;;  %v6000_v35 = vld [vmem:[%s11114_s13 + $0x138] sm:$0xff] }
0x1770   :  { %5953 = vst.msk [vmem:[#allocation2 + $0xa00] sm:$0xff] %vm5568_vm2, %v5930_v48  ;;  %v9049_v59 = vpack.c.bf16 %v6064_v47, %v6063_v6 }
0x1771   :  { %6167 = vmatmul.mubr.f32.gmra.mrb[68].mxu1 %v5966_v45 }
0x1772   :  { %v5936_v57 = vpop.permute.xlu0 %5935  ;;  %9050 = vmatprep.subr.bf16.mxu0 %v9049_v59  ;;  %6171 = vmatprep.mubr.f32.mxu1 %v5972_v49  ;;  %v6048_v50 = vld [vmem:[#allocation2 + $0x758] sm:$0xff] }
0x1773   :  { %5956 = vst.msk [vmem:[#allocation2 + $0xa78] sm:$0xff] %vm5568_vm2, %v5936_v57  ;;  %v5934_v51 = vpop.permute.xlu1 %5933  ;;  %v6047_v52 = vld [vmem:[#allocation2 + $0x730] sm:$0xff] }
0x1774   :  { %5955 = vst.msk [vmem:[#allocation2 + $0xa50] sm:$0xff] %vm5568_vm2, %v5934_v51  ;;  %v9051_v55 = vpack.c.bf16 %v6048_v50, %v6047_v52 }
0x1775   :  { %6172 = vmatmul.mubr.f32.gmra.mrb[70].mxu1 %v5971_v29 }
0x1776   :  { %v5940_v61 = vpop.permute.xlu0 %5939  ;;  %9052 = vmatpush3.bf16.msra.mxu0 %v9051_v55  ;;  %6176 = vmatprep.mubr.f32.mxu1 %v5977_v53  ;;  %v6066_v1 = vld [vmem:[#allocation2 + $0xa28] sm:$0xff] }
0x1777   :  { %5958 = vst.msk [vmem:[#allocation2 + $0xac8] sm:$0xff] %vm5568_vm2, %v5940_v61  ;;  %v5938_v3 = vpop.permute.xlu1 %5937  ;;  %v6065_v39 = vld [vmem:[#allocation2 + $0xa00] sm:$0xff] }
0x1778   :  { %5957 = vst.msk [vmem:[#allocation2 + $0xaa0] sm:$0xff] %vm5568_vm2, %v5938_v3  ;;  %v9053_v0 = vpack.c.bf16 %v6066_v1, %v6065_v39 }
0x1779   :  { %6177 = vmatmul.mubr.f32.gmra.mrb[72].mxu1 %v5976_v62  ;;  %6267 = vmatmul.mubr.f32.vlgmr.msra.gmra.mrb[56].mxu0 %v5963_v63 }
0x177a   :  { %v5944_v56 = vpop.permute.xlu0 %5943  ;;  %9054 = vmatprep.subr.bf16.mxu1 %v9053_v0  ;;  %6181 = vmatprep.mubr.f32.mxu1 %v5982_v42  ;;  %v6068_v9 = vld [vmem:[#allocation2 + $0xa78] sm:$0xff] }
0x177b   :  { %5960 = vst.msk [vmem:[#allocation2 + $0xb18] sm:$0xff] %vm5568_vm2, %v5944_v56  ;;  %9056 = vmatpush3.bf16.msra.mxu1 %v9053_v0  ;;  %v5942_v10 = vpop.permute.xlu1 %5941  ;;  %6271 = vmatprep.mubr.f32.mxu0 %v5969_v7  ;;  %v6067_v11 = vld [vmem:[#allocation2 + $0xa50] sm:$0xff] }
0x177c   :  { %5959 = vst.msk [vmem:[#allocation2 + $0xaf0] sm:$0xff] %vm5568_vm2, %v5942_v10  ;;  %v9057_v13 = vpack.c.bf16 %v6068_v9, %v6067_v11 }
0x177d   :  { %6182 = vmatmul.mubr.f32.gmra.mrb[74].mxu1 %v5981_v54  ;;  %6272 = vmatmul.mubr.f32.gmra.mrb[58].mxu0 %v5968_v60 }
0x177e   :  { %9058 = vmatprep.subr.bf16.mxu1 %v9057_v13  ;;  %6186 = vmatprep.mubr.f32.mxu1 %v5987_v12  ;;  %v6070_v2 = vld [vmem:[#allocation2 + $0xac8] sm:$0xff] }
0x177f   :  { %9060 = vmatpush3.bf16.msra.mxu1 %v9057_v13  ;;  %6276 = vmatprep.mubr.f32.mxu0 %v5974_v14  ;;  %v6069_v8 = vld [vmem:[#allocation2 + $0xaa0] sm:$0xff] }
0x1780   :  { %v9061_v24 = vpack.c.bf16 %v6070_v2, %v6069_v8 }
0x1781   :  { %6187 = vmatmul.mubr.f32.gmra.mrb[76].mxu1 %v5986_v15  ;;  %6277 = vmatmul.mubr.f32.gmra.mrb[60].mxu0 %v5973_v16 }
0x1782   :  { %9062 = vmatprep.subr.bf16.mxu1 %v9061_v24  ;;  %6191 = vmatprep.mubr.f32.mxu1 %v5992_v4  ;;  %v6072_v22 = vld [vmem:[#allocation2 + $0xb18] sm:$0xff] }
0x1783   :  { %9064 = vmatpush3.bf16.msra.mxu1 %v9061_v24  ;;  %6281 = vmatprep.mubr.f32.mxu0 %v5979_v17  ;;  %v6071_v20 = vld [vmem:[#allocation2 + $0xaf0] sm:$0xff] }
0x1784   :  { %v9065_v26 = vpack.c.bf16 %v6072_v22, %v6071_v20 }
0x1785   :  { %6192 = vmatmul.mubr.f32.gmra.mrb[78].mxu1 %v5991_v18  ;;  %6282 = vmatmul.mubr.f32.gmra.mrb[62].mxu0 %v5978_v21 }
0x1786   :  { %9066 = vmatprep.subr.bf16.mxu1 %v9065_v26  ;;  %6196 = vmatprep.mubr.f32.mxu1 %v5997_v25 }
0x1787   :  { %9068 = vmatpush3.bf16.msra.mxu1 %v9065_v26  ;;  %6286 = vmatprep.mubr.f32.mxu0 %v5984_v27 }
0x1789   :  { %6197 = vmatmul.mubr.f32.gmra.mrb[80].mxu1 %v5996_v58  ;;  %6287 = vmatmul.mubr.f32.gmra.mrb[64].mxu0 %v5983_v23 }
0x178a   :  { %6291 = vmatprep.mubr.f32.mxu0 %v5989_v31  ;;  %8426 = vmatprep.mubr.msk.f32.mxu1 %vm4866_vm15, %v5965_v30 }
0x178b   :  { %v11298_v46 = vpop.permute.xlu0 %6427 }
0x178c   :  { %v11300_v44 = vpop.permute.xlu1 %6422 }
0x178d   :  { %6292 = vmatmul.mubr.f32.gmra.mrb[66].mxu0 %v5988_v28  ;;  %8427 = vmatmul.mubr.msk.f32.vlgmr.msra.gmra.mrb[82].mxu1 %vm4866_vm15, %v5970_v33 }
0x178e   :  { %6296 = vmatprep.mubr.f32.mxu0 %v5994_v34  ;;  %8429 = vmatprep.mubr.msk.f32.mxu1 %vm4866_vm15, %v5975_v32 }
0x178f   :  { %v11302_v6 = vpop.permute.xlu0 %6483 }
0x1790   :  { %v11304_v59 = vpop.permute.xlu1 %6478 }
0x1791   :  { %6297 = vmatmul.mubr.f32.gmra.mrb[68].mxu0 %v5993_v36  ;;  %8430 = vmatmul.mubr.msk.f32.gmra.mrb[84].mxu1 %vm4866_vm15, %v5980_v37 }
0x1792   :  { %6301 = vmatprep.mubr.f32.mxu0 %v5999_v38  ;;  %8432 = vmatprep.mubr.msk.f32.mxu1 %vm4866_vm15, %v5985_v40 }
0x1793   :  { %v11306_v53 = vpop.permute.xlu0 %6437 }
0x1794   :  { %v11308_v55 = vpop.permute.xlu1 %6432 }
0x1795   :  { %6302 = vmatmul.mubr.f32.gmra.mrb[70].mxu0 %v5998_v41  ;;  %8433 = vmatmul.mubr.msk.f32.gmra.mrb[86].mxu1 %vm4866_vm15, %v5990_v19 }
0x1796   :  { %8435 = vmatprep.mubr.msk.f32.mxu1 %vm4866_vm15, %v5995_v43 }
0x1797   :  { %v6494_v10 = vpop.permute.xlu0 %6493 }
0x1798   :  { %v6489_v11 = vpop.permute.xlu1 %6488 }
0x1799   :  { %8436 = vmatmul.mubr.msk.f32.gmra.mrb[88].mxu1 %vm4866_vm15, %v6000_v35 }
0x179b   :  { %v6448_v25 = vpop.permute.xlu0 %6447 }
0x179c   :  { %v6443_v26 = vpop.permute.xlu1 %6442 }
0x179f   :  { %v6504_v43 = vpop.permute.xlu0 %6503 }
0x17a0   :  { %v6499_v35 = vpop.permute.xlu1 %6498 }
0x1840   :  { %v8044_v45 = vpop.f32.mrb[66].mxu1 }
0x1841   :  { %v8045_v47 = vpop.f32.mrb[67].mxu1 }
0x1842   :  { %v8046_v48 = vadd.f32 %v8045_v47, %v8044_v45 }
0x1844   :  { %v8047_v49 = vpop.f32.mrb[68].mxu1 }
0x1845   :  { %v8048_v57 = vpop.f32.mrb[69].mxu1 }
0x1846   :  { %v8049_v29 = vadd.f32 %v8048_v57, %v8047_v49 }
0x1848   :  { %v8050_v50 = vpop.f32.mrb[70].mxu1 }
0x1849   :  { %v8051_v51 = vpop.f32.mrb[71].mxu1 }
0x184a   :  { %v8052_v52 = vadd.f32 %v8051_v51, %v8050_v50 }
0x184c   :  { %v8100_v61 = vpop.f32.mrb[56].mxu0  ;;  %v8053_v62 = vpop.f32.mrb[72].mxu1 }
0x184d   :  { %v8101_v63 = vpop.f32.mrb[57].mxu0  ;;  %v8054_v1 = vpop.f32.mrb[73].mxu1 }
0x184e   :  { %v8102_v3 = vadd.f32 %v8101_v63, %v8100_v61  ;;  %v8055_v39 = vadd.f32 %v8054_v1, %v8053_v62  ;;  %v7713_v61 = vld [vmem:[%s7639_s25] ss:$0 sm:$0xff] }
0x1850   :  { %v8103_v42 = vpop.f32.mrb[58].mxu0  ;;  %v8056_v0 = vpop.f32.mrb[74].mxu1  ;;  %v6269_v7 = vadd.f32 %v8102_v3, %v8046_v48 }
0x1851   :  { %v8104_v56 = vpop.f32.mrb[59].mxu0  ;;  %v8057_v54 = vpop.f32.mrb[75].mxu1 }
0x1852   :  { %v8105_v60 = vadd.f32 %v8104_v56, %v8103_v42  ;;  %v8058_v9 = vadd.f32 %v8057_v54, %v8056_v0 }
0x1854   :  { %v8106_v12 = vpop.f32.mrb[60].mxu0  ;;  %v8059_v13 = vpop.f32.mrb[76].mxu1  ;;  %v6274_v14 = vadd.f32 %v8105_v60, %v8049_v29 }
0x1855   :  { %v8107_v15 = vpop.f32.mrb[61].mxu0  ;;  %v8060_v16 = vpop.f32.mrb[77].mxu1 }
0x1856   :  { %v8108_v2 = vadd.f32 %v8107_v15, %v8106_v12  ;;  %v8061_v8 = vadd.f32 %v8060_v16, %v8059_v13  ;;  %v6458_v15 = vpop.permute.xlu0 %6457  ;;  %v6453_v16 = vpop.permute.xlu1 %6452 }
0x1858   :  { %v8109_v4 = vpop.f32.mrb[62].mxu0  ;;  %v8062_v24 = vpop.f32.mrb[78].mxu1  ;;  %v6279_v17 = vadd.f32 %v8108_v2, %v8052_v52 }
0x1859   :  { %v8110_v18 = vpop.f32.mrb[63].mxu0  ;;  %v8063_v21 = vpop.f32.mrb[79].mxu1 }
0x185a   :  { %v8111_v22 = vadd.f32 %v8110_v18, %v8109_v4  ;;  %v8064_v20 = vadd.f32 %v8063_v21, %v8062_v24 }
0x185c   :  { %v8112_v27 = vpop.f32.mrb[64].mxu0  ;;  %v8065_v58 = vpop.f32.mrb[80].mxu1  ;;  %v6284_v23 = vadd.f32 %v8111_v22, %v8055_v39 }
0x185d   :  { %v8113_v31 = vpop.f32.mrb[65].mxu0  ;;  %v8066_v30 = vpop.f32.mrb[81].mxu1 }
0x185e   :  { %v8114_v28 = vadd.f32 %v8113_v31, %v8112_v27  ;;  %v8067_v33 = vadd.f32 %v8066_v30, %v8065_v58  ;;  %v6509_v31 = vpop.permute.xlu1 %6508 }
0x1860   :  { %v8115_v34 = vpop.f32.mrb[66].mxu0  ;;  %v8428_v32 = vpop.f32.mrb[82].mxu1  ;;  %v6289_v36 = vadd.f32 %v8114_v28, %v8058_v9 }
0x1861   :  { %v6379_v37 = vadd.f32 %v8428_v32, %v6274_v14  ;;  %v8116_v38 = vpop.f32.mrb[67].mxu0  ;;  %v6373_v40 = vpop.f32.mrb[83].mxu1 }
0x1862   :  { %v8117_v41 = vadd.f32 %v8116_v38, %v8115_v34  ;;  %v6374_v19 = vadd.f32 %v6373_v40, %v6269_v7 }
0x1863   :  { %v6461_v45 = vmul.f32 %v11298_v46, %v6379_v37 }
0x1864   :  { %v6460_v47 = vmul.f32 %v11300_v44, %v6374_v19  ;;  %v8118_v48 = vpop.f32.mrb[68].mxu0  ;;  %v8431_v49 = vpop.f32.mrb[84].mxu1  ;;  %v6294_v57 = vadd.f32 %v8117_v41, %v8061_v8 }
0x1865   :  { %v6517_v29 = vadd.f32 %v11302_v6, %v6461_v45  ;;  %v6389_v50 = vadd.f32 %v8431_v49, %v6284_v23  ;;  %v8119_v51 = vpop.f32.mrb[69].mxu0  ;;  %v6383_v52 = vpop.f32.mrb[85].mxu1 }
0x1866   :  { %v6516_v62 = vadd.f32 %v11304_v59, %v6460_v47  ;;  %v8120_v63 = vadd.f32 %v8119_v51, %v8118_v48  ;;  %v6384_v1 = vadd.f32 %v6383_v52, %v6279_v17 }
0x1867   :  { %v6525_v3 = vmax.f32 %v6517_v29, 0.0  ;;  %v6463_v39 = vmul.f32 %v11306_v53, %v6389_v50 }
0x1868   :  { %v6524_v42 = vmax.f32 %v6516_v62, 0.0  ;;  %v6462_v46 = vmul.f32 %v11308_v55, %v6384_v1  ;;  %v8121_v44 = vpop.f32.mrb[70].mxu0  ;;  %v8434_v0 = vpop.f32.mrb[86].mxu1  ;;  %v6299_v7 = vadd.f32 %v8120_v63, %v8064_v20 }
0x1869   :  { %v6549_v56 = vmul.f32 %v7713_v61, %v6525_v3  ;;  %v6519_v54 = vadd.f32 %v6494_v10, %v6463_v39  ;;  %v6399_v6 = vadd.f32 %v8434_v0, %v6294_v57  ;;  %v8122_v60 = vpop.f32.mrb[71].mxu0  ;;  %v6393_v9 = vpop.f32.mrb[87].mxu1 }
0x186a   :  { %v6548_v12 = vmul.f32 %v7713_v61, %v6524_v42  ;;  %v6518_v13 = vadd.f32 %v6489_v11, %v6462_v46  ;;  %v8123_v14 = vadd.f32 %v8122_v60, %v8121_v44  ;;  %v6394_v59 = vadd.f32 %v6393_v9, %v6289_v36 }
0x186b   :  { %v6527_v2 = vmax.f32 %v6519_v54, 0.0  ;;  %v6465_v8 = vmul.f32 %v6448_v25, %v6399_v6  ;;  %6566 = vrot.lane.b32.xlu0 %v6549_v56, %s9268_s11 }
0x186c   :  { %v6526_v53 = vmax.f32 %v6518_v13, 0.0  ;;  %v6464_v55 = vmul.f32 %v6443_v26, %v6394_v59  ;;  %v6304_v4 = vadd.f32 %v8123_v14, %v8067_v33  ;;  %v8437_v24 = vpop.f32.mrb[88].mxu1  ;;  %6564 = vrot.lane.b32.xlu1 %v6548_v12, %s9268_s11  ;;  %v6514_v26 = vpop.permute.xlu0 %6513 }
0x186d   :  { %v6551_v10 = vmul.f32 %v7713_v61, %v6527_v2  ;;  %v6521_v17 = vadd.f32 %v6504_v43, %v6465_v8  ;;  %v6403_v18 = vpop.f32.mrb[89].mxu1 }
0x186e   :  { %v6550_v21 = vmul.f32 %v7713_v61, %v6526_v53  ;;  %v6520_v22 = vadd.f32 %v6499_v35, %v6464_v55  ;;  %v6409_v11 = vadd.f32 %v8437_v24, %v6304_v4  ;;  %v6404_v20 = vadd.f32 %v6403_v18, %v6299_v7 }
0x186f   :  { %v6529_v27 = vmax.f32 %v6521_v17, 0.0  ;;  %6570 = vrot.lane.b32.xlu0 %v6551_v10, %s9268_s11 }
0x1870   :  { %v6528_v58 = vmax.f32 %v6520_v22, 0.0  ;;  %v6467_v25 = vmul.f32 %v6458_v15, %v6409_v11  ;;  %v6466_v23 = vmul.f32 %v6453_v16, %v6404_v20  ;;  %6568 = vrot.lane.b32.xlu1 %v6550_v21, %s9268_s11 }
0x1871   :  { %v6553_v30 = vmul.f32 %v7713_v61, %v6529_v27 }
0x1872   :  { %v6552_v28 = vmul.f32 %v7713_v61, %v6528_v58  ;;  %v6523_v33 = vadd.f32 %v6514_v26, %v6467_v25  ;;  %v6522_v34 = vadd.f32 %v6509_v31, %v6466_v23 }
0x1873   :  { %6574 = vrot.lane.b32.xlu0 %v6553_v30, %s9268_s11 }
0x1874   :  { %v6531_v32 = vmax.f32 %v6523_v33, 0.0  ;;  %v6530_v36 = vmax.f32 %v6522_v34, 0.0  ;;  %6572 = vrot.lane.b32.xlu1 %v6552_v28, %s9268_s11 }
0x1876   :  { %v6555_v37 = vmul.f32 %v7713_v61, %v6531_v32  ;;  %v6554_v38 = vmul.f32 %v7713_v61, %v6530_v36 }
0x1878   :  { %6578 = vrot.lane.b32.xlu0 %v6555_v37, %s9268_s11  ;;  %6576 = vrot.lane.b32.xlu1 %v6554_v38, %s9268_s11  ;;  %s9316_s11 = smov 28  }
0x1879   :  { %s11482_s5 = sld [smem:[%s11699_s0 + %s9316_s11]]  }
0x187f   :  { %v7007_v62 = vld [vmem:[%s11482_s5 + $0x8] sm:$0xff]  ;;  %v7009_v63 = vld [vmem:[%s11482_s5 + $0x18] sm:$0xff] }
0x1880   :  { %7206 = vmatprep.mubr.f32.mxu0 %v7007_v62  ;;  %7311 = vmatprep.mubr.f32.mxu1 %v7009_v63 }
0x18dd   :  { %v6567_v40 = vpop.permute.xlu0 %6566 }
0x18de   :  { %6590 = vst.msk [vmem:[#allocation3 + $0x30] sm:$0xff] %vm6588_vm5, %v6567_v40  ;;  %v6565_v41 = vpop.permute.xlu1 %6564 }
0x18df   :  { %6599 = vst.msk [vmem:[#allocation3 + $0x30] sm:$0xff] %vm6597_vm9, %v9256_v5 }
0x18e0   :  { %6589 = vst.msk [vmem:[#allocation3] sm:$0xff] %vm6588_vm5, %v6565_v41 }
0x18e1   :  { %6598 = vst.msk [vmem:[#allocation3] sm:$0xff] %vm6597_vm9, %v9256_v5  ;;  %v6571_v19 = vpop.permute.xlu0 %6570 }
0x18e2   :  { %6592 = vst.msk [vmem:[#allocation3 + $0x90] sm:$0xff] %vm6588_vm5, %v6571_v19  ;;  %v6569_v43 = vpop.permute.xlu1 %6568 }
0x18e3   :  { %6601 = vst.msk [vmem:[#allocation3 + $0x90] sm:$0xff] %vm6597_vm9, %v9256_v5 }
0x18e4   :  { %6591 = vst.msk [vmem:[#allocation3 + $0x60] sm:$0xff] %vm6588_vm5, %v6569_v43 }
0x18e5   :  { %6600 = vst.msk [vmem:[#allocation3 + $0x60] sm:$0xff] %vm6597_vm9, %v9256_v5  ;;  %v6575_v35 = vpop.permute.xlu0 %6574 }
0x18e6   :  { %v11339_v45 = vld [vmem:[#allocation3 + $0x30] sm:$0xff]  ;;  %6594 = vst.msk [vmem:[#allocation3 + $0xf0] sm:$0xff] %vm6588_vm5, %v6575_v35  ;;  %v6573_v47 = vpop.permute.xlu1 %6572 }
0x18e7   :  { %6615 = vst.msk [vmem:[#allocation2 + $0x28] sm:$0xff] %vm5568_vm2, %v11339_v45  ;;  %6688 = vrot.lane.b32.xlu0 %v11339_v45, %s9250_s7 }
0x18e8   :  { %v11344_v48 = vld [vmem:[#allocation3] sm:$0xff]  ;;  %6603 = vst.msk [vmem:[#allocation3 + $0xf0] sm:$0xff] %vm6597_vm9, %v9256_v5 }
0x18e9   :  { %6593 = vst.msk [vmem:[#allocation3 + $0xc0] sm:$0xff] %vm6588_vm5, %v6573_v47  ;;  %6686 = vrot.lane.b32.xlu1 %v11344_v48, %s9250_s7 }
0x18ea   :  { %6614 = vst.msk [vmem:[#allocation2] sm:$0xff] %vm5568_vm2, %v11344_v48  ;;  %v11357_v49 = vld [vmem:[#allocation3 + $0x90] sm:$0xff]  ;;  %v6579_v57 = vpop.permute.xlu0 %6578  ;;  %v6577_v29 = vpop.permute.xlu1 %6576 }
0x18eb   :  { %6602 = vst.msk [vmem:[#allocation3 + $0xc0] sm:$0xff] %vm6597_vm9, %v9256_v5  ;;  %6880 = vrot.lane.b32.xlu0 %v11339_v45, %s9286_s20 }
0x18ec   :  { %6617 = vst.msk [vmem:[#allocation2 + $0x78] sm:$0xff] %vm5568_vm2, %v11357_v49  ;;  %v11361_v50 = vld [vmem:[#allocation3 + $0x60] sm:$0xff] }
0x18ed   :  { %6596 = vst.msk [vmem:[#allocation3 + $0x150] sm:$0xff] %vm6588_vm5, %v6579_v57  ;;  %6595 = vst.msk [vmem:[#allocation3 + $0x120] sm:$0xff] %vm6588_vm5, %v6577_v29  ;;  %6878 = vrot.lane.b32.xlu1 %v11344_v48, %s9286_s20 }
0x18ee   :  { %6616 = vst.msk [vmem:[#allocation2 + $0x50] sm:$0xff] %vm5568_vm2, %v11361_v50  ;;  %v7047_v44 = vld [vmem:[#allocation2 + $0x28] sm:$0xff] }
0x18ef   :  { %6605 = vst.msk [vmem:[#allocation3 + $0x150] sm:$0xff] %vm6597_vm9, %v9256_v5  ;;  %6604 = vst.msk [vmem:[#allocation3 + $0x120] sm:$0xff] %vm6597_vm9, %v9256_v5  ;;  %v11375_v51 = vld [vmem:[#allocation3 + $0xf0] sm:$0xff]  ;;  %6784 = vrot.lane.b32.xlu0 %v11339_v45, %s9302_s19 }
0x18f0   :  { %6619 = vst.msk [vmem:[#allocation2 + $0xc8] sm:$0xff] %vm5568_vm2, %v11375_v51 }
0x18f1   :  { %6782 = vrot.lane.b32.xlu1 %v11344_v48, %s9302_s19  ;;  %v7046_v46 = vld [vmem:[#allocation2] sm:$0xff] }
0x18f2   :  { %v11379_v52 = vld [vmem:[#allocation3 + $0xc0] sm:$0xff]  ;;  %v9071_v6 = vpack.c.bf16 %v7047_v44, %v7046_v46 }
0x18f3   :  { %6618 = vst.msk [vmem:[#allocation2 + $0xa0] sm:$0xff] %vm5568_vm2, %v11379_v52  ;;  %6736 = vrot.lane.b32.xlu0 %v11339_v45, %s9311_s10  ;;  %v7049_v36 = vld [vmem:[#allocation2 + $0x78] sm:$0xff] }
0x18f5   :  { %6734 = vrot.lane.b32.xlu1 %v11344_v48, %s9311_s10  ;;  %v7048_v32 = vld [vmem:[#allocation2 + $0x50] sm:$0xff] }
0x18f6   :  { %v11387_v5 = vld [vmem:[#allocation3 + $0x150] sm:$0xff]  ;;  %v11389_v61 = vld [vmem:[#allocation3 + $0x120] sm:$0xff]  ;;  %v9075_v35 = vpack.c.bf16 %v7049_v36, %v7048_v32 }
0x18f7   :  { %6621 = vst.msk [vmem:[#allocation2 + $0x118] sm:$0xff] %vm5568_vm2, %v11387_v5  ;;  %6620 = vst.msk [vmem:[#allocation2 + $0xf0] sm:$0xff] %vm5568_vm2, %v11389_v61  ;;  %6640 = vrot.lane.b32.xlu0 %v11339_v45, %s9249_s6 }
0x18f9   :  { %6638 = vrot.lane.b32.xlu1 %v11344_v48, %s9249_s6 }
0x18fb   :  { %6928 = vrot.lane.b32.xlu0 %v11339_v45, %s9287_s21 }
0x18fd   :  { %6926 = vrot.lane.b32.xlu1 %v11344_v48, %s9287_s21 }
0x18ff   :  { %6832 = vrot.lane.b32.xlu0 %v11339_v45, %s9300_s18 }
0x1901   :  { %6830 = vrot.lane.b32.xlu1 %v11344_v48, %s9300_s18 }
0x1903   :  { %6692 = vrot.lane.b32.xlu0 %v11357_v49, %s9250_s7 }
0x1905   :  { %6690 = vrot.lane.b32.xlu1 %v11361_v50, %s9250_s7 }
0x1907   :  { %6884 = vrot.lane.b32.xlu0 %v11357_v49, %s9286_s20 }
0x1909   :  { %6882 = vrot.lane.b32.xlu1 %v11361_v50, %s9286_s20 }
0x190b   :  { %6788 = vrot.lane.b32.xlu0 %v11357_v49, %s9302_s19 }
0x190d   :  { %6786 = vrot.lane.b32.xlu1 %v11361_v50, %s9302_s19 }
0x190f   :  { %6740 = vrot.lane.b32.xlu0 %v11357_v49, %s9311_s10 }
0x1911   :  { %6738 = vrot.lane.b32.xlu1 %v11361_v50, %s9311_s10 }
0x1913   :  { %6644 = vrot.lane.b32.xlu0 %v11357_v49, %s9249_s6 }
0x1915   :  { %6642 = vrot.lane.b32.xlu1 %v11361_v50, %s9249_s6 }
0x1917   :  { %6932 = vrot.lane.b32.xlu0 %v11357_v49, %s9287_s21 }
0x1919   :  { %6930 = vrot.lane.b32.xlu1 %v11361_v50, %s9287_s21 }
0x191b   :  { %6836 = vrot.lane.b32.xlu0 %v11357_v49, %s9300_s18 }
0x191d   :  { %6834 = vrot.lane.b32.xlu1 %v11361_v50, %s9300_s18 }
0x191f   :  { %6696 = vrot.lane.b32.xlu0 %v11375_v51, %s9250_s7 }
0x1921   :  { %6694 = vrot.lane.b32.xlu1 %v11379_v52, %s9250_s7 }
0x1923   :  { %6888 = vrot.lane.b32.xlu0 %v11375_v51, %s9286_s20 }
0x1925   :  { %6886 = vrot.lane.b32.xlu1 %v11379_v52, %s9286_s20 }
0x1927   :  { %6792 = vrot.lane.b32.xlu0 %v11375_v51, %s9302_s19 }
0x1929   :  { %6790 = vrot.lane.b32.xlu1 %v11379_v52, %s9302_s19 }
0x192b   :  { %6744 = vrot.lane.b32.xlu0 %v11375_v51, %s9311_s10 }
0x192d   :  { %6742 = vrot.lane.b32.xlu1 %v11379_v52, %s9311_s10 }
0x192f   :  { %6648 = vrot.lane.b32.xlu0 %v11375_v51, %s9249_s6 }
0x1931   :  { %6646 = vrot.lane.b32.xlu1 %v11379_v52, %s9249_s6 }
0x1933   :  { %6936 = vrot.lane.b32.xlu0 %v11375_v51, %s9287_s21 }
0x1935   :  { %6934 = vrot.lane.b32.xlu1 %v11379_v52, %s9287_s21 }
0x1937   :  { %6700 = vrot.lane.b32.xlu0 %v11387_v5, %s9250_s7 }
0x1939   :  { %6698 = vrot.lane.b32.xlu1 %v11389_v61, %s9250_s7 }
0x193b   :  { %6892 = vrot.lane.b32.xlu0 %v11387_v5, %s9286_s20 }
0x193d   :  { %6838 = vrot.lane.b32.xlu1 %v11379_v52, %s9300_s18 }
0x193f   :  { %6796 = vrot.lane.b32.xlu0 %v11387_v5, %s9302_s19 }
0x1941   :  { %6890 = vrot.lane.b32.xlu1 %v11389_v61, %s9286_s20 }
0x1943   :  { %6748 = vrot.lane.b32.xlu0 %v11387_v5, %s9311_s10 }
0x1945   :  { %6794 = vrot.lane.b32.xlu1 %v11389_v61, %s9302_s19 }
0x1947   :  { %6652 = vrot.lane.b32.xlu0 %v11387_v5, %s9249_s6 }
0x1949   :  { %6746 = vrot.lane.b32.xlu1 %v11389_v61, %s9311_s10 }
0x194b   :  { %6840 = vrot.lane.b32.xlu0 %v11375_v51, %s9300_s18 }
0x194d   :  { %6650 = vrot.lane.b32.xlu1 %v11389_v61, %s9249_s6  ;;  %s9317_s6 = smov 29  }
0x194f   :  { %6940 = vrot.lane.b32.xlu0 %v11387_v5, %s9287_s21 }
0x1951   :  { %6938 = vrot.lane.b32.xlu1 %v11389_v61, %s9287_s21 }
0x1953   :  { %6844 = vrot.lane.b32.xlu0 %v11387_v5, %s9300_s18 }
0x1955   :  { %6842 = vrot.lane.b32.xlu1 %v11389_v61, %s9300_s18  ;;  %s11515_s18 = sld [smem:[%s11699_s0 + %s9317_s6]]  }
0x1957   :  { %6976 = vrot.lane.b32.xlu0 %v11339_v45, %s9288_s22 }
0x1959   :  { %6974 = vrot.lane.b32.xlu1 %v11344_v48, %s9288_s22  ;;  %v6689_v1 = vpop.permute.xlu0 %6688 }
0x195a   :  { %6711 = vst.msk [vmem:[#allocation2 + $0x2a8] sm:$0xff] %vm5568_vm2, %v6689_v1 }
0x195b   :  { %v6687_v3 = vpop.permute.xlu1 %6686  ;;  %6980 = vrot.lane.b32.xlu0 %v11357_v49, %s9288_s22  ;;  %v7458_v9 = vld [vmem:[%s11515_s18 + $0x8] sm:$0xff]  ;;  %v7457_v13 = vld [vmem:[%s11515_s18] sm:$0xff]  ;;  %v7460_v2 = vld [vmem:[%s11515_s18 + $0x18] sm:$0xff] }
0x195c   :  { %6710 = vst.msk [vmem:[#allocation2 + $0x280] sm:$0xff] %vm5568_vm2, %v6687_v3  ;;  %v7459_v53 = vld [vmem:[%s11515_s18 + $0x10] sm:$0xff]  ;;  %v7462_v17 = vld [vmem:[%s11515_s18 + $0x28] sm:$0xff]  ;;  %v7461_v21 = vld [vmem:[%s11515_s18 + $0x20] sm:$0xff] }
0x195d   :  { %6978 = vrot.lane.b32.xlu1 %v11361_v50, %s9288_s22  ;;  %v6881_v39 = vpop.permute.xlu0 %6880  ;;  %v7464_v11 = vld [vmem:[%s11515_s18 + $0x38] sm:$0xff]  ;;  %v7463_v27 = vld [vmem:[%s11515_s18 + $0x30] sm:$0xff] }
0x195e   :  { %6903 = vst.msk [vmem:[#allocation2 + $0x7a8] sm:$0xff] %vm5568_vm2, %v6881_v39 }
0x195f   :  { %v6879_v42 = vpop.permute.xlu1 %6878  ;;  %6984 = vrot.lane.b32.xlu0 %v11375_v51, %s9288_s22 }
0x1960   :  { %6902 = vst.msk [vmem:[#allocation2 + $0x780] sm:$0xff] %vm5568_vm2, %v6879_v42 }
0x1961   :  { %6982 = vrot.lane.b32.xlu1 %v11379_v52, %s9288_s22  ;;  %v6785_v0 = vpop.permute.xlu0 %6784  ;;  %v7063_v7 = vld [vmem:[#allocation2 + $0x2a8] sm:$0xff] }
0x1962   :  { %6807 = vst.msk [vmem:[#allocation2 + $0x528] sm:$0xff] %vm5568_vm2, %v6785_v0 }
0x1963   :  { %v6783_v56 = vpop.permute.xlu1 %6782  ;;  %v7062_v54 = vld [vmem:[#allocation2 + $0x280] sm:$0xff]  ;;  %6988 = vrot.lane.b32.xlu0 %v11387_v5, %s9288_s22 }
0x1964   :  { %6806 = vst.msk [vmem:[#allocation2 + $0x500] sm:$0xff] %vm5568_vm2, %v6783_v56  ;;  %v9069_v60 = vpack.c.bf16 %v7063_v7, %v7062_v54  ;;  %v7050_v56 = vld [vmem:[#allocation2 + $0xa0] sm:$0xff]  ;;  %v7051_v54 = vld [vmem:[#allocation2 + $0xc8] sm:$0xff] }
0x1965   :  { %6986 = vrot.lane.b32.xlu1 %v11389_v61, %s9288_s22  ;;  %v6737_v12 = vpop.permute.xlu0 %6736  ;;  %v7095_v14 = vld [vmem:[#allocation2 + $0x7a8] sm:$0xff]  ;;  %s9318_s22 = smov 30  }
0x1966   :  { %9070 = vmatprep.subr.bf16.mxu0 %v9069_v60  ;;  %6759 = vst.msk [vmem:[#allocation2 + $0x3e8] sm:$0xff] %vm5568_vm2, %v6737_v12  ;;  %s11541_s29 = sld [smem:[%s11699_s0 + %s9318_s22]]  }
0x1967   :  { %v6735_v59 = vpop.permute.xlu1 %6734  ;;  %v7094_v15 = vld [vmem:[#allocation2 + $0x780] sm:$0xff]  ;;  %9072 = vmatpush3.bf16.msra.mxu0 %v9071_v6  ;;  %7472 = vperm.xlu0 %9233, %v7458_v9  }
0x1968   :  { %6758 = vst.msk [vmem:[#allocation2 + $0x3c0] sm:$0xff] %vm5568_vm2, %v6735_v59  ;;  %v9101_v16 = vpack.c.bf16 %v7095_v14, %v7094_v15 }
0x1969   :  { %7467 = vperm.xlu1 %9232, %v7457_v13   ;;  %v6641_v8 = vpop.permute.xlu0 %6640  ;;  %v7079_v55 = vld [vmem:[#allocation2 + $0x528] sm:$0xff]  ;;  %v9079_v13 = vpack.c.bf16 %v7051_v54, %v7050_v56 }
0x196a   :  { %9102 = vmatprep.subr.bf16.mxu1 %v9101_v16  ;;  %6663 = vst.msk [vmem:[#allocation2 + $0x168] sm:$0xff] %vm5568_vm2, %v6641_v8 }
0x196b   :  { %v6639_v4 = vpop.permute.xlu1 %6638  ;;  %v7078_v24 = vld [vmem:[#allocation2 + $0x500] sm:$0xff]  ;;  %7482 = vperm.xlu0 %9233, %v7460_v2  }
0x196c   :  { %6662 = vst.msk [vmem:[#allocation2 + $0x140] sm:$0xff] %vm5568_vm2, %v6639_v4  ;;  %v9103_v10 = vpack.c.bf16 %v7079_v55, %v7078_v24  ;;  %v7514_v25 = vld [vmem:[%s11541_s29 + $0x8] sm:$0xff]  ;;  %v7513_v26 = vld [vmem:[%s11541_s29] sm:$0xff]  ;;  %v7516_v30 = vld [vmem:[%s11541_s29 + $0x18] sm:$0xff] }
0x196d   :  { %7477 = vperm.xlu1 %9232, %v7459_v53   ;;  %v6929_v18 = vpop.permute.xlu0 %6928  ;;  %v7515_v33 = vld [vmem:[%s11541_s29 + $0x10] sm:$0xff]  ;;  %v7518_v37 = vld [vmem:[%s11541_s29 + $0x28] sm:$0xff]  ;;  %v7517_v40 = vld [vmem:[%s11541_s29 + $0x20] sm:$0xff] }
0x196e   :  { %9104 = vmatpush3.bf16.msra.mxu1 %v9103_v10  ;;  %6951 = vst.msk [vmem:[#allocation2 + $0x8e8] sm:$0xff] %vm5568_vm2, %v6929_v18  ;;  %v7520_v47 = vld [vmem:[%s11541_s29 + $0x38] sm:$0xff]  ;;  %v7519_v49 = vld [vmem:[%s11541_s29 + $0x30] sm:$0xff] }
0x196f   :  { %v6927_v22 = vpop.permute.xlu1 %6926  ;;  %7492 = vperm.xlu0 %9233, %v7462_v17  }
0x1970   :  { %6950 = vst.msk [vmem:[#allocation2 + $0x8c0] sm:$0xff] %vm5568_vm2, %v6927_v22 }
0x1971   :  { %7487 = vperm.xlu1 %9232, %v7461_v21   ;;  %v6833_v20 = vpop.permute.xlu0 %6832 }
0x1972   :  { %6855 = vst.msk [vmem:[#allocation2 + $0x668] sm:$0xff] %vm5568_vm2, %v6833_v20 }
0x1973   :  { %v6831_v58 = vpop.permute.xlu1 %6830  ;;  %7502 = vperm.xlu0 %9233, %v7464_v11  }
0x1974   :  { %6854 = vst.msk [vmem:[#allocation2 + $0x640] sm:$0xff] %vm5568_vm2, %v6831_v58  ;;  %v7053_v58 = vld [vmem:[#allocation2 + $0x118] sm:$0xff] }
0x1975   :  { %7497 = vperm.xlu1 %9232, %v7463_v27   ;;  %v6693_v23 = vpop.permute.xlu0 %6692  ;;  %v7052_v27 = vld [vmem:[#allocation2 + $0xf0] sm:$0xff] }
0x1976   :  { %6713 = vst.msk [vmem:[#allocation2 + $0x2f8] sm:$0xff] %vm5568_vm2, %v6693_v23 }
0x1977   :  { %v6691_v31 = vpop.permute.xlu1 %6690  ;;  %7528 = vperm.xlu0 %9233, %v7514_v25  }
0x1978   :  { %6712 = vst.msk [vmem:[#allocation2 + $0x2d0] sm:$0xff] %vm5568_vm2, %v6691_v31 }
0x1979   :  { %7523 = vperm.xlu1 %9232, %v7513_v26   ;;  %v6885_v28 = vpop.permute.xlu0 %6884 }
0x197a   :  { %6905 = vst.msk [vmem:[#allocation2 + $0x7f8] sm:$0xff] %vm5568_vm2, %v6885_v28  ;;  %v7070_v28 = vld [vmem:[#allocation2 + $0x3c0] sm:$0xff] }
0x197b   :  { %v6883_v34 = vpop.permute.xlu1 %6882  ;;  %7538 = vperm.xlu0 %9233, %v7516_v30   ;;  %v9083_v30 = vpack.c.bf16 %v7053_v58, %v7052_v27  ;;  %v7086_v54 = vld [vmem:[#allocation2 + $0x640] sm:$0xff] }
0x197c   :  { %6904 = vst.msk [vmem:[#allocation2 + $0x7d0] sm:$0xff] %vm5568_vm2, %v6883_v34  ;;  %v7006_v27 = vld [vmem:[%s11482_s5] sm:$0xff] }
0x197d   :  { %7533 = vperm.xlu1 %9232, %v7515_v33   ;;  %v6789_v38 = vpop.permute.xlu0 %6788  ;;  %v7065_v41 = vld [vmem:[#allocation2 + $0x2f8] sm:$0xff]  ;;  %v7071_v33 = vld [vmem:[#allocation2 + $0x3e8] sm:$0xff] }
0x197e   :  { %6809 = vst.msk [vmem:[#allocation2 + $0x578] sm:$0xff] %vm5568_vm2, %v6789_v38  ;;  %v9085_v36 = vpack.c.bf16 %v7071_v33, %v7070_v28  ;;  %v7055_v38 = vld [vmem:[#allocation2 + $0x168] sm:$0xff] }
0x197f   :  { %v6787_v19 = vpop.permute.xlu1 %6786  ;;  %v7064_v43 = vld [vmem:[#allocation2 + $0x2d0] sm:$0xff]  ;;  %7548 = vperm.xlu0 %9233, %v7518_v37   ;;  %v7054_v37 = vld [vmem:[#allocation2 + $0x140] sm:$0xff] }
0x1980   :  { %6808 = vst.msk [vmem:[#allocation2 + $0x550] sm:$0xff] %vm5568_vm2, %v6787_v19  ;;  %v9073_v45 = vpack.c.bf16 %v7065_v41, %v7064_v43  ;;  %v9087_v43 = vpack.c.bf16 %v7055_v38, %v7054_v37  ;;  %v7017_v38 = vld [vmem:[%s11482_s5 + $0x58] sm:$0xff] }
0x1981   :  { %7543 = vperm.xlu1 %9232, %v7517_v40   ;;  %v6741_v48 = vpop.permute.xlu0 %6740  ;;  %v7097_v57 = vld [vmem:[#allocation2 + $0x7f8] sm:$0xff] }
0x1982   :  { %9074 = vmatprep.subr.bf16.mxu0 %v9073_v45  ;;  %6761 = vst.msk [vmem:[#allocation2 + $0x438] sm:$0xff] %vm5568_vm2, %v6741_v48 }
0x1983   :  { %v6739_v29 = vpop.permute.xlu1 %6738  ;;  %v7096_v50 = vld [vmem:[#allocation2 + $0x7d0] sm:$0xff]  ;;  %9076 = vmatpush3.bf16.msra.mxu0 %v9075_v35  ;;  %7558 = vperm.xlu0 %9233, %v7520_v47  }
0x1984   :  { %6760 = vst.msk [vmem:[#allocation2 + $0x410] sm:$0xff] %vm5568_vm2, %v6739_v29  ;;  %v9105_v51 = vpack.c.bf16 %v7097_v57, %v7096_v50 }
0x1985   :  { %7553 = vperm.xlu1 %9232, %v7519_v49   ;;  %v6645_v52 = vpop.permute.xlu0 %6644  ;;  %v7081_v5 = vld [vmem:[#allocation2 + $0x578] sm:$0xff] }
0x1986   :  { %9106 = vmatprep.subr.bf16.mxu1 %v9105_v51  ;;  %6665 = vst.msk [vmem:[#allocation2 + $0x1b8] sm:$0xff] %vm5568_vm2, %v6645_v52 }
0x1987   :  { %v6643_v61 = vpop.permute.xlu1 %6642  ;;  %v7080_v62 = vld [vmem:[#allocation2 + $0x550] sm:$0xff] }
0x1988   :  { %6664 = vst.msk [vmem:[#allocation2 + $0x190] sm:$0xff] %vm5568_vm2, %v6643_v61  ;;  %v9107_v63 = vpack.c.bf16 %v7081_v5, %v7080_v62  ;;  %v7103_v61 = vld [vmem:[#allocation2 + $0x8e8] sm:$0xff] }
0x1989   :  { %v6933_v1 = vpop.permute.xlu0 %6932  ;;  %v7073_v19 = vld [vmem:[#allocation2 + $0x438] sm:$0xff] }
0x198a   :  { %9108 = vmatpush3.bf16.msra.mxu1 %v9107_v63  ;;  %6953 = vst.msk [vmem:[#allocation2 + $0x938] sm:$0xff] %vm5568_vm2, %v6933_v1 }
0x198b   :  { %v6931_v3 = vpop.permute.xlu1 %6930  ;;  %v7072_v41 = vld [vmem:[#allocation2 + $0x410] sm:$0xff] }
0x198c   :  { %6952 = vst.msk [vmem:[#allocation2 + $0x910] sm:$0xff] %vm5568_vm2, %v6931_v3  ;;  %v9089_v45 = vpack.c.bf16 %v7073_v19, %v7072_v41  ;;  %v7016_v19 = vld [vmem:[%s11482_s5 + $0x50] sm:$0xff] }
0x198d   :  { %v6837_v39 = vpop.permute.xlu0 %6836  ;;  %v7057_v48 = vld [vmem:[#allocation2 + $0x1b8] sm:$0xff] }
0x198e   :  { %6857 = vst.msk [vmem:[#allocation2 + $0x6b8] sm:$0xff] %vm5568_vm2, %v6837_v39  ;;  %v7102_v39 = vld [vmem:[#allocation2 + $0x8c0] sm:$0xff] }
0x198f   :  { %v6835_v42 = vpop.permute.xlu1 %6834  ;;  %v7056_v47 = vld [vmem:[#allocation2 + $0x190] sm:$0xff]  ;;  %v9117_v56 = vpack.c.bf16 %v7103_v61, %v7102_v39  ;;  %v7027_v61 = vld [vmem:[%s11482_s5 + $0xa8] sm:$0xff]  ;;  %v7026_v39 = vld [vmem:[%s11482_s5 + $0xa0] sm:$0xff] }
0x1990   :  { %6856 = vst.msk [vmem:[#allocation2 + $0x690] sm:$0xff] %vm5568_vm2, %v6835_v42  ;;  %v9091_v5 = vpack.c.bf16 %v7057_v48, %v7056_v47  ;;  %v7022_v47 = vld [vmem:[%s11482_s5 + $0x80] sm:$0xff] }
0x1991   :  { %v6697_v46 = vpop.permute.xlu0 %6696  ;;  %v7014_v48 = vld [vmem:[%s11482_s5 + $0x40] sm:$0xff] }
0x1992   :  { %6715 = vst.msk [vmem:[#allocation2 + $0x348] sm:$0xff] %vm5568_vm2, %v6697_v46 }
0x1993   :  { %v6695_v44 = vpop.permute.xlu1 %6694 }
0x1994   :  { %6714 = vst.msk [vmem:[#allocation2 + $0x320] sm:$0xff] %vm5568_vm2, %v6695_v44 }
0x1995   :  { %v6889_v0 = vpop.permute.xlu0 %6888 }
0x1996   :  { %6907 = vst.msk [vmem:[#allocation2 + $0x848] sm:$0xff] %vm5568_vm2, %v6889_v0 }
0x1997   :  { %v6887_v7 = vpop.permute.xlu1 %6886 }
0x1998   :  { %6906 = vst.msk [vmem:[#allocation2 + $0x820] sm:$0xff] %vm5568_vm2, %v6887_v7 }
0x1999   :  { %v6793_v6 = vpop.permute.xlu0 %6792  ;;  %v7067_v60 = vld [vmem:[#allocation2 + $0x348] sm:$0xff] }
0x199a   :  { %6811 = vst.msk [vmem:[#allocation2 + $0x5c8] sm:$0xff] %vm5568_vm2, %v6793_v6  ;;  %v7087_v6 = vld [vmem:[#allocation2 + $0x668] sm:$0xff] }
0x199b   :  { %v6791_v9 = vpop.permute.xlu1 %6790  ;;  %v7066_v12 = vld [vmem:[#allocation2 + $0x320] sm:$0xff] }
0x199c   :  { %6810 = vst.msk [vmem:[#allocation2 + $0x5a0] sm:$0xff] %vm5568_vm2, %v6791_v9  ;;  %v9077_v14 = vpack.c.bf16 %v7067_v60, %v7066_v12  ;;  %v7104_v9 = vld [vmem:[#allocation2 + $0x910] sm:$0xff]  ;;  %v7105_v12 = vld [vmem:[#allocation2 + $0x938] sm:$0xff] }
0x199d   :  { %v6745_v59 = vpop.permute.xlu0 %6744  ;;  %v7099_v15 = vld [vmem:[#allocation2 + $0x848] sm:$0xff] }
0x199e   :  { %9078 = vmatprep.subr.bf16.mxu0 %v9077_v14  ;;  %6763 = vst.msk [vmem:[#allocation2 + $0x488] sm:$0xff] %vm5568_vm2, %v6745_v59 }
0x199f   :  { %v6743_v16 = vpop.permute.xlu1 %6742  ;;  %v7098_v2 = vld [vmem:[#allocation2 + $0x820] sm:$0xff]  ;;  %9080 = vmatpush3.bf16.msra.mxu0 %v9079_v13 }
0x19a0   :  { %6762 = vst.msk [vmem:[#allocation2 + $0x460] sm:$0xff] %vm5568_vm2, %v6743_v16  ;;  %v9109_v8 = vpack.c.bf16 %v7099_v15, %v7098_v2  ;;  %v9119_v15 = vpack.c.bf16 %v7087_v6, %v7086_v54  ;;  %v9121_v2 = vpack.c.bf16 %v7105_v12, %v7104_v9  ;;  %v7031_v54 = vld [vmem:[%s11482_s5 + $0xc8] sm:$0xff]  ;;  %v7037_v9 = vld [vmem:[%s11482_s5 + $0xf8] sm:$0xff] }
0x19a1   :  { %v6649_v53 = vpop.permute.xlu0 %6648  ;;  %v7083_v55 = vld [vmem:[#allocation2 + $0x5c8] sm:$0xff]  ;;  %v7029_v12 = vld [vmem:[%s11482_s5 + $0xb8] sm:$0xff] }
0x19a2   :  { %9110 = vmatprep.subr.bf16.mxu1 %v9109_v8  ;;  %6667 = vst.msk [vmem:[#allocation2 + $0x208] sm:$0xff] %vm5568_vm2, %v6649_v53  ;;  %v7088_v8 = vld [vmem:[#allocation2 + $0x690] sm:$0xff]  ;;  %v7089_v53 = vld [vmem:[#allocation2 + $0x6b8] sm:$0xff]  ;;  %v7023_v6 = vld [vmem:[%s11482_s5 + $0x88] sm:$0xff] }
0x19a3   :  { %v6647_v4 = vpop.permute.xlu1 %6646  ;;  %v7082_v24 = vld [vmem:[#allocation2 + $0x5a0] sm:$0xff] }
0x19a4   :  { %6666 = vst.msk [vmem:[#allocation2 + $0x1e0] sm:$0xff] %vm5568_vm2, %v6647_v4  ;;  %v9111_v10 = vpack.c.bf16 %v7083_v55, %v7082_v24 }
0x19a5   :  { %v6937_v17 = vpop.permute.xlu0 %6936  ;;  %v7075_v49 = vld [vmem:[#allocation2 + $0x488] sm:$0xff] }
0x19a6   :  { %9112 = vmatpush3.bf16.msra.mxu1 %v9111_v10  ;;  %6955 = vst.msk [vmem:[#allocation2 + $0x988] sm:$0xff] %vm5568_vm2, %v6937_v17 }
0x19a7   :  { %v6935_v18 = vpop.permute.xlu1 %6934  ;;  %v7074_v29 = vld [vmem:[#allocation2 + $0x460] sm:$0xff] }
0x19a8   :  { %6954 = vst.msk [vmem:[#allocation2 + $0x960] sm:$0xff] %vm5568_vm2, %v6935_v18  ;;  %v9093_v63 = vpack.c.bf16 %v7075_v49, %v7074_v29 }
0x19a9   :  { %v6701_v21 = vpop.permute.xlu0 %6700  ;;  %v7059_v3 = vld [vmem:[#allocation2 + $0x208] sm:$0xff] }
0x19aa   :  { %6717 = vst.msk [vmem:[#allocation2 + $0x398] sm:$0xff] %vm5568_vm2, %v6701_v21 }
0x19ab   :  { %v6699_v22 = vpop.permute.xlu1 %6698  ;;  %v7058_v1 = vld [vmem:[#allocation2 + $0x1e0] sm:$0xff] }
0x19ac   :  { %6716 = vst.msk [vmem:[#allocation2 + $0x370] sm:$0xff] %vm5568_vm2, %v6699_v22  ;;  %v9095_v7 = vpack.c.bf16 %v7059_v3, %v7058_v1  ;;  %v9123_v22 = vpack.c.bf16 %v7089_v53, %v7088_v8  ;;  %v7041_v8 = vld [vmem:[%s11482_s5 + $0x118] sm:$0xff] }
0x19ad   :  { %v6893_v11 = vpop.permute.xlu0 %6892  ;;  %v7107_v24 = vld [vmem:[#allocation2 + $0x988] sm:$0xff]  ;;  %v7033_v53 = vld [vmem:[%s11482_s5 + $0xd8] sm:$0xff] }
0x19ae   :  { %6909 = vst.msk [vmem:[#allocation2 + $0x898] sm:$0xff] %vm5568_vm2, %v6893_v11 }
0x19af   :  { %v6839_v20 = vpop.permute.xlu1 %6838  ;;  %v7106_v4 = vld [vmem:[#allocation2 + $0x960] sm:$0xff] }
0x19b0   :  { %6858 = vst.msk [vmem:[#allocation2 + $0x6e0] sm:$0xff] %vm5568_vm2, %v6839_v20  ;;  %v9125_v11 = vpack.c.bf16 %v7107_v24, %v7106_v4  ;;  %v7010_v4 = vld [vmem:[%s11482_s5 + $0x20] sm:$0xff] }
0x19b1   :  { %v6797_v25 = vpop.permute.xlu0 %6796  ;;  %v7069_v23 = vld [vmem:[#allocation2 + $0x398] sm:$0xff]  ;;  %v7038_v24 = vld [vmem:[%s11482_s5 + $0x100] sm:$0xff] }
0x19b2   :  { %6813 = vst.msk [vmem:[#allocation2 + $0x618] sm:$0xff] %vm5568_vm2, %v6797_v25 }
0x19b3   :  { %v6891_v26 = vpop.permute.xlu1 %6890  ;;  %v7068_v31 = vld [vmem:[#allocation2 + $0x370] sm:$0xff] }
0x19b4   :  { %6908 = vst.msk [vmem:[#allocation2 + $0x870] sm:$0xff] %vm5568_vm2, %v6891_v26  ;;  %v9081_v34 = vpack.c.bf16 %v7069_v23, %v7068_v31  ;;  %v7012_v26 = vld [vmem:[%s11482_s5 + $0x30] sm:$0xff] }
0x19b5   :  { %v6749_v32 = vpop.permute.xlu0 %6748  ;;  %v7101_v51 = vld [vmem:[#allocation2 + $0x898] sm:$0xff] }
0x19b6   :  { %9082 = vmatprep.subr.bf16.mxu0 %v9081_v34  ;;  %6765 = vst.msk [vmem:[#allocation2 + $0x4d8] sm:$0xff] %vm5568_vm2, %v6749_v32  ;;  %v7011_v34 = vld [vmem:[%s11482_s5 + $0x28] sm:$0xff] }
0x19b7   :  { %9084 = vmatpush3.bf16.msra.mxu0 %v9083_v30  ;;  %v6795_v40 = vpop.permute.xlu1 %6794  ;;  %v7090_v23 = vld [vmem:[#allocation2 + $0x6e0] sm:$0xff] }
0x19b8   :  { %6812 = vst.msk [vmem:[#allocation2 + $0x5f0] sm:$0xff] %vm5568_vm2, %v6795_v40  ;;  %9086 = vmatprep.subr.bf16.mxu0 %v9085_v36 }
0x19b9   :  { %v6653_v35 = vpop.permute.xlu0 %6652  ;;  %v7085_v44 = vld [vmem:[#allocation2 + $0x618] sm:$0xff] }
0x19ba   :  { %6669 = vst.msk [vmem:[#allocation2 + $0x258] sm:$0xff] %vm5568_vm2, %v6653_v35 }
0x19bb   :  { %9088 = vmatpush3.bf16.msra.mxu0 %v9087_v43  ;;  %v6747_v57 = vpop.permute.xlu1 %6746  ;;  %v7100_v50 = vld [vmem:[#allocation2 + $0x870] sm:$0xff] }
0x19bc   :  { %6764 = vst.msk [vmem:[#allocation2 + $0x4b0] sm:$0xff] %vm5568_vm2, %v6747_v57  ;;  %9090 = vmatprep.subr.bf16.mxu0 %v9089_v45  ;;  %v9113_v52 = vpack.c.bf16 %v7101_v51, %v7100_v50  ;;  %v7008_v43 = vld [vmem:[%s11482_s5 + $0x10] sm:$0xff]  ;;  %v7021_v50 = vld [vmem:[%s11482_s5 + $0x78] sm:$0xff] }
0x19bd   :  { %v6841_v62 = vpop.permute.xlu0 %6840  ;;  %v7077_v59 = vld [vmem:[#allocation2 + $0x4d8] sm:$0xff] }
0x19be   :  { %9114 = vmatprep.subr.bf16.mxu1 %v9113_v52  ;;  %6859 = vst.msk [vmem:[#allocation2 + $0x708] sm:$0xff] %vm5568_vm2, %v6841_v62  ;;  %v7013_v51 = vld [vmem:[%s11482_s5 + $0x38] sm:$0xff]  ;;  %v7019_v62 = vld [vmem:[%s11482_s5 + $0x68] sm:$0xff] }
0x19bf   :  { %9092 = vmatpush3.bf16.msra.mxu0 %v9091_v5  ;;  %v6651_v42 = vpop.permute.xlu1 %6650  ;;  %v7084_v46 = vld [vmem:[#allocation2 + $0x5f0] sm:$0xff] }
0x19c0   :  { %6668 = vst.msk [vmem:[#allocation2 + $0x230] sm:$0xff] %vm5568_vm2, %v6651_v42  ;;  %9094 = vmatprep.subr.bf16.mxu0 %v9093_v63  ;;  %v9115_v0 = vpack.c.bf16 %v7085_v44, %v7084_v46  ;;  %v7018_v42 = vld [vmem:[%s11482_s5 + $0x60] sm:$0xff]  ;;  %v7032_v44 = vld [vmem:[%s11482_s5 + $0xd0] sm:$0xff] }
0x19c1   :  { %v6941_v60 = vpop.permute.xlu0 %6940  ;;  %v7061_v18 = vld [vmem:[#allocation2 + $0x258] sm:$0xff] }
0x19c2   :  { %9116 = vmatpush3.bf16.msra.mxu1 %v9115_v0  ;;  %6957 = vst.msk [vmem:[#allocation2 + $0x9d8] sm:$0xff] %vm5568_vm2, %v6941_v60  ;;  %v7024_v0 = vld [vmem:[%s11482_s5 + $0x90] sm:$0xff] }
0x19c3   :  { %9096 = vmatpush3.bf16.msra.mxu0 %v9095_v7  ;;  %9118 = vmatprep.subr.bf16.mxu1 %v9117_v56  ;;  %v6939_v13 = vpop.permute.xlu1 %6938  ;;  %v7076_v14 = vld [vmem:[#allocation2 + $0x4b0] sm:$0xff] }
0x19c4   :  { %6956 = vst.msk [vmem:[#allocation2 + $0x9b0] sm:$0xff] %vm5568_vm2, %v6939_v13  ;;  %v9097_v16 = vpack.c.bf16 %v7077_v59, %v7076_v14  ;;  %v7036_v59 = vld [vmem:[%s11482_s5 + $0xf0] sm:$0xff] }
0x19c5   :  { %v6845_v55 = vpop.permute.xlu0 %6844  ;;  %v7091_v20 = vld [vmem:[#allocation2 + $0x708] sm:$0xff] }
0x19c6   :  { %9120 = vmatpush3.bf16.msra.mxu1 %v9119_v15  ;;  %9098 = vmatprep.subr.bf16.mxu0 %v9097_v16  ;;  %6861 = vst.msk [vmem:[#allocation2 + $0x758] sm:$0xff] %vm5568_vm2, %v6845_v55  ;;  %v9127_v28 = vpack.c.bf16 %v7091_v20, %v7090_v23  ;;  %v7028_v15 = vld [vmem:[%s11482_s5 + $0xb0] sm:$0xff]  ;;  %v7042_v16 = vld [vmem:[%s11482_s5 + $0x120] sm:$0xff]  ;;  %v7039_v55 = vld [vmem:[%s11482_s5 + $0x108] sm:$0xff] }
0x19c7   :  { %9122 = vmatprep.subr.bf16.mxu1 %v9121_v2  ;;  %v6843_v10 = vpop.permute.xlu1 %6842  ;;  %v7060_v17 = vld [vmem:[#allocation2 + $0x230] sm:$0xff]  ;;  %v7034_v2 = vld [vmem:[%s11482_s5 + $0xe0] sm:$0xff] }
0x19c8   :  { %6860 = vst.msk [vmem:[#allocation2 + $0x730] sm:$0xff] %vm5568_vm2, %v6843_v10  ;;  %v9099_v21 = vpack.c.bf16 %v7061_v18, %v7060_v17  ;;  %v7015_v10 = vld [vmem:[%s11482_s5 + $0x48] sm:$0xff]  ;;  %v7044_v17 = vld [vmem:[%s11482_s5 + $0x130] sm:$0xff] }
0x19c9   :  { %v6977_v58 = vpop.permute.xlu0 %6976  ;;  %v7109_v25 = vld [vmem:[#allocation2 + $0x9d8] sm:$0xff]  ;;  %v7020_v18 = vld [vmem:[%s11482_s5 + $0x70] sm:$0xff] }
0x19ca   :  { %9100 = vmatpush3.bf16.msra.mxu0 %v9099_v21  ;;  %9124 = vmatpush3.bf16.msra.mxu1 %v9123_v22  ;;  %6999 = vst.msk [vmem:[#allocation2 + $0xa28] sm:$0xff] %vm5568_vm2, %v6977_v58  ;;  %v7043_v21 = vld [vmem:[%s11482_s5 + $0x128] sm:$0xff]  ;;  %v7025_v22 = vld [vmem:[%s11482_s5 + $0x98] sm:$0xff]  ;;  %v7040_v20 = vld [vmem:[%s11482_s5 + $0x110] sm:$0xff] }
0x19cb   :  { %9126 = vmatprep.subr.bf16.mxu1 %v9125_v11  ;;  %v7108_v31 = vld [vmem:[#allocation2 + $0x9b0] sm:$0xff]  ;;  %v6975_v30 = vpop.permute.xlu1 %6974  ;;  %v7030_v11 = vld [vmem:[%s11482_s5 + $0xc0] sm:$0xff]  ;;  %v7045_v58 = vld [vmem:[%s11482_s5 + $0x138] sm:$0xff] }
0x19cc   :  { %v9129_v33 = vpack.c.bf16 %v7109_v25, %v7108_v31  ;;  %6998 = vst.msk [vmem:[#allocation2 + $0xa00] sm:$0xff] %vm5568_vm2, %v6975_v30 }
0x19cd   :  { %7207 = vmatmul.mubr.f32.vlgmr.msra.gmra.mrb[72].mxu0 %v7006_v27  ;;  %v7093_v32 = vld [vmem:[#allocation2 + $0x758] sm:$0xff]  ;;  %v6981_v36 = vpop.permute.xlu0 %6980  ;;  %v7035_v27 = vld [vmem:[%s11482_s5 + $0xe8] sm:$0xff] }
0x19ce   :  { %9128 = vmatpush3.bf16.msra.mxu1 %v9127_v28  ;;  %7211 = vmatprep.mubr.f32.mxu0 %v7012_v26  ;;  %7001 = vst.msk [vmem:[#allocation2 + $0xa78] sm:$0xff] %vm5568_vm2, %v6981_v36 }
0x19cf   :  { %9130 = vmatprep.subr.bf16.mxu1 %v9129_v33  ;;  %v7092_v37 = vld [vmem:[#allocation2 + $0x730] sm:$0xff]  ;;  %v6979_v40 = vpop.permute.xlu1 %6978 }
0x19d0   :  { %v9131_v41 = vpack.c.bf16 %v7093_v32, %v7092_v37  ;;  %7000 = vst.msk [vmem:[#allocation2 + $0xa50] sm:$0xff] %vm5568_vm2, %v6979_v40 }
0x19d1   :  { %7212 = vmatmul.mubr.f32.gmra.mrb[74].mxu0 %v7011_v34  ;;  %v6985_v35 = vpop.permute.xlu0 %6984  ;;  %v7111_v45 = vld [vmem:[#allocation2 + $0xa28] sm:$0xff] }
0x19d2   :  { %9132 = vmatpush3.bf16.msra.mxu1 %v9131_v41  ;;  %7216 = vmatprep.mubr.f32.mxu0 %v7017_v38  ;;  %7003 = vst.msk [vmem:[#allocation2 + $0xac8] sm:$0xff] %vm5568_vm2, %v6985_v35 }
0x19d3   :  { %v6983_v49 = vpop.permute.xlu1 %6982  ;;  %v7110_v57 = vld [vmem:[#allocation2 + $0xa00] sm:$0xff] }
0x19d4   :  { %7002 = vst.msk [vmem:[#allocation2 + $0xaa0] sm:$0xff] %vm5568_vm2, %v6983_v49  ;;  %v9133_v29 = vpack.c.bf16 %v7111_v45, %v7110_v57 }
0x19d5   :  { %7217 = vmatmul.mubr.f32.gmra.mrb[76].mxu0 %v7016_v19  ;;  %7312 = vmatmul.mubr.f32.vlgmr.msra.gmra.mrb[90].mxu1 %v7008_v43  ;;  %v6989_v52 = vpop.permute.xlu0 %6988  ;;  %v7113_v5 = vld [vmem:[#allocation2 + $0xa78] sm:$0xff] }
0x19d6   :  { %7221 = vmatprep.mubr.f32.mxu0 %v7022_v47  ;;  %7316 = vmatprep.mubr.f32.mxu1 %v7014_v48  ;;  %7005 = vst.msk [vmem:[#allocation2 + $0xb18] sm:$0xff] %vm5568_vm2, %v6989_v52 }
0x19d7   :  { %9134 = vmatprep.subr.bf16.mxu0 %v9133_v29  ;;  %9149 = vmatprep.subr.bf16.mxu1 %v9133_v29  ;;  %v6987_v63 = vpop.permute.xlu1 %6986  ;;  %v7112_v1 = vld [vmem:[#allocation2 + $0xa50] sm:$0xff] }
0x19d8   :  { %9136 = vmatpush3.bf16.msra.mxu0 %v9133_v29  ;;  %9153 = vmatpush3.bf16.msra.mxu1 %v9133_v29  ;;  %7004 = vst.msk [vmem:[#allocation2 + $0xaf0] sm:$0xff] %vm5568_vm2, %v6987_v63  ;;  %v9137_v3 = vpack.c.bf16 %v7113_v5, %v7112_v1 }
0x19d9   :  { %7222 = vmatmul.mubr.f32.gmra.mrb[78].mxu0 %v7021_v50  ;;  %7317 = vmatmul.mubr.f32.gmra.mrb[92].mxu1 %v7013_v51  ;;  %v7115_v46 = vld [vmem:[#allocation2 + $0xac8] sm:$0xff] }
0x19da   :  { %7226 = vmatprep.mubr.f32.mxu0 %v7027_v61  ;;  %7321 = vmatprep.mubr.f32.mxu1 %v7019_v62 }
0x19db   :  { %9138 = vmatprep.subr.bf16.mxu0 %v9137_v3  ;;  %9150 = vmatprep.subr.bf16.mxu1 %v9137_v3  ;;  %v7114_v7 = vld [vmem:[#allocation2 + $0xaa0] sm:$0xff] }
0x19dc   :  { %9140 = vmatpush3.bf16.msra.mxu0 %v9137_v3  ;;  %9154 = vmatpush3.bf16.msra.mxu1 %v9137_v3  ;;  %v9141_v56 = vpack.c.bf16 %v7115_v46, %v7114_v7 }
0x19dd   :  { %7227 = vmatmul.mubr.f32.gmra.mrb[80].mxu0 %v7026_v39  ;;  %7322 = vmatmul.mubr.f32.gmra.mrb[94].mxu1 %v7018_v42  ;;  %v7117_v60 = vld [vmem:[#allocation2 + $0xb18] sm:$0xff] }
0x19de   :  { %7231 = vmatprep.mubr.f32.mxu0 %v7032_v44  ;;  %7326 = vmatprep.mubr.f32.mxu1 %v7024_v0 }
0x19df   :  { %9142 = vmatprep.subr.bf16.mxu0 %v9141_v56  ;;  %v7116_v13 = vld [vmem:[#allocation2 + $0xaf0] sm:$0xff]  ;;  %9151 = vmatprep.subr.bf16.mxu1 %v9141_v56 }
0x19e0   :  { %9144 = vmatpush3.bf16.msra.mxu0 %v9141_v56  ;;  %v9145_v14 = vpack.c.bf16 %v7117_v60, %v7116_v13  ;;  %9155 = vmatpush3.bf16.msra.mxu1 %v9141_v56 }
0x19e1   :  { %7232 = vmatmul.mubr.f32.gmra.mrb[82].mxu0 %v7031_v54  ;;  %7327 = vmatmul.mubr.f32.gmra.mrb[96].mxu1 %v7023_v6 }
0x19e2   :  { %7236 = vmatprep.mubr.f32.mxu0 %v7037_v9  ;;  %7331 = vmatprep.mubr.f32.mxu1 %v7029_v12 }
0x19e3   :  { %9146 = vmatprep.subr.bf16.mxu0 %v9145_v14  ;;  %9152 = vmatprep.subr.bf16.mxu1 %v9145_v14 }
0x19e4   :  { %9148 = vmatpush3.bf16.msra.mxu0 %v9145_v14  ;;  %9156 = vmatpush3.bf16.msra.mxu1 %v9145_v14 }
0x19e5   :  { %7237 = vmatmul.mubr.f32.gmra.mrb[84].mxu0 %v7036_v59  ;;  %7332 = vmatmul.mubr.f32.gmra.mrb[98].mxu1 %v7028_v15 }
0x19e6   :  { %7241 = vmatprep.mubr.f32.mxu0 %v7042_v16  ;;  %7336 = vmatprep.mubr.f32.mxu1 %v7034_v2  ;;  %v11654_v25 = vpop.permute.xlu0 %7472 }
0x19e8   :  { %v11656_v23 = vpop.permute.xlu1 %7467 }
0x19e9   :  { %7242 = vmatmul.mubr.f32.gmra.mrb[86].mxu0 %v7041_v8  ;;  %7337 = vmatmul.mubr.f32.gmra.mrb[100].mxu1 %v7033_v53 }
0x19ea   :  { %7341 = vmatprep.mubr.f32.mxu1 %v7039_v55  ;;  %8454 = vmatprep.mubr.msk.f32.mxu0 %vm4866_vm15, %v7010_v4  ;;  %v11658_v26 = vpop.permute.xlu0 %7482 }
0x19ec   :  { %v11660_v30 = vpop.permute.xlu1 %7477 }
0x19ed   :  { %7342 = vmatmul.mubr.f32.gmra.mrb[102].mxu1 %v7038_v24  ;;  %8455 = vmatmul.mubr.msk.f32.vlgmr.msra.gmra.mrb[88].mxu0 %vm4866_vm15, %v7015_v10 }
0x19ee   :  { %7346 = vmatprep.mubr.f32.mxu1 %v7044_v17  ;;  %8457 = vmatprep.mubr.msk.f32.mxu0 %vm4866_vm15, %v7020_v18  ;;  %v11662_v37 = vpop.permute.xlu0 %7492 }
0x19f0   :  { %v11664_v38 = vpop.permute.xlu1 %7487 }
0x19f1   :  { %7347 = vmatmul.mubr.f32.gmra.mrb[104].mxu1 %v7043_v21  ;;  %8458 = vmatmul.mubr.msk.f32.gmra.mrb[90].mxu0 %vm4866_vm15, %v7025_v22 }
0x19f2   :  { %8460 = vmatprep.mubr.msk.f32.mxu0 %vm4866_vm15, %v7030_v11  ;;  %8463 = vmatprep.mubr.msk.f32.mxu1 %vm4866_vm15, %v7040_v20  ;;  %v11666_v52 = vpop.permute.xlu0 %7502 }
0x19f4   :  { %v11668_v5 = vpop.permute.xlu1 %7497 }
0x19f5   :  { %8461 = vmatmul.mubr.msk.f32.gmra.mrb[92].mxu0 %vm4866_vm15, %v7035_v27  ;;  %8464 = vmatmul.mubr.msk.f32.vlgmr.msra.gmra.mrb[106].mxu1 %vm4866_vm15, %v7045_v58 }
0x19f6   :  { %v7529_v60 = vpop.permute.xlu0 %7528 }
0x19f8   :  { %v7524_v9 = vpop.permute.xlu1 %7523 }
0x19fa   :  { %v7539_v18 = vpop.permute.xlu0 %7538 }
0x19fc   :  { %v7534_v21 = vpop.permute.xlu1 %7533 }
0x1aa0   :  { %v8172_v31 = vpop.f32.mrb[72].mxu0 }
0x1aa1   :  { %v8173_v28 = vpop.f32.mrb[73].mxu0 }
0x1aa2   :  { %v8174_v33 = vadd.f32 %v8173_v28, %v8172_v31 }
0x1aa4   :  { %v8175_v34 = vpop.f32.mrb[74].mxu0 }
0x1aa5   :  { %v8176_v32 = vpop.f32.mrb[75].mxu0 }
0x1aa6   :  { %v8177_v36 = vadd.f32 %v8176_v32, %v8175_v34 }
0x1aa8   :  { %v8228_v40 = vpop.f32.mrb[90].mxu1  ;;  %v8178_v41 = vpop.f32.mrb[76].mxu0 }
0x1aa9   :  { %v8229_v19 = vpop.f32.mrb[91].mxu1  ;;  %v8179_v43 = vpop.f32.mrb[77].mxu0 }
0x1aaa   :  { %v8230_v35 = vadd.f32 %v8229_v19, %v8228_v40  ;;  %v8180_v45 = vadd.f32 %v8179_v43, %v8178_v41 }
0x1aac   :  { %v8231_v47 = vpop.f32.mrb[92].mxu1  ;;  %v8181_v48 = vpop.f32.mrb[78].mxu0  ;;  %v7314_v49 = vadd.f32 %v8230_v35, %v8174_v33 }
0x1aad   :  { %v8232_v57 = vpop.f32.mrb[93].mxu1  ;;  %v8182_v29 = vpop.f32.mrb[79].mxu0 }
0x1aae   :  { %v8233_v50 = vadd.f32 %v8232_v57, %v8231_v47  ;;  %v8183_v51 = vadd.f32 %v8182_v29, %v8181_v48  ;;  %v7549_v29 = vpop.permute.xlu0 %7548 }
0x1ab0   :  { %v8184_v61 = vpop.f32.mrb[80].mxu0  ;;  %v8234_v62 = vpop.f32.mrb[94].mxu1  ;;  %v7319_v63 = vadd.f32 %v8233_v50, %v8177_v36 }
0x1ab1   :  { %v8185_v1 = vpop.f32.mrb[81].mxu0  ;;  %v8235_v3 = vpop.f32.mrb[95].mxu1 }
0x1ab2   :  { %v8186_v39 = vadd.f32 %v8185_v1, %v8184_v61  ;;  %v8236_v42 = vadd.f32 %v8235_v3, %v8234_v62  ;;  %v7544_v50 = vpop.permute.xlu1 %7543 }
0x1ab4   :  { %v8187_v46 = vpop.f32.mrb[82].mxu0  ;;  %v8237_v44 = vpop.f32.mrb[96].mxu1  ;;  %v7324_v0 = vadd.f32 %v8236_v42, %v8180_v45 }
0x1ab5   :  { %v8188_v7 = vpop.f32.mrb[83].mxu0  ;;  %v8238_v56 = vpop.f32.mrb[97].mxu1 }
0x1ab6   :  { %v8189_v54 = vadd.f32 %v8188_v7, %v8187_v46  ;;  %v8239_v6 = vadd.f32 %v8238_v56, %v8237_v44 }
0x1ab8   :  { %v8190_v12 = vpop.f32.mrb[84].mxu0  ;;  %v8240_v13 = vpop.f32.mrb[98].mxu1  ;;  %v7329_v14 = vadd.f32 %v8239_v6, %v8183_v51 }
0x1ab9   :  { %v8191_v59 = vpop.f32.mrb[85].mxu0  ;;  %v8241_v15 = vpop.f32.mrb[99].mxu1 }
0x1aba   :  { %v8192_v16 = vadd.f32 %v8191_v59, %v8190_v12  ;;  %v8242_v2 = vadd.f32 %v8241_v15, %v8240_v13  ;;  %v7554_v12 = vpop.permute.xlu1 %7553 }
0x1abc   :  { %v8193_v8 = vpop.f32.mrb[86].mxu0  ;;  %v8243_v53 = vpop.f32.mrb[100].mxu1  ;;  %v7334_v55 = vadd.f32 %v8242_v2, %v8186_v39 }
0x1abd   :  { %v8194_v4 = vpop.f32.mrb[87].mxu0  ;;  %v8244_v24 = vpop.f32.mrb[101].mxu1 }
0x1abe   :  { %v8195_v10 = vadd.f32 %v8194_v4, %v8193_v8  ;;  %v8245_v17 = vadd.f32 %v8244_v24, %v8243_v53 }
0x1ac0   :  { %v8456_v22 = vpop.f32.mrb[88].mxu0  ;;  %v8246_v11 = vpop.f32.mrb[102].mxu1  ;;  %v7339_v20 = vadd.f32 %v8245_v17, %v8189_v54 }
0x1ac1   :  { %v7424_v27 = vadd.f32 %v8456_v22, %v7319_v63  ;;  %v7418_v58 = vpop.f32.mrb[89].mxu0  ;;  %v8247_v31 = vpop.f32.mrb[103].mxu1 }
0x1ac2   :  { %v7419_v28 = vadd.f32 %v7418_v58, %v7314_v49  ;;  %v8248_v33 = vadd.f32 %v8247_v31, %v8246_v11 }
0x1ac3   :  { %v7506_v34 = vmul.f32 %v11654_v25, %v7424_v27 }
0x1ac4   :  { %v7505_v32 = vmul.f32 %v11656_v23, %v7419_v28  ;;  %v8249_v36 = vpop.f32.mrb[104].mxu1  ;;  %v8459_v40 = vpop.f32.mrb[90].mxu0  ;;  %v7344_v41 = vadd.f32 %v8248_v33, %v8192_v16 }
0x1ac5   :  { %v7562_v19 = vadd.f32 %v7529_v60, %v7506_v34  ;;  %v7434_v43 = vadd.f32 %v8459_v40, %v7329_v14  ;;  %v8250_v35 = vpop.f32.mrb[105].mxu1  ;;  %v7428_v45 = vpop.f32.mrb[91].mxu0 }
0x1ac6   :  { %v7561_v47 = vadd.f32 %v7524_v9, %v7505_v32  ;;  %v8251_v48 = vadd.f32 %v8250_v35, %v8249_v36  ;;  %v7429_v57 = vadd.f32 %v7428_v45, %v7324_v0  ;;  %v7559_v9 = vpop.permute.xlu0 %7558 }
0x1ac7   :  { %v7570_v49 = vmax.f32 %v7562_v19, 0.0  ;;  %v7508_v51 = vmul.f32 %v11658_v26, %v7434_v43 }
0x1ac8   :  { %v7569_v25 = vmax.f32 %v7561_v47, 0.0  ;;  %v7507_v23 = vmul.f32 %v11660_v30, %v7429_v57  ;;  %v8462_v61 = vpop.f32.mrb[92].mxu0  ;;  %v7349_v62 = vadd.f32 %v8251_v48, %v8195_v10  ;;  %v8465_v63 = vpop.f32.mrb[106].mxu1 }
0x1ac9   :  { %7578 = vst.msk [vmem:[%s11673_s1 + $0x8] sm:$0xff] %vm5568_vm2, %v7570_v49  ;;  %v7564_v1 = vadd.f32 %v7539_v18, %v7508_v51  ;;  %v7444_v3 = vadd.f32 %v8462_v61, %v7339_v20  ;;  %v7438_v39 = vpop.f32.mrb[93].mxu0  ;;  %v7448_v42 = vpop.f32.mrb[107].mxu1 }
0x1aca   :  { %7577 = vst.msk [vmem:[%s11673_s1] sm:$0xff] %vm5568_vm2, %v7569_v25  ;;  %v7563_v46 = vadd.f32 %v7534_v21, %v7507_v23  ;;  %v7454_v44 = vadd.f32 %v8465_v63, %v7349_v62  ;;  %v7439_v0 = vadd.f32 %v7438_v39, %v7334_v55  ;;  %v7449_v26 = vadd.f32 %v7448_v42, %v7344_v41 }
0x1acb   :  { %v7572_v7 = vmax.f32 %v7564_v1, 0.0  ;;  %v7510_v30 = vmul.f32 %v11662_v37, %v7444_v3 }
0x1acc   :  { %v7571_v56 = vmax.f32 %v7563_v46, 0.0  ;;  %v7512_v54 = vmul.f32 %v11666_v52, %v7454_v44  ;;  %v7509_v6 = vmul.f32 %v11664_v38, %v7439_v0  ;;  %v7511_v60 = vmul.f32 %v11668_v5, %v7449_v26 }
0x1acd   :  { %7580 = vst.msk [vmem:[%s11673_s1 + $0x18] sm:$0xff] %vm5568_vm2, %v7572_v7  ;;  %v7566_v13 = vadd.f32 %v7549_v29, %v7510_v30 }
0x1ace   :  { %7579 = vst.msk [vmem:[%s11673_s1 + $0x10] sm:$0xff] %vm5568_vm2, %v7571_v56  ;;  %v7568_v14 = vadd.f32 %v7559_v9, %v7512_v54  ;;  %v7565_v37 = vadd.f32 %v7544_v50, %v7509_v6  ;;  %v7567_v59 = vadd.f32 %v7554_v12, %v7511_v60 }
0x1acf   :  { %v7574_v15 = vmax.f32 %v7566_v13, 0.0 }
0x1ad0   :  { %v7576_v16 = vmax.f32 %v7568_v14, 0.0  ;;  %v7573_v52 = vmax.f32 %v7565_v37, 0.0  ;;  %v7575_v2 = vmax.f32 %v7567_v59, 0.0 }
0x1ad1   :  { %7582 = vst.msk [vmem:[%s11673_s1 + $0x28] sm:$0xff] %vm5568_vm2, %v7574_v15 }
0x1ad2   :  { %7584 = vst.msk [vmem:[%s11673_s1 + $0x38] sm:$0xff] %vm5568_vm2, %v7576_v16  ;;  %7581 = vst.msk [vmem:[%s11673_s1 + $0x20] sm:$0xff] %vm5568_vm2, %v7573_v52 }
0x1ad3   :  { %7583 = vst.msk [vmem:[%s11673_s1 + $0x30] sm:$0xff] %vm5568_vm2, %v7575_v2 }

</bundles_post_ra>
